<compile_context>
chip_gen: v7x
topology: tpu7x:2x2x1
jax: 0.10.0
libtpu: 0.0.40
codegen_flags: <defaults>
</compile_context>

<pallas_src>
import math

import jax
import jax.numpy as jnp
from jax.experimental import pallas as pl
from jax.experimental.pallas import tpu as pltpu


def lstm_ae_kernel(x_ref,
                   wih_e_ref, whh_e_ref, b_e_ref,
                   wih_d_ref, whh_d_ref, b_d_ref,
                   wout_ref, bout_ref,
                   w1_ref, b1_ref, w2_ref, b2_ref,
                   xhat_ref, cls_ref,
                   hds_ref):
    B, S, I = x_ref.shape
    Hp = whh_e_ref.shape[0]          # gate-padded hidden width (multiple of 128)

    def gate_step(pre, h, c, whh):
        # pre already contains x-projection + (b_ih + b_hh); only the recurrent
        # matmul lives on the serial chain.  Gate slices are 128-lane aligned.
        gates = pre + jnp.dot(h, whh, preferred_element_type=jnp.float32)
        i_g = jax.nn.sigmoid(gates[:, 0 * Hp:1 * Hp])
        f_g = jax.nn.sigmoid(gates[:, 1 * Hp:2 * Hp])
        g_g = jnp.tanh(gates[:, 2 * Hp:3 * Hp])
        o_g = jax.nn.sigmoid(gates[:, 3 * Hp:4 * Hp])
        c_new = f_g * c + i_g * g_g
        h_new = o_g * jnp.tanh(c_new)
        return h_new, c_new

    # ---------------- Encoder LSTM ----------------
    x = x_ref[...].astype(jnp.float32)
    # Batched input projection: one matmul for all S steps (off the critical path).
    xg_e = (jnp.dot(x.reshape(B * S, I), wih_e_ref[...],
                    preferred_element_type=jnp.float32)
            + b_e_ref[...]).reshape(B, S, 4 * Hp)

    whh_e = whh_e_ref[...]
    h = jnp.zeros((B, Hp), jnp.float32)
    c = jnp.zeros((B, Hp), jnp.float32)
    # TODO(synk): for larger S (e.g. 28 for per-row MNIST) switch these static
    # unrolls to lax.fori_loop(..., unroll=True) to bound live ranges.
    for t in range(S):
        h, c = gate_step(xg_e[:, t, :], h, c, whh_e)
    h_enc = h

    # ---------------- Decoder LSTM (input = h_enc every step) -------
    # Input projection is loop-invariant -> compute once (includes bias).
    xg_d = (jnp.dot(h_enc, wih_d_ref[...], preferred_element_type=jnp.float32)
            + b_d_ref[...])
    whh_d = whh_d_ref[...]
    hd = jnp.zeros((B, Hp), jnp.float32)
    cd = jnp.zeros((B, Hp), jnp.float32)
    for t in range(S):
        hd, cd = gate_step(xg_d, hd, cd, whh_d)
        hds_ref[:, t, :] = hd            # stash hidden; output head applied once below

    # ---------------- Output head, once over all timesteps ----------
    hds = hds_ref[...]                                   # (B, S, Hp)
    y = jnp.sum(hds * wout_ref[...], axis=-1) + bout_ref[...]   # (B, S)
    xhat_ref[...] = y.astype(xhat_ref.dtype)

    # ---------------- Classification heads --------------------------
    # TODO(synk): nn.Dropout(p=0.1) is stochastic in train mode; eval-mode identity here.
    lin = jnp.dot(hd, w1_ref[...], preferred_element_type=jnp.float32) + b1_ref[...]
    lin = jnp.dot(lin, w2_ref[...], preferred_element_type=jnp.float32) + b2_ref[...]
    cls_ref[...] = lin.astype(cls_ref.dtype)


def _pad_gates(w_t, H, Hp):
    """(K, 4H) -> (K, 4Hp): zero-pad each of the 4 gate blocks to Hp lanes."""
    K = w_t.shape[0]
    w = w_t.reshape(K, 4, H)
    w = jnp.pad(w, ((0, 0), (0, 0), (0, Hp - H)))
    return w.reshape(K, 4 * Hp)


def mnist_lstm_autoencoder(x, params, seq_size, input_size):
    B = x.shape[0]
    x = x.reshape(B, seq_size, input_size).astype(jnp.float32)

    H = params["whh_enc"].shape[1]           # (4H, H)
    C = params["w1"].shape[0]                # (C, H)

    LANE, SUB = 128, 8
    Hp = ((H + LANE - 1) // LANE) * LANE     # per-gate lane padding
    Cp = ((C + LANE - 1) // LANE) * LANE     # lane-dense classifier output
    Bp = ((B + SUB - 1) // SUB) * SUB        # sublane padding of the batch

    # Pad batch with zero rows (sliced back after the kernel).
    x_p = jnp.pad(x, ((0, Bp - B), (0, 0), (0, 0)))

    # Encoder weights (pre-transposed, per-gate lane-padded).
    wih_e = _pad_gates(params["wih_enc"].T, H, Hp)                               # (I, 4Hp)
    whh_e = jnp.pad(_pad_gates(params["whh_enc"].T, H, Hp), ((0, Hp - H), (0, 0)))  # (Hp, 4Hp)
    b_e = _pad_gates((params["bih_enc"] + params["bhh_enc"]).reshape(1, -1), H, Hp)  # (1, 4Hp)

    # Decoder weights.
    wih_d = jnp.pad(_pad_gates(params["wih_dec"].T, H, Hp), ((0, Hp - H), (0, 0)))
    whh_d = jnp.pad(_pad_gates(params["whh_dec"].T, H, Hp), ((0, Hp - H), (0, 0)))
    b_d = _pad_gates((params["bih_dec"] + params["bhh_dec"]).reshape(1, -1), H, Hp)

    # Decoder output layer Linear(H, 1): kept as a row for a VPU multiply+reduce.
    wout = jnp.pad(params["wout"], ((0, 0), (0, Hp - H)))            # (1, Hp)
    bout = params["bout"].reshape(1, 1)                              # (1, 1)

    # Classifier heads, padded to lane-dense Cp.
    w1 = jnp.pad(params["w1"].T, ((0, Hp - H), (0, Cp - C)))         # (Hp, Cp)
    b1 = jnp.pad(params["b1"].reshape(1, -1), ((0, 0), (0, Cp - C)))
    w2 = jnp.pad(params["w2"].T, ((0, Cp - C), (0, Cp - C)))         # (Cp, Cp)
    b2 = jnp.pad(params["b2"].reshape(1, -1), ((0, 0), (0, Cp - C)))

    args = (x_p, wih_e, whh_e, b_e, wih_d, whh_d, b_d,
            wout, bout, w1, b1, w2, b2)

    vmem = pl.BlockSpec(memory_space=pltpu.MemorySpace.VMEM)
    out_shape = (jax.ShapeDtypeStruct((Bp, seq_size), jnp.float32),   # xhat (dense slab)
                 jax.ShapeDtypeStruct((Bp, Cp), jnp.float32))         # logits (lane-dense)

    # TODO(synk): for large MNIST batches (>=256) add a batch grid with
    # dimension_semantics=("parallel",) so v7x's 2 TensorCores split the work.
    xhat_p, cls_p = pl.pallas_call(
        lstm_ae_kernel,
        out_shape=out_shape,
        in_specs=[vmem] * len(args),
        out_specs=(vmem, vmem),
        scratch_shapes=[pltpu.VMEM((Bp, seq_size, Hp), jnp.float32)],  # decoder hiddens
    )(*args)

    x_hat = xhat_p[:B, :, None]        # (B, S, 1) — matches PyTorch output_layer(z)
    logits = cls_p[:B, :C]             # (B, C)
    return x_hat, logits


def init_params(key, input_size, hidden, n_classes):
    """Deterministic init mimicking PyTorch's uniform(-1/sqrt(fan), 1/sqrt(fan))."""
    ks = jax.random.split(key, 14)
    kH = 1.0 / math.sqrt(hidden)

    def u(k, shape, bound):
        return jax.random.uniform(k, shape, jnp.float32, -bound, bound)

    return {
        # encoder LSTM: input_size -> hidden
        "wih_enc": u(ks[0], (4 * hidden, input_size), kH),
        "whh_enc": u(ks[1], (4 * hidden, hidden), kH),
        "bih_enc": u(ks[2], (4 * hidden,), kH),
        "bhh_enc": u(ks[3], (4 * hidden,), kH),
        # decoder LSTM: hidden -> hidden
        "wih_dec": u(ks[4], (4 * hidden, hidden), kH),
        "whh_dec": u(ks[5], (4 * hidden, hidden), kH),
        "bih_dec": u(ks[6], (4 * hidden,), kH),
        "bhh_dec": u(ks[7], (4 * hidden,), kH),
        # decoder output layer: Linear(hidden, 1)
        "wout": u(ks[8], (1, hidden), kH),
        "bout": u(ks[9], (1,), kH),
        # class_head_1: Linear(hidden, n_classes)
        "w1": u(ks[10], (n_classes, hidden), kH),
        "b1": u(ks[11], (n_classes,), kH),
        # class_head_2: Linear(n_classes, n_classes)
        "w2": u(ks[12], (n_classes, n_classes), 1.0 / math.sqrt(n_classes)),
        "b2": u(ks[13], (n_classes,), 1.0 / math.sqrt(n_classes)),
    }


def _reference(x, params, S, I):
    """Pure-JAX forward matching the PyTorch module (eval mode)."""
    B = x.shape[0]
    x = x.reshape(B, S, I)
    H = params["whh_enc"].shape[1]

    def cell(x_t, h, c, wih, whh, bih, bhh):
        g = x_t @ wih.T + h @ whh.T + bih + bhh
        i = jax.nn.sigmoid(g[:, 0 * H:1 * H])
        f = jax.nn.sigmoid(g[:, 1 * H:2 * H])
        gg = jnp.tanh(g[:, 2 * H:3 * H])
        o = jax.nn.sigmoid(g[:, 3 * H:4 * H])
        c = f * c + i * gg
        return o * jnp.tanh(c), c

    h = jnp.zeros((B, H)); c = jnp.zeros((B, H))
    for t in range(S):
        h, c = cell(x[:, t], h, c, params["wih_enc"], params["whh_enc"],
                    params["bih_enc"], params["bhh_enc"])
    h_enc = h
    hd = jnp.zeros((B, H)); cd = jnp.zeros((B, H))
    ys = []
    for t in range(S):
        hd, cd = cell(h_enc, hd, cd, params["wih_dec"], params["whh_dec"],
                      params["bih_dec"], params["bhh_dec"])
        ys.append(hd @ params["wout"].T + params["bout"])
    x_hat = jnp.stack(ys, axis=1)                               # (B, S, 1)
    lin = hd @ params["w1"].T + params["b1"]
    lin = lin @ params["w2"].T + params["b2"]
    return x_hat, lin


if __name__ == "__main__":
    B, S, I, H, C = 2, 8, 16, 32, 10

    key = jax.random.PRNGKey(0)
    k_params, k_x = jax.random.split(key)
    params = init_params(k_params, input_size=I, hidden=H, n_classes=C)
    x = jax.random.normal(k_x, (B, S, I), jnp.float32)

    x_hat, logits = mnist_lstm_autoencoder(x, params, seq_size=S, input_size=I)
    jax.block_until_ready((x_hat, logits))

    assert x_hat.shape == (B, S, 1), x_hat.shape
    assert logits.shape == (B, C), logits.shape
    assert jnp.all(jnp.isfinite(x_hat)) and jnp.all(jnp.isfinite(logits))

    # correctness vs pure-JAX reference of the PyTorch forward
    x_hat_ref, logits_ref = _reference(x, params, S, I)
    assert jnp.allclose(x_hat, x_hat_ref, rtol=1e-4, atol=1e-4)
    assert jnp.allclose(logits, logits_ref, rtol=1e-4, atol=1e-4)

    print("KERNEL_OK")
</pallas_src>

<mosaic_0001>
module attributes {stable_mosaic.version = 11 : i64} {
  func.func @lstm_ae_kernel(%arg0: memref<8x8x16xf32, #tpu.memory_space<vmem>>, %arg1: memref<16x512xf32, #tpu.memory_space<vmem>>, %arg2: memref<128x512xf32, #tpu.memory_space<vmem>>, %arg3: memref<1x512xf32, #tpu.memory_space<vmem>>, %arg4: memref<128x512xf32, #tpu.memory_space<vmem>>, %arg5: memref<128x512xf32, #tpu.memory_space<vmem>>, %arg6: memref<1x512xf32, #tpu.memory_space<vmem>>, %arg7: memref<1x128xf32, #tpu.memory_space<vmem>>, %arg8: memref<1x1xf32, #tpu.memory_space<vmem>>, %arg9: memref<128x128xf32, #tpu.memory_space<vmem>>, %arg10: memref<1x128xf32, #tpu.memory_space<vmem>>, %arg11: memref<128x128xf32, #tpu.memory_space<vmem>>, %arg12: memref<1x128xf32, #tpu.memory_space<vmem>>, %arg13: memref<8x8xf32, #tpu.memory_space<vmem>>, %arg14: memref<8x128xf32, #tpu.memory_space<vmem>>, %arg15: memref<8x8x128xf32, #tpu.memory_space<vmem>>) attributes {dimension_semantics = [], scalar_prefetch = 0 : i64, scratch_operands = 1 : i64, tpu.core_type = #tpu.core_type<tc>} {
    %c0 = arith.constant 0 : index
    %c0_0 = arith.constant 0 : index
    %c0_1 = arith.constant 0 : index
    %0 = vector.load %arg0[%c0, %c0_0, %c0_1] : memref<8x8x16xf32, #tpu.memory_space<vmem>>, vector<8x8x16xf32>
    %1 = vector.shape_cast %0 : vector<8x8x16xf32> to vector<64x16xf32>
    %c0_2 = arith.constant 0 : index
    %c0_3 = arith.constant 0 : index
    %2 = vector.load %arg1[%c0_2, %c0_3] : memref<16x512xf32, #tpu.memory_space<vmem>>, vector<16x512xf32>
    %cst = arith.constant dense<0.000000e+00> : vector<64x512xf32>
    %3 = tpu.matmul %1, %2, %cst {dimension_numbers = #tpu.dot_dimension_numbers<[1], [0], [0], [1], [0, 0, 1, 1], [], []>} : vector<64x16xf32>, vector<16x512xf32>, vector<64x512xf32> -> vector<64x512xf32>
    %c0_4 = arith.constant 0 : index
    %c0_5 = arith.constant 0 : index
    %4 = vector.load %arg3[%c0_4, %c0_5] : memref<1x512xf32, #tpu.memory_space<vmem>>, vector<1x512xf32>
    %5 = vector.broadcast %4 : vector<1x512xf32> to vector<64x512xf32>
    %6 = arith.addf %3, %5 : vector<64x512xf32>
    %7 = vector.shape_cast %6 : vector<64x512xf32> to vector<8x8x512xf32>
    %c0_6 = arith.constant 0 : index
    %c0_7 = arith.constant 0 : index
    %8 = vector.load %arg2[%c0_6, %c0_7] : memref<128x512xf32, #tpu.memory_space<vmem>>, vector<128x512xf32>
    %cst_8 = arith.constant 0.000000e+00 : f32
    %9 = vector.broadcast %cst_8 : f32 to vector<8x128xf32>
    %cst_9 = arith.constant 0.000000e+00 : f32
    %10 = vector.broadcast %cst_9 : f32 to vector<8x128xf32>
    %11 = vector.extract_strided_slice %7 {offsets = [0, 0, 0], sizes = [8, 1, 512], strides = [1, 1, 1]} : vector<8x8x512xf32> to vector<8x1x512xf32>
    %12 = vector.shape_cast %11 : vector<8x1x512xf32> to vector<8x512xf32>
    %cst_10 = arith.constant dense<0.000000e+00> : vector<8x512xf32>
    %13 = tpu.matmul %9, %8, %cst_10 {dimension_numbers = #tpu.dot_dimension_numbers<[1], [0], [0], [1], [0, 0, 1, 1], [], []>} : vector<8x128xf32>, vector<128x512xf32>, vector<8x512xf32> -> vector<8x512xf32>
    %14 = arith.addf %12, %13 : vector<8x512xf32>
    %15 = vector.extract_strided_slice %14 {offsets = [0, 0], sizes = [8, 128], strides = [1, 1]} : vector<8x512xf32> to vector<8x128xf32>
    %16 = arith.negf %15 : vector<8x128xf32>
    %17 = math.exp %16 : vector<8x128xf32>
    %cst_11 = arith.constant 1.000000e+00 : f32
    %18 = vector.broadcast %cst_11 : f32 to vector<8x128xf32>
    %19 = arith.addf %18, %17 : vector<8x128xf32>
    %20 = arith.divf %18, %19 : vector<8x128xf32>
    %21 = vector.extract_strided_slice %14 {offsets = [0, 128], sizes = [8, 128], strides = [1, 1]} : vector<8x512xf32> to vector<8x128xf32>
    %22 = arith.negf %21 : vector<8x128xf32>
    %23 = math.exp %22 : vector<8x128xf32>
    %cst_12 = arith.constant 1.000000e+00 : f32
    %24 = vector.broadcast %cst_12 : f32 to vector<8x128xf32>
    %25 = arith.addf %24, %23 : vector<8x128xf32>
    %26 = arith.divf %24, %25 : vector<8x128xf32>
    %27 = vector.extract_strided_slice %14 {offsets = [0, 256], sizes = [8, 128], strides = [1, 1]} : vector<8x512xf32> to vector<8x128xf32>
    %28 = math.tanh %27 : vector<8x128xf32>
    %29 = vector.extract_strided_slice %14 {offsets = [0, 384], sizes = [8, 128], strides = [1, 1]} : vector<8x512xf32> to vector<8x128xf32>
    %30 = arith.negf %29 : vector<8x128xf32>
    %31 = math.exp %30 : vector<8x128xf32>
    %cst_13 = arith.constant 1.000000e+00 : f32
    %32 = vector.broadcast %cst_13 : f32 to vector<8x128xf32>
    %33 = arith.addf %32, %31 : vector<8x128xf32>
    %34 = arith.divf %32, %33 : vector<8x128xf32>
    %35 = arith.mulf %26, %10 : vector<8x128xf32>
    %36 = arith.mulf %20, %28 : vector<8x128xf32>
    %37 = arith.addf %35, %36 : vector<8x128xf32>
    %38 = math.tanh %37 : vector<8x128xf32>
    %39 = arith.mulf %34, %38 : vector<8x128xf32>
    %40 = vector.extract_strided_slice %7 {offsets = [0, 1, 0], sizes = [8, 1, 512], strides = [1, 1, 1]} : vector<8x8x512xf32> to vector<8x1x512xf32>
    %41 = vector.shape_cast %40 : vector<8x1x512xf32> to vector<8x512xf32>
    %cst_14 = arith.constant dense<0.000000e+00> : vector<8x512xf32>
    %42 = tpu.matmul %39, %8, %cst_14 {dimension_numbers = #tpu.dot_dimension_numbers<[1], [0], [0], [1], [0, 0, 1, 1], [], []>} : vector<8x128xf32>, vector<128x512xf32>, vector<8x512xf32> -> vector<8x512xf32>
    %43 = arith.addf %41, %42 : vector<8x512xf32>
    %44 = vector.extract_strided_slice %43 {offsets = [0, 0], sizes = [8, 128], strides = [1, 1]} : vector<8x512xf32> to vector<8x128xf32>
    %45 = arith.negf %44 : vector<8x128xf32>
    %46 = math.exp %45 : vector<8x128xf32>
    %cst_15 = arith.constant 1.000000e+00 : f32
    %47 = vector.broadcast %cst_15 : f32 to vector<8x128xf32>
    %48 = arith.addf %47, %46 : vector<8x128xf32>
    %49 = arith.divf %47, %48 : vector<8x128xf32>
    %50 = vector.extract_strided_slice %43 {offsets = [0, 128], sizes = [8, 128], strides = [1, 1]} : vector<8x512xf32> to vector<8x128xf32>
    %51 = arith.negf %50 : vector<8x128xf32>
    %52 = math.exp %51 : vector<8x128xf32>
    %cst_16 = arith.constant 1.000000e+00 : f32
    %53 = vector.broadcast %cst_16 : f32 to vector<8x128xf32>
    %54 = arith.addf %53, %52 : vector<8x128xf32>
    %55 = arith.divf %53, %54 : vector<8x128xf32>
    %56 = vector.extract_strided_slice %43 {offsets = [0, 256], sizes = [8, 128], strides = [1, 1]} : vector<8x512xf32> to vector<8x128xf32>
    %57 = math.tanh %56 : vector<8x128xf32>
    %58 = vector.extract_strided_slice %43 {offsets = [0, 384], sizes = [8, 128], strides = [1, 1]} : vector<8x512xf32> to vector<8x128xf32>
    %59 = arith.negf %58 : vector<8x128xf32>
    %60 = math.exp %59 : vector<8x128xf32>
    %cst_17 = arith.constant 1.000000e+00 : f32
    %61 = vector.broadcast %cst_17 : f32 to vector<8x128xf32>
    %62 = arith.addf %61, %60 : vector<8x128xf32>
    %63 = arith.divf %61, %62 : vector<8x128xf32>
    %64 = arith.mulf %55, %37 : vector<8x128xf32>
    %65 = arith.mulf %49, %57 : vector<8x128xf32>
    %66 = arith.addf %64, %65 : vector<8x128xf32>
    %67 = math.tanh %66 : vector<8x128xf32>
    %68 = arith.mulf %63, %67 : vector<8x128xf32>
    %69 = vector.extract_strided_slice %7 {offsets = [0, 2, 0], sizes = [8, 1, 512], strides = [1, 1, 1]} : vector<8x8x512xf32> to vector<8x1x512xf32>
    %70 = vector.shape_cast %69 : vector<8x1x512xf32> to vector<8x512xf32>
    %cst_18 = arith.constant dense<0.000000e+00> : vector<8x512xf32>
    %71 = tpu.matmul %68, %8, %cst_18 {dimension_numbers = #tpu.dot_dimension_numbers<[1], [0], [0], [1], [0, 0, 1, 1], [], []>} : vector<8x128xf32>, vector<128x512xf32>, vector<8x512xf32> -> vector<8x512xf32>
    %72 = arith.addf %70, %71 : vector<8x512xf32>
    %73 = vector.extract_strided_slice %72 {offsets = [0, 0], sizes = [8, 128], strides = [1, 1]} : vector<8x512xf32> to vector<8x128xf32>
    %74 = arith.negf %73 : vector<8x128xf32>
    %75 = math.exp %74 : vector<8x128xf32>
    %cst_19 = arith.constant 1.000000e+00 : f32
    %76 = vector.broadcast %cst_19 : f32 to vector<8x128xf32>
    %77 = arith.addf %76, %75 : vector<8x128xf32>
    %78 = arith.divf %76, %77 : vector<8x128xf32>
    %79 = vector.extract_strided_slice %72 {offsets = [0, 128], sizes = [8, 128], strides = [1, 1]} : vector<8x512xf32> to vector<8x128xf32>
    %80 = arith.negf %79 : vector<8x128xf32>
    %81 = math.exp %80 : vector<8x128xf32>
    %cst_20 = arith.constant 1.000000e+00 : f32
    %82 = vector.broadcast %cst_20 : f32 to vector<8x128xf32>
    %83 = arith.addf %82, %81 : vector<8x128xf32>
    %84 = arith.divf %82, %83 : vector<8x128xf32>
    %85 = vector.extract_strided_slice %72 {offsets = [0, 256], sizes = [8, 128], strides = [1, 1]} : vector<8x512xf32> to vector<8x128xf32>
    %86 = math.tanh %85 : vector<8x128xf32>
    %87 = vector.extract_strided_slice %72 {offsets = [0, 384], sizes = [8, 128], strides = [1, 1]} : vector<8x512xf32> to vector<8x128xf32>
    %88 = arith.negf %87 : vector<8x128xf32>
    %89 = math.exp %88 : vector<8x128xf32>
    %cst_21 = arith.constant 1.000000e+00 : f32
    %90 = vector.broadcast %cst_21 : f32 to vector<8x128xf32>
    %91 = arith.addf %90, %89 : vector<8x128xf32>
    %92 = arith.divf %90, %91 : vector<8x128xf32>
    %93 = arith.mulf %84, %66 : vector<8x128xf32>
    %94 = arith.mulf %78, %86 : vector<8x128xf32>
    %95 = arith.addf %93, %94 : vector<8x128xf32>
    %96 = math.tanh %95 : vector<8x128xf32>
    %97 = arith.mulf %92, %96 : vector<8x128xf32>
    %98 = vector.extract_strided_slice %7 {offsets = [0, 3, 0], sizes = [8, 1, 512], strides = [1, 1, 1]} : vector<8x8x512xf32> to vector<8x1x512xf32>
    %99 = vector.shape_cast %98 : vector<8x1x512xf32> to vector<8x512xf32>
    %cst_22 = arith.constant dense<0.000000e+00> : vector<8x512xf32>
    %100 = tpu.matmul %97, %8, %cst_22 {dimension_numbers = #tpu.dot_dimension_numbers<[1], [0], [0], [1], [0, 0, 1, 1], [], []>} : vector<8x128xf32>, vector<128x512xf32>, vector<8x512xf32> -> vector<8x512xf32>
    %101 = arith.addf %99, %100 : vector<8x512xf32>
    %102 = vector.extract_strided_slice %101 {offsets = [0, 0], sizes = [8, 128], strides = [1, 1]} : vector<8x512xf32> to vector<8x128xf32>
    %103 = arith.negf %102 : vector<8x128xf32>
    %104 = math.exp %103 : vector<8x128xf32>
    %cst_23 = arith.constant 1.000000e+00 : f32
    %105 = vector.broadcast %cst_23 : f32 to vector<8x128xf32>
    %106 = arith.addf %105, %104 : vector<8x128xf32>
    %107 = arith.divf %105, %106 : vector<8x128xf32>
    %108 = vector.extract_strided_slice %101 {offsets = [0, 128], sizes = [8, 128], strides = [1, 1]} : vector<8x512xf32> to vector<8x128xf32>
    %109 = arith.negf %108 : vector<8x128xf32>
    %110 = math.exp %109 : vector<8x128xf32>
    %cst_24 = arith.constant 1.000000e+00 : f32
    %111 = vector.broadcast %cst_24 : f32 to vector<8x128xf32>
    %112 = arith.addf %111, %110 : vector<8x128xf32>
    %113 = arith.divf %111, %112 : vector<8x128xf32>
    %114 = vector.extract_strided_slice %101 {offsets = [0, 256], sizes = [8, 128], strides = [1, 1]} : vector<8x512xf32> to vector<8x128xf32>
    %115 = math.tanh %114 : vector<8x128xf32>
    %116 = vector.extract_strided_slice %101 {offsets = [0, 384], sizes = [8, 128], strides = [1, 1]} : vector<8x512xf32> to vector<8x128xf32>
    %117 = arith.negf %116 : vector<8x128xf32>
    %118 = math.exp %117 : vector<8x128xf32>
    %cst_25 = arith.constant 1.000000e+00 : f32
    %119 = vector.broadcast %cst_25 : f32 to vector<8x128xf32>
    %120 = arith.addf %119, %118 : vector<8x128xf32>
    %121 = arith.divf %119, %120 : vector<8x128xf32>
    %122 = arith.mulf %113, %95 : vector<8x128xf32>
    %123 = arith.mulf %107, %115 : vector<8x128xf32>
    %124 = arith.addf %122, %123 : vector<8x128xf32>
    %125 = math.tanh %124 : vector<8x128xf32>
    %126 = arith.mulf %121, %125 : vector<8x128xf32>
    %127 = vector.extract_strided_slice %7 {offsets = [0, 4, 0], sizes = [8, 1, 512], strides = [1, 1, 1]} : vector<8x8x512xf32> to vector<8x1x512xf32>
    %128 = vector.shape_cast %127 : vector<8x1x512xf32> to vector<8x512xf32>
    %cst_26 = arith.constant dense<0.000000e+00> : vector<8x512xf32>
    %129 = tpu.matmul %126, %8, %cst_26 {dimension_numbers = #tpu.dot_dimension_numbers<[1], [0], [0], [1], [0, 0, 1, 1], [], []>} : vector<8x128xf32>, vector<128x512xf32>, vector<8x512xf32> -> vector<8x512xf32>
    %130 = arith.addf %128, %129 : vector<8x512xf32>
    %131 = vector.extract_strided_slice %130 {offsets = [0, 0], sizes = [8, 128], strides = [1, 1]} : vector<8x512xf32> to vector<8x128xf32>
    %132 = arith.negf %131 : vector<8x128xf32>
    %133 = math.exp %132 : vector<8x128xf32>
    %cst_27 = arith.constant 1.000000e+00 : f32
    %134 = vector.broadcast %cst_27 : f32 to vector<8x128xf32>
    %135 = arith.addf %134, %133 : vector<8x128xf32>
    %136 = arith.divf %134, %135 : vector<8x128xf32>
    %137 = vector.extract_strided_slice %130 {offsets = [0, 128], sizes = [8, 128], strides = [1, 1]} : vector<8x512xf32> to vector<8x128xf32>
    %138 = arith.negf %137 : vector<8x128xf32>
    %139 = math.exp %138 : vector<8x128xf32>
    %cst_28 = arith.constant 1.000000e+00 : f32
    %140 = vector.broadcast %cst_28 : f32 to vector<8x128xf32>
    %141 = arith.addf %140, %139 : vector<8x128xf32>
    %142 = arith.divf %140, %141 : vector<8x128xf32>
    %143 = vector.extract_strided_slice %130 {offsets = [0, 256], sizes = [8, 128], strides = [1, 1]} : vector<8x512xf32> to vector<8x128xf32>
    %144 = math.tanh %143 : vector<8x128xf32>
    %145 = vector.extract_strided_slice %130 {offsets = [0, 384], sizes = [8, 128], strides = [1, 1]} : vector<8x512xf32> to vector<8x128xf32>
    %146 = arith.negf %145 : vector<8x128xf32>
    %147 = math.exp %146 : vector<8x128xf32>
    %cst_29 = arith.constant 1.000000e+00 : f32
    %148 = vector.broadcast %cst_29 : f32 to vector<8x128xf32>
    %149 = arith.addf %148, %147 : vector<8x128xf32>
    %150 = arith.divf %148, %149 : vector<8x128xf32>
    %151 = arith.mulf %142, %124 : vector<8x128xf32>
    %152 = arith.mulf %136, %144 : vector<8x128xf32>
    %153 = arith.addf %151, %152 : vector<8x128xf32>
    %154 = math.tanh %153 : vector<8x128xf32>
    %155 = arith.mulf %150, %154 : vector<8x128xf32>
    %156 = vector.extract_strided_slice %7 {offsets = [0, 5, 0], sizes = [8, 1, 512], strides = [1, 1, 1]} : vector<8x8x512xf32> to vector<8x1x512xf32>
    %157 = vector.shape_cast %156 : vector<8x1x512xf32> to vector<8x512xf32>
    %cst_30 = arith.constant dense<0.000000e+00> : vector<8x512xf32>
    %158 = tpu.matmul %155, %8, %cst_30 {dimension_numbers = #tpu.dot_dimension_numbers<[1], [0], [0], [1], [0, 0, 1, 1], [], []>} : vector<8x128xf32>, vector<128x512xf32>, vector<8x512xf32> -> vector<8x512xf32>
    %159 = arith.addf %157, %158 : vector<8x512xf32>
    %160 = vector.extract_strided_slice %159 {offsets = [0, 0], sizes = [8, 128], strides = [1, 1]} : vector<8x512xf32> to vector<8x128xf32>
    %161 = arith.negf %160 : vector<8x128xf32>
    %162 = math.exp %161 : vector<8x128xf32>
    %cst_31 = arith.constant 1.000000e+00 : f32
    %163 = vector.broadcast %cst_31 : f32 to vector<8x128xf32>
    %164 = arith.addf %163, %162 : vector<8x128xf32>
    %165 = arith.divf %163, %164 : vector<8x128xf32>
    %166 = vector.extract_strided_slice %159 {offsets = [0, 128], sizes = [8, 128], strides = [1, 1]} : vector<8x512xf32> to vector<8x128xf32>
    %167 = arith.negf %166 : vector<8x128xf32>
    %168 = math.exp %167 : vector<8x128xf32>
    %cst_32 = arith.constant 1.000000e+00 : f32
    %169 = vector.broadcast %cst_32 : f32 to vector<8x128xf32>
    %170 = arith.addf %169, %168 : vector<8x128xf32>
    %171 = arith.divf %169, %170 : vector<8x128xf32>
    %172 = vector.extract_strided_slice %159 {offsets = [0, 256], sizes = [8, 128], strides = [1, 1]} : vector<8x512xf32> to vector<8x128xf32>
    %173 = math.tanh %172 : vector<8x128xf32>
    %174 = vector.extract_strided_slice %159 {offsets = [0, 384], sizes = [8, 128], strides = [1, 1]} : vector<8x512xf32> to vector<8x128xf32>
    %175 = arith.negf %174 : vector<8x128xf32>
    %176 = math.exp %175 : vector<8x128xf32>
    %cst_33 = arith.constant 1.000000e+00 : f32
    %177 = vector.broadcast %cst_33 : f32 to vector<8x128xf32>
    %178 = arith.addf %177, %176 : vector<8x128xf32>
    %179 = arith.divf %177, %178 : vector<8x128xf32>
    %180 = arith.mulf %171, %153 : vector<8x128xf32>
    %181 = arith.mulf %165, %173 : vector<8x128xf32>
    %182 = arith.addf %180, %181 : vector<8x128xf32>
    %183 = math.tanh %182 : vector<8x128xf32>
    %184 = arith.mulf %179, %183 : vector<8x128xf32>
    %185 = vector.extract_strided_slice %7 {offsets = [0, 6, 0], sizes = [8, 1, 512], strides = [1, 1, 1]} : vector<8x8x512xf32> to vector<8x1x512xf32>
    %186 = vector.shape_cast %185 : vector<8x1x512xf32> to vector<8x512xf32>
    %cst_34 = arith.constant dense<0.000000e+00> : vector<8x512xf32>
    %187 = tpu.matmul %184, %8, %cst_34 {dimension_numbers = #tpu.dot_dimension_numbers<[1], [0], [0], [1], [0, 0, 1, 1], [], []>} : vector<8x128xf32>, vector<128x512xf32>, vector<8x512xf32> -> vector<8x512xf32>
    %188 = arith.addf %186, %187 : vector<8x512xf32>
    %189 = vector.extract_strided_slice %188 {offsets = [0, 0], sizes = [8, 128], strides = [1, 1]} : vector<8x512xf32> to vector<8x128xf32>
    %190 = arith.negf %189 : vector<8x128xf32>
    %191 = math.exp %190 : vector<8x128xf32>
    %cst_35 = arith.constant 1.000000e+00 : f32
    %192 = vector.broadcast %cst_35 : f32 to vector<8x128xf32>
    %193 = arith.addf %192, %191 : vector<8x128xf32>
    %194 = arith.divf %192, %193 : vector<8x128xf32>
    %195 = vector.extract_strided_slice %188 {offsets = [0, 128], sizes = [8, 128], strides = [1, 1]} : vector<8x512xf32> to vector<8x128xf32>
    %196 = arith.negf %195 : vector<8x128xf32>
    %197 = math.exp %196 : vector<8x128xf32>
    %cst_36 = arith.constant 1.000000e+00 : f32
    %198 = vector.broadcast %cst_36 : f32 to vector<8x128xf32>
    %199 = arith.addf %198, %197 : vector<8x128xf32>
    %200 = arith.divf %198, %199 : vector<8x128xf32>
    %201 = vector.extract_strided_slice %188 {offsets = [0, 256], sizes = [8, 128], strides = [1, 1]} : vector<8x512xf32> to vector<8x128xf32>
    %202 = math.tanh %201 : vector<8x128xf32>
    %203 = vector.extract_strided_slice %188 {offsets = [0, 384], sizes = [8, 128], strides = [1, 1]} : vector<8x512xf32> to vector<8x128xf32>
    %204 = arith.negf %203 : vector<8x128xf32>
    %205 = math.exp %204 : vector<8x128xf32>
    %cst_37 = arith.constant 1.000000e+00 : f32
    %206 = vector.broadcast %cst_37 : f32 to vector<8x128xf32>
    %207 = arith.addf %206, %205 : vector<8x128xf32>
    %208 = arith.divf %206, %207 : vector<8x128xf32>
    %209 = arith.mulf %200, %182 : vector<8x128xf32>
    %210 = arith.mulf %194, %202 : vector<8x128xf32>
    %211 = arith.addf %209, %210 : vector<8x128xf32>
    %212 = math.tanh %211 : vector<8x128xf32>
    %213 = arith.mulf %208, %212 : vector<8x128xf32>
    %214 = vector.extract_strided_slice %7 {offsets = [0, 7, 0], sizes = [8, 1, 512], strides = [1, 1, 1]} : vector<8x8x512xf32> to vector<8x1x512xf32>
    %215 = vector.shape_cast %214 : vector<8x1x512xf32> to vector<8x512xf32>
    %cst_38 = arith.constant dense<0.000000e+00> : vector<8x512xf32>
    %216 = tpu.matmul %213, %8, %cst_38 {dimension_numbers = #tpu.dot_dimension_numbers<[1], [0], [0], [1], [0, 0, 1, 1], [], []>} : vector<8x128xf32>, vector<128x512xf32>, vector<8x512xf32> -> vector<8x512xf32>
    %217 = arith.addf %215, %216 : vector<8x512xf32>
    %218 = vector.extract_strided_slice %217 {offsets = [0, 0], sizes = [8, 128], strides = [1, 1]} : vector<8x512xf32> to vector<8x128xf32>
    %219 = arith.negf %218 : vector<8x128xf32>
    %220 = math.exp %219 : vector<8x128xf32>
    %cst_39 = arith.constant 1.000000e+00 : f32
    %221 = vector.broadcast %cst_39 : f32 to vector<8x128xf32>
    %222 = arith.addf %221, %220 : vector<8x128xf32>
    %223 = arith.divf %221, %222 : vector<8x128xf32>
    %224 = vector.extract_strided_slice %217 {offsets = [0, 128], sizes = [8, 128], strides = [1, 1]} : vector<8x512xf32> to vector<8x128xf32>
    %225 = arith.negf %224 : vector<8x128xf32>
    %226 = math.exp %225 : vector<8x128xf32>
    %cst_40 = arith.constant 1.000000e+00 : f32
    %227 = vector.broadcast %cst_40 : f32 to vector<8x128xf32>
    %228 = arith.addf %227, %226 : vector<8x128xf32>
    %229 = arith.divf %227, %228 : vector<8x128xf32>
    %230 = vector.extract_strided_slice %217 {offsets = [0, 256], sizes = [8, 128], strides = [1, 1]} : vector<8x512xf32> to vector<8x128xf32>
    %231 = math.tanh %230 : vector<8x128xf32>
    %232 = vector.extract_strided_slice %217 {offsets = [0, 384], sizes = [8, 128], strides = [1, 1]} : vector<8x512xf32> to vector<8x128xf32>
    %233 = arith.negf %232 : vector<8x128xf32>
    %234 = math.exp %233 : vector<8x128xf32>
    %cst_41 = arith.constant 1.000000e+00 : f32
    %235 = vector.broadcast %cst_41 : f32 to vector<8x128xf32>
    %236 = arith.addf %235, %234 : vector<8x128xf32>
    %237 = arith.divf %235, %236 : vector<8x128xf32>
    %238 = arith.mulf %229, %211 : vector<8x128xf32>
    %239 = arith.mulf %223, %231 : vector<8x128xf32>
    %240 = arith.addf %238, %239 : vector<8x128xf32>
    %241 = math.tanh %240 : vector<8x128xf32>
    %242 = arith.mulf %237, %241 : vector<8x128xf32>
    %c0_42 = arith.constant 0 : index
    %c0_43 = arith.constant 0 : index
    %243 = vector.load %arg4[%c0_42, %c0_43] : memref<128x512xf32, #tpu.memory_space<vmem>>, vector<128x512xf32>
    %cst_44 = arith.constant dense<0.000000e+00> : vector<8x512xf32>
    %244 = tpu.matmul %242, %243, %cst_44 {dimension_numbers = #tpu.dot_dimension_numbers<[1], [0], [0], [1], [0, 0, 1, 1], [], []>} : vector<8x128xf32>, vector<128x512xf32>, vector<8x512xf32> -> vector<8x512xf32>
    %c0_45 = arith.constant 0 : index
    %c0_46 = arith.constant 0 : index
    %245 = vector.load %arg6[%c0_45, %c0_46] : memref<1x512xf32, #tpu.memory_space<vmem>>, vector<1x512xf32>
    %246 = vector.broadcast %245 : vector<1x512xf32> to vector<8x512xf32>
    %247 = arith.addf %244, %246 : vector<8x512xf32>
    %c0_47 = arith.constant 0 : index
    %c0_48 = arith.constant 0 : index
    %248 = vector.load %arg5[%c0_47, %c0_48] : memref<128x512xf32, #tpu.memory_space<vmem>>, vector<128x512xf32>
    %cst_49 = arith.constant 0.000000e+00 : f32
    %249 = vector.broadcast %cst_49 : f32 to vector<8x128xf32>
    %cst_50 = arith.constant 0.000000e+00 : f32
    %250 = vector.broadcast %cst_50 : f32 to vector<8x128xf32>
    %cst_51 = arith.constant dense<0.000000e+00> : vector<8x512xf32>
    %251 = tpu.matmul %249, %248, %cst_51 {dimension_numbers = #tpu.dot_dimension_numbers<[1], [0], [0], [1], [0, 0, 1, 1], [], []>} : vector<8x128xf32>, vector<128x512xf32>, vector<8x512xf32> -> vector<8x512xf32>
    %252 = arith.addf %247, %251 : vector<8x512xf32>
    %253 = vector.extract_strided_slice %252 {offsets = [0, 0], sizes = [8, 128], strides = [1, 1]} : vector<8x512xf32> to vector<8x128xf32>
    %254 = arith.negf %253 : vector<8x128xf32>
    %255 = math.exp %254 : vector<8x128xf32>
    %cst_52 = arith.constant 1.000000e+00 : f32
    %256 = vector.broadcast %cst_52 : f32 to vector<8x128xf32>
    %257 = arith.addf %256, %255 : vector<8x128xf32>
    %258 = arith.divf %256, %257 : vector<8x128xf32>
    %259 = vector.extract_strided_slice %252 {offsets = [0, 128], sizes = [8, 128], strides = [1, 1]} : vector<8x512xf32> to vector<8x128xf32>
    %260 = arith.negf %259 : vector<8x128xf32>
    %261 = math.exp %260 : vector<8x128xf32>
    %cst_53 = arith.constant 1.000000e+00 : f32
    %262 = vector.broadcast %cst_53 : f32 to vector<8x128xf32>
    %263 = arith.addf %262, %261 : vector<8x128xf32>
    %264 = arith.divf %262, %263 : vector<8x128xf32>
    %265 = vector.extract_strided_slice %252 {offsets = [0, 256], sizes = [8, 128], strides = [1, 1]} : vector<8x512xf32> to vector<8x128xf32>
    %266 = math.tanh %265 : vector<8x128xf32>
    %267 = vector.extract_strided_slice %252 {offsets = [0, 384], sizes = [8, 128], strides = [1, 1]} : vector<8x512xf32> to vector<8x128xf32>
    %268 = arith.negf %267 : vector<8x128xf32>
    %269 = math.exp %268 : vector<8x128xf32>
    %cst_54 = arith.constant 1.000000e+00 : f32
    %270 = vector.broadcast %cst_54 : f32 to vector<8x128xf32>
    %271 = arith.addf %270, %269 : vector<8x128xf32>
    %272 = arith.divf %270, %271 : vector<8x128xf32>
    %273 = arith.mulf %264, %250 : vector<8x128xf32>
    %274 = arith.mulf %258, %266 : vector<8x128xf32>
    %275 = arith.addf %273, %274 : vector<8x128xf32>
    %276 = math.tanh %275 : vector<8x128xf32>
    %277 = arith.mulf %272, %276 : vector<8x128xf32>
    %c0_55 = arith.constant 0 : index
    %c0_56 = arith.constant 0 : index
    %c0_57 = arith.constant 0 : index
    %278 = vector.load %arg15[%c0_55, %c0_56, %c0_57] : memref<8x8x128xf32, #tpu.memory_space<vmem>>, vector<8x1x128xf32>
    %279 = vector.shape_cast %278 : vector<8x1x128xf32> to vector<8x128xf32>
    %280 = vector.shape_cast %277 : vector<8x128xf32> to vector<8x1x128xf32>
    tpu.vector_store %arg15[%c0_55, %c0_56, %c0_57], %280 {strides = array<i32>} : memref<8x8x128xf32, #tpu.memory_space<vmem>>, vector<8x1x128xf32>,
    %cst_58 = arith.constant dense<0.000000e+00> : vector<8x512xf32>
    %281 = tpu.matmul %277, %248, %cst_58 {dimension_numbers = #tpu.dot_dimension_numbers<[1], [0], [0], [1], [0, 0, 1, 1], [], []>} : vector<8x128xf32>, vector<128x512xf32>, vector<8x512xf32> -> vector<8x512xf32>
    %282 = arith.addf %247, %281 : vector<8x512xf32>
    %283 = vector.extract_strided_slice %282 {offsets = [0, 0], sizes = [8, 128], strides = [1, 1]} : vector<8x512xf32> to vector<8x128xf32>
    %284 = arith.negf %283 : vector<8x128xf32>
    %285 = math.exp %284 : vector<8x128xf32>
    %cst_59 = arith.constant 1.000000e+00 : f32
    %286 = vector.broadcast %cst_59 : f32 to vector<8x128xf32>
    %287 = arith.addf %286, %285 : vector<8x128xf32>
    %288 = arith.divf %286, %287 : vector<8x128xf32>
    %289 = vector.extract_strided_slice %282 {offsets = [0, 128], sizes = [8, 128], strides = [1, 1]} : vector<8x512xf32> to vector<8x128xf32>
    %290 = arith.negf %289 : vector<8x128xf32>
    %291 = math.exp %290 : vector<8x128xf32>
    %cst_60 = arith.constant 1.000000e+00 : f32
    %292 = vector.broadcast %cst_60 : f32 to vector<8x128xf32>
    %293 = arith.addf %292, %291 : vector<8x128xf32>
    %294 = arith.divf %292, %293 : vector<8x128xf32>
    %295 = vector.extract_strided_slice %282 {offsets = [0, 256], sizes = [8, 128], strides = [1, 1]} : vector<8x512xf32> to vector<8x128xf32>
    %296 = math.tanh %295 : vector<8x128xf32>
    %297 = vector.extract_strided_slice %282 {offsets = [0, 384], sizes = [8, 128], strides = [1, 1]} : vector<8x512xf32> to vector<8x128xf32>
    %298 = arith.negf %297 : vector<8x128xf32>
    %299 = math.exp %298 : vector<8x128xf32>
    %cst_61 = arith.constant 1.000000e+00 : f32
    %300 = vector.broadcast %cst_61 : f32 to vector<8x128xf32>
    %301 = arith.addf %300, %299 : vector<8x128xf32>
    %302 = arith.divf %300, %301 : vector<8x128xf32>
    %303 = arith.mulf %294, %275 : vector<8x128xf32>
    %304 = arith.mulf %288, %296 : vector<8x128xf32>
    %305 = arith.addf %303, %304 : vector<8x128xf32>
    %306 = math.tanh %305 : vector<8x128xf32>
    %307 = arith.mulf %302, %306 : vector<8x128xf32>
    %c0_62 = arith.constant 0 : index
    %c1 = arith.constant 1 : index
    %c0_63 = arith.constant 0 : index
    %308 = vector.load %arg15[%c0_62, %c1, %c0_63] : memref<8x8x128xf32, #tpu.memory_space<vmem>>, vector<8x1x128xf32>
    %309 = vector.shape_cast %308 : vector<8x1x128xf32> to vector<8x128xf32>
    %310 = vector.shape_cast %307 : vector<8x128xf32> to vector<8x1x128xf32>
    tpu.vector_store %arg15[%c0_62, %c1, %c0_63], %310 {strides = array<i32>} : memref<8x8x128xf32, #tpu.memory_space<vmem>>, vector<8x1x128xf32>,
    %cst_64 = arith.constant dense<0.000000e+00> : vector<8x512xf32>
    %311 = tpu.matmul %307, %248, %cst_64 {dimension_numbers = #tpu.dot_dimension_numbers<[1], [0], [0], [1], [0, 0, 1, 1], [], []>} : vector<8x128xf32>, vector<128x512xf32>, vector<8x512xf32> -> vector<8x512xf32>
    %312 = arith.addf %247, %311 : vector<8x512xf32>
    %313 = vector.extract_strided_slice %312 {offsets = [0, 0], sizes = [8, 128], strides = [1, 1]} : vector<8x512xf32> to vector<8x128xf32>
    %314 = arith.negf %313 : vector<8x128xf32>
    %315 = math.exp %314 : vector<8x128xf32>
    %cst_65 = arith.constant 1.000000e+00 : f32
    %316 = vector.broadcast %cst_65 : f32 to vector<8x128xf32>
    %317 = arith.addf %316, %315 : vector<8x128xf32>
    %318 = arith.divf %316, %317 : vector<8x128xf32>
    %319 = vector.extract_strided_slice %312 {offsets = [0, 128], sizes = [8, 128], strides = [1, 1]} : vector<8x512xf32> to vector<8x128xf32>
    %320 = arith.negf %319 : vector<8x128xf32>
    %321 = math.exp %320 : vector<8x128xf32>
    %cst_66 = arith.constant 1.000000e+00 : f32
    %322 = vector.broadcast %cst_66 : f32 to vector<8x128xf32>
    %323 = arith.addf %322, %321 : vector<8x128xf32>
    %324 = arith.divf %322, %323 : vector<8x128xf32>
    %325 = vector.extract_strided_slice %312 {offsets = [0, 256], sizes = [8, 128], strides = [1, 1]} : vector<8x512xf32> to vector<8x128xf32>
    %326 = math.tanh %325 : vector<8x128xf32>
    %327 = vector.extract_strided_slice %312 {offsets = [0, 384], sizes = [8, 128], strides = [1, 1]} : vector<8x512xf32> to vector<8x128xf32>
    %328 = arith.negf %327 : vector<8x128xf32>
    %329 = math.exp %328 : vector<8x128xf32>
    %cst_67 = arith.constant 1.000000e+00 : f32
    %330 = vector.broadcast %cst_67 : f32 to vector<8x128xf32>
    %331 = arith.addf %330, %329 : vector<8x128xf32>
    %332 = arith.divf %330, %331 : vector<8x128xf32>
    %333 = arith.mulf %324, %305 : vector<8x128xf32>
    %334 = arith.mulf %318, %326 : vector<8x128xf32>
    %335 = arith.addf %333, %334 : vector<8x128xf32>
    %336 = math.tanh %335 : vector<8x128xf32>
    %337 = arith.mulf %332, %336 : vector<8x128xf32>
    %c0_68 = arith.constant 0 : index
    %c2 = arith.constant 2 : index
    %c0_69 = arith.constant 0 : index
    %338 = vector.load %arg15[%c0_68, %c2, %c0_69] : memref<8x8x128xf32, #tpu.memory_space<vmem>>, vector<8x1x128xf32>
    %339 = vector.shape_cast %338 : vector<8x1x128xf32> to vector<8x128xf32>
    %340 = vector.shape_cast %337 : vector<8x128xf32> to vector<8x1x128xf32>
    tpu.vector_store %arg15[%c0_68, %c2, %c0_69], %340 {strides = array<i32>} : memref<8x8x128xf32, #tpu.memory_space<vmem>>, vector<8x1x128xf32>,
    %cst_70 = arith.constant dense<0.000000e+00> : vector<8x512xf32>
    %341 = tpu.matmul %337, %248, %cst_70 {dimension_numbers = #tpu.dot_dimension_numbers<[1], [0], [0], [1], [0, 0, 1, 1], [], []>} : vector<8x128xf32>, vector<128x512xf32>, vector<8x512xf32> -> vector<8x512xf32>
    %342 = arith.addf %247, %341 : vector<8x512xf32>
    %343 = vector.extract_strided_slice %342 {offsets = [0, 0], sizes = [8, 128], strides = [1, 1]} : vector<8x512xf32> to vector<8x128xf32>
    %344 = arith.negf %343 : vector<8x128xf32>
    %345 = math.exp %344 : vector<8x128xf32>
    %cst_71 = arith.constant 1.000000e+00 : f32
    %346 = vector.broadcast %cst_71 : f32 to vector<8x128xf32>
    %347 = arith.addf %346, %345 : vector<8x128xf32>
    %348 = arith.divf %346, %347 : vector<8x128xf32>
    %349 = vector.extract_strided_slice %342 {offsets = [0, 128], sizes = [8, 128], strides = [1, 1]} : vector<8x512xf32> to vector<8x128xf32>
    %350 = arith.negf %349 : vector<8x128xf32>
    %351 = math.exp %350 : vector<8x128xf32>
    %cst_72 = arith.constant 1.000000e+00 : f32
    %352 = vector.broadcast %cst_72 : f32 to vector<8x128xf32>
    %353 = arith.addf %352, %351 : vector<8x128xf32>
    %354 = arith.divf %352, %353 : vector<8x128xf32>
    %355 = vector.extract_strided_slice %342 {offsets = [0, 256], sizes = [8, 128], strides = [1, 1]} : vector<8x512xf32> to vector<8x128xf32>
    %356 = math.tanh %355 : vector<8x128xf32>
    %357 = vector.extract_strided_slice %342 {offsets = [0, 384], sizes = [8, 128], strides = [1, 1]} : vector<8x512xf32> to vector<8x128xf32>
    %358 = arith.negf %357 : vector<8x128xf32>
    %359 = math.exp %358 : vector<8x128xf32>
    %cst_73 = arith.constant 1.000000e+00 : f32
    %360 = vector.broadcast %cst_73 : f32 to vector<8x128xf32>
    %361 = arith.addf %360, %359 : vector<8x128xf32>
    %362 = arith.divf %360, %361 : vector<8x128xf32>
    %363 = arith.mulf %354, %335 : vector<8x128xf32>
    %364 = arith.mulf %348, %356 : vector<8x128xf32>
    %365 = arith.addf %363, %364 : vector<8x128xf32>
    %366 = math.tanh %365 : vector<8x128xf32>
    %367 = arith.mulf %362, %366 : vector<8x128xf32>
    %c0_74 = arith.constant 0 : index
    %c3 = arith.constant 3 : index
    %c0_75 = arith.constant 0 : index
    %368 = vector.load %arg15[%c0_74, %c3, %c0_75] : memref<8x8x128xf32, #tpu.memory_space<vmem>>, vector<8x1x128xf32>
    %369 = vector.shape_cast %368 : vector<8x1x128xf32> to vector<8x128xf32>
    %370 = vector.shape_cast %367 : vector<8x128xf32> to vector<8x1x128xf32>
    tpu.vector_store %arg15[%c0_74, %c3, %c0_75], %370 {strides = array<i32>} : memref<8x8x128xf32, #tpu.memory_space<vmem>>, vector<8x1x128xf32>,
    %cst_76 = arith.constant dense<0.000000e+00> : vector<8x512xf32>
    %371 = tpu.matmul %367, %248, %cst_76 {dimension_numbers = #tpu.dot_dimension_numbers<[1], [0], [0], [1], [0, 0, 1, 1], [], []>} : vector<8x128xf32>, vector<128x512xf32>, vector<8x512xf32> -> vector<8x512xf32>
    %372 = arith.addf %247, %371 : vector<8x512xf32>
    %373 = vector.extract_strided_slice %372 {offsets = [0, 0], sizes = [8, 128], strides = [1, 1]} : vector<8x512xf32> to vector<8x128xf32>
    %374 = arith.negf %373 : vector<8x128xf32>
    %375 = math.exp %374 : vector<8x128xf32>
    %cst_77 = arith.constant 1.000000e+00 : f32
    %376 = vector.broadcast %cst_77 : f32 to vector<8x128xf32>
    %377 = arith.addf %376, %375 : vector<8x128xf32>
    %378 = arith.divf %376, %377 : vector<8x128xf32>
    %379 = vector.extract_strided_slice %372 {offsets = [0, 128], sizes = [8, 128], strides = [1, 1]} : vector<8x512xf32> to vector<8x128xf32>
    %380 = arith.negf %379 : vector<8x128xf32>
    %381 = math.exp %380 : vector<8x128xf32>
    %cst_78 = arith.constant 1.000000e+00 : f32
    %382 = vector.broadcast %cst_78 : f32 to vector<8x128xf32>
    %383 = arith.addf %382, %381 : vector<8x128xf32>
    %384 = arith.divf %382, %383 : vector<8x128xf32>
    %385 = vector.extract_strided_slice %372 {offsets = [0, 256], sizes = [8, 128], strides = [1, 1]} : vector<8x512xf32> to vector<8x128xf32>
    %386 = math.tanh %385 : vector<8x128xf32>
    %387 = vector.extract_strided_slice %372 {offsets = [0, 384], sizes = [8, 128], strides = [1, 1]} : vector<8x512xf32> to vector<8x128xf32>
    %388 = arith.negf %387 : vector<8x128xf32>
    %389 = math.exp %388 : vector<8x128xf32>
    %cst_79 = arith.constant 1.000000e+00 : f32
    %390 = vector.broadcast %cst_79 : f32 to vector<8x128xf32>
    %391 = arith.addf %390, %389 : vector<8x128xf32>
    %392 = arith.divf %390, %391 : vector<8x128xf32>
    %393 = arith.mulf %384, %365 : vector<8x128xf32>
    %394 = arith.mulf %378, %386 : vector<8x128xf32>
    %395 = arith.addf %393, %394 : vector<8x128xf32>
    %396 = math.tanh %395 : vector<8x128xf32>
    %397 = arith.mulf %392, %396 : vector<8x128xf32>
    %c0_80 = arith.constant 0 : index
    %c4 = arith.constant 4 : index
    %c0_81 = arith.constant 0 : index
    %398 = vector.load %arg15[%c0_80, %c4, %c0_81] : memref<8x8x128xf32, #tpu.memory_space<vmem>>, vector<8x1x128xf32>
    %399 = vector.shape_cast %398 : vector<8x1x128xf32> to vector<8x128xf32>
    %400 = vector.shape_cast %397 : vector<8x128xf32> to vector<8x1x128xf32>
    tpu.vector_store %arg15[%c0_80, %c4, %c0_81], %400 {strides = array<i32>} : memref<8x8x128xf32, #tpu.memory_space<vmem>>, vector<8x1x128xf32>,
    %cst_82 = arith.constant dense<0.000000e+00> : vector<8x512xf32>
    %401 = tpu.matmul %397, %248, %cst_82 {dimension_numbers = #tpu.dot_dimension_numbers<[1], [0], [0], [1], [0, 0, 1, 1], [], []>} : vector<8x128xf32>, vector<128x512xf32>, vector<8x512xf32> -> vector<8x512xf32>
    %402 = arith.addf %247, %401 : vector<8x512xf32>
    %403 = vector.extract_strided_slice %402 {offsets = [0, 0], sizes = [8, 128], strides = [1, 1]} : vector<8x512xf32> to vector<8x128xf32>
    %404 = arith.negf %403 : vector<8x128xf32>
    %405 = math.exp %404 : vector<8x128xf32>
    %cst_83 = arith.constant 1.000000e+00 : f32
    %406 = vector.broadcast %cst_83 : f32 to vector<8x128xf32>
    %407 = arith.addf %406, %405 : vector<8x128xf32>
    %408 = arith.divf %406, %407 : vector<8x128xf32>
    %409 = vector.extract_strided_slice %402 {offsets = [0, 128], sizes = [8, 128], strides = [1, 1]} : vector<8x512xf32> to vector<8x128xf32>
    %410 = arith.negf %409 : vector<8x128xf32>
    %411 = math.exp %410 : vector<8x128xf32>
    %cst_84 = arith.constant 1.000000e+00 : f32
    %412 = vector.broadcast %cst_84 : f32 to vector<8x128xf32>
    %413 = arith.addf %412, %411 : vector<8x128xf32>
    %414 = arith.divf %412, %413 : vector<8x128xf32>
    %415 = vector.extract_strided_slice %402 {offsets = [0, 256], sizes = [8, 128], strides = [1, 1]} : vector<8x512xf32> to vector<8x128xf32>
    %416 = math.tanh %415 : vector<8x128xf32>
    %417 = vector.extract_strided_slice %402 {offsets = [0, 384], sizes = [8, 128], strides = [1, 1]} : vector<8x512xf32> to vector<8x128xf32>
    %418 = arith.negf %417 : vector<8x128xf32>
    %419 = math.exp %418 : vector<8x128xf32>
    %cst_85 = arith.constant 1.000000e+00 : f32
    %420 = vector.broadcast %cst_85 : f32 to vector<8x128xf32>
    %421 = arith.addf %420, %419 : vector<8x128xf32>
    %422 = arith.divf %420, %421 : vector<8x128xf32>
    %423 = arith.mulf %414, %395 : vector<8x128xf32>
    %424 = arith.mulf %408, %416 : vector<8x128xf32>
    %425 = arith.addf %423, %424 : vector<8x128xf32>
    %426 = math.tanh %425 : vector<8x128xf32>
    %427 = arith.mulf %422, %426 : vector<8x128xf32>
    %c0_86 = arith.constant 0 : index
    %c5 = arith.constant 5 : index
    %c0_87 = arith.constant 0 : index
    %428 = vector.load %arg15[%c0_86, %c5, %c0_87] : memref<8x8x128xf32, #tpu.memory_space<vmem>>, vector<8x1x128xf32>
    %429 = vector.shape_cast %428 : vector<8x1x128xf32> to vector<8x128xf32>
    %430 = vector.shape_cast %427 : vector<8x128xf32> to vector<8x1x128xf32>
    tpu.vector_store %arg15[%c0_86, %c5, %c0_87], %430 {strides = array<i32>} : memref<8x8x128xf32, #tpu.memory_space<vmem>>, vector<8x1x128xf32>,
    %cst_88 = arith.constant dense<0.000000e+00> : vector<8x512xf32>
    %431 = tpu.matmul %427, %248, %cst_88 {dimension_numbers = #tpu.dot_dimension_numbers<[1], [0], [0], [1], [0, 0, 1, 1], [], []>} : vector<8x128xf32>, vector<128x512xf32>, vector<8x512xf32> -> vector<8x512xf32>
    %432 = arith.addf %247, %431 : vector<8x512xf32>
    %433 = vector.extract_strided_slice %432 {offsets = [0, 0], sizes = [8, 128], strides = [1, 1]} : vector<8x512xf32> to vector<8x128xf32>
    %434 = arith.negf %433 : vector<8x128xf32>
    %435 = math.exp %434 : vector<8x128xf32>
    %cst_89 = arith.constant 1.000000e+00 : f32
    %436 = vector.broadcast %cst_89 : f32 to vector<8x128xf32>
    %437 = arith.addf %436, %435 : vector<8x128xf32>
    %438 = arith.divf %436, %437 : vector<8x128xf32>
    %439 = vector.extract_strided_slice %432 {offsets = [0, 128], sizes = [8, 128], strides = [1, 1]} : vector<8x512xf32> to vector<8x128xf32>
    %440 = arith.negf %439 : vector<8x128xf32>
    %441 = math.exp %440 : vector<8x128xf32>
    %cst_90 = arith.constant 1.000000e+00 : f32
    %442 = vector.broadcast %cst_90 : f32 to vector<8x128xf32>
    %443 = arith.addf %442, %441 : vector<8x128xf32>
    %444 = arith.divf %442, %443 : vector<8x128xf32>
    %445 = vector.extract_strided_slice %432 {offsets = [0, 256], sizes = [8, 128], strides = [1, 1]} : vector<8x512xf32> to vector<8x128xf32>
    %446 = math.tanh %445 : vector<8x128xf32>
    %447 = vector.extract_strided_slice %432 {offsets = [0, 384], sizes = [8, 128], strides = [1, 1]} : vector<8x512xf32> to vector<8x128xf32>
    %448 = arith.negf %447 : vector<8x128xf32>
    %449 = math.exp %448 : vector<8x128xf32>
    %cst_91 = arith.constant 1.000000e+00 : f32
    %450 = vector.broadcast %cst_91 : f32 to vector<8x128xf32>
    %451 = arith.addf %450, %449 : vector<8x128xf32>
    %452 = arith.divf %450, %451 : vector<8x128xf32>
    %453 = arith.mulf %444, %425 : vector<8x128xf32>
    %454 = arith.mulf %438, %446 : vector<8x128xf32>
    %455 = arith.addf %453, %454 : vector<8x128xf32>
    %456 = math.tanh %455 : vector<8x128xf32>
    %457 = arith.mulf %452, %456 : vector<8x128xf32>
    %c0_92 = arith.constant 0 : index
    %c6 = arith.constant 6 : index
    %c0_93 = arith.constant 0 : index
    %458 = vector.load %arg15[%c0_92, %c6, %c0_93] : memref<8x8x128xf32, #tpu.memory_space<vmem>>, vector<8x1x128xf32>
    %459 = vector.shape_cast %458 : vector<8x1x128xf32> to vector<8x128xf32>
    %460 = vector.shape_cast %457 : vector<8x128xf32> to vector<8x1x128xf32>
    tpu.vector_store %arg15[%c0_92, %c6, %c0_93], %460 {strides = array<i32>} : memref<8x8x128xf32, #tpu.memory_space<vmem>>, vector<8x1x128xf32>,
    %cst_94 = arith.constant dense<0.000000e+00> : vector<8x512xf32>
    %461 = tpu.matmul %457, %248, %cst_94 {dimension_numbers = #tpu.dot_dimension_numbers<[1], [0], [0], [1], [0, 0, 1, 1], [], []>} : vector<8x128xf32>, vector<128x512xf32>, vector<8x512xf32> -> vector<8x512xf32>
    %462 = arith.addf %247, %461 : vector<8x512xf32>
    %463 = vector.extract_strided_slice %462 {offsets = [0, 0], sizes = [8, 128], strides = [1, 1]} : vector<8x512xf32> to vector<8x128xf32>
    %464 = arith.negf %463 : vector<8x128xf32>
    %465 = math.exp %464 : vector<8x128xf32>
    %cst_95 = arith.constant 1.000000e+00 : f32
    %466 = vector.broadcast %cst_95 : f32 to vector<8x128xf32>
    %467 = arith.addf %466, %465 : vector<8x128xf32>
    %468 = arith.divf %466, %467 : vector<8x128xf32>
    %469 = vector.extract_strided_slice %462 {offsets = [0, 128], sizes = [8, 128], strides = [1, 1]} : vector<8x512xf32> to vector<8x128xf32>
    %470 = arith.negf %469 : vector<8x128xf32>
    %471 = math.exp %470 : vector<8x128xf32>
    %cst_96 = arith.constant 1.000000e+00 : f32
    %472 = vector.broadcast %cst_96 : f32 to vector<8x128xf32>
    %473 = arith.addf %472, %471 : vector<8x128xf32>
    %474 = arith.divf %472, %473 : vector<8x128xf32>
    %475 = vector.extract_strided_slice %462 {offsets = [0, 256], sizes = [8, 128], strides = [1, 1]} : vector<8x512xf32> to vector<8x128xf32>
    %476 = math.tanh %475 : vector<8x128xf32>
    %477 = vector.extract_strided_slice %462 {offsets = [0, 384], sizes = [8, 128], strides = [1, 1]} : vector<8x512xf32> to vector<8x128xf32>
    %478 = arith.negf %477 : vector<8x128xf32>
    %479 = math.exp %478 : vector<8x128xf32>
    %cst_97 = arith.constant 1.000000e+00 : f32
    %480 = vector.broadcast %cst_97 : f32 to vector<8x128xf32>
    %481 = arith.addf %480, %479 : vector<8x128xf32>
    %482 = arith.divf %480, %481 : vector<8x128xf32>
    %483 = arith.mulf %474, %455 : vector<8x128xf32>
    %484 = arith.mulf %468, %476 : vector<8x128xf32>
    %485 = arith.addf %483, %484 : vector<8x128xf32>
    %486 = math.tanh %485 : vector<8x128xf32>
    %487 = arith.mulf %482, %486 : vector<8x128xf32>
    %c0_98 = arith.constant 0 : index
    %c7 = arith.constant 7 : index
    %c0_99 = arith.constant 0 : index
    %488 = vector.load %arg15[%c0_98, %c7, %c0_99] : memref<8x8x128xf32, #tpu.memory_space<vmem>>, vector<8x1x128xf32>
    %489 = vector.shape_cast %488 : vector<8x1x128xf32> to vector<8x128xf32>
    %490 = vector.shape_cast %487 : vector<8x128xf32> to vector<8x1x128xf32>
    tpu.vector_store %arg15[%c0_98, %c7, %c0_99], %490 {strides = array<i32>} : memref<8x8x128xf32, #tpu.memory_space<vmem>>, vector<8x1x128xf32>,
    %c0_100 = arith.constant 0 : index
    %c0_101 = arith.constant 0 : index
    %c0_102 = arith.constant 0 : index
    %491 = vector.load %arg15[%c0_100, %c0_101, %c0_102] : memref<8x8x128xf32, #tpu.memory_space<vmem>>, vector<8x8x128xf32>
    %c0_103 = arith.constant 0 : index
    %c0_104 = arith.constant 0 : index
    %492 = vector.load %arg7[%c0_103, %c0_104] : memref<1x128xf32, #tpu.memory_space<vmem>>, vector<1x128xf32>
    %493 = vector.shape_cast %492 : vector<1x128xf32> to vector<1x1x128xf32>
    %494 = vector.broadcast %493 : vector<1x1x128xf32> to vector<8x8x128xf32>
    %495 = arith.mulf %491, %494 : vector<8x8x128xf32>
    %cst_105 = arith.constant dense<0.000000e+00> : vector<8x8xf32>
    %496 = vector.multi_reduction <add>, %495, %cst_105 [2] : vector<8x8x128xf32> to vector<8x8xf32>
    %c0_106 = arith.constant 0 : index
    %c0_107 = arith.constant 0 : index
    %497 = vector.load %arg8[%c0_106, %c0_107] : memref<1x1xf32, #tpu.memory_space<vmem>>, vector<1x1xf32>
    %498 = vector.broadcast %497 : vector<1x1xf32> to vector<8x8xf32>
    %499 = arith.addf %496, %498 : vector<8x8xf32>
    %c0_108 = arith.constant 0 : index
    %c0_109 = arith.constant 0 : index
    %500 = vector.load %arg13[%c0_108, %c0_109] : memref<8x8xf32, #tpu.memory_space<vmem>>, vector<8x8xf32>
    tpu.vector_store %arg13[%c0_108, %c0_109], %499 {strides = array<i32>} : memref<8x8xf32, #tpu.memory_space<vmem>>, vector<8x8xf32>,
    %c0_110 = arith.constant 0 : index
    %c0_111 = arith.constant 0 : index
    %501 = vector.load %arg9[%c0_110, %c0_111] : memref<128x128xf32, #tpu.memory_space<vmem>>, vector<128x128xf32>
    %cst_112 = arith.constant dense<0.000000e+00> : vector<8x128xf32>
    %502 = tpu.matmul %487, %501, %cst_112 {dimension_numbers = #tpu.dot_dimension_numbers<[1], [0], [0], [1], [0, 0, 1, 1], [], []>} : vector<8x128xf32>, vector<128x128xf32>, vector<8x128xf32> -> vector<8x128xf32>
    %c0_113 = arith.constant 0 : index
    %c0_114 = arith.constant 0 : index
    %503 = vector.load %arg10[%c0_113, %c0_114] : memref<1x128xf32, #tpu.memory_space<vmem>>, vector<1x128xf32>
    %504 = vector.broadcast %503 : vector<1x128xf32> to vector<8x128xf32>
    %505 = arith.addf %502, %504 : vector<8x128xf32>
    %c0_115 = arith.constant 0 : index
    %c0_116 = arith.constant 0 : index
    %506 = vector.load %arg11[%c0_115, %c0_116] : memref<128x128xf32, #tpu.memory_space<vmem>>, vector<128x128xf32>
    %cst_117 = arith.constant dense<0.000000e+00> : vector<8x128xf32>
    %507 = tpu.matmul %505, %506, %cst_117 {dimension_numbers = #tpu.dot_dimension_numbers<[1], [0], [0], [1], [0, 0, 1, 1], [], []>} : vector<8x128xf32>, vector<128x128xf32>, vector<8x128xf32> -> vector<8x128xf32>
    %c0_118 = arith.constant 0 : index
    %c0_119 = arith.constant 0 : index
    %508 = vector.load %arg12[%c0_118, %c0_119] : memref<1x128xf32, #tpu.memory_space<vmem>>, vector<1x128xf32>
    %509 = vector.broadcast %508 : vector<1x128xf32> to vector<8x128xf32>
    %510 = arith.addf %507, %509 : vector<8x128xf32>
    %c0_120 = arith.constant 0 : index
    %c0_121 = arith.constant 0 : index
    %511 = vector.load %arg14[%c0_120, %c0_121] : memref<8x128xf32, #tpu.memory_space<vmem>>, vector<8x128xf32>
    tpu.vector_store %arg14[%c0_120, %c0_121], %510 {strides = array<i32>} : memref<8x128xf32, #tpu.memory_space<vmem>>, vector<8x128xf32>,
    return
  }
}

</mosaic_0001>

<bundles_post_ra>
// kernel: tpu_custom_call.1
= control target key start
LH: loop header
LB: loop body
LE: loop exit
PB: predicated region body
PF: predicated region fallthrough
CT: control target
= control target key end

     0   :  { %s11969_s0 = inlined_call_operand.hbm [shape: f32[8,8,16], index: 0, kind: input, shape index: {}]   ;;  %s11970_s1 = inlined_call_operand.hbm [shape: f32[16,512], index: 1, kind: input, shape index: {}]   ;;  %s11971_s2 = inlined_call_operand.hbm [shape: f32[128,512], index: 2, kind: input, shape index: {}]   ;;  %s11972_s3 = inlined_call_operand.vmem [shape: f32[1,512], index: 3, kind: input, shape index: {}]   ;;  %s11973_s4 = inlined_call_operand.hbm [shape: f32[128,512], index: 4, kind: input, shape index: {}]   ;;  %s11974_s5 = inlined_call_operand.hbm [shape: f32[128,512], index: 5, kind: input, shape index: {}]   ;;  %s11975_s6 = inlined_call_operand.vmem [shape: f32[1,512], index: 6, kind: input, shape index: {}]   ;;  %s11976_s7 = inlined_call_operand.vmem [shape: f32[1,128], index: 7, kind: input, shape index: {}]   ;;  %s11977_s8 = inlined_call_operand.<no memory space> [shape: f32[1,1], index: 8, kind: input, shape index: {}]   ;;  %s11978_s9 = inlined_call_operand.hbm [shape: f32[128,128], index: 9, kind: input, shape index: {}]   ;;  %s11979_s10 = inlined_call_operand.vmem [shape: f32[1,128], index: 10, kind: input, shape index: {}]   ;;  %s11980_s11 = inlined_call_operand.hbm [shape: f32[128,128], index: 11, kind: input, shape index: {}]   ;;  %s11981_s12 = inlined_call_operand.vmem [shape: f32[1,128], index: 12, kind: input, shape index: {}]   ;;  %s11982_s13 = inlined_call_operand.hbm [shape: f32[8,8], index: 13, kind: output, shape index: {0}]   ;;  %s11983_s14 = inlined_call_operand.hbm [shape: f32[8,128], index: 14, kind: output, shape index: {1}]  }
   0x1   :  { %v20_v0 = vstv %s11977_s8 }
   0x2   :  { %21 = vst [vmem:[#allocation3] sm:$0x1] %v20_v0 }
   0x3   :  { %22 = vsyncpa [#allocation5], 0 }
   0x4   :  { %23 = vsyncpa [#allocation8], 0 }
   0x5   :  { %24 = vsyncpa [#allocation11], 0 }
   0x6   :  { %25 = vsyncpa [#allocation14], 0 }
   0x7   :  { %26 = vsyncpa [#allocation6], 0 }
   0x8   :  { %27 = vsyncpa [#allocation18], 0  ;;  %s9702_s15 = smov [#allocation7]   ;;  %s9492_s19 = scalar_lea.hbm %s11970_s1, 1024 }
   0x9   :  { %s45_s16 = sshll.u32 %s9702_s15, 4  ;;  %p9493_p0 = scmp.ne.s32.totalorder %s11970_s1, %s9492_s19  ;;  %s46_s16 = int_to_ptr.vmem [resolvable:$true] %s45_s16 }
   0xa   :  { %p9496_p1 = scmp.lt.u32.totalorder %s9492_s19, %s11970_s1 }
   0xc   :  { %p9498_p2 = pnand %p9496_p1, %p9493_p0 }
   0xe   :  { %9501 = shalt.err (!%p9498_p2)
}
   0xf   :  { %s9502_s23 = scalar_lea.vmem %s46_s16, 1024  ;;  %p9507_p4 = scmp.lt.s32.totalorder %s46_s16, %s46_s16 }
  0x10   :  { %p9503_p3 = scmp.ne.s32.totalorder %s46_s16, %s9502_s23  ;;  %p9508_p5 = scmp.lt.s32.totalorder %s9502_s23, %s9502_s23 }
  0x12   :  { %p9509_p6 = por %p9508_p5, %p9507_p4 }
  0x14   :  { %p9510_p7 = pnand %p9509_p6, %p9503_p3 }
  0x16   :  { %9513 = shalt.err (!%p9510_p7)
}
  0x17   :  { %s9703_s24 = smov 512   ;;  %s9704_s25 = smov 32  }
  0x18   :  { %51 = dma.hbm_to_vmem [thread:$0]  %s11970_s1, 1024, %s46_s16, [#allocation8], %s9703_s24, %s9703_s24, %s9704_s25  }
  0x19   :  { %s9705_s28 = smov [#allocation10]   ;;  %s9514_s17 = scalar_lea.hbm %s11973_s4, 8192 }
  0x1a   :  { %s71_s29 = sshll.u32 %s9705_s28, 4  ;;  %p9515_p8 = scmp.ne.s32.totalorder %s11973_s4, %s9514_s17  ;;  %s72_s29 = int_to_ptr.vmem [resolvable:$true] %s71_s29 }
  0x1b   :  { %p9518_p9 = scmp.lt.u32.totalorder %s9514_s17, %s11973_s4 }
  0x1d   :  { %p9520_p10 = pnand %p9518_p9, %p9515_p8 }
  0x1f   :  { %9523 = shalt.err (!%p9520_p10)
}
  0x20   :  { %s9524_s22 = scalar_lea.vmem %s72_s29, 8192  ;;  %p9529_p12 = scmp.lt.s32.totalorder %s72_s29, %s72_s29 }
  0x21   :  { %p9525_p11 = scmp.ne.s32.totalorder %s72_s29, %s9524_s22  ;;  %p9530_p13 = scmp.lt.s32.totalorder %s9524_s22, %s9524_s22 }
  0x23   :  { %p9531_p0 = por %p9530_p13, %p9529_p12 }
  0x25   :  { %p9532_p1 = pnand %p9531_p0, %p9525_p11 }
  0x27   :  { %9535 = shalt.err (!%p9532_p1)
}
  0x28   :  { %77 = dma.hbm_to_vmem [thread:$0]  %s11973_s4, 8192, %s72_s29, [#allocation11], %s9703_s24, %s9703_s24, %s9704_s25  }
  0x29   :  { %s9706_s8 = smov [#allocation13]   ;;  %s9707_s26 = smov [#allocation4]  }
  0x2a   :  { %s101_s23 = sshll.u32 %s9706_s8, 4  ;;  %s33_s27 = sshll.u32 %s9707_s26, 4  ;;  %s102_s23 = int_to_ptr.vmem [resolvable:$true] %s101_s23  ;;  %s9828_s27 = int_to_ptr.vmem [resolvable:$true] %s33_s27 }
  0x2b   :  { %s9536_s15 = scalar_lea.hbm %s11978_s9, 2048 }
  0x2c   :  { %p9537_p2 = scmp.ne.s32.totalorder %s11978_s9, %s9536_s15  ;;  %p9540_p3 = scmp.lt.u32.totalorder %s9536_s15, %s11978_s9 }
  0x2e   :  { %p9542_p4 = pnand %p9540_p3, %p9537_p2 }
  0x30   :  { %9545 = shalt.err (!%p9542_p4)
}
  0x31   :  { %s9546_s4 = scalar_lea.vmem %s102_s23, 2048  ;;  %p9551_p6 = scmp.lt.s32.totalorder %s102_s23, %s102_s23 }
  0x32   :  { %p9547_p5 = scmp.ne.s32.totalorder %s102_s23, %s9546_s4  ;;  %p9552_p7 = scmp.lt.s32.totalorder %s9546_s4, %s9546_s4 }
  0x34   :  { %p9553_p8 = por %p9552_p7, %p9551_p6 }
  0x36   :  { %p9554_p9 = pnand %p9553_p8, %p9547_p5 }
  0x38   :  { %9557 = shalt.err (!%p9554_p9)
}
  0x39   :  { %s9708_s29 = smov 128   ;;  %s9709_s21 = smov 8  }
  0x3a   :  { %107 = dma.hbm_to_vmem [thread:$0]  %s11978_s9, 2048, %s102_s23, [#allocation14], %s9708_s29, %s9708_s29, %s9709_s21  }
  0x3b   :  { %s9558_s26 = scalar_lea.hbm %s11969_s0, 1024 }
  0x3c   :  { %p9559_p10 = scmp.ne.s32.totalorder %s11969_s0, %s9558_s26  ;;  %p9562_p11 = scmp.lt.u32.totalorder %s9558_s26, %s11969_s0 }
  0x3e   :  { %p9564_p12 = pnand %p9562_p11, %p9559_p10 }
  0x40   :  { %9567 = shalt.err (!%p9564_p12)
}
  0x41   :  { %s9568_s18 = scalar_lea.vmem %s9828_s27, 1024  ;;  %p9573_p0 = scmp.lt.s32.totalorder %s9828_s27, %s9828_s27 }
  0x42   :  { %p9569_p13 = scmp.ne.s32.totalorder %s9828_s27, %s9568_s18  ;;  %p9574_p1 = scmp.lt.s32.totalorder %s9568_s18, %s9568_s18 }
  0x44   :  { %p9575_p2 = por %p9574_p1, %p9573_p0 }
  0x46   :  { %p9576_p3 = pnand %p9575_p2, %p9569_p13 }
  0x48   :  { %9579 = shalt.err (!%p9576_p3)
}
  0x49   :  { %39 = dma.hbm_to_vmem [thread:$0]  %s11969_s0, 1024, %s9828_s27, [#allocation5], %s9708_s29, %s9708_s29, %s9709_s21  }
  0x4a   :  { %s9710_s19 = smov [#allocation9]   ;;  %s9711_s4 = smov [#allocation12]  }
  0x4b   :  { %s57_s20 = sshll.u32 %s9710_s19, 4  ;;  %s83_s22 = sshll.u32 %s9711_s4, 4  ;;  %s58_s20 = int_to_ptr.vmem [resolvable:$true] %s57_s20  ;;  %s9865_s22 = int_to_ptr.vmem [resolvable:$true] %s83_s22 }
  0x4c   :  { %s9580_s8 = scalar_lea.hbm %s11971_s2, 8192 }
  0x4d   :  { %p9581_p4 = scmp.ne.s32.totalorder %s11971_s2, %s9580_s8  ;;  %p9584_p5 = scmp.lt.u32.totalorder %s9580_s8, %s11971_s2 }
  0x4f   :  { %p9586_p6 = pnand %p9584_p5, %p9581_p4 }
  0x51   :  { %9589 = shalt.err (!%p9586_p6)
}
  0x52   :  { %s9590_s0 = scalar_lea.vmem %s58_s20, 8192  ;;  %p9595_p8 = scmp.lt.s32.totalorder %s58_s20, %s58_s20 }
  0x53   :  { %p9591_p7 = scmp.ne.s32.totalorder %s58_s20, %s9590_s0  ;;  %p9596_p9 = scmp.lt.s32.totalorder %s9590_s0, %s9590_s0 }
  0x55   :  { %p9597_p10 = por %p9596_p9, %p9595_p8 }
  0x57   :  { %p9598_p11 = pnand %p9597_p10, %p9591_p7 }
  0x59   :  { %9601 = shalt.err (!%p9598_p11)
}
  0x5a   :  { %63 = dma.hbm_to_vmem [thread:$0]  %s11971_s2, 8192, %s58_s20, [#allocation8], %s9703_s24, %s9703_s24, %s9704_s25  }
  0x5b   :  { %s9602_s23 = scalar_lea.hbm %s11974_s5, 8192 }
  0x5c   :  { %p9603_p12 = scmp.ne.s32.totalorder %s11974_s5, %s9602_s23  ;;  %p9606_p13 = scmp.lt.u32.totalorder %s9602_s23, %s11974_s5 }
  0x5e   :  { %p9608_p0 = pnand %p9606_p13, %p9603_p12 }
  0x60   :  { %9611 = shalt.err (!%p9608_p0)
}
  0x61   :  { %s9612_s8 = scalar_lea.vmem %s9865_s22, 8192  ;;  %p9617_p2 = scmp.lt.s32.totalorder %s9865_s22, %s9865_s22 }
  0x62   :  { %p9613_p1 = scmp.ne.s32.totalorder %s9865_s22, %s9612_s8  ;;  %p9618_p3 = scmp.lt.s32.totalorder %s9612_s8, %s9612_s8 }
  0x64   :  { %p9619_p4 = por %p9618_p3, %p9617_p2 }
  0x66   :  { %p9620_p5 = pnand %p9619_p4, %p9613_p1 }
  0x68   :  { %9623 = shalt.err (!%p9620_p5)
}
  0x69   :  { %89 = dma.hbm_to_vmem [thread:$0]  %s11974_s5, 8192, %s9865_s22, [#allocation11], %s9703_s24, %s9703_s24, %s9704_s25  }
  0x6a   :  { %s9712_s26 = smov [#allocation15]   ;;  %s9624_s0 = scalar_lea.hbm %s11980_s11, 2048 }
  0x6b   :  { %s115_s28 = sshll.u32 %s9712_s26, 4  ;;  %p9625_p6 = scmp.ne.s32.totalorder %s11980_s11, %s9624_s0  ;;  %s116_s28 = int_to_ptr.vmem [resolvable:$true] %s115_s28 }
  0x6c   :  { %p9628_p7 = scmp.lt.u32.totalorder %s9624_s0, %s11980_s11 }
  0x6e   :  { %p9630_p8 = pnand %p9628_p7, %p9625_p6 }
  0x70   :  { %9633 = shalt.err (!%p9630_p8)
}
  0x71   :  { %s9634_s23 = scalar_lea.vmem %s116_s28, 2048  ;;  %p9639_p10 = scmp.lt.s32.totalorder %s116_s28, %s116_s28 }
  0x72   :  { %p9635_p9 = scmp.ne.s32.totalorder %s116_s28, %s9634_s23  ;;  %p9640_p11 = scmp.lt.s32.totalorder %s9634_s23, %s9634_s23 }
  0x74   :  { %p9641_p12 = por %p9640_p11, %p9639_p10 }
  0x76   :  { %p9642_p13 = pnand %p9641_p12, %p9635_p9 }
  0x78   :  { %9645 = shalt.err (!%p9642_p13)
}
  0x79   :  { %121 = dma.hbm_to_vmem [thread:$0]  %s11980_s11, 2048, %s116_s28, [#allocation14], %s9708_s29, %s9708_s29, %s9709_s21  }
  0x7a   :  { %9690 = dma.done.wait [#allocation5], 1024  }
  0x7b   :  { %9691 = vsyncadd [#allocation5], 4294966272 }
  0x7c   :  { %9692 = dma.done.wait [#allocation8], 9216  }
  0x7d   :  { %9693 = vsyncadd [#allocation8], 4294958080 }
  0x7e   :  { %9694 = dma.done.wait [#allocation11], 16384  }
  0x7f   :  { %9695 = vsyncadd [#allocation11], 4294950912 }
  0x80   :  { %9696 = dma.done.wait [#allocation14], 4096  }
  0x81   :  { %9697 = vsyncadd [#allocation14], 4294963200  ;;  %v11985_v1 = vmov 0.0   ;;  %v154_v2 = vld [vmem:[#allocation7 + $0x8] sm:$0xff]  ;;  %v156_v4 = vld [vmem:[#allocation7 + $0x18] sm:$0xff]  ;;  %vm183_vm0 = vcmask 130048  }
  0x82   :  { %272 = vmatprep.mubr.f32.mxu0 %v11985_v1  ;;  %385 = vmatprep.mubr.f32.mxu1 %v11985_v1  ;;  %v158_v3 = vld [vmem:[#allocation7 + $0x28] sm:$0xff]  ;;  %v160_v6 = vld [vmem:[#allocation7 + $0x38] sm:$0xff]  ;;  %v153_v7 = vld [vmem:[#allocation7] sm:$0xff]  ;;  %vm937_vm1 = vcmask 1041409   ;;  %vm940_vm2 = vcmask 1042434   ;;  %vm943_vm3 = vcmask 1043459  }
  0x83   :  { %v7177_v5 = vpack.c.bf16 %v158_v3, %v154_v2  ;;  %v157_v8 = vld [vmem:[#allocation7 + $0x20] sm:$0xff]  ;;  %v7181_v9 = vpack.c.bf16 %v160_v6, %v156_v4  ;;  %v155_v11 = vld [vmem:[#allocation7 + $0x10] sm:$0xff]  ;;  %v435_v15 = vld [vmem:[#allocation9 + $0x8] sm:$0xff]  ;;  %vm946_vm4 = vcmask 1044484   ;;  %vm949_vm5 = vcmask 1045509   ;;  %s9718_s19 = smov [#allocation16]  }
  0x84   :  { %v7179_v10 = vpack.c.bf16 %v157_v8, %v153_v7  ;;  %v159_v12 = vld [vmem:[#allocation7 + $0x30] sm:$0xff]  ;;  %v145_v13 = vld [vmem:[#allocation4] sm:$0xff]  ;;  %v439_v16 = vld [vmem:[#allocation9 + $0x28] sm:$0xff]  ;;  %vm952_vm6 = vcmask 1046534   ;;  %vm955_vm7 = vcmask 1047559   ;;  %vm9716_vm8 = vmmov 0  }
  0x85   :  { %7178 = vmatprep.subr.bf16.mxu0 %v7177_v5  ;;  %v7183_v14 = vpack.c.bf16 %v159_v12, %v155_v11  ;;  %v437_v17 = vld [vmem:[#allocation9 + $0x18] sm:$0xff]  ;;  %7182 = vmatprep.subr.bf16.mxu1 %v7181_v9  ;;  %v9919_v18 = vpack.c.bf16 %v439_v16, %v435_v15  ;;  %v434_v20 = vld [vmem:[#allocation9] sm:$0xff]  ;;  %v436_v24 = vld [vmem:[#allocation9 + $0x10] sm:$0xff]  ;;  %vm6584_vm9 = vcmask 64512   ;;  %s6779_s4 = sshll.u32 %s9718_s19, 4  ;;  %s6780_s4 = int_to_ptr.vmem [resolvable:$true] %s6779_s4 }
  0x86   :  { %7180 = vmatpush1.bf16.msra.mxu0 %v7179_v10  ;;  %v441_v19 = vld [vmem:[#allocation9 + $0x38] sm:$0xff]  ;;  %v438_v21 = vld [vmem:[#allocation9 + $0x20] sm:$0xff]  ;;  %v440_v25 = vld [vmem:[#allocation9 + $0x30] sm:$0xff]  ;;  %s9646_s1 = scalar_lea.vmem %s6780_s4, 128  ;;  %p9651_p1 = scmp.lt.s32.totalorder %s6780_s4, %s6780_s4 }
  0x87   :  { %12101 = vst [vmem:[#allocation25_spill] sm:$0xff] %v9919_v18  ;;  %7184 = vmatpush1.bf16.msra.mxu1 %v7183_v14  ;;  %v9921_v22 = vpack.c.bf16 %v441_v19, %v437_v17  ;;  %v9923_v23 = vpack.c.bf16 %v438_v21, %v434_v20  ;;  %7186 = vmatprep.subr.bf16.mxu0 %v9919_v18  ;;  %v443_v27 = vld [vmem:[#allocation9 + $0x48] sm:$0xff]  ;;  %v445_v29 = vld [vmem:[#allocation9 + $0x58] sm:$0xff]  ;;  %v442_v32 = vld [vmem:[#allocation9 + $0x40] sm:$0xff]  ;;  %p9647_p0 = scmp.ne.s32.totalorder %s6780_s4, %s9646_s1  ;;  %p9652_p2 = scmp.lt.s32.totalorder %s9646_s1, %s9646_s1 }
  0x88   :  { %v9926_v26 = vpack.c.bf16 %v440_v25, %v436_v24  ;;  %v447_v28 = vld [vmem:[#allocation9 + $0x68] sm:$0xff]  ;;  %v449_v31 = vld [vmem:[#allocation9 + $0x78] sm:$0xff]  ;;  %v446_v33 = vld [vmem:[#allocation9 + $0x60] sm:$0xff] }
  0x89   :  { %12102 = vst [vmem:[#allocation26_spill] sm:$0xff] %v9921_v22  ;;  %6805 = vmatmul.mubr.msk.f32.vlgmr.msra.gmra.mrb[0].mxu0 %vm183_vm0, %v145_v13  ;;  %7218 = vmatprep.subr.bf16.mxu1 %v9921_v22  ;;  %v9930_v30 = vpack.c.bf16 %v447_v28, %v443_v27  ;;  %v146_v34 = vld [vmem:[#allocation4 + $0x8] sm:$0xff]  ;;  %v9934_v35 = vpack.c.bf16 %v449_v31, %v445_v29  ;;  %v444_v37 = vld [vmem:[#allocation9 + $0x50] sm:$0xff]  ;;  %v453_v42 = vld [vmem:[#allocation9 + $0x98] sm:$0xff]  ;;  %p9653_p3 = por %p9652_p2, %p9651_p1 }
  0x8a   :  { %6813 = vmatmul.mubr.msk.f32.vlgmr.msra.gmra.mrb[0].mxu1 %vm183_vm0, %v145_v13  ;;  %7188 = vmatpush1.bf16.msra.mxu0 %v9923_v23  ;;  %v9936_v36 = vpack.c.bf16 %v446_v33, %v442_v32  ;;  %v448_v38 = vld [vmem:[#allocation9 + $0x70] sm:$0xff]  ;;  %v451_v40 = vld [vmem:[#allocation9 + $0x88] sm:$0xff]  ;;  %v457_v44 = vld [vmem:[#allocation9 + $0xb8] sm:$0xff] }
  0x8b   :  { %7220 = vmatpush1.bf16.msra.mxu1 %v9926_v26  ;;  %278 = vmatprep.mubr.f32.mxu0 %v11985_v1  ;;  %v9940_v39 = vpack.c.bf16 %v448_v38, %v444_v37  ;;  %v455_v41 = vld [vmem:[#allocation9 + $0xa8] sm:$0xff]  ;;  %v450_v45 = vld [vmem:[#allocation9 + $0x80] sm:$0xff]  ;;  %v147_v47 = vld [vmem:[#allocation4 + $0x10] sm:$0xff]  ;;  %v9948_v48 = vpack.c.bf16 %v457_v44, %v453_v42  ;;  %p9654_p4 = pnand %p9653_p3, %p9647_p0 }
  0x8c   :  { %391 = vmatprep.mubr.f32.mxu1 %v11985_v1  ;;  %7190 = vmatprep.subr.bf16.mxu0 %v9930_v30  ;;  %v9944_v43 = vpack.c.bf16 %v455_v41, %v451_v40  ;;  %v454_v46 = vld [vmem:[#allocation9 + $0xa0] sm:$0xff]  ;;  %v452_v49 = vld [vmem:[#allocation9 + $0x90] sm:$0xff]  ;;  %v459_v52 = vld [vmem:[#allocation9 + $0xc8] sm:$0xff] }
  0x8d   :  { %12103 = vst [vmem:[#allocation27_spill] sm:$0xff] %v9940_v39  ;;  %6806 = vmatmul.mubr.msk.f32.gmra.mrb[2].mxu0 %vm183_vm0, %v146_v34  ;;  %7222 = vmatprep.subr.bf16.mxu1 %v9934_v35  ;;  %12105 = vst [vmem:[#allocation29_spill] sm:$0xff] %v9948_v48  ;;  %v456_v50 = vld [vmem:[#allocation9 + $0xb0] sm:$0xff]  ;;  %v9952_v51 = vpack.c.bf16 %v454_v46, %v450_v45  ;;  %v463_v53 = vld [vmem:[#allocation9 + $0xe8] sm:$0xff] }
  0x8e   :  { %12104 = vst [vmem:[#allocation28_spill] sm:$0xff] %v9944_v43  ;;  %6814 = vmatmul.mubr.msk.f32.gmra.mrb[2].mxu1 %vm183_vm0, %v146_v34  ;;  %7192 = vmatpush1.bf16.msra.mxu0 %v9936_v36  ;;  %v461_v54 = vld [vmem:[#allocation9 + $0xd8] sm:$0xff]  ;;  %v9956_v55 = vpack.c.bf16 %v456_v50, %v452_v49  ;;  %v458_v57 = vld [vmem:[#allocation9 + $0xc0] sm:$0xff]  ;;  %v9960_v59 = vpack.c.bf16 %v463_v53, %v459_v52  ;;  %v460_v60 = vld [vmem:[#allocation9 + $0xd0] sm:$0xff] }
  0x8f   :  { %12106 = vst [vmem:[#allocation30_spill] sm:$0xff] %v9952_v51  ;;  %7224 = vmatpush1.bf16.msra.mxu1 %v9940_v39  ;;  %284 = vmatprep.mubr.f32.mxu0 %v11985_v1  ;;  %v465_v56 = vld [vmem:[#allocation9 + $0xf8] sm:$0xff]  ;;  %v462_v58 = vld [vmem:[#allocation9 + $0xe0] sm:$0xff]  ;;  %v464_v61 = vld [vmem:[#allocation9 + $0xf0] sm:$0xff] }
  0x90   :  { %12107 = vst [vmem:[#allocation31_spill] sm:$0xff] %v9956_v55  ;;  %397 = vmatprep.mubr.f32.mxu1 %v11985_v1  ;;  %7194 = vmatprep.subr.bf16.mxu0 %v9944_v43  ;;  %12108 = vst [vmem:[#allocation32_spill] sm:$0xff] %v9960_v59  ;;  %v9964_v62 = vpack.c.bf16 %v465_v56, %v461_v54  ;;  %v467_v63 = vld [vmem:[#allocation9 + $0x108] sm:$0xff]  ;;  %v148_v2 = vld [vmem:[#allocation4 + $0x18] sm:$0xff]  ;;  %v9968_v3 = vpack.c.bf16 %v462_v58, %v458_v57 }
  0x91   :  { %6807 = vmatmul.mubr.msk.f32.gmra.mrb[4].mxu0 %vm183_vm0, %v147_v47  ;;  %7226 = vmatprep.subr.bf16.mxu1 %v9948_v48  ;;  %v471_v0 = vld [vmem:[#allocation9 + $0x128] sm:$0xff]  ;;  %v469_v4 = vld [vmem:[#allocation9 + $0x118] sm:$0xff]  ;;  %v9972_v6 = vpack.c.bf16 %v464_v61, %v460_v60  ;;  %v466_v7 = vld [vmem:[#allocation9 + $0x100] sm:$0xff] }
  0x92   :  { %12109 = vst [vmem:[#allocation33_spill] sm:$0xff] %v9964_v62  ;;  %6815 = vmatmul.mubr.msk.f32.gmra.mrb[4].mxu1 %vm183_vm0, %v147_v47  ;;  %7196 = vmatpush1.bf16.msra.mxu0 %v9952_v51  ;;  %12110 = vst [vmem:[#allocation34_spill] sm:$0xff] %v9968_v3  ;;  %v473_v5 = vld [vmem:[#allocation9 + $0x138] sm:$0xff]  ;;  %v470_v8 = vld [vmem:[#allocation9 + $0x120] sm:$0xff]  ;;  %v9976_v9 = vpack.c.bf16 %v471_v0, %v467_v63 }
  0x93   :  { %7228 = vmatpush1.bf16.msra.mxu1 %v9956_v55  ;;  %290 = vmatprep.mubr.f32.mxu0 %v11985_v1  ;;  %12111 = vst [vmem:[#allocation35_spill] sm:$0xff] %v9972_v6  ;;  %v468_v10 = vld [vmem:[#allocation9 + $0x110] sm:$0xff]  ;;  %v9980_v12 = vpack.c.bf16 %v473_v5, %v469_v4  ;;  %v475_v13 = vld [vmem:[#allocation9 + $0x148] sm:$0xff]  ;;  %v149_v15 = vld [vmem:[#allocation4 + $0x20] sm:$0xff]  ;;  %v9984_v16 = vpack.c.bf16 %v470_v8, %v466_v7 }
  0x94   :  { %403 = vmatprep.mubr.f32.mxu1 %v11985_v1  ;;  %7198 = vmatprep.subr.bf16.mxu0 %v9960_v59  ;;  %12112 = vst [vmem:[#allocation36_spill] sm:$0xff] %v9976_v9  ;;  %v472_v11 = vld [vmem:[#allocation9 + $0x130] sm:$0xff]  ;;  %v479_v14 = vld [vmem:[#allocation9 + $0x168] sm:$0xff]  ;;  %v477_v17 = vld [vmem:[#allocation9 + $0x158] sm:$0xff] }
  0x95   :  { %6808 = vmatmul.mubr.msk.f32.gmra.mrb[6].mxu0 %vm183_vm0, %v148_v2  ;;  %7230 = vmatprep.subr.bf16.mxu1 %v9964_v62  ;;  %12113 = vst [vmem:[#allocation37_spill] sm:$0xff] %v9980_v12  ;;  %12114 = vst [vmem:[#allocation38_spill] sm:$0xff] %v9984_v16  ;;  %v481_v19 = vld [vmem:[#allocation9 + $0x178] sm:$0xff]  ;;  %v9988_v20 = vpack.c.bf16 %v472_v11, %v468_v10  ;;  %v474_v21 = vld [vmem:[#allocation9 + $0x140] sm:$0xff]  ;;  %v9992_v25 = vpack.c.bf16 %v479_v14, %v475_v13 }
  0x96   :  { %6816 = vmatmul.mubr.msk.f32.gmra.mrb[6].mxu1 %vm183_vm0, %v148_v2  ;;  %7200 = vmatpush1.bf16.msra.mxu0 %v9968_v3  ;;  %v478_v24 = vld [vmem:[#allocation9 + $0x160] sm:$0xff]  ;;  %v476_v27 = vld [vmem:[#allocation9 + $0x150] sm:$0xff]  ;;  %v9996_v29 = vpack.c.bf16 %v481_v19, %v477_v17  ;;  %v483_v31 = vld [vmem:[#allocation9 + $0x188] sm:$0xff] }
  0x97   :  { %7232 = vmatpush1.bf16.msra.mxu1 %v9972_v6  ;;  %296 = vmatprep.mubr.f32.mxu0 %v11985_v1  ;;  %12115 = vst [vmem:[#allocation39_spill] sm:$0xff] %v9988_v20  ;;  %12116 = vst [vmem:[#allocation40_spill] sm:$0xff] %v9992_v25  ;;  %v480_v28 = vld [vmem:[#allocation9 + $0x170] sm:$0xff]  ;;  %v487_v32 = vld [vmem:[#allocation9 + $0x1a8] sm:$0xff]  ;;  %v10000_v34 = vpack.c.bf16 %v478_v24, %v474_v21 }
  0x98   :  { %409 = vmatprep.mubr.f32.mxu1 %v11985_v1  ;;  %7202 = vmatprep.subr.bf16.mxu0 %v9976_v9  ;;  %12117 = vst [vmem:[#allocation41_spill] sm:$0xff] %v9996_v29  ;;  %v150_v33 = vld [vmem:[#allocation4 + $0x28] sm:$0xff]  ;;  %v485_v37 = vld [vmem:[#allocation9 + $0x198] sm:$0xff]  ;;  %v10004_v40 = vpack.c.bf16 %v480_v28, %v476_v27  ;;  %v482_v41 = vld [vmem:[#allocation9 + $0x180] sm:$0xff]  ;;  %v10008_v44 = vpack.c.bf16 %v487_v32, %v483_v31 }
  0x99   :  { %6809 = vmatmul.mubr.msk.f32.gmra.mrb[8].mxu0 %vm183_vm0, %v149_v15  ;;  %7234 = vmatprep.subr.bf16.mxu1 %v9980_v12  ;;  %12118 = vst [vmem:[#allocation42_spill] sm:$0xff] %v10000_v34  ;;  %v489_v38 = vld [vmem:[#allocation9 + $0x1b8] sm:$0xff]  ;;  %v486_v42 = vld [vmem:[#allocation9 + $0x1a0] sm:$0xff]  ;;  %v484_v45 = vld [vmem:[#allocation9 + $0x190] sm:$0xff] }
  0x9a   :  { %6817 = vmatmul.mubr.msk.f32.gmra.mrb[8].mxu1 %vm183_vm0, %v149_v15  ;;  %7204 = vmatpush1.bf16.msra.mxu0 %v9984_v16  ;;  %12119 = vst [vmem:[#allocation43_spill] sm:$0xff] %v10004_v40  ;;  %12120 = vst [vmem:[#allocation44_spill] sm:$0xff] %v10008_v44  ;;  %v488_v46 = vld [vmem:[#allocation9 + $0x1b0] sm:$0xff]  ;;  %v10012_v47 = vpack.c.bf16 %v489_v38, %v485_v37  ;;  %v491_v49 = vld [vmem:[#allocation9 + $0x1c8] sm:$0xff]  ;;  %v10016_v53 = vpack.c.bf16 %v486_v42, %v482_v41  ;;  %v11984_v38 = vlaneseq }
  0x9b   :  { %7236 = vmatpush1.bf16.msra.mxu1 %v9988_v20  ;;  %302 = vmatprep.mubr.f32.mxu0 %v11985_v1  ;;  %v495_v50 = vld [vmem:[#allocation9 + $0x1e8] sm:$0xff]  ;;  %v151_v52 = vld [vmem:[#allocation4 + $0x30] sm:$0xff]  ;;  %v493_v54 = vld [vmem:[#allocation9 + $0x1d8] sm:$0xff]  ;;  %v10020_v57 = vpack.c.bf16 %v488_v46, %v484_v45 }
  0x9c   :  { %415 = vmatprep.mubr.f32.mxu1 %v11985_v1  ;;  %7206 = vmatprep.subr.bf16.mxu0 %v9992_v25  ;;  %12121 = vst [vmem:[#allocation45_spill] sm:$0xff] %v10012_v47  ;;  %12122 = vst [vmem:[#allocation46_spill] sm:$0xff] %v10016_v53  ;;  %v497_v56 = vld [vmem:[#allocation9 + $0x1f8] sm:$0xff]  ;;  %v490_v58 = vld [vmem:[#allocation9 + $0x1c0] sm:$0xff]  ;;  %v10024_v61 = vpack.c.bf16 %v495_v50, %v491_v49  ;;  %v10116_v49 = vshrl.u32 %v11984_v38, 7 }
  0x9d   :  { %6810 = vmatmul.mubr.msk.f32.gmra.mrb[10].mxu0 %vm183_vm0, %v150_v33  ;;  %7238 = vmatprep.subr.bf16.mxu1 %v9996_v29  ;;  %12123 = vst [vmem:[#allocation47_spill] sm:$0xff] %v10020_v57  ;;  %v494_v60 = vld [vmem:[#allocation9 + $0x1e0] sm:$0xff]  ;;  %v492_v63 = vld [vmem:[#allocation9 + $0x1d0] sm:$0xff]  ;;  %v10028_v2 = vpack.c.bf16 %v497_v56, %v493_v54  ;;  %v152_v4 = vld [vmem:[#allocation4 + $0x38] sm:$0xff] }
  0x9e   :  { %6818 = vmatmul.mubr.msk.f32.gmra.mrb[10].mxu1 %vm183_vm0, %v150_v33  ;;  %7208 = vmatpush1.bf16.msra.mxu0 %v10000_v34  ;;  %12124 = vst [vmem:[#allocation48_spill] sm:$0xff] %v10024_v61  ;;  %v496_v0 = vld [vmem:[#allocation9 + $0x1f0] sm:$0xff]  ;;  %v10032_v5 = vpack.c.bf16 %v494_v60, %v490_v58  ;;  %12128 = vst [vmem:[#allocation52_spill] sm:$0xff] %v10116_v49  ;;  %v12007_v58 = vsub.s32 0, %v10116_v49  ;;  %v161_v60 = vld [vmem:[%s11972_s3] sm:$0xf] }
  0x9f   :  { %7240 = vmatpush1.bf16.msra.mxu1 %v10004_v40  ;;  %308 = vmatprep.mubr.f32.mxu0 %v11985_v1  ;;  %12125 = vst [vmem:[#allocation49_spill] sm:$0xff] %v10028_v2  ;;  %v10036_v7 = vpack.c.bf16 %v496_v0, %v492_v63  ;;  %v12014_v38 = vsub.s32 1, %v10116_v49 }
  0xa0   :  { %421 = vmatprep.mubr.f32.mxu1 %v11985_v1  ;;  %7210 = vmatprep.subr.bf16.mxu0 %v10008_v44  ;;  %12126 = vst [vmem:[#allocation50_spill] sm:$0xff] %v10032_v5 }
  0xa1   :  { %6811 = vmatmul.mubr.msk.f32.gmra.mrb[12].mxu0 %vm183_vm0, %v151_v52  ;;  %7242 = vmatprep.subr.bf16.mxu1 %v10012_v47  ;;  %12127 = vst [vmem:[#allocation51_spill] sm:$0xff] %v10036_v7 }
  0xa2   :  { %6819 = vmatmul.mubr.msk.f32.gmra.mrb[12].mxu1 %vm183_vm0, %v151_v52  ;;  %7212 = vmatpush1.bf16.msra.mxu0 %v10016_v53 }
  0xa3   :  { %7244 = vmatpush1.bf16.msra.mxu1 %v10020_v57  ;;  %314 = vmatprep.mubr.f32.mxu0 %v11985_v1 }
  0xa4   :  { %427 = vmatprep.mubr.f32.mxu1 %v11985_v1  ;;  %7214 = vmatprep.subr.bf16.mxu0 %v10024_v61 }
  0xa5   :  { %6812 = vmatmul.mubr.msk.f32.gmra.mrb[14].mxu0 %vm183_vm0, %v152_v4  ;;  %7246 = vmatprep.subr.bf16.mxu1 %v10028_v2 }
  0xa6   :  { %6820 = vmatmul.mubr.msk.f32.gmra.mrb[14].mxu1 %vm183_vm0, %v152_v4  ;;  %7216 = vmatpush1.bf16.msra.mxu0 %v10032_v5 }
  0xa7   :  { %7248 = vmatpush1.bf16.msra.mxu1 %v10036_v7  ;;  %562 = vmatprep.mubr.f32.mxu0 %v11985_v1 }
  0xa8   :  { %633 = vmatprep.mubr.f32.mxu1 %v11985_v1  ;;  %7250 = vmatprep.subr.bf16.mxu0 %v9919_v18 }
  0xa9   :  { %563 = vmatmul.mubr.f32.vlgmr.msra.gmra.mrb[16].mxu0 %v11985_v1  ;;  %7282 = vmatprep.subr.bf16.mxu1 %v9921_v22 }
  0xaa   :  { %634 = vmatmul.mubr.f32.vlgmr.msra.gmra.mrb[16].mxu1 %v11985_v1  ;;  %7252 = vmatpush1.bf16.msra.mxu0 %v9923_v23 }
  0xab   :  { %7284 = vmatpush1.bf16.msra.mxu1 %v9926_v26  ;;  %7254 = vmatprep.subr.bf16.mxu0 %v9930_v30 }
  0xac   :  { %7286 = vmatprep.subr.bf16.mxu1 %v9934_v35  ;;  %1022 = vmatprep.mubr.f32.mxu0 %v11985_v1 }
  0xad   :  { %1093 = vmatprep.mubr.f32.mxu1 %v11985_v1  ;;  %v12017_v1 = vsub.s32 2, %v10116_v49 }
  0xae   :  { %7256 = vmatpush1.bf16.msra.mxu0 %v9936_v36 }
  0xaf   :  { %7288 = vmatpush1.bf16.msra.mxu1 %v9940_v39  ;;  %7258 = vmatprep.subr.bf16.mxu0 %v9944_v43 }
  0xb0   :  { %7290 = vmatprep.subr.bf16.mxu1 %v9948_v48 }
  0xb2   :  { %7260 = vmatpush1.bf16.msra.mxu0 %v9952_v51 }
  0xb3   :  { %7292 = vmatpush1.bf16.msra.mxu1 %v9956_v55  ;;  %7262 = vmatprep.subr.bf16.mxu0 %v9960_v59 }
  0xb4   :  { %7294 = vmatprep.subr.bf16.mxu1 %v9964_v62 }
  0xb6   :  { %7264 = vmatpush1.bf16.msra.mxu0 %v9968_v3 }
  0xb7   :  { %7296 = vmatpush1.bf16.msra.mxu1 %v9972_v6  ;;  %7266 = vmatprep.subr.bf16.mxu0 %v9976_v9 }
  0xb8   :  { %7298 = vmatprep.subr.bf16.mxu1 %v9980_v12 }
  0xba   :  { %7268 = vmatpush1.bf16.msra.mxu0 %v9984_v16 }
  0xbb   :  { %7300 = vmatpush1.bf16.msra.mxu1 %v9988_v20  ;;  %7270 = vmatprep.subr.bf16.mxu0 %v9992_v25 }
  0xbc   :  { %7302 = vmatprep.subr.bf16.mxu1 %v9996_v29 }
  0xbe   :  { %7272 = vmatpush1.bf16.msra.mxu0 %v10000_v34 }
  0xbf   :  { %7304 = vmatpush1.bf16.msra.mxu1 %v10004_v40  ;;  %7274 = vmatprep.subr.bf16.mxu0 %v10008_v44 }
  0xc0   :  { %7306 = vmatprep.subr.bf16.mxu1 %v10012_v47 }
  0xc2   :  { %7276 = vmatpush1.bf16.msra.mxu0 %v10016_v53 }
  0xc3   :  { %7308 = vmatpush1.bf16.msra.mxu1 %v10020_v57  ;;  %7278 = vmatprep.subr.bf16.mxu0 %v10024_v61  ;;  %v10144_v61 = vrot.slane %v161_v60, %v12014_v38  ;;  %v10148_v57 = vrot.slane %v161_v60, %v12017_v1 }
  0xc4   :  { %7310 = vmatprep.subr.bf16.mxu1 %v10028_v2 }
  0xc6   :  { %7280 = vmatpush1.bf16.msra.mxu0 %v10032_v5 }
  0xc7   :  { %7312 = vmatpush1.bf16.msra.mxu1 %v10036_v7  ;;  %7314 = vmatprep.subr.bf16.mxu0 %v9919_v18  ;;  %v166_v18 = vrot.slane %v161_v60, %v12007_v58 }
  0xc8   :  { %7346 = vmatprep.subr.bf16.mxu1 %v9921_v22 }
 0x15c   :  { %v274_v8 = vpop.f32.mrb[0].mxu0 }
 0x15d   :  { %v10085_v10 = vpop.f32.mrb[1].mxu0  ;;  %v10087_v11 = vpop.f32.mrb[0].mxu1  ;;  %v10153_v44 = vadd.f32 %v274_v8, %v166_v18 }
 0x15e   :  { %v10089_v13 = vpop.f32.mrb[1].mxu1 }
 0x15f   :  { %12129 = vst [vmem:[#allocation53_spill] sm:$0xff] %v10153_v44 }
 0x160   :  { %v280_v14 = vpop.f32.mrb[2].mxu0 }
 0x161   :  { %v10091_v15 = vpop.f32.mrb[3].mxu0  ;;  %v10093_v17 = vpop.f32.mrb[2].mxu1  ;;  %v10155_v58 = vadd.f32 %v280_v14, %v166_v18 }
 0x162   :  { %v10095_v19 = vpop.f32.mrb[3].mxu1 }
 0x163   :  { %12130 = vst [vmem:[#allocation54_spill] sm:$0xff] %v10155_v58 }
 0x164   :  { %v286_v21 = vpop.f32.mrb[4].mxu0 }
 0x165   :  { %v10097_v24 = vpop.f32.mrb[5].mxu0  ;;  %v10099_v27 = vpop.f32.mrb[4].mxu1  ;;  %v10157_v40 = vadd.f32 %v286_v21, %v166_v18 }
 0x166   :  { %v10101_v28 = vpop.f32.mrb[5].mxu1 }
 0x167   :  { %12131 = vst [vmem:[#allocation55_spill] sm:$0xff] %v10157_v40 }
 0x168   :  { %v292_v31 = vpop.f32.mrb[6].mxu0 }
 0x169   :  { %v10103_v32 = vpop.f32.mrb[7].mxu0  ;;  %v10105_v33 = vpop.f32.mrb[6].mxu1  ;;  %v10159_v34 = vadd.f32 %v292_v31, %v166_v18 }
 0x16a   :  { %v10107_v37 = vpop.f32.mrb[7].mxu1 }
 0x16b   :  { %12132 = vst [vmem:[#allocation56_spill] sm:$0xff] %v10159_v34 }
 0x16c   :  { %v298_v41 = vpop.f32.mrb[8].mxu0 }
 0x16d   :  { %v10109_v42 = vpop.f32.mrb[9].mxu0  ;;  %v10111_v45 = vpop.f32.mrb[8].mxu1  ;;  %v10161_v29 = vadd.f32 %v298_v41, %v166_v18 }
 0x16e   :  { %v10113_v46 = vpop.f32.mrb[9].mxu1 }
 0x16f   :  { %12133 = vst [vmem:[#allocation57_spill] sm:$0xff] %v10161_v29 }
 0x170   :  { %v304_v50 = vpop.f32.mrb[10].mxu0 }
 0x171   :  { %v10118_v52 = vpop.f32.mrb[11].mxu0  ;;  %v10120_v54 = vpop.f32.mrb[10].mxu1  ;;  %v10163_v38 = vadd.f32 %v304_v50, %v166_v18 }
 0x172   :  { %v10122_v56 = vpop.f32.mrb[11].mxu1 }
 0x173   :  { %12134 = vst [vmem:[#allocation58_spill] sm:$0xff] %v10163_v38 }
 0x174   :  { %v310_v63 = vpop.f32.mrb[12].mxu0 }
 0x175   :  { %v10128_v0 = vpop.f32.mrb[13].mxu0  ;;  %v10130_v4 = vpop.f32.mrb[12].mxu1  ;;  %v10165_v25 = vadd.f32 %v310_v63, %v166_v18 }
 0x176   :  { %v10134_v22 = vpop.f32.mrb[13].mxu1 }
 0x177   :  { %12135 = vst [vmem:[#allocation59_spill] sm:$0xff] %v10165_v25 }
 0x178   :  { %v316_v7 = vpop.f32.mrb[14].mxu0 }
 0x179   :  { %v10138_v5 = vpop.f32.mrb[15].mxu0  ;;  %v10140_v2 = vpop.f32.mrb[14].mxu1  ;;  %v10167_v1 = vadd.f32 %v316_v7, %v166_v18 }
 0x17a   :  { %v10151_v47 = vpop.f32.mrb[15].mxu1 }
 0x17b   :  { %12136 = vst [vmem:[#allocation60_spill] sm:$0xff] %v10167_v1 }
 0x17c   :  { %v564_v20 = vpop.f32.mrb[16].mxu0 }
 0x17d   :  { %v644_v53 = vrot.slane %v564_v20, 1  ;;  %v648_v16 = vrot.slane %v564_v20, 2  ;;  %v652_v12 = vrot.slane %v564_v20, 3  ;;  %v656_v8 = vrot.slane %v564_v20, 4  ;;  %v10169_v9 = vpop.f32.mrb[16].mxu1  ;;  %v10171_v14 = vpop.f32.mrb[17].mxu0 }
 0x17e   :  { %v660_v21 = vrot.slane %v564_v20, 5  ;;  %v664_v31 = vrot.slane %v564_v20, 6  ;;  %v668_v6 = vrot.slane %v564_v20, 7  ;;  %v704_v41 = vadd.f32 %v564_v20, %v10153_v44  ;;  %v10174_v50 = vpop.f32.mrb[17].mxu1 }
 0x17f   :  { %v708_v63 = vadd.f32 %v644_v53, %v10155_v58  ;;  %v712_v18 = vadd.f32 %v648_v16, %v10157_v40  ;;  %v716_v7 = vadd.f32 %v652_v12, %v10159_v34  ;;  %v720_v3 = vadd.f32 %v656_v8, %v10161_v29 }
 0x180   :  { %v724_v62 = vadd.f32 %v660_v21, %v10163_v38  ;;  %v728_v59 = vadd.f32 %v664_v31, %v10165_v25  ;;  %v6821_v55 = vmul.f32 -1.442695, %v704_v41  ;;  %v732_v51 = vadd.f32 %v668_v6, %v10167_v1 }
 0x181   :  { %v6822_v48 = vmul.f32 -1.442695, %v708_v63  ;;  %v6823_v43 = vmul.f32 -1.442695, %v712_v18  ;;  %v6824_v20 = vmul.f32 -1.442695, %v716_v7  ;;  %v10185_v44 = vadd.f32 %v10085_v10, %v10144_v61 }
 0x182   :  { %v12138_v16 = vsub.s32 3, %v10116_v49  ;;  %8340 = vpow2.f32 %v6821_v55  ;;  %v6825_v12 = vmul.f32 -1.442695, %v720_v3  ;;  %v10193_v8 = vadd.f32 %v10087_v11, %v10148_v57 }
 0x183   :  { %12137 = vst [vmem:[#allocation61_spill] sm:$0xff] %v10185_v44  ;;  %8342 = vpow2.f32 %v6822_v48  ;;  %v6826_v21 = vmul.f32 -1.442695, %v724_v62  ;;  %v646_v6 = vrot.slane %v10169_v9, 1  ;;  %v10198_v31 = vadd.f32 %v10093_v17, %v10148_v57 }
 0x184   :  { %v10189_v53 = vrot.slane %v161_v60, %v12138_v16  ;;  %12139 = vst [vmem:[#allocation62_spill] sm:$0xff] %v10193_v8  ;;  %8344 = vpow2.f32 %v6823_v43  ;;  %v6827_v10 = vmul.f32 -1.442695, %v728_v59  ;;  %v650_v41 = vrot.slane %v10169_v9, 2 }
 0x185   :  { %12140 = vst [vmem:[#allocation63_spill] sm:$0xff] %v10198_v31  ;;  %v10203_v55 = vadd.f32 %v10099_v27, %v10148_v57  ;;  %8346 = vpow2.f32 %v6824_v20  ;;  %v6828_v3 = vmul.f32 -1.442695, %v732_v51  ;;  %v654_v11 = vrot.slane %v10169_v9, 3 }
 0x186   :  { %v10208_v48 = vadd.f32 %v10111_v45, %v10148_v57  ;;  %8348 = vpow2.f32 %v6825_v12  ;;  %v658_v62 = vrot.slane %v10169_v9, 4  ;;  %v706_v43 = vadd.f32 %v10169_v9, %v10193_v8 }
 0x187   :  { %12141 = vst [vmem:[#allocation64_spill] sm:$0xff] %v10203_v55  ;;  %v10215_v59 = vadd.f32 %v10089_v13, %v10189_v53  ;;  %v10219_v17 = vadd.f32 %v10105_v33, %v10148_v57  ;;  %8350 = vpow2.f32 %v6826_v21  ;;  %v710_v51 = vadd.f32 %v646_v6, %v10198_v31 }
 0x188   :  { %12142 = vst [vmem:[#allocation65_spill] sm:$0xff] %v10208_v48  ;;  %v10224_v27 = vadd.f32 %v10091_v15, %v10144_v61  ;;  %v10228_v45 = vadd.f32 %v10095_v19, %v10189_v53  ;;  %8352 = vpow2.f32 %v6827_v10  ;;  %v714_v60 = vadd.f32 %v650_v41, %v10203_v55 }
 0x189   :  { %12143 = vst [vmem:[#allocation66_spill] sm:$0xff] %v10215_v59  ;;  %12144 = vst [vmem:[#allocation67_spill] sm:$0xff] %v10219_v17  ;;  %v10233_v13 = vadd.f32 %v10097_v24, %v10144_v61  ;;  %v10237_v33 = vadd.f32 %v10101_v28, %v10189_v53  ;;  %8354 = vpow2.f32 %v6828_v3  ;;  %v718_v63 = vadd.f32 %v654_v11, %v10219_v17 }
 0x18a   :  { %12145 = vst [vmem:[#allocation68_spill] sm:$0xff] %v10224_v27  ;;  %v10242_v15 = vadd.f32 %v10103_v32, %v10144_v61  ;;  %v10246_v19 = vadd.f32 %v10107_v37, %v10189_v53  ;;  %v722_v18 = vadd.f32 %v658_v62, %v10208_v48  ;;  %8356 = vtanh.f32 %v706_v43 }
 0x18b   :  { %12146 = vst [vmem:[#allocation69_spill] sm:$0xff] %v10233_v13  ;;  %v10251_v24 = vadd.f32 %v10109_v42, %v10144_v61  ;;  %v10255_v28 = vadd.f32 %v10120_v54, %v10148_v57  ;;  %v662_v7 = vrot.slane %v10169_v9, 5  ;;  %8358 = vtanh.f32 %v710_v51 }
 0x18c   :  { %12147 = vst [vmem:[#allocation70_spill] sm:$0xff] %v10242_v15  ;;  %v8341_v32 = vpop.eup %8340  ;;  %v10260_v20 = vadd.f32 %v10113_v46, %v10189_v53  ;;  %v10264_v37 = vadd.f32 %v10130_v4, %v10148_v57  ;;  %v666_v16 = vrot.slane %v10169_v9, 6  ;;  %8360 = vtanh.f32 %v714_v60 }
 0x18d   :  { %12148 = vst [vmem:[#allocation71_spill] sm:$0xff] %v10251_v24  ;;  %12149 = vst [vmem:[#allocation72_spill] sm:$0xff] %v10255_v28  ;;  %v8343_v42 = vpop.eup %8342  ;;  %v10269_v54 = vadd.f32 %v10118_v52, %v10144_v61  ;;  %v10273_v12 = vadd.f32 %v10128_v0, %v10144_v61  ;;  %v760_v21 = vadd.f32 1.0, %v8341_v32  ;;  %8362 = vtanh.f32 %v718_v63 }
 0x18e   :  { %12150 = vst [vmem:[#allocation73_spill] sm:$0xff] %v10264_v37  ;;  %v8345_v46 = vpop.eup %8344  ;;  %v10277_v6 = vadd.f32 %v10140_v2, %v10148_v57  ;;  %v761_v4 = vadd.f32 1.0, %v8343_v42  ;;  %v670_v10 = vrot.slane %v10169_v9, 7  ;;  %8364 = vtanh.f32 %v722_v18 }
 0x18f   :  { %12151 = vst [vmem:[#allocation74_spill] sm:$0xff] %v10269_v54  ;;  %12152 = vst [vmem:[#allocation75_spill] sm:$0xff] %v10273_v12  ;;  %v8347_v41 = vpop.eup %8346  ;;  %v762_v3 = vadd.f32 1.0, %v8345_v46  ;;  %8366 = vrcp.f32 %v760_v21  ;;  %v726_v52 = vadd.f32 %v662_v7, %v10255_v28  ;;  %v645_v11 = vrot.slane %v10171_v14, 1 }
 0x190   :  { %12153 = vst [vmem:[#allocation76_spill] sm:$0xff] %v10277_v6  ;;  %v8349_v0 = vpop.eup %8348  ;;  %v763_v62 = vadd.f32 1.0, %v8347_v41  ;;  %8368 = vrcp.f32 %v761_v4  ;;  %v730_v43 = vadd.f32 %v666_v16, %v10264_v37  ;;  %v649_v51 = vrot.slane %v10171_v14, 2 }
 0x191   :  { %v8351_v57 = vpop.eup %8350  ;;  %v764_v2 = vadd.f32 1.0, %v8349_v0  ;;  %8370 = vrcp.f32 %v762_v3  ;;  %v653_v9 = vrot.slane %v10171_v14, 3  ;;  %v657_v60 = vrot.slane %v10171_v14, 4 }
 0x192   :  { %v8353_v63 = vpop.eup %8352  ;;  %v765_v18 = vadd.f32 1.0, %v8351_v57  ;;  %8372 = vrcp.f32 %v763_v62  ;;  %v661_v7 = vrot.slane %v10171_v14, 5  ;;  %v705_v32 = vadd.f32 %v10171_v14, %v10185_v44 }
 0x193   :  { %v8355_v42 = vpop.eup %8354  ;;  %v766_v21 = vadd.f32 1.0, %v8353_v63  ;;  %8374 = vrcp.f32 %v764_v2  ;;  %v665_v16 = vrot.slane %v10171_v14, 6  ;;  %v709_v46 = vadd.f32 %v645_v11, %v10224_v27 }
 0x194   :  { %v8357_v4 = vpop.eup %8356  ;;  %v767_v41 = vadd.f32 1.0, %v8355_v42  ;;  %8376 = vrcp.f32 %v765_v18  ;;  %v669_v3 = vrot.slane %v10171_v14, 7  ;;  %v713_v0 = vadd.f32 %v649_v51, %v10233_v13 }
 0x195   :  { %v8359_v62 = vpop.eup %8358  ;;  %8378 = vrcp.f32 %v766_v21  ;;  %v734_v57 = vadd.f32 %v670_v10, %v10277_v6  ;;  %v717_v49 = vadd.f32 %v653_v9, %v10242_v15  ;;  %v721_v63 = vadd.f32 %v657_v60, %v10251_v24 }
 0x196   :  { %v8361_v2 = vpop.eup %8360  ;;  %v10298_v44 = vadd.f32 %v10138_v5, %v10144_v61  ;;  %8380 = vrcp.f32 %v767_v41  ;;  %v725_v11 = vadd.f32 %v661_v7, %v10269_v54  ;;  %v6829_v18 = vmul.f32 -1.442695, %v705_v32 }
 0x197   :  { %v8363_v14 = vpop.eup %8362  ;;  %8382 = vtanh.f32 %v726_v52  ;;  %v729_v51 = vadd.f32 %v665_v16, %v10273_v12  ;;  %v6830_v42 = vmul.f32 -1.442695, %v709_v46  ;;  %v647_v10 = vrot.slane %v10174_v50, 1 }
 0x198   :  { %12154 = vst [vmem:[#allocation77_spill] sm:$0xff] %v10298_v44  ;;  %v8365_v21 = vpop.eup %8364  ;;  %8384 = vtanh.f32 %v730_v43  ;;  %v733_v9 = vadd.f32 %v669_v3, %v10298_v44  ;;  %v6831_v60 = vmul.f32 -1.442695, %v713_v0  ;;  %v651_v24 = vrot.slane %v10174_v50, 2 }
 0x199   :  { %v8367_v61 = vpop.eup %8366  ;;  %8386 = vtanh.f32 %v734_v57  ;;  %v6832_v5 = vmul.f32 -1.442695, %v717_v49  ;;  %v6833_v41 = vmul.f32 -1.442695, %v721_v63  ;;  %v655_v7 = vrot.slane %v10174_v50, 3 }
 0x19a   :  { %v8369_v32 = vpop.eup %8368  ;;  %8388 = vpow2.f32 %v6829_v18  ;;  %v10306_v52 = vmul.f32 %v8367_v61, %v8357_v4  ;;  %v659_v16 = vrot.slane %v10174_v50, 4  ;;  %v707_v43 = vadd.f32 %v10174_v50, %v10215_v59 }
 0x19b   :  { %v8371_v46 = vpop.eup %8370  ;;  %8390 = vpow2.f32 %v6830_v42  ;;  %v6834_v3 = vmul.f32 -1.442695, %v725_v11  ;;  %v10311_v0 = vmul.f32 %v8369_v32, %v8359_v62  ;;  %v711_v57 = vadd.f32 %v647_v10, %v10228_v45 }
 0x19c   :  { %v8373_v49 = vpop.eup %8372  ;;  %8392 = vpow2.f32 %v6831_v60  ;;  %v6835_v63 = vmul.f32 -1.442695, %v729_v51  ;;  %v10314_v44 = vmul.f32 %v8371_v46, %v8361_v2  ;;  %v715_v4 = vadd.f32 %v651_v24, %v10237_v33 }
 0x19d   :  { %v8375_v18 = vpop.eup %8374  ;;  %8394 = vpow2.f32 %v6832_v5  ;;  %v6836_v61 = vmul.f32 -1.442695, %v733_v9  ;;  %v719_v12 = vadd.f32 %v655_v7, %v10246_v19  ;;  %v10318_v59 = vmul.f32 %v8373_v49, %v8363_v14 }
 0x19e   :  { %v8377_v42 = vpop.eup %8376  ;;  %8396 = vpow2.f32 %v6833_v41  ;;  %v723_v62 = vadd.f32 %v659_v16, %v10260_v20  ;;  %v6837_v11 = vmul.f32 -1.442695, %v707_v43  ;;  %v10321_v10 = vmul.f32 %v8375_v18, %v8365_v21 }
 0x19f   :  { %v8379_v60 = vpop.eup %8378  ;;  %8398 = vpow2.f32 %v6834_v3  ;;  %v6838_v2 = vmul.f32 -1.442695, %v711_v57  ;;  %v6839_v24 = vmul.f32 -1.442695, %v715_v4  ;;  %v6840_v9 = vmul.f32 -1.442695, %v719_v12 }
 0x1a0   :  { %v8381_v51 = vpop.eup %8380  ;;  %8400 = vpow2.f32 %v6835_v63  ;;  %v6841_v14 = vmul.f32 -1.442695, %v723_v62  ;;  %v10327_v16 = vadd.f32 %v10122_v56, %v10189_v53  ;;  %v663_v21 = vrot.slane %v10174_v50, 5 }
 0x1a1   :  { %v8383_v32 = vpop.eup %8382  ;;  %8402 = vpow2.f32 %v6836_v61  ;;  %v10334_v3 = vadd.f32 %v10134_v22, %v10189_v53  ;;  %v667_v12 = vrot.slane %v10174_v50, 6 }
 0x1a2   :  { %v8385_v5 = vpop.eup %8384  ;;  %8404 = vpow2.f32 %v6837_v11  ;;  %v10323_v7 = vmul.f32 %v8383_v32, %v8377_v42  ;;  %v727_v42 = vadd.f32 %v663_v21, %v10327_v16 }
 0x1a3   :  { %v8387_v41 = vpop.eup %8386  ;;  %8406 = vpow2.f32 %v6838_v2  ;;  %v10330_v43 = vmul.f32 %v8385_v5, %v8379_v60  ;;  %v731_v22 = vadd.f32 %v667_v12, %v10334_v3 }
 0x1a4   :  { %v8389_v46 = vpop.eup %8388  ;;  %8408 = vpow2.f32 %v6839_v24  ;;  %v10337_v57 = vmul.f32 %v8387_v41, %v8381_v51 }
 0x1a5   :  { %v8391_v49 = vpop.eup %8390  ;;  %v808_v63 = vadd.f32 1.0, %v8389_v46  ;;  %8410 = vpow2.f32 %v6840_v9  ;;  %v10343_v9 = vadd.f32 %v10151_v47, %v10189_v53  ;;  %v671_v46 = vrot.slane %v10174_v50, 7 }
 0x1a6   :  { %v8393_v56 = vpop.eup %8392  ;;  %v809_v4 = vadd.f32 1.0, %v8391_v49  ;;  %8412 = vpow2.f32 %v6841_v14  ;;  %v6842_v14 = vmul.f32 -1.442695, %v727_v42  ;;  %v6843_v12 = vmul.f32 -1.442695, %v731_v22 }
 0x1a7   :  { %v8395_v18 = vpop.eup %8394  ;;  %v810_v61 = vadd.f32 1.0, %v8393_v56  ;;  %8414 = vrcp.f32 %v808_v63  ;;  %v735_v53 = vadd.f32 %v671_v46, %v10343_v9 }
 0x1a8   :  { %v8397_v62 = vpop.eup %8396  ;;  %v811_v11 = vadd.f32 1.0, %v8395_v18  ;;  %8416 = vrcp.f32 %v809_v4 }
 0x1a9   :  { %v8399_v60 = vpop.eup %8398  ;;  %v812_v2 = vadd.f32 1.0, %v8397_v62  ;;  %8418 = vrcp.f32 %v810_v61 }
 0x1aa   :  { %v8401_v51 = vpop.eup %8400  ;;  %v813_v24 = vadd.f32 1.0, %v8399_v60  ;;  %8420 = vrcp.f32 %v811_v11 }
 0x1ab   :  { %v8403_v32 = vpop.eup %8402  ;;  %v814_v5 = vadd.f32 1.0, %v8401_v51  ;;  %8422 = vrcp.f32 %v812_v2 }
 0x1ac   :  { %v8405_v41 = vpop.eup %8404  ;;  %v815_v21 = vadd.f32 1.0, %v8403_v32  ;;  %8424 = vrcp.f32 %v813_v24 }
 0x1ad   :  { %v8407_v49 = vpop.eup %8406  ;;  %8426 = vrcp.f32 %v814_v5  ;;  %v864_v63 = vadd.f32 1.0, %v8405_v41  ;;  %v6844_v5 = vmul.f32 -1.442695, %v735_v53 }
 0x1ae   :  { %v8409_v56 = vpop.eup %8408  ;;  %8428 = vrcp.f32 %v815_v21  ;;  %v865_v4 = vadd.f32 1.0, %v8407_v49 }
 0x1af   :  { %v8411_v18 = vpop.eup %8410  ;;  %8430 = vpow2.f32 %v6842_v14  ;;  %v866_v61 = vadd.f32 1.0, %v8409_v56 }
 0x1b0   :  { %v8413_v47 = vpop.eup %8412  ;;  %8432 = vpow2.f32 %v6843_v12  ;;  %v867_v42 = vadd.f32 1.0, %v8411_v18 }
 0x1b1   :  { %v8415_v62 = vpop.eup %8414  ;;  %v868_v11 = vadd.f32 1.0, %v8413_v47  ;;  %8434 = vrcp.f32 %v864_v63 }
 0x1b2   :  { %v8417_v60 = vpop.eup %8416  ;;  %v888_v50 = vmul.f32 0.0, %v8415_v62  ;;  %8436 = vrcp.f32 %v865_v4 }
 0x1b3   :  { %v8419_v22 = vpop.eup %8418  ;;  %v889_v2 = vmul.f32 0.0, %v8417_v60  ;;  %8438 = vrcp.f32 %v866_v61 }
 0x1b4   :  { %v8421_v51 = vpop.eup %8420  ;;  %v890_v24 = vmul.f32 0.0, %v8419_v22  ;;  %v10348_v32 = vadd.f32 %v10306_v52, %v888_v50  ;;  %8440 = vrcp.f32 %v867_v42 }
 0x1b5   :  { %v8423_v14 = vpop.eup %8422  ;;  %v891_v41 = vmul.f32 0.0, %v8421_v51  ;;  %v10351_v21 = vadd.f32 %v10311_v0, %v889_v2  ;;  %8442 = vrcp.f32 %v868_v11 }
 0x1b6   :  { %v8425_v46 = vpop.eup %8424  ;;  %v892_v12 = vmul.f32 0.0, %v8423_v14  ;;  %v10354_v49 = vadd.f32 %v10314_v44, %v890_v24  ;;  %8444 = vtanh.f32 %v10348_v32 }
 0x1b7   :  { %v8427_v63 = vpop.eup %8426  ;;  %8446 = vtanh.f32 %v10351_v21  ;;  %v893_v52 = vmul.f32 0.0, %v8425_v46  ;;  %v10359_v56 = vadd.f32 %v10318_v59, %v891_v41 }
 0x1b8   :  { %v8429_v4 = vpop.eup %8428  ;;  %8448 = vpow2.f32 %v6844_v5  ;;  %v894_v18 = vmul.f32 0.0, %v8427_v63  ;;  %v10362_v0 = vadd.f32 %v10321_v10, %v892_v12 }
 0x1b9   :  { %v8431_v61 = vpop.eup %8430  ;;  %v895_v47 = vmul.f32 0.0, %v8429_v4  ;;  %v10365_v44 = vadd.f32 %v10323_v7, %v893_v52  ;;  %8450 = vtanh.f32 %v10354_v49 }
 0x1ba   :  { %v8433_v53 = vpop.eup %8432  ;;  %v869_v42 = vadd.f32 1.0, %v8431_v61  ;;  %v10369_v62 = vadd.f32 %v10330_v43, %v894_v18  ;;  %8452 = vtanh.f32 %v10359_v56 }
 0x1bb   :  { %v8435_v59 = vpop.eup %8434  ;;  %v870_v11 = vadd.f32 1.0, %v8433_v53  ;;  %v10373_v60 = vadd.f32 %v10337_v57, %v895_v47  ;;  %8454 = vtanh.f32 %v10362_v0 }
 0x1bc   :  { %v8437_v10 = vpop.eup %8436  ;;  %8456 = vrcp.f32 %v869_v42 }
 0x1bd   :  { %v8439_v7 = vpop.eup %8438  ;;  %8458 = vrcp.f32 %v870_v11 }
 0x1be   :  { %v8441_v50 = vpop.eup %8440  ;;  %8460 = vtanh.f32 %v10365_v44 }
 0x1bf   :  { %v8443_v22 = vpop.eup %8442  ;;  %8462 = vtanh.f32 %v10369_v62 }
 0x1c0   :  { %v8445_v43 = vpop.eup %8444  ;;  %8464 = vtanh.f32 %v10373_v60 }
 0x1c1   :  { %v8447_v2 = vpop.eup %8446  ;;  %v920_v51 = vmul.f32 %v8445_v43, %v8435_v59 }
 0x1c2   :  { %v8449_v24 = vpop.eup %8448  ;;  %v921_v5 = vmul.f32 %v8447_v2, %v8437_v10 }
 0x1c3   :  { %v8451_v14 = vpop.eup %8450  ;;  %v871_v57 = vadd.f32 1.0, %v8449_v24 }
 0x1c4   :  { %v8453_v41 = vpop.eup %8452  ;;  %v922_v46 = vmul.f32 %v8451_v14, %v8439_v7  ;;  %v936_v12 = vrot.slane %v921_v5, 7 }
 0x1c5   :  { %v8455_v63 = vpop.eup %8454  ;;  %8466 = vrcp.f32 %v871_v57  ;;  %v923_v52 = vmul.f32 %v8453_v41, %v8441_v50 }
 0x1c6   :  { %v8457_v4 = vpop.eup %8456  ;;  %v924_v18 = vmul.f32 %v8455_v63, %v8443_v22  ;;  %v938_v61 = vsel %vm937_vm1, %v936_v12, %v920_v51  ;;  %v939_v47 = vrot.slane %v922_v46, 6 }
 0x1c7   :  { %v8459_v53 = vpop.eup %8458  ;;  %v942_v42 = vrot.slane %v923_v52, 5  ;;  %v12155_v52 = vmov 0.0  }
 0x1c8   :  { %v8461_v59 = vpop.eup %8460  ;;  %v941_v11 = vsel %vm940_vm2, %v939_v47, %v938_v61  ;;  %v945_v10 = vrot.slane %v924_v18, 4  ;;  %v12157_v18 = vld [vmem:[#allocation29_spill] sm:$0xff]  ;;  %v12158_v61 = vld [vmem:[#allocation30_spill] sm:$0xff]  ;;  %v12159_v47 = vld [vmem:[#allocation31_spill] sm:$0xff] }
 0x1c9   :  { %v8463_v43 = vpop.eup %8462  ;;  %v925_v7 = vmul.f32 %v8461_v59, %v8457_v4  ;;  %v944_v2 = vsel %vm943_vm3, %v942_v42, %v941_v11  ;;  %v12156_v4 = vld [vmem:[#allocation28_spill] sm:$0xff]  ;;  %v12161_v42 = vld [vmem:[#allocation33_spill] sm:$0xff]  ;;  %v12162_v59 = vld [vmem:[#allocation34_spill] sm:$0xff] }
 0x1ca   :  { %v926_v24 = vmul.f32 %v8463_v43, %v8459_v53  ;;  %v947_v50 = vsel %vm946_vm4, %v945_v10, %v944_v2  ;;  %v8465_v5 = vpop.eup %8464  ;;  %v12160_v53 = vld [vmem:[#allocation32_spill] sm:$0xff]  ;;  %v12163_v11 = vld [vmem:[#allocation35_spill] sm:$0xff]  ;;  %v12165_v43 = vld [vmem:[#allocation37_spill] sm:$0xff] }
 0x1cb   :  { %v948_v22 = vrot.slane %v925_v7, 3  ;;  %v12164_v10 = vld [vmem:[#allocation36_spill] sm:$0xff]  ;;  %v12166_v7 = vld [vmem:[#allocation38_spill] sm:$0xff]  ;;  %v12167_v2 = vld [vmem:[#allocation39_spill] sm:$0xff] }
 0x1cc   :  { %v951_v51 = vrot.slane %v926_v24, 2  ;;  %v12168_v24 = vld [vmem:[#allocation40_spill] sm:$0xff] }
 0x1cd   :  { %v950_v14 = vsel %vm949_vm5, %v948_v22, %v947_v50  ;;  %v12169_v50 = vld [vmem:[#allocation41_spill] sm:$0xff]  ;;  %v12170_v22 = vld [vmem:[#allocation42_spill] sm:$0xff] }
 0x1ce   :  { %v953_v57 = vsel %vm952_vm6, %v951_v51, %v950_v14  ;;  %v12171_v51 = vld [vmem:[#allocation43_spill] sm:$0xff]  ;;  %v12173_v14 = vld [vmem:[#allocation45_spill] sm:$0xff] }
 0x1cf   :  { %v8467_v41 = vpop.eup %8466 }
 0x1d0   :  { %v927_v46 = vmul.f32 %v8467_v41, %v8465_v5  ;;  %v12172_v5 = vld [vmem:[#allocation44_spill] sm:$0xff]  ;;  %v12175_v41 = vld [vmem:[#allocation47_spill] sm:$0xff] }
 0x1d2   :  { %v954_v12 = vrot.slane %v927_v46, 1  ;;  %v12176_v46 = vld [vmem:[#allocation48_spill] sm:$0xff] }
 0x1d4   :  { %v956_v63 = vsel %vm955_vm7, %v954_v12, %v953_v57  ;;  %v12174_v57 = vld [vmem:[#allocation46_spill] sm:$0xff]  ;;  %v12177_v12 = vld [vmem:[#allocation49_spill] sm:$0xff] }
 0x1d5   :  { %1023 = vmatmul.mubr.f32.vlgmr.msra.gmra.mrb[18].mxu0 %v956_v63  ;;  %1094 = vmatmul.mubr.f32.vlgmr.msra.gmra.mrb[18].mxu1 %v956_v63  ;;  %v12178_v63 = vld [vmem:[#allocation50_spill] sm:$0xff] }
 0x1d6   :  { %7316 = vmatpush1.bf16.msra.mxu0 %v9923_v23  ;;  %7348 = vmatpush1.bf16.msra.mxu1 %v9926_v26 }
 0x1d7   :  { %7318 = vmatprep.subr.bf16.mxu0 %v9930_v30  ;;  %7350 = vmatprep.subr.bf16.mxu1 %v9934_v35 }
 0x1d8   :  { %1499 = vmatprep.mubr.f32.mxu0 %v12155_v52  ;;  %1570 = vmatprep.mubr.f32.mxu1 %v12155_v52 }
 0x1da   :  { %7320 = vmatpush1.bf16.msra.mxu0 %v9936_v36  ;;  %7352 = vmatpush1.bf16.msra.mxu1 %v9940_v39 }
 0x1db   :  { %7322 = vmatprep.subr.bf16.mxu0 %v12156_v4  ;;  %7354 = vmatprep.subr.bf16.mxu1 %v12157_v18 }
 0x1de   :  { %7324 = vmatpush1.bf16.msra.mxu0 %v12158_v61  ;;  %7356 = vmatpush1.bf16.msra.mxu1 %v12159_v47 }
 0x1df   :  { %7326 = vmatprep.subr.bf16.mxu0 %v12160_v53  ;;  %7358 = vmatprep.subr.bf16.mxu1 %v12161_v42 }
 0x1e2   :  { %7328 = vmatpush1.bf16.msra.mxu0 %v12162_v59  ;;  %7360 = vmatpush1.bf16.msra.mxu1 %v12163_v11 }
 0x1e3   :  { %7330 = vmatprep.subr.bf16.mxu0 %v12164_v10  ;;  %7362 = vmatprep.subr.bf16.mxu1 %v12165_v43  ;;  %v12182_v10 = vld [vmem:[#allocation53_spill] sm:$0xff] }
 0x1e6   :  { %7332 = vmatpush1.bf16.msra.mxu0 %v12166_v7  ;;  %7364 = vmatpush1.bf16.msra.mxu1 %v12167_v2 }
 0x1e7   :  { %7334 = vmatprep.subr.bf16.mxu0 %v12168_v24  ;;  %7366 = vmatprep.subr.bf16.mxu1 %v12169_v50  ;;  %v12179_v24 = vld [vmem:[#allocation51_spill] sm:$0xff]  ;;  %v12180_v50 = vld [vmem:[#allocation25_spill] sm:$0xff] }
 0x1ea   :  { %7336 = vmatpush1.bf16.msra.mxu0 %v12170_v22  ;;  %7368 = vmatpush1.bf16.msra.mxu1 %v12171_v51  ;;  %v12181_v22 = vld [vmem:[#allocation26_spill] sm:$0xff] }
 0x1eb   :  { %7338 = vmatprep.subr.bf16.mxu0 %v12172_v5  ;;  %7370 = vmatprep.subr.bf16.mxu1 %v12173_v14 }
 0x1ee   :  { %7340 = vmatpush1.bf16.msra.mxu0 %v12174_v57  ;;  %7372 = vmatpush1.bf16.msra.mxu1 %v12175_v41 }
 0x1ef   :  { %7342 = vmatprep.subr.bf16.mxu0 %v12176_v46  ;;  %7374 = vmatprep.subr.bf16.mxu1 %v12177_v12 }
 0x1f2   :  { %7344 = vmatpush1.bf16.msra.mxu0 %v12178_v63  ;;  %7376 = vmatpush1.bf16.msra.mxu1 %v12179_v24 }
 0x1f3   :  { %7378 = vmatprep.subr.bf16.mxu0 %v12180_v50  ;;  %7410 = vmatprep.subr.bf16.mxu1 %v12181_v22 }
 0x2a8   :  { %v1024_v51 = vpop.f32.mrb[18].mxu0  ;;  %v10420_v5 = vpop.f32.mrb[18].mxu1 }
 0x2a9   :  { %v1104_v14 = vrot.slane %v1024_v51, 7  ;;  %v1108_v2 = vrot.slane %v1024_v51, 1  ;;  %v1112_v57 = vrot.slane %v1024_v51, 2  ;;  %v1116_v7 = vrot.slane %v1024_v51, 3  ;;  %v10422_v41 = vpop.f32.mrb[19].mxu0  ;;  %v10424_v46 = vpop.f32.mrb[19].mxu1 }
 0x2aa   :  { %v1120_v12 = vrot.slane %v1024_v51, 4  ;;  %v1124_v43 = vrot.slane %v1024_v51, 5  ;;  %v1128_v63 = vrot.slane %v1024_v51, 6  ;;  %v1168_v24 = vadd.f32 %v1024_v51, %v10155_v58 }
 0x2ab   :  { %v1164_v50 = vadd.f32 %v1104_v14, %v12182_v10  ;;  %v1172_v22 = vadd.f32 %v1108_v2, %v10157_v40  ;;  %v1176_v11 = vadd.f32 %v1112_v57, %v10159_v34  ;;  %v1180_v59 = vadd.f32 %v1116_v7, %v10161_v29 }
 0x2ac   :  { %v1184_v42 = vadd.f32 %v1120_v12, %v10163_v38  ;;  %v1188_v53 = vadd.f32 %v1124_v43, %v10165_v25  ;;  %v6846_v47 = vmul.f32 -1.442695, %v1168_v24  ;;  %v1192_v61 = vadd.f32 %v1128_v63, %v10167_v1 }
 0x2ad   :  { %v6845_v18 = vmul.f32 -1.442695, %v1164_v50  ;;  %v6847_v4 = vmul.f32 -1.442695, %v1172_v22  ;;  %v6848_v39 = vmul.f32 -1.442695, %v1176_v11 }
 0x2ae   :  { %8468 = vpow2.f32 %v6846_v47  ;;  %v6849_v51 = vmul.f32 -1.442695, %v1180_v59  ;;  %v6850_v14 = vmul.f32 -1.442695, %v1184_v42  ;;  %v1106_v2 = vrot.slane %v10420_v5, 7 }
 0x2af   :  { %8470 = vpow2.f32 %v6845_v18  ;;  %v6851_v57 = vmul.f32 -1.442695, %v1188_v53  ;;  %v1110_v7 = vrot.slane %v10420_v5, 1  ;;  %v6852_v12 = vmul.f32 -1.442695, %v1192_v61 }
 0x2b0   :  { %8472 = vpow2.f32 %v6847_v4  ;;  %v1114_v43 = vrot.slane %v10420_v5, 2  ;;  %v1118_v24 = vrot.slane %v10420_v5, 3  ;;  %v1166_v50 = vadd.f32 %v1106_v2, %v10193_v8 }
 0x2b1   :  { %8474 = vpow2.f32 %v6848_v39  ;;  %v1170_v18 = vadd.f32 %v10420_v5, %v10198_v31  ;;  %v1174_v47 = vadd.f32 %v1110_v7, %v10203_v55  ;;  %v1122_v61 = vrot.slane %v10420_v5, 4 }
 0x2b2   :  { %8476 = vpow2.f32 %v6849_v51  ;;  %v1178_v4 = vadd.f32 %v1114_v43, %v10219_v17  ;;  %v1182_v39 = vadd.f32 %v1118_v24, %v10208_v48  ;;  %v1126_v42 = vrot.slane %v10420_v5, 5 }
 0x2b3   :  { %8478 = vpow2.f32 %v6850_v14  ;;  %v1105_v51 = vrot.slane %v10422_v41, 7  ;;  %v1186_v7 = vadd.f32 %v1122_v61, %v10255_v28  ;;  %v12183_v61 = vld [vmem:[#allocation61_spill] sm:$0xff] }
 0x2b4   :  { %8480 = vpow2.f32 %v6851_v57  ;;  %v1130_v57 = vrot.slane %v10420_v5, 6  ;;  %v1190_v24 = vadd.f32 %v1126_v42, %v10264_v37  ;;  %v1121_v5 = vrot.slane %v10422_v41, 4 }
 0x2b5   :  { %8482 = vpow2.f32 %v6852_v12  ;;  %v1125_v42 = vrot.slane %v10422_v41, 5  ;;  %v1129_v37 = vrot.slane %v10422_v41, 6 }
 0x2b6   :  { %8484 = vtanh.f32 %v1166_v50  ;;  %v1109_v50 = vrot.slane %v10422_v41, 1  ;;  %v1194_v28 = vadd.f32 %v1130_v57, %v10277_v6 }
 0x2b7   :  { %8486 = vtanh.f32 %v1170_v18 }
 0x2b8   :  { %v8469_v53 = vpop.eup %8468  ;;  %8488 = vtanh.f32 %v1174_v47 }
 0x2b9   :  { %v8471_v59 = vpop.eup %8470  ;;  %v1221_v11 = vadd.f32 1.0, %v8469_v53  ;;  %8490 = vtanh.f32 %v1178_v4  ;;  %v1113_v4 = vrot.slane %v10422_v41, 2 }
 0x2ba   :  { %v8473_v22 = vpop.eup %8472  ;;  %v1220_v63 = vadd.f32 1.0, %v8471_v59  ;;  %8492 = vtanh.f32 %v1182_v39  ;;  %v1117_v39 = vrot.slane %v10422_v41, 3 }
 0x2bb   :  { %v8475_v14 = vpop.eup %8474  ;;  %v1222_v2 = vadd.f32 1.0, %v8473_v22  ;;  %8494 = vrcp.f32 %v1221_v11  ;;  %v1165_v11 = vadd.f32 %v1105_v51, %v12183_v61  ;;  %v1177_v51 = vadd.f32 %v1113_v4, %v10242_v15 }
 0x2bc   :  { %v8477_v12 = vpop.eup %8476  ;;  %v1223_v43 = vadd.f32 1.0, %v8475_v14  ;;  %8496 = vrcp.f32 %v1220_v63  ;;  %v1169_v14 = vadd.f32 %v10422_v41, %v10224_v27  ;;  %v1107_v27 = vrot.slane %v10424_v46, 7  ;;  %v12185_v41 = vld [vmem:[#allocation75_spill] sm:$0xff] }
 0x2bd   :  { %v8479_v18 = vpop.eup %8478  ;;  %v1224_v47 = vadd.f32 1.0, %v8477_v12  ;;  %8498 = vrcp.f32 %v1222_v2  ;;  %v6853_v48 = vmul.f32 -1.442695, %v1165_v11  ;;  %v1111_v4 = vrot.slane %v10424_v46, 1 }
 0x2be   :  { %v8481_v53 = vpop.eup %8480  ;;  %v1225_v59 = vadd.f32 1.0, %v8479_v18  ;;  %8500 = vrcp.f32 %v1223_v43  ;;  %v1173_v18 = vadd.f32 %v1109_v50, %v10233_v13  ;;  %v6854_v50 = vmul.f32 -1.442695, %v1169_v14 }
 0x2bf   :  { %v8483_v22 = vpop.eup %8482  ;;  %v1226_v63 = vadd.f32 1.0, %v8481_v53  ;;  %8502 = vrcp.f32 %v1224_v47  ;;  %v12184_v53 = vld [vmem:[#allocation71_spill] sm:$0xff] }
 0x2c0   :  { %v8485_v2 = vpop.eup %8484  ;;  %v1227_v12 = vadd.f32 1.0, %v8483_v22  ;;  %8504 = vrcp.f32 %v1225_v59  ;;  %v1181_v47 = vadd.f32 %v1117_v39, %v12184_v53  ;;  %v1185_v59 = vadd.f32 %v1121_v5, %v10269_v54 }
 0x2c1   :  { %v8487_v43 = vpop.eup %8486  ;;  %8506 = vrcp.f32 %v1226_v63  ;;  %v1189_v22 = vadd.f32 %v1125_v42, %v12185_v41  ;;  %v12186_v63 = vld [vmem:[#allocation77_spill] sm:$0xff]  ;;  %v6855_v6 = vmul.f32 -1.442695, %v1173_v18  ;;  %v1115_v53 = vrot.slane %v10424_v46, 2  ;;  %v12187_v42 = vld [vmem:[#allocation66_spill] sm:$0xff] }
 0x2c2   :  { %v8489_v61 = vpop.eup %8488  ;;  %8508 = vrcp.f32 %v1227_v12  ;;  %v1193_v57 = vadd.f32 %v1129_v37, %v12186_v63  ;;  %v6856_v12 = vmul.f32 -1.442695, %v1177_v51  ;;  %v6857_v11 = vmul.f32 -1.442695, %v1181_v47 }
 0x2c3   :  { %v8491_v17 = vpop.eup %8490  ;;  %8510 = vtanh.f32 %v1186_v7  ;;  %v1119_v5 = vrot.slane %v10424_v46, 3  ;;  %v1167_v14 = vadd.f32 %v1107_v27, %v12187_v42  ;;  %v6858_v37 = vmul.f32 -1.442695, %v1185_v59 }
 0x2c4   :  { %v8493_v13 = vpop.eup %8492  ;;  %8512 = vtanh.f32 %v1190_v24  ;;  %v6859_v47 = vmul.f32 -1.442695, %v1189_v22  ;;  %v1179_v27 = vadd.f32 %v1115_v53, %v10246_v19 }
 0x2c5   :  { %v8495_v39 = vpop.eup %8494  ;;  %8514 = vtanh.f32 %v1194_v28  ;;  %v1171_v28 = vadd.f32 %v10424_v46, %v10228_v45  ;;  %v6861_v59 = vmul.f32 -1.442695, %v1167_v14 }
 0x2c6   :  { %v8497_v15 = vpop.eup %8496  ;;  %v10469_v7 = vmul.f32 %v8495_v39, %v8487_v43  ;;  %8516 = vpow2.f32 %v6853_v48  ;;  %v1175_v43 = vadd.f32 %v1111_v4, %v10237_v33  ;;  %v6860_v39 = vmul.f32 -1.442695, %v1193_v57 }
 0x2c7   :  { %v8499_v24 = vpop.eup %8498  ;;  %v10473_v41 = vmul.f32 %v8497_v15, %v8485_v2  ;;  %8518 = vpow2.f32 %v6854_v50  ;;  %v1183_v2 = vadd.f32 %v1119_v5, %v10260_v20  ;;  %v6864_v57 = vmul.f32 -1.442695, %v1179_v27 }
 0x2c8   :  { %v8501_v18 = vpop.eup %8500  ;;  %v10477_v51 = vmul.f32 %v8499_v24, %v8489_v61  ;;  %8520 = vpow2.f32 %v6855_v6  ;;  %v6862_v6 = vmul.f32 -1.442695, %v1171_v28  ;;  %v6863_v4 = vmul.f32 -1.442695, %v1175_v43 }
 0x2c9   :  { %v8503_v48 = vpop.eup %8502  ;;  %8522 = vpow2.f32 %v6856_v12  ;;  %v10481_v42 = vmul.f32 %v8501_v18, %v8491_v17  ;;  %v6865_v17 = vmul.f32 -1.442695, %v1183_v2  ;;  %v1123_v5 = vrot.slane %v10424_v46, 4 }
 0x2ca   :  { %v8505_v15 = vpop.eup %8504  ;;  %8524 = vpow2.f32 %v6857_v11  ;;  %v10484_v50 = vmul.f32 %v8503_v48, %v8493_v13 }
 0x2cb   :  { %v8507_v61 = vpop.eup %8506  ;;  %8526 = vpow2.f32 %v6858_v37  ;;  %v1127_v37 = vrot.slane %v10424_v46, 5 }
 0x2cc   :  { %v8509_v22 = vpop.eup %8508  ;;  %8528 = vpow2.f32 %v6859_v47 }
 0x2cd   :  { %v8511_v24 = vpop.eup %8510  ;;  %8530 = vpow2.f32 %v6860_v39 }
 0x2ce   :  { %v8513_v12 = vpop.eup %8512  ;;  %8532 = vpow2.f32 %v6861_v59  ;;  %v10486_v53 = vmul.f32 %v8511_v24, %v8505_v15  ;;  %v1187_v15 = vadd.f32 %v1123_v5, %v10327_v16 }
 0x2cf   :  { %v8515_v11 = vpop.eup %8514  ;;  %8534 = vpow2.f32 %v6862_v6  ;;  %v10489_v13 = vmul.f32 %v8513_v12, %v8507_v61  ;;  %v1191_v61 = vadd.f32 %v1127_v37, %v10334_v3 }
 0x2d0   :  { %v8517_v14 = vpop.eup %8516  ;;  %8536 = vpow2.f32 %v6863_v4  ;;  %v10492_v28 = vmul.f32 %v8515_v11, %v8509_v22  ;;  %v6866_v11 = vmul.f32 -1.442695, %v1187_v15 }
 0x2d1   :  { %v8519_v18 = vpop.eup %8518  ;;  %v1268_v47 = vadd.f32 1.0, %v8517_v14  ;;  %8538 = vpow2.f32 %v6864_v57  ;;  %v1131_v57 = vrot.slane %v10424_v46, 6  ;;  %v6867_v5 = vmul.f32 -1.442695, %v1191_v61 }
 0x2d2   :  { %v8521_v43 = vpop.eup %8520  ;;  %v1269_v48 = vadd.f32 1.0, %v8519_v18  ;;  %8540 = vpow2.f32 %v6865_v17 }
 0x2d3   :  { %v8523_v39 = vpop.eup %8522  ;;  %v1270_v27 = vadd.f32 1.0, %v8521_v43  ;;  %8542 = vrcp.f32 %v1268_v47 }
 0x2d4   :  { %v8525_v2 = vpop.eup %8524  ;;  %v1271_v59 = vadd.f32 1.0, %v8523_v39  ;;  %8544 = vrcp.f32 %v1269_v48  ;;  %v1195_v48 = vadd.f32 %v1131_v57, %v10343_v9 }
 0x2d5   :  { %v8527_v6 = vpop.eup %8526  ;;  %v1272_v4 = vadd.f32 1.0, %v8525_v2  ;;  %8546 = vrcp.f32 %v1270_v27 }
 0x2d6   :  { %v8529_v22 = vpop.eup %8528  ;;  %v1273_v24 = vadd.f32 1.0, %v8527_v6  ;;  %8548 = vrcp.f32 %v1271_v59  ;;  %v1356_v59 = vrot.slane %v10348_v32, 7  ;;  %v1360_v32 = vrot.slane %v10362_v0, 7 }
 0x2d7   :  { %v8531_v12 = vpop.eup %8530  ;;  %v1274_v17 = vadd.f32 1.0, %v8529_v22  ;;  %8550 = vrcp.f32 %v1272_v4  ;;  %v1357_v4 = vrot.slane %v10351_v21, 7 }
 0x2d8   :  { %v8533_v14 = vpop.eup %8532  ;;  %v1275_v18 = vadd.f32 1.0, %v8531_v12  ;;  %8552 = vrcp.f32 %v1273_v24  ;;  %v1358_v24 = vrot.slane %v10354_v49, 7  ;;  %v6868_v12 = vmul.f32 -1.442695, %v1195_v48 }
 0x2d9   :  { %v8535_v47 = vpop.eup %8534  ;;  %8554 = vrcp.f32 %v1274_v17  ;;  %v1324_v43 = vadd.f32 1.0, %v8533_v14 }
 0x2da   :  { %v8537_v37 = vpop.eup %8536  ;;  %8556 = vrcp.f32 %v1275_v18  ;;  %v1325_v39 = vadd.f32 1.0, %v8535_v47 }
 0x2db   :  { %v8539_v27 = vpop.eup %8538  ;;  %8558 = vpow2.f32 %v6866_v11  ;;  %v1326_v2 = vadd.f32 1.0, %v8537_v37  ;;  %v1359_v11 = vrot.slane %v10359_v56, 7  ;;  %v1362_v56 = vrot.slane %v10369_v62, 7 }
 0x2dc   :  { %v8541_v46 = vpop.eup %8540  ;;  %8560 = vpow2.f32 %v6867_v5  ;;  %v1327_v15 = vadd.f32 1.0, %v8539_v27 }
 0x2dd   :  { %v8543_v6 = vpop.eup %8542  ;;  %v1328_v61 = vadd.f32 1.0, %v8541_v46  ;;  %8562 = vrcp.f32 %v1324_v43  ;;  %v1361_v43 = vrot.slane %v10365_v44, 7 }
 0x2de   :  { %v8545_v22 = vpop.eup %8544  ;;  %8564 = vrcp.f32 %v1325_v39  ;;  %v1372_v57 = vmul.f32 %v8543_v6, %v1356_v59 }
 0x2df   :  { %v8547_v17 = vpop.eup %8546  ;;  %v1373_v14 = vmul.f32 %v8545_v22, %v1357_v4  ;;  %8566 = vrcp.f32 %v1326_v2 }
 0x2e0   :  { %v8549_v18 = vpop.eup %8548  ;;  %8568 = vrcp.f32 %v1327_v15  ;;  %v1374_v5 = vmul.f32 %v8547_v17, %v1358_v24  ;;  %v10504_v21 = vadd.f32 %v10473_v41, %v1372_v57  ;;  %v1363_v41 = vrot.slane %v10373_v60, 7 }
 0x2e1   :  { %v8551_v47 = vpop.eup %8550  ;;  %8570 = vrcp.f32 %v1328_v61  ;;  %v1375_v49 = vmul.f32 %v8549_v18, %v1359_v11  ;;  %v10508_v37 = vadd.f32 %v10469_v7, %v1373_v14 }
 0x2e2   :  { %v8553_v48 = vpop.eup %8552  ;;  %8572 = vpow2.f32 %v6868_v12  ;;  %v1376_v39 = vmul.f32 %v8551_v47, %v1360_v32  ;;  %v10512_v0 = vadd.f32 %v10477_v51, %v1374_v5 }
 0x2e3   :  { %v8555_v27 = vpop.eup %8554  ;;  %v1377_v2 = vmul.f32 %v8553_v48, %v1361_v43  ;;  %v10516_v46 = vadd.f32 %v10481_v42, %v1375_v49  ;;  %8574 = vtanh.f32 %v10504_v21 }
 0x2e4   :  { %v8557_v44 = vpop.eup %8556  ;;  %v1378_v7 = vmul.f32 %v8555_v27, %v1362_v56  ;;  %v10520_v59 = vadd.f32 %v10484_v50, %v1376_v39  ;;  %8576 = vtanh.f32 %v10508_v37 }
 0x2e5   :  { %v8559_v62 = vpop.eup %8558  ;;  %v1379_v15 = vmul.f32 %v8557_v44, %v1363_v41  ;;  %v10524_v51 = vadd.f32 %v10486_v53, %v1377_v2  ;;  %8578 = vtanh.f32 %v10512_v0 }
 0x2e6   :  { %v8561_v60 = vpop.eup %8560  ;;  %v1329_v6 = vadd.f32 1.0, %v8559_v62  ;;  %v10528_v42 = vadd.f32 %v10489_v13, %v1378_v7  ;;  %8580 = vtanh.f32 %v10516_v46 }
 0x2e7   :  { %v8563_v4 = vpop.eup %8562  ;;  %v1330_v61 = vadd.f32 1.0, %v8561_v60  ;;  %v10532_v50 = vadd.f32 %v10492_v28, %v1379_v15  ;;  %8582 = vtanh.f32 %v10520_v59 }
 0x2e8   :  { %v8565_v22 = vpop.eup %8564  ;;  %8584 = vrcp.f32 %v1329_v6 }
 0x2e9   :  { %v8567_v53 = vpop.eup %8566  ;;  %8586 = vrcp.f32 %v1330_v61 }
 0x2ea   :  { %v8569_v24 = vpop.eup %8568  ;;  %8588 = vtanh.f32 %v10524_v51 }
 0x2eb   :  { %v8571_v12 = vpop.eup %8570  ;;  %8590 = vtanh.f32 %v10528_v42 }
 0x2ec   :  { %v8573_v13 = vpop.eup %8572  ;;  %8592 = vtanh.f32 %v10532_v50 }
 0x2ed   :  { %v8575_v57 = vpop.eup %8574  ;;  %v1331_v17 = vadd.f32 1.0, %v8573_v13 }
 0x2ee   :  { %v8577_v11 = vpop.eup %8576  ;;  %v1404_v28 = vmul.f32 %v8575_v57, %v8563_v4 }
 0x2ef   :  { %v8579_v14 = vpop.eup %8578  ;;  %8594 = vrcp.f32 %v1331_v17  ;;  %v1405_v18 = vmul.f32 %v8577_v11, %v8565_v22 }
 0x2f0   :  { %v8581_v32 = vpop.eup %8580  ;;  %v1406_v5 = vmul.f32 %v8579_v14, %v8567_v53  ;;  %v1420_v47 = vrot.slane %v1404_v28, 1  ;;  %v12188_v14 = vld [vmem:[#allocation27_spill] sm:$0xff] }
 0x2f1   :  { %v8583_v43 = vpop.eup %8582  ;;  %v1407_v49 = vmul.f32 %v8581_v32, %v8569_v24  ;;  %v12190_v32 = vld [vmem:[#allocation29_spill] sm:$0xff] }
 0x2f2   :  { %v8585_v48 = vpop.eup %8584  ;;  %v1408_v56 = vmul.f32 %v8583_v43, %v8571_v12  ;;  %v1421_v39 = vsel %vm937_vm1, %v1405_v18, %v1420_v47  ;;  %v1422_v27 = vrot.slane %v1406_v5, 7  ;;  %v12189_v18 = vld [vmem:[#allocation28_spill] sm:$0xff]  ;;  %v12191_v5 = vld [vmem:[#allocation30_spill] sm:$0xff]  ;;  %v12192_v47 = vld [vmem:[#allocation31_spill] sm:$0xff] }
 0x2f3   :  { %v8587_v41 = vpop.eup %8586  ;;  %v1424_v2 = vrot.slane %v1407_v49, 6  ;;  %v12193_v43 = vld [vmem:[#allocation32_spill] sm:$0xff]  ;;  %v12194_v49 = vld [vmem:[#allocation33_spill] sm:$0xff] }
 0x2f4   :  { %v8589_v44 = vpop.eup %8588  ;;  %v1423_v7 = vsel %vm940_vm2, %v1422_v27, %v1421_v39  ;;  %v1426_v62 = vrot.slane %v1408_v56, 5  ;;  %v12196_v56 = vld [vmem:[#allocation35_spill] sm:$0xff]  ;;  %v12197_v39 = vld [vmem:[#allocation36_spill] sm:$0xff]  ;;  %v12198_v27 = vld [vmem:[#allocation37_spill] sm:$0xff] }
 0x2f5   :  { %v8591_v15 = vpop.eup %8590  ;;  %v1409_v60 = vmul.f32 %v8589_v44, %v8585_v48  ;;  %v1425_v6 = vsel %vm943_vm3, %v1424_v2, %v1423_v7  ;;  %v12195_v48 = vld [vmem:[#allocation34_spill] sm:$0xff]  ;;  %v12200_v2 = vld [vmem:[#allocation39_spill] sm:$0xff]  ;;  %v12201_v44 = vld [vmem:[#allocation40_spill] sm:$0xff] }
 0x2f6   :  { %v1410_v4 = vmul.f32 %v8591_v15, %v8587_v41  ;;  %v1427_v61 = vsel %vm946_vm4, %v1426_v62, %v1425_v6  ;;  %v8593_v22 = vpop.eup %8592  ;;  %v12199_v41 = vld [vmem:[#allocation38_spill] sm:$0xff]  ;;  %v12202_v7 = vld [vmem:[#allocation41_spill] sm:$0xff]  ;;  %v12204_v15 = vld [vmem:[#allocation43_spill] sm:$0xff] }
 0x2f7   :  { %v1428_v53 = vrot.slane %v1409_v60, 4  ;;  %v12203_v62 = vld [vmem:[#allocation42_spill] sm:$0xff]  ;;  %v12205_v60 = vld [vmem:[#allocation44_spill] sm:$0xff]  ;;  %v12206_v6 = vld [vmem:[#allocation45_spill] sm:$0xff] }
 0x2f8   :  { %v1430_v24 = vrot.slane %v1410_v4, 3  ;;  %v12207_v4 = vld [vmem:[#allocation46_spill] sm:$0xff] }
 0x2f9   :  { %v8595_v12 = vpop.eup %8594  ;;  %v1429_v13 = vsel %vm949_vm5, %v1428_v53, %v1427_v61  ;;  %v12208_v61 = vld [vmem:[#allocation47_spill] sm:$0xff]  ;;  %v12210_v53 = vld [vmem:[#allocation49_spill] sm:$0xff] }
 0x2fa   :  { %v1411_v57 = vmul.f32 %v8595_v12, %v8593_v22  ;;  %v1431_v17 = vsel %vm952_vm6, %v1430_v24, %v1429_v13  ;;  %v12209_v22 = vld [vmem:[#allocation48_spill] sm:$0xff]  ;;  %v12211_v24 = vld [vmem:[#allocation50_spill] sm:$0xff]  ;;  %v12212_v12 = vld [vmem:[#allocation51_spill] sm:$0xff] }
 0x2fb   :  { %v12213_v13 = vld [vmem:[#allocation25_spill] sm:$0xff] }
 0x2fc   :  { %v1432_v11 = vrot.slane %v1411_v57, 2  ;;  %v12214_v57 = vld [vmem:[#allocation26_spill] sm:$0xff] }
 0x2fe   :  { %v1433_v28 = vsel %vm955_vm7, %v1432_v11, %v1431_v17 }
 0x2ff   :  { %1500 = vmatmul.mubr.f32.vlgmr.msra.gmra.mrb[20].mxu0 %v1433_v28  ;;  %1571 = vmatmul.mubr.f32.vlgmr.msra.gmra.mrb[20].mxu1 %v1433_v28 }
 0x300   :  { %7380 = vmatpush1.bf16.msra.mxu0 %v9923_v23  ;;  %7412 = vmatpush1.bf16.msra.mxu1 %v9926_v26 }
 0x301   :  { %7382 = vmatprep.subr.bf16.mxu0 %v9930_v30  ;;  %7414 = vmatprep.subr.bf16.mxu1 %v9934_v35 }
 0x302   :  { %1976 = vmatprep.mubr.f32.mxu0 %v12155_v52  ;;  %2047 = vmatprep.mubr.f32.mxu1 %v12155_v52 }
 0x304   :  { %7384 = vmatpush1.bf16.msra.mxu0 %v9936_v36  ;;  %7416 = vmatpush1.bf16.msra.mxu1 %v12188_v14 }
 0x305   :  { %7386 = vmatprep.subr.bf16.mxu0 %v12189_v18  ;;  %7418 = vmatprep.subr.bf16.mxu1 %v12190_v32 }
 0x308   :  { %7388 = vmatpush1.bf16.msra.mxu0 %v12191_v5  ;;  %7420 = vmatpush1.bf16.msra.mxu1 %v12192_v47 }
 0x309   :  { %7390 = vmatprep.subr.bf16.mxu0 %v12193_v43  ;;  %7422 = vmatprep.subr.bf16.mxu1 %v12194_v49 }
 0x30c   :  { %7392 = vmatpush1.bf16.msra.mxu0 %v12195_v48  ;;  %7424 = vmatpush1.bf16.msra.mxu1 %v12196_v56 }
 0x30d   :  { %7394 = vmatprep.subr.bf16.mxu0 %v12197_v39  ;;  %7426 = vmatprep.subr.bf16.mxu1 %v12198_v27 }
 0x310   :  { %7396 = vmatpush1.bf16.msra.mxu0 %v12199_v41  ;;  %7428 = vmatpush1.bf16.msra.mxu1 %v12200_v2 }
 0x311   :  { %7398 = vmatprep.subr.bf16.mxu0 %v12201_v44  ;;  %7430 = vmatprep.subr.bf16.mxu1 %v12202_v7 }
 0x314   :  { %7400 = vmatpush1.bf16.msra.mxu0 %v12203_v62  ;;  %7432 = vmatpush1.bf16.msra.mxu1 %v12204_v15 }
 0x315   :  { %7402 = vmatprep.subr.bf16.mxu0 %v12205_v60  ;;  %7434 = vmatprep.subr.bf16.mxu1 %v12206_v6 }
 0x318   :  { %7404 = vmatpush1.bf16.msra.mxu0 %v12207_v4  ;;  %7436 = vmatpush1.bf16.msra.mxu1 %v12208_v61 }
 0x319   :  { %7406 = vmatprep.subr.bf16.mxu0 %v12209_v22  ;;  %7438 = vmatprep.subr.bf16.mxu1 %v12210_v53 }
 0x31c   :  { %7408 = vmatpush1.bf16.msra.mxu0 %v12211_v24  ;;  %7440 = vmatpush1.bf16.msra.mxu1 %v12212_v12 }
 0x31d   :  { %7442 = vmatprep.subr.bf16.mxu0 %v12213_v13  ;;  %7474 = vmatprep.subr.bf16.mxu1 %v12214_v57 }
 0x3d2   :  { %v1501_v17 = vpop.f32.mrb[20].mxu0  ;;  %v10579_v11 = vpop.f32.mrb[20].mxu1 }
 0x3d3   :  { %v1581_v28 = vrot.slane %v1501_v17, 6  ;;  %v1585_v6 = vrot.slane %v1501_v17, 7  ;;  %v1589_v4 = vrot.slane %v1501_v17, 1  ;;  %v1593_v60 = vrot.slane %v1501_v17, 2  ;;  %v10581_v61 = vpop.f32.mrb[21].mxu0  ;;  %v10583_v22 = vpop.f32.mrb[21].mxu1 }
 0x3d4   :  { %v1597_v53 = vrot.slane %v1501_v17, 3  ;;  %v1601_v15 = vrot.slane %v1501_v17, 4  ;;  %v1605_v24 = vrot.slane %v1501_v17, 5  ;;  %v1649_v12 = vadd.f32 %v1501_v17, %v10157_v40 }
 0x3d5   :  { %v1641_v13 = vadd.f32 %v1581_v28, %v12182_v10  ;;  %v1645_v57 = vadd.f32 %v1585_v6, %v10155_v58  ;;  %v1653_v62 = vadd.f32 %v1589_v4, %v10159_v34  ;;  %v1657_v7 = vadd.f32 %v1593_v60, %v10161_v29 }
 0x3d6   :  { %v1661_v44 = vadd.f32 %v1597_v53, %v10163_v38  ;;  %v1665_v2 = vadd.f32 %v1601_v15, %v10165_v25  ;;  %v6871_v41 = vmul.f32 -1.442695, %v1649_v12  ;;  %v1669_v27 = vadd.f32 %v1605_v24, %v10167_v1  ;;  %v12222_v1 = vld [vmem:[#allocation76_spill] sm:$0xff] }
 0x3d7   :  { %v6869_v39 = vmul.f32 -1.442695, %v1641_v13  ;;  %v6870_v56 = vmul.f32 -1.442695, %v1645_v57  ;;  %v6872_v48 = vmul.f32 -1.442695, %v1653_v62 }
 0x3d8   :  { %8596 = vpow2.f32 %v6871_v41  ;;  %v6873_v17 = vmul.f32 -1.442695, %v1657_v7  ;;  %v6874_v28 = vmul.f32 -1.442695, %v1661_v44  ;;  %v1583_v6 = vrot.slane %v10579_v11, 6  ;;  %v12215_v44 = vld [vmem:[#allocation67_spill] sm:$0xff] }
 0x3d9   :  { %8598 = vpow2.f32 %v6869_v39  ;;  %v1587_v4 = vrot.slane %v10579_v11, 7  ;;  %v6875_v60 = vmul.f32 -1.442695, %v1665_v2  ;;  %v6876_v53 = vmul.f32 -1.442695, %v1669_v27  ;;  %v12216_v2 = vld [vmem:[#allocation65_spill] sm:$0xff] }
 0x3da   :  { %8600 = vpow2.f32 %v6870_v56  ;;  %v1591_v15 = vrot.slane %v10579_v11, 1  ;;  %v1595_v24 = vrot.slane %v10579_v11, 2  ;;  %v1643_v12 = vadd.f32 %v1583_v6, %v10193_v8  ;;  %v12221_v8 = vld [vmem:[#allocation69_spill] sm:$0xff] }
 0x3db   :  { %8602 = vpow2.f32 %v6872_v48  ;;  %v1647_v41 = vadd.f32 %v1587_v4, %v10198_v31  ;;  %v1651_v39 = vadd.f32 %v10579_v11, %v10203_v55  ;;  %v1599_v7 = vrot.slane %v10579_v11, 3  ;;  %v12219_v55 = vld [vmem:[#allocation61_spill] sm:$0xff] }
 0x3dc   :  { %8604 = vpow2.f32 %v6873_v17  ;;  %v1655_v56 = vadd.f32 %v1591_v15, %v12215_v44  ;;  %v1659_v48 = vadd.f32 %v1595_v24, %v12216_v2  ;;  %v1603_v62 = vrot.slane %v10579_v11, 4  ;;  %v12218_v2 = vld [vmem:[#allocation73_spill] sm:$0xff] }
 0x3dd   :  { %8606 = vpow2.f32 %v6874_v28  ;;  %v1582_v6 = vrot.slane %v10581_v61, 6  ;;  %v1586_v15 = vrot.slane %v10581_v61, 7 }
 0x3de   :  { %8608 = vpow2.f32 %v6875_v60 }
 0x3df   :  { %8610 = vpow2.f32 %v6876_v53  ;;  %v1607_v53 = vrot.slane %v10579_v11, 5  ;;  %v1598_v11 = vrot.slane %v10581_v61, 3  ;;  %v1642_v31 = vadd.f32 %v1582_v6, %v12219_v55  ;;  %v12223_v6 = vld [vmem:[#allocation70_spill] sm:$0xff] }
 0x3e0   :  { %8612 = vtanh.f32 %v1643_v12 }
 0x3e1   :  { %8614 = vtanh.f32 %v1647_v41  ;;  %v12217_v41 = vld [vmem:[#allocation72_spill] sm:$0xff]  ;;  %v1671_v25 = vadd.f32 %v1607_v53, %v12222_v1  ;;  %v6877_v29 = vmul.f32 -1.442695, %v1642_v31 }
 0x3e2   :  { %v8597_v27 = vpop.eup %8596  ;;  %8616 = vtanh.f32 %v1651_v39  ;;  %v1663_v39 = vadd.f32 %v1599_v7, %v12217_v41  ;;  %v1602_v7 = vrot.slane %v10581_v61, 4  ;;  %v1606_v41 = vrot.slane %v10581_v61, 5 }
 0x3e3   :  { %v8599_v13 = vpop.eup %8598  ;;  %v1699_v57 = vadd.f32 1.0, %v8597_v27  ;;  %8618 = vtanh.f32 %v1655_v56  ;;  %v1667_v27 = vadd.f32 %v1603_v62, %v12218_v2  ;;  %v12220_v62 = vld [vmem:[#allocation68_spill] sm:$0xff] }
 0x3e4   :  { %v8601_v17 = vpop.eup %8600  ;;  %v1697_v28 = vadd.f32 1.0, %v8599_v13  ;;  %8620 = vtanh.f32 %v1659_v48  ;;  %v1590_v48 = vrot.slane %v10581_v61, 1  ;;  %v1594_v13 = vrot.slane %v10581_v61, 2 }
 0x3e5   :  { %v8603_v4 = vpop.eup %8602  ;;  %v1698_v60 = vadd.f32 1.0, %v8601_v17  ;;  %8622 = vrcp.f32 %v1699_v57  ;;  %v1646_v2 = vadd.f32 %v1586_v15, %v12220_v62  ;;  %v1584_v15 = vrot.slane %v10583_v22, 6 }
 0x3e6   :  { %v8605_v24 = vpop.eup %8604  ;;  %v1700_v12 = vadd.f32 1.0, %v8603_v4  ;;  %8624 = vrcp.f32 %v1697_v28  ;;  %v1654_v55 = vadd.f32 %v1590_v48, %v12223_v6  ;;  %v1670_v48 = vadd.f32 %v1606_v41, %v12186_v63 }
 0x3e7   :  { %v8607_v56 = vpop.eup %8606  ;;  %v1701_v44 = vadd.f32 1.0, %v8605_v24  ;;  %8626 = vrcp.f32 %v1698_v60  ;;  %v6878_v62 = vmul.f32 -1.442695, %v1646_v2  ;;  %v1596_v2 = vrot.slane %v10583_v22, 2 }
 0x3e8   :  { %v8609_v17 = vpop.eup %8608  ;;  %v1702_v57 = vadd.f32 1.0, %v8607_v56  ;;  %8628 = vrcp.f32 %v1700_v12  ;;  %v1650_v56 = vadd.f32 %v10581_v61, %v12221_v8  ;;  %v1588_v61 = vrot.slane %v10583_v22, 7 }
 0x3e9   :  { %v8611_v4 = vpop.eup %8610  ;;  %v1703_v28 = vadd.f32 1.0, %v8609_v17  ;;  %8630 = vrcp.f32 %v1701_v44  ;;  %v12224_v17 = vld [vmem:[#allocation71_spill] sm:$0xff] }
 0x3ea   :  { %v8613_v24 = vpop.eup %8612  ;;  %v1704_v60 = vadd.f32 1.0, %v8611_v4  ;;  %8632 = vrcp.f32 %v1702_v57  ;;  %v1658_v44 = vadd.f32 %v1594_v13, %v12224_v17  ;;  %v1662_v57 = vadd.f32 %v1598_v11, %v10269_v54  ;;  %v12226_v11 = vld [vmem:[#allocation66_spill] sm:$0xff] }
 0x3eb   :  { %v8615_v12 = vpop.eup %8614  ;;  %8634 = vrcp.f32 %v1703_v28  ;;  %v12225_v28 = vld [vmem:[#allocation75_spill] sm:$0xff]  ;;  %v6879_v6 = vmul.f32 -1.442695, %v1650_v56  ;;  %v1592_v17 = vrot.slane %v10583_v22, 1  ;;  %v1644_v54 = vadd.f32 %v1584_v15, %v12226_v11 }
 0x3ec   :  { %v8617_v38 = vpop.eup %8616  ;;  %8636 = vrcp.f32 %v1704_v60  ;;  %v1666_v53 = vadd.f32 %v1602_v7, %v12225_v28  ;;  %v6880_v60 = vmul.f32 -1.442695, %v1654_v55  ;;  %v6881_v31 = vmul.f32 -1.442695, %v1658_v44 }
 0x3ed   :  { %v8619_v4 = vpop.eup %8618  ;;  %8638 = vtanh.f32 %v1663_v39  ;;  %v6882_v41 = vmul.f32 -1.442695, %v1662_v57  ;;  %v1648_v7 = vadd.f32 %v1588_v61, %v10228_v45  ;;  %v6884_v44 = vmul.f32 -1.442695, %v1670_v48 }
 0x3ee   :  { %v8621_v8 = vpop.eup %8620  ;;  %8640 = vtanh.f32 %v1667_v27  ;;  %v6883_v56 = vmul.f32 -1.442695, %v1666_v53  ;;  %v1656_v15 = vadd.f32 %v1592_v17, %v10246_v19 }
 0x3ef   :  { %v8623_v13 = vpop.eup %8622  ;;  %8642 = vtanh.f32 %v1671_v25 }
 0x3f0   :  { %v8625_v1 = vpop.eup %8624  ;;  %v10628_v39 = vmul.f32 %v8623_v13, %v8617_v38  ;;  %8644 = vpow2.f32 %v6877_v29  ;;  %v1652_v38 = vadd.f32 %v10583_v22, %v10237_v33  ;;  %v6888_v48 = vmul.f32 -1.442695, %v1656_v15 }
 0x3f1   :  { %v8627_v27 = vpop.eup %8626  ;;  %v10632_v40 = vmul.f32 %v8625_v1, %v8613_v24  ;;  %8646 = vpow2.f32 %v6878_v62  ;;  %v1660_v62 = vadd.f32 %v1596_v2, %v10260_v20  ;;  %v6885_v24 = vmul.f32 -1.442695, %v1644_v54 }
 0x3f2   :  { %v8629_v25 = vpop.eup %8628  ;;  %v10635_v55 = vmul.f32 %v8627_v27, %v8615_v12  ;;  %8648 = vpow2.f32 %v6879_v6  ;;  %v6886_v6 = vmul.f32 -1.442695, %v1648_v7  ;;  %v6887_v53 = vmul.f32 -1.442695, %v1652_v38 }
 0x3f3   :  { %v8631_v29 = vpop.eup %8630  ;;  %8650 = vpow2.f32 %v6880_v60  ;;  %v10640_v13 = vmul.f32 %v8629_v25, %v8619_v4  ;;  %v6889_v17 = vmul.f32 -1.442695, %v1660_v62  ;;  %v1600_v2 = vrot.slane %v10583_v22, 3 }
 0x3f4   :  { %v8633_v1 = vpop.eup %8632  ;;  %8652 = vpow2.f32 %v6881_v31  ;;  %v10643_v57 = vmul.f32 %v8631_v29, %v8621_v8 }
 0x3f5   :  { %v8635_v12 = vpop.eup %8634  ;;  %8654 = vpow2.f32 %v6882_v41  ;;  %v1604_v41 = vrot.slane %v10583_v22, 4 }
 0x3f6   :  { %v8637_v61 = vpop.eup %8636  ;;  %8656 = vpow2.f32 %v6883_v56 }
 0x3f7   :  { %v8639_v27 = vpop.eup %8638  ;;  %8658 = vpow2.f32 %v6884_v44 }
 0x3f8   :  { %v8641_v60 = vpop.eup %8640  ;;  %8660 = vpow2.f32 %v6885_v24  ;;  %v10645_v4 = vmul.f32 %v8639_v27, %v8633_v1  ;;  %v1664_v1 = vadd.f32 %v1600_v2, %v10327_v16 }
 0x3f9   :  { %v8643_v31 = vpop.eup %8642  ;;  %8662 = vpow2.f32 %v6886_v6  ;;  %v10648_v8 = vmul.f32 %v8641_v60, %v8635_v12  ;;  %v1668_v12 = vadd.f32 %v1604_v41, %v10334_v3 }
 0x3fa   :  { %v8645_v54 = vpop.eup %8644  ;;  %8664 = vpow2.f32 %v6887_v53  ;;  %v10651_v7 = vmul.f32 %v8643_v31, %v8637_v61  ;;  %v6890_v31 = vmul.f32 -1.442695, %v1664_v1 }
 0x3fb   :  { %v8647_v25 = vpop.eup %8646  ;;  %v1745_v56 = vadd.f32 1.0, %v8645_v54  ;;  %8666 = vpow2.f32 %v6888_v48  ;;  %v1608_v48 = vrot.slane %v10583_v22, 5  ;;  %v6891_v2 = vmul.f32 -1.442695, %v1668_v12 }
 0x3fc   :  { %v8649_v38 = vpop.eup %8648  ;;  %v1746_v29 = vadd.f32 1.0, %v8647_v25  ;;  %8668 = vpow2.f32 %v6889_v17 }
 0x3fd   :  { %v8651_v44 = vpop.eup %8650  ;;  %v1747_v15 = vadd.f32 1.0, %v8649_v38  ;;  %8670 = vrcp.f32 %v1745_v56 }
 0x3fe   :  { %v8653_v62 = vpop.eup %8652  ;;  %v1748_v24 = vadd.f32 1.0, %v8651_v44  ;;  %8672 = vrcp.f32 %v1746_v29  ;;  %v1672_v29 = vadd.f32 %v1608_v48, %v10343_v9 }
 0x3ff   :  { %v8655_v6 = vpop.eup %8654  ;;  %v1749_v53 = vadd.f32 1.0, %v8653_v62  ;;  %8674 = vrcp.f32 %v1747_v15 }
 0x400   :  { %v8657_v61 = vpop.eup %8656  ;;  %v1750_v27 = vadd.f32 1.0, %v8655_v6  ;;  %8676 = vrcp.f32 %v1748_v24  ;;  %v1833_v24 = vrot.slane %v10504_v21, 7  ;;  %v1837_v21 = vrot.slane %v10520_v59, 7 }
 0x401   :  { %v8659_v60 = vpop.eup %8658  ;;  %v1751_v17 = vadd.f32 1.0, %v8657_v61  ;;  %8678 = vrcp.f32 %v1749_v53  ;;  %v1834_v53 = vrot.slane %v10508_v37, 7 }
 0x402   :  { %v8661_v54 = vpop.eup %8660  ;;  %v1752_v25 = vadd.f32 1.0, %v8659_v60  ;;  %8680 = vrcp.f32 %v1750_v27  ;;  %v1835_v27 = vrot.slane %v10512_v0, 7  ;;  %v6892_v60 = vmul.f32 -1.442695, %v1672_v29 }
 0x403   :  { %v8663_v56 = vpop.eup %8662  ;;  %8682 = vrcp.f32 %v1751_v17  ;;  %v1801_v38 = vadd.f32 1.0, %v8661_v54 }
 0x404   :  { %v8665_v41 = vpop.eup %8664  ;;  %8684 = vrcp.f32 %v1752_v25  ;;  %v1802_v44 = vadd.f32 1.0, %v8663_v56 }
 0x405   :  { %v8667_v15 = vpop.eup %8666  ;;  %8686 = vpow2.f32 %v6890_v31  ;;  %v1803_v62 = vadd.f32 1.0, %v8665_v41  ;;  %v1836_v31 = vrot.slane %v10516_v46, 7  ;;  %v1839_v46 = vrot.slane %v10528_v42, 7 }
 0x406   :  { %v8669_v22 = vpop.eup %8668  ;;  %8688 = vpow2.f32 %v6891_v2  ;;  %v1804_v1 = vadd.f32 1.0, %v8667_v15 }
 0x407   :  { %v8671_v6 = vpop.eup %8670  ;;  %v1805_v12 = vadd.f32 1.0, %v8669_v22  ;;  %8690 = vrcp.f32 %v1801_v38  ;;  %v1838_v38 = vrot.slane %v10524_v51, 7 }
 0x408   :  { %v8673_v61 = vpop.eup %8672  ;;  %8692 = vrcp.f32 %v1802_v44  ;;  %v1849_v48 = vmul.f32 %v8671_v6, %v1833_v24 }
 0x409   :  { %v8675_v17 = vpop.eup %8674  ;;  %8694 = vrcp.f32 %v1803_v62  ;;  %v1850_v54 = vmul.f32 %v8673_v61, %v1834_v53 }
 0x40a   :  { %v8677_v25 = vpop.eup %8676  ;;  %8696 = vrcp.f32 %v1804_v1  ;;  %v1851_v2 = vmul.f32 %v8675_v17, %v1835_v27  ;;  %v10663_v37 = vadd.f32 %v10632_v40, %v1849_v48  ;;  %v1840_v40 = vrot.slane %v10532_v50, 7 }
 0x40b   :  { %v8679_v56 = vpop.eup %8678  ;;  %8698 = vrcp.f32 %v1805_v12  ;;  %v1852_v0 = vmul.f32 %v8677_v25, %v1836_v31  ;;  %v10667_v41 = vadd.f32 %v10635_v55, %v1850_v54 }
 0x40c   :  { %v8681_v29 = vpop.eup %8680  ;;  %8700 = vpow2.f32 %v6892_v60  ;;  %v1853_v44 = vmul.f32 %v8679_v56, %v1837_v21  ;;  %v10671_v59 = vadd.f32 %v10628_v39, %v1851_v2 }
 0x40d   :  { %v8683_v15 = vpop.eup %8682  ;;  %v1854_v62 = vmul.f32 %v8681_v29, %v1838_v38  ;;  %v10675_v22 = vadd.f32 %v10640_v13, %v1852_v0  ;;  %8702 = vtanh.f32 %v10663_v37 }
 0x40e   :  { %v8685_v51 = vpop.eup %8684  ;;  %v1855_v55 = vmul.f32 %v8683_v15, %v1839_v46  ;;  %v10679_v24 = vadd.f32 %v10643_v57, %v1853_v44  ;;  %8704 = vtanh.f32 %v10667_v41 }
 0x40f   :  { %v8687_v42 = vpop.eup %8686  ;;  %v1856_v1 = vmul.f32 %v8685_v51, %v1840_v40  ;;  %v10683_v39 = vadd.f32 %v10645_v4, %v1854_v62  ;;  %8706 = vtanh.f32 %v10671_v59 }
 0x410   :  { %v8689_v50 = vpop.eup %8688  ;;  %v1806_v6 = vadd.f32 1.0, %v8687_v42  ;;  %v10687_v13 = vadd.f32 %v10648_v8, %v1855_v55  ;;  %8708 = vtanh.f32 %v10675_v22 }
 0x411   :  { %v8691_v53 = vpop.eup %8690  ;;  %v1807_v12 = vadd.f32 1.0, %v8689_v50  ;;  %v10691_v57 = vadd.f32 %v10651_v7, %v1856_v1  ;;  %8710 = vtanh.f32 %v10679_v24 }
 0x412   :  { %v8693_v61 = vpop.eup %8692  ;;  %8712 = vrcp.f32 %v1806_v6 }
 0x413   :  { %v8695_v4 = vpop.eup %8694  ;;  %8714 = vrcp.f32 %v1807_v12 }
 0x414   :  { %v8697_v27 = vpop.eup %8696  ;;  %8716 = vtanh.f32 %v10683_v39 }
 0x415   :  { %v8699_v60 = vpop.eup %8698  ;;  %8718 = vtanh.f32 %v10687_v13 }
 0x416   :  { %v8701_v8 = vpop.eup %8700  ;;  %8720 = vtanh.f32 %v10691_v57 }
 0x417   :  { %v8703_v48 = vpop.eup %8702  ;;  %v1808_v17 = vadd.f32 1.0, %v8701_v8 }
 0x418   :  { %v8705_v31 = vpop.eup %8704  ;;  %v1881_v7 = vmul.f32 %v8703_v48, %v8691_v53 }
 0x419   :  { %v8707_v54 = vpop.eup %8706  ;;  %8722 = vrcp.f32 %v1808_v17  ;;  %v1882_v25 = vmul.f32 %v8705_v31, %v8693_v61 }
 0x41a   :  { %v8709_v21 = vpop.eup %8708  ;;  %v1883_v2 = vmul.f32 %v8707_v54, %v8695_v4  ;;  %v1897_v56 = vrot.slane %v1881_v7, 2  ;;  %v12227_v54 = vld [vmem:[#allocation34_spill] sm:$0xff] }
 0x41b   :  { %v8711_v38 = vpop.eup %8710  ;;  %v1884_v0 = vmul.f32 %v8709_v21, %v8697_v27  ;;  %v1898_v29 = vrot.slane %v1882_v25, 1  ;;  %v12228_v25 = vld [vmem:[#allocation35_spill] sm:$0xff]  ;;  %v12229_v21 = vld [vmem:[#allocation36_spill] sm:$0xff] }
 0x41c   :  { %v8713_v46 = vpop.eup %8712  ;;  %v1885_v44 = vmul.f32 %v8711_v38, %v8699_v60  ;;  %v12232_v38 = vld [vmem:[#allocation39_spill] sm:$0xff] }
 0x41d   :  { %v8715_v15 = vpop.eup %8714  ;;  %v1899_v40 = vsel %vm937_vm1, %v1898_v29, %v1897_v56  ;;  %v1901_v62 = vrot.slane %v1884_v0, 7  ;;  %v12231_v56 = vld [vmem:[#allocation38_spill] sm:$0xff]  ;;  %v12233_v0 = vld [vmem:[#allocation40_spill] sm:$0xff]  ;;  %v12234_v29 = vld [vmem:[#allocation41_spill] sm:$0xff] }
 0x41e   :  { %v8717_v51 = vpop.eup %8716  ;;  %v1900_v55 = vsel %vm940_vm2, %v1883_v2, %v1899_v40  ;;  %v1903_v42 = vrot.slane %v1885_v44, 6  ;;  %v12230_v2 = vld [vmem:[#allocation37_spill] sm:$0xff]  ;;  %v12236_v44 = vld [vmem:[#allocation43_spill] sm:$0xff] }
 0x41f   :  { %v8719_v1 = vpop.eup %8718  ;;  %v1886_v50 = vmul.f32 %v8717_v51, %v8713_v46  ;;  %v1902_v6 = vsel %vm943_vm3, %v1901_v62, %v1900_v55  ;;  %v12235_v46 = vld [vmem:[#allocation42_spill] sm:$0xff]  ;;  %v12238_v40 = vld [vmem:[#allocation45_spill] sm:$0xff]  ;;  %v12240_v51 = vld [vmem:[#allocation47_spill] sm:$0xff] }
 0x420   :  { %v1887_v53 = vmul.f32 %v8719_v1, %v8715_v15  ;;  %v1904_v12 = vsel %vm946_vm4, %v1903_v42, %v1902_v6  ;;  %v8721_v61 = vpop.eup %8720  ;;  %v12237_v15 = vld [vmem:[#allocation44_spill] sm:$0xff]  ;;  %v12239_v62 = vld [vmem:[#allocation46_spill] sm:$0xff]  ;;  %v12242_v42 = vld [vmem:[#allocation49_spill] sm:$0xff] }
 0x421   :  { %v1905_v4 = vrot.slane %v1886_v50, 5  ;;  %v12241_v55 = vld [vmem:[#allocation48_spill] sm:$0xff]  ;;  %v12243_v1 = vld [vmem:[#allocation50_spill] sm:$0xff]  ;;  %v12244_v50 = vld [vmem:[#allocation51_spill] sm:$0xff] }
 0x422   :  { %v1907_v27 = vrot.slane %v1887_v53, 4  ;;  %v12245_v6 = vld [vmem:[#allocation25_spill] sm:$0xff]  ;;  %v12246_v53 = vld [vmem:[#allocation26_spill] sm:$0xff] }
 0x423   :  { %v8723_v8 = vpop.eup %8722  ;;  %v1906_v60 = vsel %vm949_vm5, %v1905_v4, %v1904_v12 }
 0x424   :  { %v1888_v48 = vmul.f32 %v8723_v8, %v8721_v61  ;;  %v1908_v17 = vsel %vm952_vm6, %v1907_v27, %v1906_v60 }
 0x426   :  { %v1909_v31 = vrot.slane %v1888_v48, 3 }
 0x428   :  { %v1910_v7 = vsel %vm955_vm7, %v1909_v31, %v1908_v17 }
 0x429   :  { %1977 = vmatmul.mubr.f32.vlgmr.msra.gmra.mrb[22].mxu0 %v1910_v7  ;;  %2048 = vmatmul.mubr.f32.vlgmr.msra.gmra.mrb[22].mxu1 %v1910_v7 }
 0x42a   :  { %7444 = vmatpush1.bf16.msra.mxu0 %v9923_v23  ;;  %7476 = vmatpush1.bf16.msra.mxu1 %v9926_v26 }
 0x42b   :  { %7446 = vmatprep.subr.bf16.mxu0 %v9930_v30  ;;  %7478 = vmatprep.subr.bf16.mxu1 %v9934_v35 }
 0x42c   :  { %2453 = vmatprep.mubr.f32.mxu0 %v12155_v52  ;;  %2524 = vmatprep.mubr.f32.mxu1 %v12155_v52 }
 0x42e   :  { %7448 = vmatpush1.bf16.msra.mxu0 %v9936_v36  ;;  %7480 = vmatpush1.bf16.msra.mxu1 %v12188_v14 }
 0x42f   :  { %7450 = vmatprep.subr.bf16.mxu0 %v12189_v18  ;;  %7482 = vmatprep.subr.bf16.mxu1 %v12190_v32 }
 0x432   :  { %7452 = vmatpush1.bf16.msra.mxu0 %v12191_v5  ;;  %7484 = vmatpush1.bf16.msra.mxu1 %v12192_v47 }
 0x433   :  { %7454 = vmatprep.subr.bf16.mxu0 %v12193_v43  ;;  %7486 = vmatprep.subr.bf16.mxu1 %v12194_v49 }
 0x436   :  { %7456 = vmatpush1.bf16.msra.mxu0 %v12227_v54  ;;  %7488 = vmatpush1.bf16.msra.mxu1 %v12228_v25 }
 0x437   :  { %7458 = vmatprep.subr.bf16.mxu0 %v12229_v21  ;;  %7490 = vmatprep.subr.bf16.mxu1 %v12230_v2 }
 0x43a   :  { %7460 = vmatpush1.bf16.msra.mxu0 %v12231_v56  ;;  %7492 = vmatpush1.bf16.msra.mxu1 %v12232_v38 }
 0x43b   :  { %7462 = vmatprep.subr.bf16.mxu0 %v12233_v0  ;;  %7494 = vmatprep.subr.bf16.mxu1 %v12234_v29  ;;  %v12251_v0 = vld [vmem:[#allocation60_spill] sm:$0xff] }
 0x43e   :  { %7464 = vmatpush1.bf16.msra.mxu0 %v12235_v46  ;;  %7496 = vmatpush1.bf16.msra.mxu1 %v12236_v44  ;;  %v12250_v44 = vld [vmem:[#allocation59_spill] sm:$0xff] }
 0x43f   :  { %7466 = vmatprep.subr.bf16.mxu0 %v12237_v15  ;;  %7498 = vmatprep.subr.bf16.mxu1 %v12238_v40  ;;  %v12249_v40 = vld [vmem:[#allocation58_spill] sm:$0xff] }
 0x442   :  { %7468 = vmatpush1.bf16.msra.mxu0 %v12239_v62  ;;  %7500 = vmatpush1.bf16.msra.mxu1 %v12240_v51  ;;  %v12248_v51 = vld [vmem:[#allocation57_spill] sm:$0xff] }
 0x443   :  { %7470 = vmatprep.subr.bf16.mxu0 %v12241_v55  ;;  %7502 = vmatprep.subr.bf16.mxu1 %v12242_v42  ;;  %v12247_v42 = vld [vmem:[#allocation55_spill] sm:$0xff] }
 0x446   :  { %7472 = vmatpush1.bf16.msra.mxu0 %v12243_v1  ;;  %7504 = vmatpush1.bf16.msra.mxu1 %v12244_v50 }
 0x447   :  { %7506 = vmatprep.subr.bf16.mxu0 %v12245_v6  ;;  %7538 = vmatprep.subr.bf16.mxu1 %v12246_v53 }
 0x4fc   :  { %v1978_v12 = vpop.f32.mrb[22].mxu0  ;;  %v10738_v61 = vpop.f32.mrb[22].mxu1 }
 0x4fd   :  { %v2058_v4 = vrot.slane %v1978_v12, 5  ;;  %v2062_v27 = vrot.slane %v1978_v12, 6  ;;  %v2066_v8 = vrot.slane %v1978_v12, 7  ;;  %v2070_v60 = vrot.slane %v1978_v12, 1  ;;  %v10740_v48 = vpop.f32.mrb[23].mxu0  ;;  %v10742_v17 = vpop.f32.mrb[23].mxu1 }
 0x4fe   :  { %v2074_v31 = vrot.slane %v1978_v12, 2  ;;  %v2078_v7 = vrot.slane %v1978_v12, 3  ;;  %v2082_v1 = vrot.slane %v1978_v12, 4  ;;  %v2130_v50 = vadd.f32 %v1978_v12, %v10159_v34 }
 0x4ff   :  { %v2118_v6 = vadd.f32 %v2058_v4, %v12182_v10  ;;  %v2122_v53 = vadd.f32 %v2062_v27, %v10155_v58  ;;  %v2126_v55 = vadd.f32 %v2066_v8, %v12247_v42  ;;  %v2134_v62 = vadd.f32 %v2070_v60, %v12248_v51 }
 0x500   :  { %v2138_v15 = vadd.f32 %v2074_v31, %v12249_v40  ;;  %v2142_v46 = vadd.f32 %v2078_v7, %v12250_v44  ;;  %v6896_v29 = vmul.f32 -1.442695, %v2130_v50  ;;  %v2146_v38 = vadd.f32 %v2082_v1, %v12251_v0  ;;  %v12252_v50 = vld [vmem:[#allocation62_spill] sm:$0xff]  ;;  %v12260_v44 = vld [vmem:[#allocation61_spill] sm:$0xff] }
 0x501   :  { %v6893_v56 = vmul.f32 -1.442695, %v2118_v6  ;;  %v6894_v2 = vmul.f32 -1.442695, %v2122_v53  ;;  %v6895_v21 = vmul.f32 -1.442695, %v2126_v55 }
 0x502   :  { %8724 = vpow2.f32 %v6896_v29  ;;  %v6897_v12 = vmul.f32 -1.442695, %v2134_v62  ;;  %v6898_v4 = vmul.f32 -1.442695, %v2138_v15  ;;  %v2060_v27 = vrot.slane %v10738_v61, 5  ;;  %v12253_v29 = vld [vmem:[#allocation63_spill] sm:$0xff] }
 0x503   :  { %8726 = vpow2.f32 %v6893_v56  ;;  %v2064_v8 = vrot.slane %v10738_v61, 6  ;;  %v6899_v60 = vmul.f32 -1.442695, %v2142_v46  ;;  %v2068_v31 = vrot.slane %v10738_v61, 7  ;;  %v12254_v56 = vld [vmem:[#allocation64_spill] sm:$0xff]  ;;  %v12255_v55 = vld [vmem:[#allocation67_spill] sm:$0xff] }
 0x504   :  { %8728 = vpow2.f32 %v6894_v2  ;;  %v6900_v7 = vmul.f32 -1.442695, %v2146_v38  ;;  %v2072_v1 = vrot.slane %v10738_v61, 1  ;;  %v2120_v6 = vadd.f32 %v2060_v27, %v12252_v50  ;;  %v12256_v46 = vld [vmem:[#allocation65_spill] sm:$0xff] }
 0x505   :  { %8730 = vpow2.f32 %v6895_v21  ;;  %v2124_v62 = vadd.f32 %v2064_v8, %v12253_v29  ;;  %v2128_v15 = vadd.f32 %v2068_v31, %v12254_v56  ;;  %v2132_v2 = vadd.f32 %v10738_v61, %v12255_v55 }
 0x506   :  { %8732 = vpow2.f32 %v6897_v12  ;;  %v2136_v53 = vadd.f32 %v2072_v1, %v12256_v46  ;;  %v2076_v38 = vrot.slane %v10738_v61, 2  ;;  %v2084_v31 = vrot.slane %v10738_v61, 4 }
 0x507   :  { %8734 = vpow2.f32 %v6898_v4  ;;  %v2080_v4 = vrot.slane %v10738_v61, 3  ;;  %v2067_v56 = vrot.slane %v10740_v48, 7 }
 0x508   :  { %8736 = vpow2.f32 %v6899_v60 }
 0x509   :  { %8738 = vpow2.f32 %v6900_v7  ;;  %v2059_v7 = vrot.slane %v10740_v48, 5 }
 0x50a   :  { %8740 = vtanh.f32 %v2120_v6  ;;  %v2063_v6 = vrot.slane %v10740_v48, 6 }
 0x50b   :  { %8742 = vtanh.f32 %v2124_v62  ;;  %v2119_v40 = vadd.f32 %v2059_v7, %v12260_v44 }
 0x50c   :  { %v8725_v21 = vpop.eup %8724  ;;  %8744 = vtanh.f32 %v2128_v15  ;;  %v12257_v15 = vld [vmem:[#allocation72_spill] sm:$0xff] }
 0x50d   :  { %v8727_v12 = vpop.eup %8726  ;;  %v2177_v27 = vadd.f32 1.0, %v8725_v21  ;;  %8746 = vtanh.f32 %v2132_v2  ;;  %v2140_v21 = vadd.f32 %v2076_v38, %v12257_v15  ;;  %v2075_v38 = vrot.slane %v10740_v48, 2  ;;  %v12261_v15 = vld [vmem:[#allocation68_spill] sm:$0xff] }
 0x50e   :  { %v8729_v8 = vpop.eup %8728  ;;  %v2174_v60 = vadd.f32 1.0, %v8727_v12  ;;  %8748 = vtanh.f32 %v2136_v53  ;;  %v12258_v12 = vld [vmem:[#allocation73_spill] sm:$0xff]  ;;  %v2071_v53 = vrot.slane %v10740_v48, 1  ;;  %v2123_v34 = vadd.f32 %v2063_v6, %v12261_v15 }
 0x50f   :  { %v8731_v55 = vpop.eup %8730  ;;  %v2175_v1 = vadd.f32 1.0, %v8729_v8  ;;  %8750 = vrcp.f32 %v2177_v27  ;;  %v2144_v61 = vadd.f32 %v2080_v4, %v12258_v12  ;;  %v12259_v27 = vld [vmem:[#allocation76_spill] sm:$0xff]  ;;  %v2079_v4 = vrot.slane %v10740_v48, 3  ;;  %v12262_v12 = vld [vmem:[#allocation69_spill] sm:$0xff] }
 0x510   :  { %v8733_v62 = vpop.eup %8732  ;;  %v2176_v46 = vadd.f32 1.0, %v8731_v55  ;;  %8752 = vrcp.f32 %v2174_v60  ;;  %v2148_v8 = vadd.f32 %v2084_v31, %v12259_v27  ;;  %v2127_v42 = vadd.f32 %v2067_v56, %v12262_v12  ;;  %v12263_v31 = vld [vmem:[#allocation70_spill] sm:$0xff] }
 0x511   :  { %v8735_v2 = vpop.eup %8734  ;;  %v2178_v29 = vadd.f32 1.0, %v8733_v62  ;;  %8754 = vrcp.f32 %v2175_v1  ;;  %v2131_v7 = vadd.f32 %v10740_v48, %v12263_v31  ;;  %v6901_v44 = vmul.f32 -1.442695, %v2119_v40 }
 0x512   :  { %v8737_v50 = vpop.eup %8736  ;;  %v2179_v0 = vadd.f32 1.0, %v8735_v2  ;;  %8756 = vrcp.f32 %v2176_v46  ;;  %v2083_v46 = vrot.slane %v10740_v48, 4  ;;  %v2061_v6 = vrot.slane %v10742_v17, 5 }
 0x513   :  { %v8739_v55 = vpop.eup %8738  ;;  %v2180_v60 = vadd.f32 1.0, %v8737_v50  ;;  %8758 = vrcp.f32 %v2178_v29  ;;  %v12264_v50 = vld [vmem:[#allocation71_spill] sm:$0xff]  ;;  %v6902_v58 = vmul.f32 -1.442695, %v2123_v34  ;;  %v2065_v56 = vrot.slane %v10742_v17, 6 }
 0x514   :  { %v8741_v62 = vpop.eup %8740  ;;  %v2181_v1 = vadd.f32 1.0, %v8739_v55  ;;  %8760 = vrcp.f32 %v2179_v0  ;;  %v2135_v29 = vadd.f32 %v2071_v53, %v12264_v50  ;;  %v12265_v0 = vld [vmem:[#allocation74_spill] sm:$0xff]  ;;  %v2143_v12 = vadd.f32 %v2079_v4, %v12225_v28 }
 0x515   :  { %v8743_v2 = vpop.eup %8742  ;;  %8762 = vrcp.f32 %v2180_v60  ;;  %v2139_v15 = vadd.f32 %v2075_v38, %v12265_v0  ;;  %v6903_v10 = vmul.f32 -1.442695, %v2127_v42  ;;  %v2069_v48 = vrot.slane %v10742_v17, 7 }
 0x516   :  { %v8745_v27 = vpop.eup %8744  ;;  %8764 = vrcp.f32 %v2181_v1  ;;  %v2147_v40 = vadd.f32 %v2083_v46, %v12186_v63  ;;  %v6904_v1 = vmul.f32 -1.442695, %v2131_v7  ;;  %v6905_v50 = vmul.f32 -1.442695, %v2135_v29 }
 0x517   :  { %v8747_v55 = vpop.eup %8746  ;;  %8766 = vtanh.f32 %v2140_v21  ;;  %v2073_v34 = vrot.slane %v10742_v17, 1  ;;  %v2121_v38 = vadd.f32 %v2061_v6, %v12226_v11  ;;  %v6906_v42 = vmul.f32 -1.442695, %v2139_v15 }
 0x518   :  { %v8749_v60 = vpop.eup %8748  ;;  %8768 = vtanh.f32 %v2144_v61  ;;  %v2125_v4 = vadd.f32 %v2065_v56, %v10228_v45  ;;  %v6907_v46 = vmul.f32 -1.442695, %v2143_v12  ;;  %v2129_v7 = vadd.f32 %v2069_v48, %v10237_v33 }
 0x519   :  { %v8751_v53 = vpop.eup %8750  ;;  %8770 = vtanh.f32 %v2148_v8  ;;  %v6909_v15 = vmul.f32 -1.442695, %v2121_v38 }
 0x51a   :  { %v8753_v31 = vpop.eup %8752  ;;  %v10787_v21 = vmul.f32 %v8751_v53, %v8747_v55  ;;  %8772 = vpow2.f32 %v6901_v44  ;;  %v6908_v55 = vmul.f32 -1.442695, %v2147_v40  ;;  %v6911_v56 = vmul.f32 -1.442695, %v2129_v7 }
 0x51b   :  { %v8755_v61 = vpop.eup %8754  ;;  %v10791_v0 = vmul.f32 %v8753_v31, %v8741_v62  ;;  %8774 = vpow2.f32 %v6902_v58  ;;  %v2133_v62 = vadd.f32 %v10742_v17, %v10246_v19  ;;  %v2137_v58 = vadd.f32 %v2073_v34, %v10260_v20 }
 0x51c   :  { %v8757_v8 = vpop.eup %8756  ;;  %v10794_v28 = vmul.f32 %v8755_v61, %v8743_v2  ;;  %8776 = vpow2.f32 %v6903_v10  ;;  %v6910_v10 = vmul.f32 -1.442695, %v2125_v4  ;;  %v2077_v34 = vrot.slane %v10742_v17, 2 }
 0x51d   :  { %v8759_v29 = vpop.eup %8758  ;;  %v10797_v44 = vmul.f32 %v8757_v8, %v8745_v27  ;;  %8778 = vpow2.f32 %v6904_v1  ;;  %v6912_v48 = vmul.f32 -1.442695, %v2133_v62  ;;  %v6913_v40 = vmul.f32 -1.442695, %v2137_v58 }
 0x51e   :  { %v8761_v31 = vpop.eup %8760  ;;  %8780 = vpow2.f32 %v6905_v50  ;;  %v10802_v6 = vmul.f32 %v8759_v29, %v8749_v60  ;;  %v2081_v61 = vrot.slane %v10742_v17, 3  ;;  %v2141_v62 = vadd.f32 %v2077_v34, %v10327_v16 }
 0x51f   :  { %v8763_v2 = vpop.eup %8762  ;;  %8782 = vpow2.f32 %v6906_v42 }
 0x520   :  { %v8765_v12 = vpop.eup %8764  ;;  %8784 = vpow2.f32 %v6907_v46 }
 0x521   :  { %v8767_v27 = vpop.eup %8766  ;;  %8786 = vpow2.f32 %v6908_v55 }
 0x522   :  { %v8769_v53 = vpop.eup %8768  ;;  %8788 = vpow2.f32 %v6909_v15  ;;  %v10804_v1 = vmul.f32 %v8767_v27, %v8761_v31  ;;  %v2145_v15 = vadd.f32 %v2081_v61, %v10334_v3  ;;  %v2085_v27 = vrot.slane %v10742_v17, 4 }
 0x523   :  { %v8771_v50 = vpop.eup %8770  ;;  %8790 = vpow2.f32 %v6910_v10  ;;  %v10807_v60 = vmul.f32 %v8769_v53, %v8763_v2 }
 0x524   :  { %v8773_v38 = vpop.eup %8772  ;;  %8792 = vpow2.f32 %v6911_v56  ;;  %v10810_v42 = vmul.f32 %v8771_v50, %v8765_v12  ;;  %v6915_v34 = vmul.f32 -1.442695, %v2145_v15 }
 0x525   :  { %v8775_v4 = vpop.eup %8774  ;;  %v2222_v8 = vadd.f32 1.0, %v8773_v38  ;;  %8794 = vpow2.f32 %v6912_v48 }
 0x526   :  { %v8777_v46 = vpop.eup %8776  ;;  %v2223_v7 = vadd.f32 1.0, %v8775_v4  ;;  %8796 = vpow2.f32 %v6913_v40  ;;  %v6914_v40 = vmul.f32 -1.442695, %v2141_v62 }
 0x527   :  { %v8779_v29 = vpop.eup %8778  ;;  %v2224_v55 = vadd.f32 1.0, %v8777_v46  ;;  %8798 = vrcp.f32 %v2222_v8  ;;  %v2149_v46 = vadd.f32 %v2085_v27, %v10343_v9 }
 0x528   :  { %v8781_v31 = vpop.eup %8780  ;;  %v2225_v58 = vadd.f32 1.0, %v8779_v29  ;;  %8800 = vrcp.f32 %v2223_v7 }
 0x529   :  { %v8783_v2 = vpop.eup %8782  ;;  %v2226_v10 = vadd.f32 1.0, %v8781_v31  ;;  %8802 = vrcp.f32 %v2224_v55  ;;  %v2310_v31 = vrot.slane %v10663_v37, 7  ;;  %v2314_v37 = vrot.slane %v10679_v24, 7 }
 0x52a   :  { %v8785_v12 = vpop.eup %8784  ;;  %v2227_v56 = vadd.f32 1.0, %v8783_v2  ;;  %8804 = vrcp.f32 %v2225_v58  ;;  %v2311_v2 = vrot.slane %v10667_v41, 7 }
 0x52b   :  { %v8787_v48 = vpop.eup %8786  ;;  %v2228_v53 = vadd.f32 1.0, %v8785_v12  ;;  %8806 = vrcp.f32 %v2226_v10  ;;  %v2312_v12 = vrot.slane %v10671_v59, 7 }
 0x52c   :  { %v8789_v50 = vpop.eup %8788  ;;  %v2229_v38 = vadd.f32 1.0, %v8787_v48  ;;  %8808 = vrcp.f32 %v2227_v56  ;;  %v6916_v56 = vmul.f32 -1.442695, %v2149_v46 }
 0x52d   :  { %v8791_v4 = vpop.eup %8790  ;;  %8810 = vrcp.f32 %v2228_v53  ;;  %v2278_v8 = vadd.f32 1.0, %v8789_v50  ;;  %v2313_v53 = vrot.slane %v10675_v22, 7  ;;  %v2316_v22 = vrot.slane %v10687_v13, 7 }
 0x52e   :  { %v8793_v61 = vpop.eup %8792  ;;  %8812 = vrcp.f32 %v2229_v38  ;;  %v2279_v7 = vadd.f32 1.0, %v8791_v4  ;;  %v2315_v4 = vrot.slane %v10683_v39, 7 }
 0x52f   :  { %v8795_v29 = vpop.eup %8794  ;;  %8814 = vpow2.f32 %v6914_v40  ;;  %v2280_v55 = vadd.f32 1.0, %v8793_v61 }
 0x530   :  { %v8797_v17 = vpop.eup %8796  ;;  %8816 = vpow2.f32 %v6915_v34  ;;  %v2281_v62 = vadd.f32 1.0, %v8795_v29 }
 0x531   :  { %v8799_v58 = vpop.eup %8798  ;;  %v2282_v15 = vadd.f32 1.0, %v8797_v17  ;;  %8818 = vrcp.f32 %v2278_v8 }
 0x532   :  { %v8801_v10 = vpop.eup %8800  ;;  %8820 = vrcp.f32 %v2279_v7  ;;  %v2326_v27 = vmul.f32 %v8799_v58, %v2310_v31 }
 0x533   :  { %v8803_v48 = vpop.eup %8802  ;;  %8822 = vrcp.f32 %v2280_v55  ;;  %v2327_v40 = vmul.f32 %v8801_v10, %v2311_v2 }
 0x534   :  { %v8805_v50 = vpop.eup %8804  ;;  %8824 = vrcp.f32 %v2281_v62  ;;  %v2328_v38 = vmul.f32 %v8803_v48, %v2312_v12  ;;  %v10822_v41 = vadd.f32 %v10791_v0, %v2326_v27  ;;  %v2317_v0 = vrot.slane %v10691_v57, 7 }
 0x535   :  { %v8807_v34 = vpop.eup %8806  ;;  %8826 = vrcp.f32 %v2282_v15  ;;  %v2329_v59 = vmul.f32 %v8805_v50, %v2313_v53  ;;  %v10826_v8 = vadd.f32 %v10794_v28, %v2327_v40 }
 0x536   :  { %v8809_v61 = vpop.eup %8808  ;;  %8828 = vpow2.f32 %v6916_v56  ;;  %v2330_v46 = vmul.f32 %v8807_v34, %v2314_v37  ;;  %v10830_v24 = vadd.f32 %v10797_v44, %v2328_v38 }
 0x537   :  { %v8811_v7 = vpop.eup %8810  ;;  %v2331_v29 = vmul.f32 %v8809_v61, %v2315_v4  ;;  %v10834_v55 = vadd.f32 %v10787_v21, %v2329_v59  ;;  %8830 = vtanh.f32 %v10822_v41 }
 0x538   :  { %v8813_v39 = vpop.eup %8812  ;;  %v2332_v28 = vmul.f32 %v8811_v7, %v2316_v22  ;;  %v10838_v17 = vadd.f32 %v10802_v6, %v2330_v46  ;;  %8832 = vtanh.f32 %v10826_v8 }
 0x539   :  { %v8815_v13 = vpop.eup %8814  ;;  %v2333_v31 = vmul.f32 %v8813_v39, %v2317_v0  ;;  %v10842_v44 = vadd.f32 %v10804_v1, %v2331_v29  ;;  %8834 = vtanh.f32 %v10830_v24 }
 0x53a   :  { %v8817_v57 = vpop.eup %8816  ;;  %v2283_v62 = vadd.f32 1.0, %v8815_v13  ;;  %v10846_v21 = vadd.f32 %v10807_v60, %v2332_v28  ;;  %8836 = vtanh.f32 %v10834_v55 }
 0x53b   :  { %v8819_v58 = vpop.eup %8818  ;;  %v2284_v2 = vadd.f32 1.0, %v8817_v57  ;;  %v10850_v6 = vadd.f32 %v10810_v42, %v2333_v31  ;;  %8838 = vtanh.f32 %v10838_v17 }
 0x53c   :  { %v8821_v15 = vpop.eup %8820  ;;  %8840 = vrcp.f32 %v2283_v62 }
 0x53d   :  { %v8823_v1 = vpop.eup %8822  ;;  %8842 = vrcp.f32 %v2284_v2 }
 0x53e   :  { %v8825_v10 = vpop.eup %8824  ;;  %8844 = vtanh.f32 %v10842_v44 }
 0x53f   :  { %v8827_v12 = vpop.eup %8826  ;;  %8846 = vtanh.f32 %v10846_v21 }
 0x540   :  { %v8829_v60 = vpop.eup %8828  ;;  %8848 = vtanh.f32 %v10850_v6 }
 0x541   :  { %v8831_v56 = vpop.eup %8830  ;;  %v2285_v27 = vadd.f32 1.0, %v8829_v60 }
 0x542   :  { %v8833_v48 = vpop.eup %8832  ;;  %v2358_v42 = vmul.f32 %v8831_v56, %v8819_v58 }
 0x543   :  { %v8835_v53 = vpop.eup %8834  ;;  %8850 = vrcp.f32 %v2285_v27  ;;  %v2359_v40 = vmul.f32 %v8833_v48, %v8821_v15 }
 0x544   :  { %v8837_v50 = vpop.eup %8836  ;;  %v2360_v37 = vmul.f32 %v8835_v53, %v8823_v1  ;;  %v2374_v38 = vrot.slane %v2358_v42, 3  ;;  %v12266_v42 = vld [vmem:[#allocation36_spill] sm:$0xff]  ;;  %v12267_v53 = vld [vmem:[#allocation37_spill] sm:$0xff] }
 0x545   :  { %v8839_v34 = vpop.eup %8838  ;;  %v2361_v4 = vmul.f32 %v8837_v50, %v8825_v10  ;;  %v2375_v59 = vrot.slane %v2359_v40, 2  ;;  %v12268_v40 = vld [vmem:[#allocation38_spill] sm:$0xff]  ;;  %v12269_v50 = vld [vmem:[#allocation39_spill] sm:$0xff] }
 0x546   :  { %v8841_v61 = vpop.eup %8840  ;;  %v2362_v22 = vmul.f32 %v8839_v34, %v8827_v12  ;;  %v2377_v46 = vrot.slane %v2360_v37, 1  ;;  %v12270_v37 = vld [vmem:[#allocation40_spill] sm:$0xff]  ;;  %v12272_v34 = vld [vmem:[#allocation42_spill] sm:$0xff] }
 0x547   :  { %v8843_v7 = vpop.eup %8842  ;;  %v2376_v0 = vsel %vm937_vm1, %v2375_v59, %v2374_v38  ;;  %v12271_v38 = vld [vmem:[#allocation41_spill] sm:$0xff]  ;;  %v12274_v59 = vld [vmem:[#allocation44_spill] sm:$0xff] }
 0x548   :  { %v8845_v29 = vpop.eup %8844  ;;  %v2378_v39 = vsel %vm940_vm2, %v2377_v46, %v2376_v0  ;;  %v2380_v28 = vrot.slane %v2362_v22, 7  ;;  %v12276_v22 = vld [vmem:[#allocation46_spill] sm:$0xff]  ;;  %v12277_v46 = vld [vmem:[#allocation47_spill] sm:$0xff]  ;;  %v12279_v0 = vld [vmem:[#allocation49_spill] sm:$0xff] }
 0x549   :  { %v8847_v13 = vpop.eup %8846  ;;  %v2363_v31 = vmul.f32 %v8845_v29, %v8841_v61  ;;  %v2379_v57 = vsel %vm943_vm3, %v2361_v4, %v2378_v39  ;;  %v12273_v4 = vld [vmem:[#allocation43_spill] sm:$0xff]  ;;  %v12275_v61 = vld [vmem:[#allocation45_spill] sm:$0xff]  ;;  %v12280_v29 = vld [vmem:[#allocation50_spill] sm:$0xff] }
 0x54a   :  { %v2364_v62 = vmul.f32 %v8847_v13, %v8843_v7  ;;  %v2381_v58 = vsel %vm946_vm4, %v2380_v28, %v2379_v57  ;;  %v8849_v2 = vpop.eup %8848  ;;  %v12278_v7 = vld [vmem:[#allocation48_spill] sm:$0xff]  ;;  %v12281_v39 = vld [vmem:[#allocation51_spill] sm:$0xff]  ;;  %v12282_v28 = vld [vmem:[#allocation25_spill] sm:$0xff] }
 0x54b   :  { %v2382_v15 = vrot.slane %v2363_v31, 6  ;;  %v12283_v13 = vld [vmem:[#allocation26_spill] sm:$0xff] }
 0x54c   :  { %v2384_v1 = vrot.slane %v2364_v62, 5 }
 0x54d   :  { %v8851_v10 = vpop.eup %8850  ;;  %v2383_v12 = vsel %vm949_vm5, %v2382_v15, %v2381_v58 }
 0x54e   :  { %v2365_v60 = vmul.f32 %v8851_v10, %v8849_v2  ;;  %v2385_v56 = vsel %vm952_vm6, %v2384_v1, %v2383_v12 }
 0x550   :  { %v2386_v27 = vrot.slane %v2365_v60, 4 }
 0x552   :  { %v2387_v48 = vsel %vm955_vm7, %v2386_v27, %v2385_v56 }
 0x553   :  { %2454 = vmatmul.mubr.f32.vlgmr.msra.gmra.mrb[24].mxu0 %v2387_v48  ;;  %2525 = vmatmul.mubr.f32.vlgmr.msra.gmra.mrb[24].mxu1 %v2387_v48  ;;  %v12284_v48 = vld [vmem:[#allocation53_spill] sm:$0xff] }
 0x554   :  { %7508 = vmatpush1.bf16.msra.mxu0 %v9923_v23  ;;  %7540 = vmatpush1.bf16.msra.mxu1 %v9926_v26 }
 0x555   :  { %7510 = vmatprep.subr.bf16.mxu0 %v9930_v30  ;;  %7542 = vmatprep.subr.bf16.mxu1 %v9934_v35 }
 0x556   :  { %2930 = vmatprep.mubr.f32.mxu0 %v12155_v52  ;;  %3001 = vmatprep.mubr.f32.mxu1 %v12155_v52 }
 0x558   :  { %7512 = vmatpush1.bf16.msra.mxu0 %v9936_v36  ;;  %7544 = vmatpush1.bf16.msra.mxu1 %v12188_v14 }
 0x559   :  { %7514 = vmatprep.subr.bf16.mxu0 %v12189_v18  ;;  %7546 = vmatprep.subr.bf16.mxu1 %v12190_v32 }
 0x55c   :  { %7516 = vmatpush1.bf16.msra.mxu0 %v12191_v5  ;;  %7548 = vmatpush1.bf16.msra.mxu1 %v12192_v47 }
 0x55d   :  { %7518 = vmatprep.subr.bf16.mxu0 %v12193_v43  ;;  %7550 = vmatprep.subr.bf16.mxu1 %v12194_v49 }
 0x560   :  { %7520 = vmatpush1.bf16.msra.mxu0 %v12227_v54  ;;  %7552 = vmatpush1.bf16.msra.mxu1 %v12228_v25 }
 0x561   :  { %7522 = vmatprep.subr.bf16.mxu0 %v12266_v42  ;;  %7554 = vmatprep.subr.bf16.mxu1 %v12267_v53 }
 0x564   :  { %7524 = vmatpush1.bf16.msra.mxu0 %v12268_v40  ;;  %7556 = vmatpush1.bf16.msra.mxu1 %v12269_v50 }
 0x565   :  { %7526 = vmatprep.subr.bf16.mxu0 %v12270_v37  ;;  %7558 = vmatprep.subr.bf16.mxu1 %v12271_v38  ;;  %v12290_v38 = vld [vmem:[#allocation60_spill] sm:$0xff] }
 0x568   :  { %7528 = vmatpush1.bf16.msra.mxu0 %v12272_v34  ;;  %7560 = vmatpush1.bf16.msra.mxu1 %v12273_v4 }
 0x569   :  { %7530 = vmatprep.subr.bf16.mxu0 %v12274_v59  ;;  %7562 = vmatprep.subr.bf16.mxu1 %v12275_v61  ;;  %v12289_v59 = vld [vmem:[#allocation59_spill] sm:$0xff] }
 0x56c   :  { %7532 = vmatpush1.bf16.msra.mxu0 %v12276_v22  ;;  %7564 = vmatpush1.bf16.msra.mxu1 %v12277_v46  ;;  %v12288_v22 = vld [vmem:[#allocation58_spill] sm:$0xff] }
 0x56d   :  { %7534 = vmatprep.subr.bf16.mxu0 %v12278_v7  ;;  %7566 = vmatprep.subr.bf16.mxu1 %v12279_v0  ;;  %v12287_v7 = vld [vmem:[#allocation56_spill] sm:$0xff] }
 0x570   :  { %7536 = vmatpush1.bf16.msra.mxu0 %v12280_v29  ;;  %7568 = vmatpush1.bf16.msra.mxu1 %v12281_v39  ;;  %v12285_v39 = vld [vmem:[#allocation54_spill] sm:$0xff]  ;;  %v12286_v29 = vld [vmem:[#allocation55_spill] sm:$0xff] }
 0x571   :  { %7570 = vmatprep.subr.bf16.mxu0 %v12282_v28  ;;  %7602 = vmatprep.subr.bf16.mxu1 %v12283_v13 }
 0x626   :  { %v2455_v31 = vpop.f32.mrb[24].mxu0  ;;  %v10897_v57 = vpop.f32.mrb[24].mxu1 }
 0x627   :  { %v2535_v62 = vrot.slane %v2455_v31, 4  ;;  %v2539_v58 = vrot.slane %v2455_v31, 5  ;;  %v2543_v2 = vrot.slane %v2455_v31, 6  ;;  %v2547_v15 = vrot.slane %v2455_v31, 7  ;;  %v10899_v1 = vpop.f32.mrb[25].mxu0  ;;  %v10901_v10 = vpop.f32.mrb[25].mxu1 }
 0x628   :  { %v2551_v12 = vrot.slane %v2455_v31, 1  ;;  %v2555_v60 = vrot.slane %v2455_v31, 2  ;;  %v2559_v56 = vrot.slane %v2455_v31, 3  ;;  %v2611_v27 = vadd.f32 %v2455_v31, %v12248_v51 }
 0x629   :  { %v2595_v28 = vadd.f32 %v2535_v62, %v12284_v48  ;;  %v2599_v13 = vadd.f32 %v2539_v58, %v12285_v39  ;;  %v2603_v0 = vadd.f32 %v2543_v2, %v12286_v29  ;;  %v2607_v46 = vadd.f32 %v2547_v15, %v12287_v7  ;;  %v12304_v29 = vld [vmem:[#allocation74_spill] sm:$0xff] }
 0x62a   :  { %v2615_v61 = vadd.f32 %v2551_v12, %v12288_v22  ;;  %v2619_v4 = vadd.f32 %v2555_v60, %v12289_v59  ;;  %v6921_v34 = vmul.f32 -1.442695, %v2611_v27  ;;  %v2623_v37 = vadd.f32 %v2559_v56, %v12290_v38  ;;  %v12299_v59 = vld [vmem:[#allocation68_spill] sm:$0xff] }
 0x62b   :  { %v6917_v50 = vmul.f32 -1.442695, %v2595_v28  ;;  %v6918_v40 = vmul.f32 -1.442695, %v2599_v13  ;;  %v6919_v53 = vmul.f32 -1.442695, %v2603_v0 }
 0x62c   :  { %v6920_v42 = vmul.f32 -1.442695, %v2607_v46  ;;  %8852 = vpow2.f32 %v6921_v34  ;;  %v6922_v31 = vmul.f32 -1.442695, %v2615_v61  ;;  %v2537_v62 = vrot.slane %v10897_v57, 4  ;;  %v12291_v28 = vld [vmem:[#allocation62_spill] sm:$0xff] }
 0x62d   :  { %8854 = vpow2.f32 %v6917_v50  ;;  %v2541_v58 = vrot.slane %v10897_v57, 5  ;;  %v6923_v2 = vmul.f32 -1.442695, %v2619_v4  ;;  %v2545_v15 = vrot.slane %v10897_v57, 6  ;;  %v12292_v46 = vld [vmem:[#allocation63_spill] sm:$0xff]  ;;  %v12293_v50 = vld [vmem:[#allocation64_spill] sm:$0xff] }
 0x62e   :  { %8856 = vpow2.f32 %v6918_v40  ;;  %v6924_v12 = vmul.f32 -1.442695, %v2623_v37  ;;  %v2549_v60 = vrot.slane %v10897_v57, 7  ;;  %v2597_v13 = vadd.f32 %v2537_v62, %v12291_v28  ;;  %v12294_v0 = vld [vmem:[#allocation67_spill] sm:$0xff]  ;;  %v12295_v40 = vld [vmem:[#allocation65_spill] sm:$0xff] }
 0x62f   :  { %8858 = vpow2.f32 %v6919_v53  ;;  %v2601_v34 = vadd.f32 %v2541_v58, %v12292_v46  ;;  %v2605_v61 = vadd.f32 %v2545_v15, %v12293_v50  ;;  %v2613_v4 = vadd.f32 %v10897_v57, %v12295_v40  ;;  %v12298_v28 = vld [vmem:[#allocation61_spill] sm:$0xff] }
 0x630   :  { %8860 = vpow2.f32 %v6920_v42  ;;  %v2609_v56 = vadd.f32 %v2549_v60, %v12294_v0  ;;  %v2553_v27 = vrot.slane %v10897_v57, 1  ;;  %v2557_v58 = vrot.slane %v10897_v57, 2 }
 0x631   :  { %8862 = vpow2.f32 %v6922_v31  ;;  %v2540_v60 = vrot.slane %v10899_v1, 5 }
 0x632   :  { %8864 = vpow2.f32 %v6923_v2  ;;  %v2536_v2 = vrot.slane %v10899_v1, 4 }
 0x633   :  { %8866 = vpow2.f32 %v6924_v12  ;;  %v2600_v51 = vadd.f32 %v2540_v60, %v12299_v59 }
 0x634   :  { %8868 = vtanh.f32 %v2597_v13  ;;  %v2596_v38 = vadd.f32 %v2536_v2, %v12298_v28  ;;  %v2560_v2 = vrot.slane %v10899_v1, 3  ;;  %v12303_v28 = vld [vmem:[#allocation71_spill] sm:$0xff] }
 0x635   :  { %8870 = vtanh.f32 %v2601_v34  ;;  %v2612_v60 = vadd.f32 %v10899_v1, %v12303_v28  ;;  %v2550_v28 = vrot.slane %v10901_v10, 7 }
 0x636   :  { %v8853_v53 = vpop.eup %8852  ;;  %8872 = vtanh.f32 %v2605_v61  ;;  %v2561_v61 = vrot.slane %v10897_v57, 3  ;;  %v2552_v57 = vrot.slane %v10899_v1, 1  ;;  %v6925_v59 = vmul.f32 -1.442695, %v2596_v38 }
 0x637   :  { %v8855_v37 = vpop.eup %8854  ;;  %v2655_v42 = vadd.f32 1.0, %v8853_v53  ;;  %8874 = vtanh.f32 %v2609_v56  ;;  %v2544_v53 = vrot.slane %v10899_v1, 6  ;;  %v2624_v38 = vadd.f32 %v2560_v2, %v12186_v63 }
 0x638   :  { %v8857_v31 = vpop.eup %8856  ;;  %v2651_v62 = vadd.f32 1.0, %v8855_v37  ;;  %8876 = vtanh.f32 %v2613_v4  ;;  %v12296_v37 = vld [vmem:[#allocation72_spill] sm:$0xff]  ;;  %v2548_v4 = vrot.slane %v10899_v1, 7 }
 0x639   :  { %v8859_v15 = vpop.eup %8858  ;;  %v2652_v12 = vadd.f32 1.0, %v8857_v31  ;;  %8878 = vrcp.f32 %v2655_v42  ;;  %v2617_v0 = vadd.f32 %v2553_v27, %v12296_v37  ;;  %v12297_v42 = vld [vmem:[#allocation73_spill] sm:$0xff]  ;;  %v2556_v27 = vrot.slane %v10899_v1, 2 }
 0x63a   :  { %v8861_v13 = vpop.eup %8860  ;;  %v2653_v34 = vadd.f32 1.0, %v8859_v15  ;;  %8880 = vrcp.f32 %v2651_v62  ;;  %v2621_v31 = vadd.f32 %v2557_v58, %v12297_v42  ;;  %v12300_v37 = vld [vmem:[#allocation69_spill] sm:$0xff]  ;;  %v12302_v42 = vld [vmem:[#allocation70_spill] sm:$0xff] }
 0x63b   :  { %v8863_v56 = vpop.eup %8862  ;;  %v2654_v40 = vadd.f32 1.0, %v8861_v13  ;;  %8882 = vrcp.f32 %v2652_v12  ;;  %v2604_v7 = vadd.f32 %v2544_v53, %v12300_v37  ;;  %v2616_v53 = vadd.f32 %v2552_v57, %v12304_v29 }
 0x63c   :  { %v8865_v50 = vpop.eup %8864  ;;  %v2656_v46 = vadd.f32 1.0, %v8863_v56  ;;  %8884 = vrcp.f32 %v2653_v34  ;;  %v12301_v34 = vld [vmem:[#allocation76_spill] sm:$0xff]  ;;  %v6926_v37 = vmul.f32 -1.442695, %v2600_v51  ;;  %v6929_v57 = vmul.f32 -1.442695, %v2612_v60 }
 0x63d   :  { %v8867_v15 = vpop.eup %8866  ;;  %v2657_v62 = vadd.f32 1.0, %v8865_v50  ;;  %8886 = vrcp.f32 %v2654_v40  ;;  %v2625_v58 = vadd.f32 %v2561_v61, %v12301_v34  ;;  %v2608_v50 = vadd.f32 %v2548_v4, %v12302_v42  ;;  %v12305_v34 = vld [vmem:[#allocation75_spill] sm:$0xff] }
 0x63e   :  { %v8869_v13 = vpop.eup %8868  ;;  %v2658_v12 = vadd.f32 1.0, %v8867_v15  ;;  %8888 = vrcp.f32 %v2656_v46  ;;  %v2538_v46 = vrot.slane %v10901_v10, 4  ;;  %v2620_v39 = vadd.f32 %v2556_v27, %v12305_v34 }
 0x63f   :  { %v8871_v56 = vpop.eup %8870  ;;  %8890 = vrcp.f32 %v2657_v62  ;;  %v2542_v62 = vrot.slane %v10901_v10, 5  ;;  %v6927_v4 = vmul.f32 -1.442695, %v2604_v7  ;;  %v6928_v1 = vmul.f32 -1.442695, %v2608_v50 }
 0x640   :  { %v8873_v40 = vpop.eup %8872  ;;  %8892 = vrcp.f32 %v2658_v12  ;;  %v2546_v12 = vrot.slane %v10901_v10, 6  ;;  %v2598_v51 = vadd.f32 %v2538_v46, %v12226_v11  ;;  %v6930_v7 = vmul.f32 -1.442695, %v2616_v53 }
 0x641   :  { %v8875_v15 = vpop.eup %8874  ;;  %8894 = vtanh.f32 %v2617_v0  ;;  %v2602_v27 = vadd.f32 %v2542_v62, %v10228_v45  ;;  %v6931_v2 = vmul.f32 -1.442695, %v2620_v39  ;;  %v2610_v46 = vadd.f32 %v2550_v28, %v10246_v19 }
 0x642   :  { %v8877_v61 = vpop.eup %8876  ;;  %8896 = vtanh.f32 %v2621_v31  ;;  %v2606_v50 = vadd.f32 %v2546_v12, %v10237_v33  ;;  %v6933_v53 = vmul.f32 -1.442695, %v2598_v51 }
 0x643   :  { %v8879_v42 = vpop.eup %8878  ;;  %8898 = vtanh.f32 %v2625_v58  ;;  %v6934_v39 = vmul.f32 -1.442695, %v2602_v27  ;;  %v6936_v12 = vmul.f32 -1.442695, %v2610_v46 }
 0x644   :  { %v8881_v0 = vpop.eup %8880  ;;  %8900 = vpow2.f32 %v6925_v59  ;;  %v10948_v29 = vmul.f32 %v8879_v42, %v8877_v61  ;;  %v6932_v42 = vmul.f32 -1.442695, %v2624_v38 }
 0x645   :  { %v8883_v31 = vpop.eup %8882  ;;  %v10950_v48 = vmul.f32 %v8881_v0, %v8869_v13  ;;  %8902 = vpow2.f32 %v6926_v37  ;;  %v2614_v37 = vadd.f32 %v10901_v10, %v10260_v20 }
 0x646   :  { %v8885_v58 = vpop.eup %8884  ;;  %v10953_v34 = vmul.f32 %v8883_v31, %v8871_v56  ;;  %8904 = vpow2.f32 %v6927_v4  ;;  %v6935_v4 = vmul.f32 -1.442695, %v2606_v50  ;;  %v2558_v31 = vrot.slane %v10901_v10, 2 }
 0x647   :  { %v8887_v59 = vpop.eup %8886  ;;  %v10956_v60 = vmul.f32 %v8885_v58, %v8873_v40  ;;  %8906 = vpow2.f32 %v6928_v1  ;;  %v6937_v28 = vmul.f32 -1.442695, %v2614_v37 }
 0x648   :  { %v8889_v13 = vpop.eup %8888  ;;  %8908 = vpow2.f32 %v6929_v57  ;;  %v10961_v62 = vmul.f32 %v8887_v59, %v8875_v15  ;;  %v2554_v57 = vrot.slane %v10901_v10, 1 }
 0x649   :  { %v8891_v56 = vpop.eup %8890  ;;  %8910 = vpow2.f32 %v6930_v7 }
 0x64a   :  { %v8893_v61 = vpop.eup %8892  ;;  %8912 = vpow2.f32 %v6931_v2  ;;  %v2618_v46 = vadd.f32 %v2554_v57, %v10327_v16 }
 0x64b   :  { %v8895_v40 = vpop.eup %8894  ;;  %8914 = vpow2.f32 %v6932_v42 }
 0x64c   :  { %v8897_v38 = vpop.eup %8896  ;;  %8916 = vpow2.f32 %v6933_v53  ;;  %v10963_v1 = vmul.f32 %v8895_v40, %v8889_v13  ;;  %v2622_v53 = vadd.f32 %v2558_v31, %v10334_v3  ;;  %v2562_v40 = vrot.slane %v10901_v10, 3 }
 0x64d   :  { %v8899_v0 = vpop.eup %8898  ;;  %8918 = vpow2.f32 %v6934_v39  ;;  %v10966_v15 = vmul.f32 %v8897_v38, %v8891_v56 }
 0x64e   :  { %v8901_v51 = vpop.eup %8900  ;;  %8920 = vpow2.f32 %v6935_v4  ;;  %v10969_v7 = vmul.f32 %v8899_v0, %v8893_v61  ;;  %v6939_v57 = vmul.f32 -1.442695, %v2622_v53 }
 0x64f   :  { %v8903_v27 = vpop.eup %8902  ;;  %v2699_v58 = vadd.f32 1.0, %v8901_v51  ;;  %8922 = vpow2.f32 %v6936_v12 }
 0x650   :  { %v8905_v2 = vpop.eup %8904  ;;  %v2700_v50 = vadd.f32 1.0, %v8903_v27  ;;  %8924 = vpow2.f32 %v6937_v28  ;;  %v6938_v28 = vmul.f32 -1.442695, %v2618_v46 }
 0x651   :  { %v8907_v59 = vpop.eup %8906  ;;  %v2701_v42 = vadd.f32 1.0, %v8905_v2  ;;  %8926 = vrcp.f32 %v2699_v58  ;;  %v2626_v2 = vadd.f32 %v2562_v40, %v10343_v9 }
 0x652   :  { %v8909_v13 = vpop.eup %8908  ;;  %v2702_v37 = vadd.f32 1.0, %v8907_v59  ;;  %8928 = vrcp.f32 %v2700_v50 }
 0x653   :  { %v8911_v56 = vpop.eup %8910  ;;  %v2703_v39 = vadd.f32 1.0, %v8909_v13  ;;  %8930 = vrcp.f32 %v2701_v42  ;;  %v2787_v13 = vrot.slane %v10822_v41, 7  ;;  %v2791_v41 = vrot.slane %v10838_v17, 7 }
 0x654   :  { %v8913_v61 = vpop.eup %8912  ;;  %v2704_v4 = vadd.f32 1.0, %v8911_v56  ;;  %8932 = vrcp.f32 %v2702_v37  ;;  %v2788_v56 = vrot.slane %v10826_v8, 7 }
 0x655   :  { %v8915_v12 = vpop.eup %8914  ;;  %v2705_v38 = vadd.f32 1.0, %v8913_v61  ;;  %8934 = vrcp.f32 %v2703_v39  ;;  %v2789_v61 = vrot.slane %v10830_v24, 7 }
 0x656   :  { %v8917_v0 = vpop.eup %8916  ;;  %v2706_v51 = vadd.f32 1.0, %v8915_v12  ;;  %8936 = vrcp.f32 %v2704_v4  ;;  %v6940_v4 = vmul.f32 -1.442695, %v2626_v2 }
 0x657   :  { %v8919_v27 = vpop.eup %8918  ;;  %8938 = vrcp.f32 %v2705_v38  ;;  %v2755_v58 = vadd.f32 1.0, %v8917_v0  ;;  %v2790_v38 = vrot.slane %v10834_v55, 7  ;;  %v2793_v55 = vrot.slane %v10846_v21, 7 }
 0x658   :  { %v8921_v31 = vpop.eup %8920  ;;  %8940 = vrcp.f32 %v2706_v51  ;;  %v2756_v50 = vadd.f32 1.0, %v8919_v27  ;;  %v2792_v27 = vrot.slane %v10842_v44, 7 }
 0x659   :  { %v8923_v59 = vpop.eup %8922  ;;  %8942 = vpow2.f32 %v6938_v28  ;;  %v2757_v42 = vadd.f32 1.0, %v8921_v31 }
 0x65a   :  { %v8925_v10 = vpop.eup %8924  ;;  %8944 = vpow2.f32 %v6939_v57  ;;  %v2758_v46 = vadd.f32 1.0, %v8923_v59 }
 0x65b   :  { %v8927_v37 = vpop.eup %8926  ;;  %v2759_v53 = vadd.f32 1.0, %v8925_v10  ;;  %8946 = vrcp.f32 %v2755_v58 }
 0x65c   :  { %v8929_v39 = vpop.eup %8928  ;;  %8948 = vrcp.f32 %v2756_v50  ;;  %v2803_v40 = vmul.f32 %v8927_v37, %v2787_v13 }
 0x65d   :  { %v8931_v12 = vpop.eup %8930  ;;  %8950 = vrcp.f32 %v2757_v42  ;;  %v2804_v28 = vmul.f32 %v8929_v39, %v2788_v56 }
 0x65e   :  { %v8933_v0 = vpop.eup %8932  ;;  %8952 = vrcp.f32 %v2758_v46  ;;  %v2805_v51 = vmul.f32 %v8931_v12, %v2789_v61  ;;  %v10981_v8 = vadd.f32 %v10950_v48, %v2803_v40  ;;  %v2794_v48 = vrot.slane %v10850_v6, 7 }
 0x65f   :  { %v8935_v57 = vpop.eup %8934  ;;  %8954 = vrcp.f32 %v2759_v53  ;;  %v2806_v24 = vmul.f32 %v8933_v0, %v2790_v38  ;;  %v10985_v58 = vadd.f32 %v10953_v34, %v2804_v28 }
 0x660   :  { %v8937_v31 = vpop.eup %8936  ;;  %8956 = vpow2.f32 %v6940_v4  ;;  %v2807_v2 = vmul.f32 %v8935_v57, %v2791_v41  ;;  %v10989_v17 = vadd.f32 %v10956_v60, %v2805_v51 }
 0x661   :  { %v8939_v50 = vpop.eup %8938  ;;  %v2808_v59 = vmul.f32 %v8937_v31, %v2792_v27  ;;  %v10993_v42 = vadd.f32 %v10961_v62, %v2806_v24  ;;  %8958 = vtanh.f32 %v10981_v8 }
 0x662   :  { %v8941_v44 = vpop.eup %8940  ;;  %v2809_v34 = vmul.f32 %v8939_v50, %v2793_v55  ;;  %v10997_v10 = vadd.f32 %v10948_v29, %v2807_v2  ;;  %8960 = vtanh.f32 %v10985_v58 }
 0x663   :  { %v8943_v21 = vpop.eup %8942  ;;  %v2810_v13 = vmul.f32 %v8941_v44, %v2794_v48  ;;  %v11001_v60 = vadd.f32 %v10963_v1, %v2808_v59  ;;  %8962 = vtanh.f32 %v10989_v17 }
 0x664   :  { %v8945_v6 = vpop.eup %8944  ;;  %v2760_v46 = vadd.f32 1.0, %v8943_v21  ;;  %v11005_v62 = vadd.f32 %v10966_v15, %v2809_v34  ;;  %8964 = vtanh.f32 %v10993_v42 }
 0x665   :  { %v8947_v37 = vpop.eup %8946  ;;  %v2761_v56 = vadd.f32 1.0, %v8945_v6  ;;  %v11009_v29 = vadd.f32 %v10969_v7, %v2810_v13  ;;  %8966 = vtanh.f32 %v10997_v10 }
 0x666   :  { %v8949_v53 = vpop.eup %8948  ;;  %8968 = vrcp.f32 %v2760_v46 }
 0x667   :  { %v8951_v1 = vpop.eup %8950  ;;  %8970 = vrcp.f32 %v2761_v56 }
 0x668   :  { %v8953_v39 = vpop.eup %8952  ;;  %8972 = vtanh.f32 %v11001_v60 }
 0x669   :  { %v8955_v61 = vpop.eup %8954  ;;  %8974 = vtanh.f32 %v11005_v62 }
 0x66a   :  { %v8957_v15 = vpop.eup %8956  ;;  %8976 = vtanh.f32 %v11009_v29 }
 0x66b   :  { %v8959_v4 = vpop.eup %8958  ;;  %v2762_v40 = vadd.f32 1.0, %v8957_v15 }
 0x66c   :  { %v8961_v12 = vpop.eup %8960  ;;  %v2835_v7 = vmul.f32 %v8959_v4, %v8947_v37 }
 0x66d   :  { %v8963_v38 = vpop.eup %8962  ;;  %8978 = vrcp.f32 %v2762_v40  ;;  %v2836_v28 = vmul.f32 %v8961_v12, %v8949_v53 }
 0x66e   :  { %v8965_v0 = vpop.eup %8964  ;;  %v2837_v41 = vmul.f32 %v8963_v38, %v8951_v1  ;;  %v2851_v51 = vrot.slane %v2835_v7, 4  ;;  %v12306_v7 = vld [vmem:[#allocation36_spill] sm:$0xff]  ;;  %v12307_v38 = vld [vmem:[#allocation37_spill] sm:$0xff] }
 0x66f   :  { %v8967_v57 = vpop.eup %8966  ;;  %v2838_v27 = vmul.f32 %v8965_v0, %v8953_v39  ;;  %v2852_v24 = vrot.slane %v2836_v28, 3  ;;  %v12308_v28 = vld [vmem:[#allocation38_spill] sm:$0xff]  ;;  %v12309_v0 = vld [vmem:[#allocation39_spill] sm:$0xff] }
 0x670   :  { %v8969_v31 = vpop.eup %8968  ;;  %v2839_v55 = vmul.f32 %v8967_v57, %v8955_v61  ;;  %v2854_v2 = vrot.slane %v2837_v41, 2  ;;  %v12310_v41 = vld [vmem:[#allocation40_spill] sm:$0xff]  ;;  %v12312_v57 = vld [vmem:[#allocation42_spill] sm:$0xff] }
 0x671   :  { %v8971_v50 = vpop.eup %8970  ;;  %v2853_v48 = vsel %vm937_vm1, %v2852_v24, %v2851_v51  ;;  %v2856_v59 = vrot.slane %v2838_v27, 1  ;;  %v12311_v51 = vld [vmem:[#allocation41_spill] sm:$0xff]  ;;  %v12313_v27 = vld [vmem:[#allocation43_spill] sm:$0xff]  ;;  %v12314_v24 = vld [vmem:[#allocation44_spill] sm:$0xff] }
 0x672   :  { %v8973_v44 = vpop.eup %8972  ;;  %v2855_v34 = vsel %vm940_vm2, %v2854_v2, %v2853_v48  ;;  %v12317_v2 = vld [vmem:[#allocation47_spill] sm:$0xff]  ;;  %v12319_v48 = vld [vmem:[#allocation49_spill] sm:$0xff] }
 0x673   :  { %v8975_v21 = vpop.eup %8974  ;;  %v2840_v13 = vmul.f32 %v8973_v44, %v8969_v31  ;;  %v2857_v6 = vsel %vm943_vm3, %v2856_v59, %v2855_v34  ;;  %v12315_v31 = vld [vmem:[#allocation45_spill] sm:$0xff]  ;;  %v12320_v59 = vld [vmem:[#allocation50_spill] sm:$0xff]  ;;  %v12321_v44 = vld [vmem:[#allocation51_spill] sm:$0xff] }
 0x674   :  { %v2841_v46 = vmul.f32 %v8975_v21, %v8971_v50  ;;  %v2858_v37 = vsel %vm946_vm4, %v2839_v55, %v2857_v6  ;;  %v8977_v56 = vpop.eup %8976  ;;  %v12316_v55 = vld [vmem:[#allocation46_spill] sm:$0xff]  ;;  %v12318_v50 = vld [vmem:[#allocation48_spill] sm:$0xff]  ;;  %v12322_v34 = vld [vmem:[#allocation25_spill] sm:$0xff] }
 0x675   :  { %v2859_v53 = vrot.slane %v2840_v13, 7  ;;  %v12323_v21 = vld [vmem:[#allocation26_spill] sm:$0xff] }
 0x676   :  { %v2861_v1 = vrot.slane %v2841_v46, 6 }
 0x677   :  { %v8979_v39 = vpop.eup %8978  ;;  %v2860_v61 = vsel %vm949_vm5, %v2859_v53, %v2858_v37 }
 0x678   :  { %v2842_v15 = vmul.f32 %v8979_v39, %v8977_v56  ;;  %v2862_v4 = vsel %vm952_vm6, %v2861_v1, %v2860_v61 }
 0x67a   :  { %v2863_v40 = vrot.slane %v2842_v15, 5 }
 0x67c   :  { %v2864_v12 = vsel %vm955_vm7, %v2863_v40, %v2862_v4 }
 0x67d   :  { %2931 = vmatmul.mubr.f32.vlgmr.msra.gmra.mrb[26].mxu0 %v2864_v12  ;;  %3002 = vmatmul.mubr.f32.vlgmr.msra.gmra.mrb[26].mxu1 %v2864_v12  ;;  %v12324_v12 = vld [vmem:[#allocation53_spill] sm:$0xff] }
 0x67e   :  { %7572 = vmatpush1.bf16.msra.mxu0 %v9923_v23  ;;  %7604 = vmatpush1.bf16.msra.mxu1 %v9926_v26 }
 0x67f   :  { %7574 = vmatprep.subr.bf16.mxu0 %v9930_v30  ;;  %7606 = vmatprep.subr.bf16.mxu1 %v9934_v35 }
 0x680   :  { %3407 = vmatprep.mubr.f32.mxu0 %v12155_v52  ;;  %3478 = vmatprep.mubr.f32.mxu1 %v12155_v52 }
 0x682   :  { %7576 = vmatpush1.bf16.msra.mxu0 %v9936_v36  ;;  %7608 = vmatpush1.bf16.msra.mxu1 %v12188_v14 }
 0x683   :  { %7578 = vmatprep.subr.bf16.mxu0 %v12189_v18  ;;  %7610 = vmatprep.subr.bf16.mxu1 %v12190_v32 }
 0x686   :  { %7580 = vmatpush1.bf16.msra.mxu0 %v12191_v5  ;;  %7612 = vmatpush1.bf16.msra.mxu1 %v12192_v47 }
 0x687   :  { %7582 = vmatprep.subr.bf16.mxu0 %v12193_v43  ;;  %7614 = vmatprep.subr.bf16.mxu1 %v12194_v49 }
 0x68a   :  { %7584 = vmatpush1.bf16.msra.mxu0 %v12227_v54  ;;  %7616 = vmatpush1.bf16.msra.mxu1 %v12228_v25 }
 0x68b   :  { %7586 = vmatprep.subr.bf16.mxu0 %v12306_v7  ;;  %7618 = vmatprep.subr.bf16.mxu1 %v12307_v38 }
 0x68e   :  { %7588 = vmatpush1.bf16.msra.mxu0 %v12308_v28  ;;  %7620 = vmatpush1.bf16.msra.mxu1 %v12309_v0 }
 0x68f   :  { %7590 = vmatprep.subr.bf16.mxu0 %v12310_v41  ;;  %7622 = vmatprep.subr.bf16.mxu1 %v12311_v51  ;;  %v12330_v51 = vld [vmem:[#allocation60_spill] sm:$0xff] }
 0x692   :  { %7592 = vmatpush1.bf16.msra.mxu0 %v12312_v57  ;;  %7624 = vmatpush1.bf16.msra.mxu1 %v12313_v27 }
 0x693   :  { %7594 = vmatprep.subr.bf16.mxu0 %v12314_v24  ;;  %7626 = vmatprep.subr.bf16.mxu1 %v12315_v31  ;;  %v12329_v24 = vld [vmem:[#allocation59_spill] sm:$0xff] }
 0x696   :  { %7596 = vmatpush1.bf16.msra.mxu0 %v12316_v55  ;;  %7628 = vmatpush1.bf16.msra.mxu1 %v12317_v2  ;;  %v12328_v55 = vld [vmem:[#allocation57_spill] sm:$0xff] }
 0x697   :  { %7598 = vmatprep.subr.bf16.mxu0 %v12318_v50  ;;  %7630 = vmatprep.subr.bf16.mxu1 %v12319_v48  ;;  %v12327_v50 = vld [vmem:[#allocation56_spill] sm:$0xff] }
 0x69a   :  { %7600 = vmatpush1.bf16.msra.mxu0 %v12320_v59  ;;  %7632 = vmatpush1.bf16.msra.mxu1 %v12321_v44  ;;  %v12325_v44 = vld [vmem:[#allocation54_spill] sm:$0xff]  ;;  %v12326_v59 = vld [vmem:[#allocation55_spill] sm:$0xff] }
 0x69b   :  { %7634 = vmatprep.subr.bf16.mxu0 %v12322_v34  ;;  %7666 = vmatprep.subr.bf16.mxu1 %v12323_v21 }
 0x750   :  { %v2932_v13 = vpop.f32.mrb[26].mxu0  ;;  %v11056_v6 = vpop.f32.mrb[26].mxu1 }
 0x751   :  { %v3012_v46 = vrot.slane %v2932_v13, 3  ;;  %v3016_v37 = vrot.slane %v2932_v13, 4  ;;  %v3020_v56 = vrot.slane %v2932_v13, 5  ;;  %v3024_v53 = vrot.slane %v2932_v13, 6  ;;  %v11058_v1 = vpop.f32.mrb[27].mxu0  ;;  %v11060_v39 = vpop.f32.mrb[27].mxu1 }
 0x752   :  { %v3028_v61 = vrot.slane %v2932_v13, 7  ;;  %v3032_v15 = vrot.slane %v2932_v13, 1  ;;  %v3036_v4 = vrot.slane %v2932_v13, 2  ;;  %v3092_v40 = vadd.f32 %v2932_v13, %v12288_v22 }
 0x753   :  { %v3072_v34 = vadd.f32 %v3012_v46, %v12324_v12  ;;  %v3076_v21 = vadd.f32 %v3016_v37, %v12325_v44  ;;  %v3080_v48 = vadd.f32 %v3020_v56, %v12326_v59  ;;  %v3084_v2 = vadd.f32 %v3024_v53, %v12327_v50 }
 0x754   :  { %v3088_v31 = vadd.f32 %v3028_v61, %v12328_v55  ;;  %v3096_v27 = vadd.f32 %v3032_v15, %v12329_v24  ;;  %v6946_v57 = vmul.f32 -1.442695, %v3092_v40  ;;  %v3100_v41 = vadd.f32 %v3036_v4, %v12330_v51  ;;  %v12340_v55 = vld [vmem:[#allocation69_spill] sm:$0xff] }
 0x755   :  { %v6941_v0 = vmul.f32 -1.442695, %v3072_v34  ;;  %v6942_v28 = vmul.f32 -1.442695, %v3076_v21  ;;  %v6943_v38 = vmul.f32 -1.442695, %v3080_v48 }
 0x756   :  { %v6944_v7 = vmul.f32 -1.442695, %v3084_v2  ;;  %8980 = vpow2.f32 %v6946_v57  ;;  %v6945_v13 = vmul.f32 -1.442695, %v3088_v31  ;;  %v3014_v46 = vrot.slane %v11056_v6, 3  ;;  %v12331_v48 = vld [vmem:[#allocation62_spill] sm:$0xff] }
 0x757   :  { %8982 = vpow2.f32 %v6941_v0  ;;  %v3018_v37 = vrot.slane %v11056_v6, 4  ;;  %v6947_v56 = vmul.f32 -1.442695, %v3096_v27  ;;  %v3022_v53 = vrot.slane %v11056_v6, 5  ;;  %v12332_v0 = vld [vmem:[#allocation63_spill] sm:$0xff]  ;;  %v12333_v31 = vld [vmem:[#allocation64_spill] sm:$0xff] }
 0x758   :  { %8984 = vpow2.f32 %v6942_v28  ;;  %v6948_v61 = vmul.f32 -1.442695, %v3100_v41  ;;  %v3026_v15 = vrot.slane %v11056_v6, 6  ;;  %v3030_v4 = vrot.slane %v11056_v6, 7  ;;  %v12334_v28 = vld [vmem:[#allocation67_spill] sm:$0xff]  ;;  %v12335_v34 = vld [vmem:[#allocation65_spill] sm:$0xff] }
 0x759   :  { %8986 = vpow2.f32 %v6943_v38  ;;  %v3074_v2 = vadd.f32 %v3014_v46, %v12331_v48  ;;  %v3078_v57 = vadd.f32 %v3018_v37, %v12332_v0  ;;  %v3082_v40 = vadd.f32 %v3022_v53, %v12333_v31  ;;  %v12339_v48 = vld [vmem:[#allocation68_spill] sm:$0xff] }
 0x75a   :  { %8988 = vpow2.f32 %v6944_v7  ;;  %v3086_v27 = vadd.f32 %v3026_v15, %v12334_v28  ;;  %v3090_v21 = vadd.f32 %v3030_v4, %v12335_v34  ;;  %v3034_v53 = vrot.slane %v11056_v6, 1  ;;  %v12337_v28 = vld [vmem:[#allocation61_spill] sm:$0xff] }
 0x75b   :  { %8990 = vpow2.f32 %v6945_v13  ;;  %v3013_v13 = vrot.slane %v11058_v1, 3  ;;  %v3029_v34 = vrot.slane %v11058_v1, 7 }
 0x75c   :  { %8992 = vpow2.f32 %v6947_v56 }
 0x75d   :  { %8994 = vpow2.f32 %v6948_v61  ;;  %v3017_v61 = vrot.slane %v11058_v1, 4 }
 0x75e   :  { %8996 = vtanh.f32 %v3074_v2  ;;  %v12336_v2 = vld [vmem:[#allocation72_spill] sm:$0xff] }
 0x75f   :  { %8998 = vtanh.f32 %v3078_v57  ;;  %v3094_v57 = vadd.f32 %v11056_v6, %v12336_v2  ;;  %v12338_v2 = vld [vmem:[#allocation73_spill] sm:$0xff]  ;;  %v3077_v22 = vadd.f32 %v3017_v61, %v12339_v48  ;;  %v12344_v48 = vld [vmem:[#allocation74_spill] sm:$0xff] }
 0x760   :  { %v8981_v38 = vpop.eup %8980  ;;  %9000 = vtanh.f32 %v3082_v40  ;;  %v3021_v40 = vrot.slane %v11058_v1, 5  ;;  %v3098_v0 = vadd.f32 %v3034_v53, %v12338_v2  ;;  %v12343_v53 = vld [vmem:[#allocation71_spill] sm:$0xff] }
 0x761   :  { %v8983_v7 = vpop.eup %8982  ;;  %v3133_v41 = vadd.f32 1.0, %v8981_v38  ;;  %9002 = vtanh.f32 %v3086_v27  ;;  %v3089_v2 = vadd.f32 %v3029_v34, %v12343_v53 }
 0x762   :  { %v8985_v51 = vpop.eup %8984  ;;  %v3128_v46 = vadd.f32 1.0, %v8983_v7  ;;  %9004 = vtanh.f32 %v3090_v21  ;;  %v3038_v21 = vrot.slane %v11056_v6, 2  ;;  %v3033_v6 = vrot.slane %v11058_v1, 1 }
 0x763   :  { %v8987_v37 = vpop.eup %8986  ;;  %v3129_v56 = vadd.f32 1.0, %v8985_v51  ;;  %9006 = vrcp.f32 %v3133_v41  ;;  %v3025_v51 = vrot.slane %v11058_v1, 6  ;;  %v3081_v50 = vadd.f32 %v3021_v40, %v12340_v55 }
 0x764   :  { %v8989_v15 = vpop.eup %8988  ;;  %v3130_v4 = vadd.f32 1.0, %v8987_v37  ;;  %9008 = vrcp.f32 %v3128_v46  ;;  %v3073_v37 = vadd.f32 %v3013_v13, %v12337_v28  ;;  %v3037_v13 = vrot.slane %v11058_v1, 2  ;;  %v12342_v28 = vld [vmem:[#allocation70_spill] sm:$0xff] }
 0x765   :  { %v8991_v27 = vpop.eup %8990  ;;  %v3131_v38 = vadd.f32 1.0, %v8989_v15  ;;  %9010 = vrcp.f32 %v3129_v56  ;;  %v3093_v40 = vadd.f32 %v11058_v1, %v12344_v48  ;;  %v6950_v55 = vmul.f32 -1.442695, %v3077_v22 }
 0x766   :  { %v8993_v7 = vpop.eup %8992  ;;  %v3132_v41 = vadd.f32 1.0, %v8991_v27  ;;  %9012 = vrcp.f32 %v3130_v4  ;;  %v12341_v4 = vld [vmem:[#allocation76_spill] sm:$0xff]  ;;  %v6949_v61 = vmul.f32 -1.442695, %v3073_v37  ;;  %v3101_v34 = vadd.f32 %v3037_v13, %v12186_v63 }
 0x767   :  { %v8995_v46 = vpop.eup %8994  ;;  %v3134_v31 = vadd.f32 1.0, %v8993_v7  ;;  %9014 = vrcp.f32 %v3131_v38  ;;  %v3102_v59 = vadd.f32 %v3038_v21, %v12341_v4  ;;  %v3085_v7 = vadd.f32 %v3025_v51, %v12342_v28  ;;  %v12345_v4 = vld [vmem:[#allocation75_spill] sm:$0xff] }
 0x768   :  { %v8997_v15 = vpop.eup %8996  ;;  %v3135_v56 = vadd.f32 1.0, %v8995_v46  ;;  %9016 = vrcp.f32 %v3132_v41  ;;  %v3015_v46 = vrot.slane %v11060_v39, 3  ;;  %v3097_v44 = vadd.f32 %v3033_v6, %v12345_v4 }
 0x769   :  { %v8999_v27 = vpop.eup %8998  ;;  %9018 = vrcp.f32 %v3134_v31  ;;  %v3019_v31 = vrot.slane %v11060_v39, 4  ;;  %v6951_v51 = vmul.f32 -1.442695, %v3081_v50  ;;  %v6952_v37 = vmul.f32 -1.442695, %v3085_v7 }
 0x76a   :  { %v9001_v38 = vpop.eup %9000  ;;  %9020 = vrcp.f32 %v3135_v56  ;;  %v3023_v56 = vrot.slane %v11060_v39, 5  ;;  %v6953_v1 = vmul.f32 -1.442695, %v3089_v2  ;;  %v3031_v22 = vrot.slane %v11060_v39, 7 }
 0x76b   :  { %v9003_v41 = vpop.eup %9002  ;;  %9022 = vtanh.f32 %v3094_v57  ;;  %v3027_v57 = vrot.slane %v11060_v39, 6  ;;  %v3075_v48 = vadd.f32 %v3015_v46, %v12226_v11  ;;  %v6954_v50 = vmul.f32 -1.442695, %v3093_v40 }
 0x76c   :  { %v9005_v21 = vpop.eup %9004  ;;  %9024 = vtanh.f32 %v3098_v0  ;;  %v3079_v6 = vadd.f32 %v3019_v31, %v10228_v45  ;;  %v6955_v13 = vmul.f32 -1.442695, %v3097_v44  ;;  %v3083_v7 = vadd.f32 %v3023_v56, %v10237_v33 }
 0x76d   :  { %v9007_v28 = vpop.eup %9006  ;;  %9026 = vtanh.f32 %v3102_v59  ;;  %v6956_v63 = vmul.f32 -1.442695, %v3101_v34  ;;  %v3087_v46 = vadd.f32 %v3027_v57, %v10246_v19 }
 0x76e   :  { %v9009_v53 = vpop.eup %9008  ;;  %9028 = vpow2.f32 %v6949_v61  ;;  %v6958_v31 = vmul.f32 -1.442695, %v3079_v6 }
 0x76f   :  { %v9011_v0 = vpop.eup %9010  ;;  %v11108_v12 = vmul.f32 %v9009_v53, %v8997_v15  ;;  %9030 = vpow2.f32 %v6950_v55  ;;  %v3091_v55 = vadd.f32 %v3031_v22, %v10260_v20  ;;  %v6957_v53 = vmul.f32 -1.442695, %v3075_v48 }
 0x770   :  { %v9013_v59 = vpop.eup %9012  ;;  %v11111_v4 = vmul.f32 %v9011_v0, %v8999_v27  ;;  %9032 = vpow2.f32 %v6951_v51  ;;  %v6960_v34 = vmul.f32 -1.442695, %v3087_v46  ;;  %v3035_v0 = vrot.slane %v11060_v39, 1 }
 0x771   :  { %v9015_v61 = vpop.eup %9014  ;;  %v11114_v2 = vmul.f32 %v9013_v59, %v9001_v38  ;;  %9034 = vpow2.f32 %v6952_v37  ;;  %v6959_v38 = vmul.f32 -1.442695, %v3083_v7  ;;  %v6961_v57 = vmul.f32 -1.442695, %v3091_v55 }
 0x772   :  { %v9017_v15 = vpop.eup %9016  ;;  %9036 = vpow2.f32 %v6953_v1  ;;  %v11118_v40 = vmul.f32 %v9015_v61, %v9003_v41 }
 0x773   :  { %v9019_v27 = vpop.eup %9018  ;;  %9038 = vpow2.f32 %v6954_v50  ;;  %v11120_v44 = vmul.f32 %v9017_v15, %v9005_v21  ;;  %v3099_v15 = vadd.f32 %v3035_v0, %v10334_v3 }
 0x774   :  { %v9021_v51 = vpop.eup %9020  ;;  %9040 = vpow2.f32 %v6955_v13 }
 0x775   :  { %v9023_v56 = vpop.eup %9022  ;;  %9042 = vpow2.f32 %v6956_v63 }
 0x776   :  { %v9025_v37 = vpop.eup %9024  ;;  %9044 = vpow2.f32 %v6957_v53  ;;  %v11122_v1 = vmul.f32 %v9023_v56, %v9007_v28  ;;  %v3095_v28 = vadd.f32 %v11060_v39, %v10327_v16 }
 0x777   :  { %v9027_v22 = vpop.eup %9026  ;;  %9046 = vpow2.f32 %v6958_v31  ;;  %v11124_v48 = vmul.f32 %v9025_v37, %v9019_v27 }
 0x778   :  { %v9029_v41 = vpop.eup %9028  ;;  %9048 = vpow2.f32 %v6959_v38  ;;  %v11127_v21 = vmul.f32 %v9027_v22, %v9021_v51  ;;  %v3039_v51 = vrot.slane %v11060_v39, 2  ;;  %v6963_v22 = vmul.f32 -1.442695, %v3099_v15 }
 0x779   :  { %v9031_v50 = vpop.eup %9030  ;;  %v3176_v6 = vadd.f32 1.0, %v9029_v41  ;;  %9050 = vpow2.f32 %v6960_v34  ;;  %v6962_v34 = vmul.f32 -1.442695, %v3095_v28 }
 0x77a   :  { %v9033_v63 = vpop.eup %9032  ;;  %v3177_v59 = vadd.f32 1.0, %v9031_v50  ;;  %9052 = vpow2.f32 %v6961_v57 }
 0x77b   :  { %v9035_v13 = vpop.eup %9034  ;;  %v3178_v7 = vadd.f32 1.0, %v9033_v63  ;;  %9054 = vrcp.f32 %v3176_v6  ;;  %v3103_v6 = vadd.f32 %v3039_v51, %v10343_v9 }
 0x77c   :  { %v9037_v61 = vpop.eup %9036  ;;  %v3179_v46 = vadd.f32 1.0, %v9035_v13  ;;  %9056 = vrcp.f32 %v3177_v59 }
 0x77d   :  { %v9039_v55 = vpop.eup %9038  ;;  %v3180_v53 = vadd.f32 1.0, %v9037_v61  ;;  %9058 = vrcp.f32 %v3178_v7  ;;  %v3264_v7 = vrot.slane %v10981_v8, 7  ;;  %v3268_v8 = vrot.slane %v10997_v10, 7 }
 0x77e   :  { %v9041_v27 = vpop.eup %9040  ;;  %v3181_v31 = vadd.f32 1.0, %v9039_v55  ;;  %9060 = vrcp.f32 %v3179_v46  ;;  %v3265_v46 = vrot.slane %v10985_v58, 7 }
 0x77f   :  { %v9043_v38 = vpop.eup %9042  ;;  %v3182_v56 = vadd.f32 1.0, %v9041_v27  ;;  %9062 = vrcp.f32 %v3180_v53  ;;  %v3266_v53 = vrot.slane %v10989_v17, 7  ;;  %v6964_v27 = vmul.f32 -1.442695, %v3103_v6 }
 0x780   :  { %v9045_v37 = vpop.eup %9044  ;;  %v3183_v57 = vadd.f32 1.0, %v9043_v38  ;;  %9064 = vrcp.f32 %v3181_v31  ;;  %v3267_v38 = vrot.slane %v10993_v42, 7  ;;  %v3270_v42 = vrot.slane %v11005_v62, 7 }
 0x781   :  { %v9047_v41 = vpop.eup %9046  ;;  %9066 = vrcp.f32 %v3182_v56  ;;  %v3232_v50 = vadd.f32 1.0, %v9045_v37 }
 0x782   :  { %v9049_v0 = vpop.eup %9048  ;;  %9068 = vrcp.f32 %v3183_v57  ;;  %v3233_v63 = vadd.f32 1.0, %v9047_v41 }
 0x783   :  { %v9051_v59 = vpop.eup %9050  ;;  %9070 = vpow2.f32 %v6962_v34  ;;  %v3234_v13 = vadd.f32 1.0, %v9049_v0 }
 0x784   :  { %v9053_v39 = vpop.eup %9052  ;;  %9072 = vpow2.f32 %v6963_v22  ;;  %v3235_v28 = vadd.f32 1.0, %v9051_v59  ;;  %v3269_v22 = vrot.slane %v11001_v60, 7 }
 0x785   :  { %v9055_v61 = vpop.eup %9054  ;;  %v3236_v15 = vadd.f32 1.0, %v9053_v39  ;;  %9074 = vrcp.f32 %v3232_v50 }
 0x786   :  { %v9057_v55 = vpop.eup %9056  ;;  %9076 = vrcp.f32 %v3233_v63  ;;  %v3280_v31 = vmul.f32 %v9055_v61, %v3264_v7 }
 0x787   :  { %v9059_v51 = vpop.eup %9058  ;;  %9078 = vrcp.f32 %v3234_v13  ;;  %v3281_v56 = vmul.f32 %v9057_v55, %v3265_v46 }
 0x788   :  { %v9061_v34 = vpop.eup %9060  ;;  %9080 = vrcp.f32 %v3235_v28  ;;  %v3282_v37 = vmul.f32 %v9059_v51, %v3266_v53  ;;  %v11140_v58 = vadd.f32 %v11108_v12, %v3280_v31  ;;  %v3271_v12 = vrot.slane %v11009_v29, 7 }
 0x789   :  { %v9063_v57 = vpop.eup %9062  ;;  %9082 = vrcp.f32 %v3236_v15  ;;  %v3283_v17 = vmul.f32 %v9061_v34, %v3267_v38  ;;  %v11144_v41 = vadd.f32 %v11111_v4, %v3281_v56 }
 0x78a   :  { %v9065_v50 = vpop.eup %9064  ;;  %9084 = vpow2.f32 %v6964_v27  ;;  %v3284_v0 = vmul.f32 %v9063_v57, %v3268_v8  ;;  %v11148_v10 = vadd.f32 %v11114_v2, %v3282_v37 }
 0x78b   :  { %v9067_v6 = vpop.eup %9066  ;;  %v3285_v63 = vmul.f32 %v9065_v50, %v3269_v22  ;;  %v11152_v59 = vadd.f32 %v11118_v40, %v3283_v17  ;;  %9086 = vtanh.f32 %v11140_v58 }
 0x78c   :  { %v9069_v60 = vpop.eup %9068  ;;  %v3286_v4 = vmul.f32 %v9067_v6, %v3270_v42  ;;  %v11156_v13 = vadd.f32 %v11120_v44, %v3284_v0  ;;  %9088 = vtanh.f32 %v11144_v41 }
 0x78d   :  { %v9071_v62 = vpop.eup %9070  ;;  %v3287_v39 = vmul.f32 %v9069_v60, %v3271_v12  ;;  %v11160_v2 = vadd.f32 %v11122_v1, %v3285_v63  ;;  %9090 = vtanh.f32 %v11148_v10 }
 0x78e   :  { %v9073_v29 = vpop.eup %9072  ;;  %v3237_v7 = vadd.f32 1.0, %v9071_v62  ;;  %v11164_v40 = vadd.f32 %v11124_v48, %v3286_v4  ;;  %9092 = vtanh.f32 %v11152_v59 }
 0x78f   :  { %v9075_v28 = vpop.eup %9074  ;;  %v3238_v61 = vadd.f32 1.0, %v9073_v29  ;;  %v11168_v44 = vadd.f32 %v11127_v21, %v3287_v39  ;;  %9094 = vtanh.f32 %v11156_v13 }
 0x790   :  { %v9077_v46 = vpop.eup %9076  ;;  %9096 = vrcp.f32 %v3237_v7 }
 0x791   :  { %v9079_v1 = vpop.eup %9078  ;;  %9098 = vrcp.f32 %v3238_v61 }
 0x792   :  { %v9081_v15 = vpop.eup %9080  ;;  %9100 = vtanh.f32 %v11160_v2 }
 0x793   :  { %v9083_v55 = vpop.eup %9082  ;;  %9102 = vtanh.f32 %v11164_v40 }
 0x794   :  { %v9085_v48 = vpop.eup %9084  ;;  %9104 = vtanh.f32 %v11168_v44 }
 0x795   :  { %v9087_v53 = vpop.eup %9086  ;;  %v3239_v27 = vadd.f32 1.0, %v9085_v48 }
 0x796   :  { %v9089_v31 = vpop.eup %9088  ;;  %v3312_v21 = vmul.f32 %v9087_v53, %v9075_v28 }
 0x797   :  { %v9091_v51 = vpop.eup %9090  ;;  %9106 = vrcp.f32 %v3239_v27  ;;  %v3313_v38 = vmul.f32 %v9089_v31, %v9077_v46  ;;  %v12360_v31 = vld [vmem:[#allocation50_spill] sm:$0xff] }
 0x798   :  { %v9093_v56 = vpop.eup %9092  ;;  %v3314_v34 = vmul.f32 %v9091_v51, %v9079_v1  ;;  %v3328_v8 = vrot.slane %v3312_v21, 5  ;;  %v12361_v21 = vld [vmem:[#allocation51_spill] sm:$0xff] }
 0x799   :  { %v9095_v37 = vpop.eup %9094  ;;  %v3315_v57 = vmul.f32 %v9093_v56, %v9081_v15  ;;  %v3329_v22 = vrot.slane %v3313_v38, 4 }
 0x79a   :  { %v9097_v17 = vpop.eup %9096  ;;  %v3316_v50 = vmul.f32 %v9095_v37, %v9083_v55  ;;  %v3331_v42 = vrot.slane %v3314_v34, 3 }
 0x79b   :  { %v9099_v0 = vpop.eup %9098  ;;  %v3330_v6 = vsel %vm937_vm1, %v3329_v22, %v3328_v8  ;;  %v3333_v12 = vrot.slane %v3315_v57, 2 }
 0x79c   :  { %v9101_v63 = vpop.eup %9100  ;;  %v3332_v60 = vsel %vm940_vm2, %v3331_v42, %v3330_v6  ;;  %v3335_v4 = vrot.slane %v3316_v50, 1  ;;  %v12362_v6 = vld [vmem:[#allocation53_spill] sm:$0xff] }
 0x79d   :  { %v9103_v62 = vpop.eup %9102  ;;  %v3317_v39 = vmul.f32 %v9101_v63, %v9097_v17  ;;  %v3334_v29 = vsel %vm943_vm3, %v3333_v12, %v3332_v60  ;;  %v12363_v63 = vld [vmem:[#allocation54_spill] sm:$0xff] }
 0x79e   :  { %v3318_v7 = vmul.f32 %v9103_v62, %v9099_v0  ;;  %v3336_v28 = vsel %vm946_vm4, %v3335_v4, %v3334_v29  ;;  %v9105_v61 = vpop.eup %9104  ;;  %v12364_v4 = vld [vmem:[#allocation55_spill] sm:$0xff] }
 0x79f   :  { %v3337_v46 = vsel %vm949_vm5, %v3317_v39, %v3336_v28  ;;  %v12365_v39 = vld [vmem:[#allocation56_spill] sm:$0xff] }
 0x7a0   :  { %v3338_v1 = vrot.slane %v3318_v7, 7  ;;  %v12366_v7 = vld [vmem:[#allocation57_spill] sm:$0xff] }
 0x7a1   :  { %v9107_v15 = vpop.eup %9106 }
 0x7a2   :  { %v3319_v55 = vmul.f32 %v9107_v15, %v9105_v61  ;;  %v3339_v48 = vsel %vm952_vm6, %v3338_v1, %v3337_v46  ;;  %v12367_v61 = vld [vmem:[#allocation58_spill] sm:$0xff]  ;;  %v12368_v15 = vld [vmem:[#allocation60_spill] sm:$0xff] }
 0x7a4   :  { %v3340_v53 = vrot.slane %v3319_v55, 6 }
 0x7a6   :  { %v3341_v27 = vsel %vm955_vm7, %v3340_v53, %v3339_v48 }
 0x7a7   :  { %3408 = vmatmul.mubr.f32.vlgmr.msra.gmra.mrb[28].mxu0 %v3341_v27  ;;  %3479 = vmatmul.mubr.f32.vlgmr.msra.gmra.mrb[28].mxu1 %v3341_v27 }
 0x7a8   :  { %7636 = vmatpush1.bf16.msra.mxu0 %v9923_v23  ;;  %7668 = vmatpush1.bf16.msra.mxu1 %v9926_v26  ;;  %v12346_v23 = vld [vmem:[#allocation36_spill] sm:$0xff]  ;;  %v12347_v26 = vld [vmem:[#allocation37_spill] sm:$0xff] }
 0x7a9   :  { %7638 = vmatprep.subr.bf16.mxu0 %v9930_v30  ;;  %7670 = vmatprep.subr.bf16.mxu1 %v9934_v35  ;;  %v12348_v30 = vld [vmem:[#allocation38_spill] sm:$0xff]  ;;  %v12349_v35 = vld [vmem:[#allocation39_spill] sm:$0xff] }
 0x7aa   :  { %3884 = vmatprep.mubr.f32.mxu0 %v12155_v52  ;;  %3955 = vmatprep.mubr.f32.mxu1 %v12155_v52 }
 0x7ac   :  { %7640 = vmatpush1.bf16.msra.mxu0 %v9936_v36  ;;  %7672 = vmatpush1.bf16.msra.mxu1 %v12188_v14  ;;  %v12350_v36 = vld [vmem:[#allocation40_spill] sm:$0xff]  ;;  %v12351_v14 = vld [vmem:[#allocation41_spill] sm:$0xff] }
 0x7ad   :  { %7642 = vmatprep.subr.bf16.mxu0 %v12189_v18  ;;  %7674 = vmatprep.subr.bf16.mxu1 %v12190_v32  ;;  %v12352_v18 = vld [vmem:[#allocation42_spill] sm:$0xff]  ;;  %v12353_v32 = vld [vmem:[#allocation43_spill] sm:$0xff] }
 0x7b0   :  { %7644 = vmatpush1.bf16.msra.mxu0 %v12191_v5  ;;  %7676 = vmatpush1.bf16.msra.mxu1 %v12192_v47  ;;  %v12354_v5 = vld [vmem:[#allocation44_spill] sm:$0xff]  ;;  %v12355_v47 = vld [vmem:[#allocation45_spill] sm:$0xff] }
 0x7b1   :  { %7646 = vmatprep.subr.bf16.mxu0 %v12193_v43  ;;  %7678 = vmatprep.subr.bf16.mxu1 %v12194_v49  ;;  %v12356_v43 = vld [vmem:[#allocation46_spill] sm:$0xff]  ;;  %v12357_v49 = vld [vmem:[#allocation47_spill] sm:$0xff] }
 0x7b4   :  { %7648 = vmatpush1.bf16.msra.mxu0 %v12227_v54  ;;  %7680 = vmatpush1.bf16.msra.mxu1 %v12228_v25  ;;  %v12358_v54 = vld [vmem:[#allocation48_spill] sm:$0xff]  ;;  %v12359_v25 = vld [vmem:[#allocation49_spill] sm:$0xff] }
 0x7b5   :  { %7650 = vmatprep.subr.bf16.mxu0 %v12346_v23  ;;  %7682 = vmatprep.subr.bf16.mxu1 %v12347_v26 }
 0x7b8   :  { %7652 = vmatpush1.bf16.msra.mxu0 %v12348_v30  ;;  %7684 = vmatpush1.bf16.msra.mxu1 %v12349_v35 }
 0x7b9   :  { %7654 = vmatprep.subr.bf16.mxu0 %v12350_v36  ;;  %7686 = vmatprep.subr.bf16.mxu1 %v12351_v14 }
 0x7bc   :  { %7656 = vmatpush1.bf16.msra.mxu0 %v12352_v18  ;;  %7688 = vmatpush1.bf16.msra.mxu1 %v12353_v32 }
 0x7bd   :  { %7658 = vmatprep.subr.bf16.mxu0 %v12354_v5  ;;  %7690 = vmatprep.subr.bf16.mxu1 %v12355_v47  ;;  %v12369_v47 = vld [vmem:[#allocation62_spill] sm:$0xff] }
 0x7c0   :  { %7660 = vmatpush1.bf16.msra.mxu0 %v12356_v43  ;;  %7692 = vmatpush1.bf16.msra.mxu1 %v12357_v49  ;;  %v12370_v49 = vld [vmem:[#allocation63_spill] sm:$0xff] }
 0x7c1   :  { %7662 = vmatprep.subr.bf16.mxu0 %v12358_v54  ;;  %7694 = vmatprep.subr.bf16.mxu1 %v12359_v25  ;;  %v12371_v25 = vld [vmem:[#allocation64_spill] sm:$0xff] }
 0x7c4   :  { %7664 = vmatpush1.bf16.msra.mxu0 %v12360_v31  ;;  %7696 = vmatpush1.bf16.msra.mxu1 %v12361_v21  ;;  %v12372_v21 = vld [vmem:[#allocation67_spill] sm:$0xff] }
 0x87a   :  { %v3409_v51 = vpop.f32.mrb[28].mxu0  ;;  %v11213_v38 = vpop.f32.mrb[28].mxu1 }
 0x87b   :  { %v3489_v56 = vrot.slane %v3409_v51, 2  ;;  %v3493_v34 = vrot.slane %v3409_v51, 3  ;;  %v3497_v8 = vrot.slane %v3409_v51, 4  ;;  %v3501_v37 = vrot.slane %v3409_v51, 5  ;;  %v11215_v57 = vpop.f32.mrb[29].mxu0  ;;  %v11217_v22 = vpop.f32.mrb[29].mxu1 }
 0x87c   :  { %v3505_v17 = vrot.slane %v3409_v51, 6  ;;  %v3509_v50 = vrot.slane %v3409_v51, 7  ;;  %v3513_v42 = vrot.slane %v3409_v51, 1  ;;  %v3573_v0 = vadd.f32 %v3409_v51, %v12329_v24 }
 0x87d   :  { %v3549_v12 = vadd.f32 %v3489_v56, %v12362_v6  ;;  %v3553_v60 = vadd.f32 %v3493_v34, %v12363_v63  ;;  %v3557_v62 = vadd.f32 %v3497_v8, %v12364_v4  ;;  %v3561_v29 = vadd.f32 %v3501_v37, %v12365_v39  ;;  %v12373_v56 = vld [vmem:[#allocation65_spill] sm:$0xff] }
 0x87e   :  { %v3565_v28 = vadd.f32 %v3505_v17, %v12366_v7  ;;  %v3569_v46 = vadd.f32 %v3509_v50, %v12367_v61  ;;  %v6971_v1 = vmul.f32 -1.442695, %v3573_v0  ;;  %v3577_v55 = vadd.f32 %v3513_v42, %v12368_v15 }
 0x87f   :  { %v6965_v48 = vmul.f32 -1.442695, %v3549_v12  ;;  %v6966_v53 = vmul.f32 -1.442695, %v3553_v60  ;;  %v6967_v27 = vmul.f32 -1.442695, %v3557_v62 }
 0x880   :  { %v6968_v23 = vmul.f32 -1.442695, %v3561_v29  ;;  %9108 = vpow2.f32 %v6971_v1  ;;  %v6969_v26 = vmul.f32 -1.442695, %v3565_v28  ;;  %v3491_v30 = vrot.slane %v11213_v38, 2 }
 0x881   :  { %9110 = vpow2.f32 %v6965_v48  ;;  %v3495_v35 = vrot.slane %v11213_v38, 3  ;;  %v6970_v36 = vmul.f32 -1.442695, %v3569_v46  ;;  %v3499_v14 = vrot.slane %v11213_v38, 4 }
 0x882   :  { %9112 = vpow2.f32 %v6966_v53  ;;  %v6972_v18 = vmul.f32 -1.442695, %v3577_v55  ;;  %v3503_v32 = vrot.slane %v11213_v38, 5  ;;  %v3507_v5 = vrot.slane %v11213_v38, 6 }
 0x883   :  { %9114 = vpow2.f32 %v6967_v27  ;;  %v3551_v43 = vadd.f32 %v3491_v30, %v12369_v47  ;;  %v3555_v54 = vadd.f32 %v3495_v35, %v12370_v49  ;;  %v3559_v31 = vadd.f32 %v3499_v14, %v12371_v25  ;;  %v12374_v27 = vld [vmem:[#allocation72_spill] sm:$0xff]  ;;  %v12375_v14 = vld [vmem:[#allocation61_spill] sm:$0xff] }
 0x884   :  { %9116 = vpow2.f32 %v6968_v23  ;;  %v3563_v51 = vadd.f32 %v3503_v32, %v12372_v21  ;;  %v3567_v34 = vadd.f32 %v3507_v5, %v12373_v56  ;;  %v3511_v50 = vrot.slane %v11213_v38, 7 }
 0x885   :  { %9118 = vpow2.f32 %v6969_v26  ;;  %v3490_v12 = vrot.slane %v11215_v57, 2  ;;  %v3494_v29 = vrot.slane %v11215_v57, 3  ;;  %v3515_v1 = vrot.slane %v11213_v38, 1 }
 0x886   :  { %9120 = vpow2.f32 %v6970_v36  ;;  %v3498_v55 = vrot.slane %v11215_v57, 4  ;;  %v3571_v23 = vadd.f32 %v3511_v50, %v12374_v27  ;;  %v3502_v26 = vrot.slane %v11215_v57, 5 }
 0x887   :  { %9122 = vpow2.f32 %v6972_v18  ;;  %v3506_v36 = vrot.slane %v11215_v57, 6  ;;  %v3550_v18 = vadd.f32 %v3490_v12, %v12375_v14  ;;  %v3514_v12 = vrot.slane %v11215_v57, 1 }
 0x888   :  { %9124 = vtanh.f32 %v3551_v43  ;;  %v3510_v43 = vrot.slane %v11215_v57, 7 }
 0x889   :  { %9126 = vtanh.f32 %v3555_v54  ;;  %v12376_v54 = vld [vmem:[#allocation68_spill] sm:$0xff] }
 0x88a   :  { %v9109_v8 = vpop.eup %9108  ;;  %9128 = vtanh.f32 %v3559_v31  ;;  %v3554_v31 = vadd.f32 %v3494_v29, %v12376_v54 }
 0x88b   :  { %v9111_v37 = vpop.eup %9110  ;;  %v3611_v17 = vadd.f32 1.0, %v9109_v8  ;;  %9130 = vtanh.f32 %v3563_v51  ;;  %v12377_v8 = vld [vmem:[#allocation73_spill] sm:$0xff] }
 0x88c   :  { %v9113_v42 = vpop.eup %9112  ;;  %v3605_v0 = vadd.f32 1.0, %v9111_v37  ;;  %9132 = vtanh.f32 %v3567_v34  ;;  %v3575_v37 = vadd.f32 %v11213_v38, %v12377_v8  ;;  %v12382_v38 = vld [vmem:[#allocation74_spill] sm:$0xff] }
 0x88d   :  { %v9115_v60 = vpop.eup %9114  ;;  %v3606_v62 = vadd.f32 1.0, %v9113_v42  ;;  %9134 = vrcp.f32 %v3611_v17  ;;  %v12378_v17 = vld [vmem:[#allocation69_spill] sm:$0xff] }
 0x88e   :  { %v9117_v28 = vpop.eup %9116  ;;  %v3607_v46 = vadd.f32 1.0, %v9115_v60  ;;  %9136 = vrcp.f32 %v3605_v0  ;;  %v3558_v50 = vadd.f32 %v3498_v55, %v12378_v17  ;;  %v12379_v0 = vld [vmem:[#allocation76_spill] sm:$0xff]  ;;  %v6974_v55 = vmul.f32 -1.442695, %v3554_v31 }
 0x88f   :  { %v9119_v48 = vpop.eup %9118  ;;  %v3608_v53 = vadd.f32 1.0, %v9117_v28  ;;  %9138 = vrcp.f32 %v3606_v62  ;;  %v3579_v60 = vadd.f32 %v3515_v1, %v12379_v0  ;;  %v12380_v62 = vld [vmem:[#allocation70_spill] sm:$0xff]  ;;  %v12383_v1 = vld [vmem:[#allocation75_spill] sm:$0xff]  ;;  %v3508_v31 = vrot.slane %v11217_v22, 6 }
 0x890   :  { %v9121_v30 = vpop.eup %9120  ;;  %v3609_v35 = vadd.f32 1.0, %v9119_v48  ;;  %9140 = vrcp.f32 %v3607_v46  ;;  %v3562_v28 = vadd.f32 %v3502_v26, %v12380_v62  ;;  %v12381_v48 = vld [vmem:[#allocation71_spill] sm:$0xff]  ;;  %v3574_v0 = vadd.f32 %v11215_v57, %v12383_v1 }
 0x891   :  { %v9123_v32 = vpop.eup %9122  ;;  %v3610_v5 = vadd.f32 1.0, %v9121_v30  ;;  %9142 = vrcp.f32 %v3608_v53  ;;  %v3566_v29 = vadd.f32 %v3506_v36, %v12381_v48  ;;  %v6973_v53 = vmul.f32 -1.442695, %v3550_v18  ;;  %v12384_v36 = vld [vmem:[#allocation77_spill] sm:$0xff] }
 0x892   :  { %v9125_v51 = vpop.eup %9124  ;;  %v3612_v34 = vadd.f32 1.0, %v9123_v32  ;;  %9144 = vrcp.f32 %v3609_v35  ;;  %v3492_v30 = vrot.slane %v11217_v22, 2  ;;  %v3570_v32 = vadd.f32 %v3510_v43, %v12382_v38 }
 0x893   :  { %v9127_v42 = vpop.eup %9126  ;;  %9146 = vrcp.f32 %v3610_v5  ;;  %v3496_v5 = vrot.slane %v11217_v22, 3  ;;  %v6975_v26 = vmul.f32 -1.442695, %v3558_v50  ;;  %v3578_v18 = vadd.f32 %v3514_v12, %v12384_v36 }
 0x894   :  { %v9129_v46 = vpop.eup %9128  ;;  %9148 = vrcp.f32 %v3612_v34  ;;  %v3500_v34 = vrot.slane %v11217_v22, 4  ;;  %v6976_v48 = vmul.f32 -1.442695, %v3562_v28  ;;  %v6977_v43 = vmul.f32 -1.442695, %v3566_v29 }
 0x895   :  { %v9131_v35 = vpop.eup %9130  ;;  %9150 = vtanh.f32 %v3571_v23  ;;  %v3504_v23 = vrot.slane %v11217_v22, 5  ;;  %v6978_v57 = vmul.f32 -1.442695, %v3570_v32  ;;  %v3556_v50 = vadd.f32 %v3496_v5, %v10228_v45 }
 0x896   :  { %v9133_v17 = vpop.eup %9132  ;;  %9152 = vtanh.f32 %v3575_v37  ;;  %v3552_v37 = vadd.f32 %v3492_v30, %v12226_v11  ;;  %v6979_v12 = vmul.f32 -1.442695, %v3574_v0  ;;  %v3560_v28 = vadd.f32 %v3500_v34, %v10237_v33 }
 0x897   :  { %v9135_v62 = vpop.eup %9134  ;;  %9154 = vtanh.f32 %v3579_v60  ;;  %v6980_v36 = vmul.f32 -1.442695, %v3578_v18  ;;  %v3564_v30 = vadd.f32 %v3504_v23, %v10246_v19 }
 0x898   :  { %v9137_v54 = vpop.eup %9136  ;;  %9156 = vpow2.f32 %v6973_v53  ;;  %v6981_v32 = vmul.f32 -1.442695, %v3552_v37 }
 0x899   :  { %v9139_v38 = vpop.eup %9138  ;;  %v11265_v14 = vmul.f32 %v9137_v54, %v9125_v51  ;;  %9158 = vpow2.f32 %v6974_v55  ;;  %v3568_v51 = vadd.f32 %v3508_v31, %v10260_v20 }
 0x89a   :  { %v9141_v60 = vpop.eup %9140  ;;  %v11268_v1 = vmul.f32 %v9139_v38, %v9127_v42  ;;  %9160 = vpow2.f32 %v6975_v26  ;;  %v6982_v38 = vmul.f32 -1.442695, %v3556_v50 }
 0x89b   :  { %v9143_v53 = vpop.eup %9142  ;;  %v11271_v29 = vmul.f32 %v9141_v60, %v9129_v46  ;;  %9162 = vpow2.f32 %v6976_v48  ;;  %v6983_v46 = vmul.f32 -1.442695, %v3560_v28  ;;  %v6984_v48 = vmul.f32 -1.442695, %v3564_v30 }
 0x89c   :  { %v9145_v54 = vpop.eup %9144  ;;  %9164 = vpow2.f32 %v6977_v43  ;;  %v11275_v55 = vmul.f32 %v9143_v53, %v9131_v35  ;;  %v6985_v18 = vmul.f32 -1.442695, %v3568_v51  ;;  %v3512_v35 = vrot.slane %v11217_v22, 7 }
 0x89d   :  { %v9147_v42 = vpop.eup %9146  ;;  %9166 = vpow2.f32 %v6978_v57  ;;  %v11277_v0 = vmul.f32 %v9145_v54, %v9133_v17 }
 0x89e   :  { %v9149_v5 = vpop.eup %9148  ;;  %9168 = vpow2.f32 %v6979_v12  ;;  %v3572_v53 = vadd.f32 %v3512_v35, %v10327_v16 }
 0x89f   :  { %v9151_v26 = vpop.eup %9150  ;;  %9170 = vpow2.f32 %v6980_v36 }
 0x8a0   :  { %v9153_v34 = vpop.eup %9152  ;;  %9172 = vpow2.f32 %v6981_v32  ;;  %v11279_v23 = vmul.f32 %v9151_v26, %v9147_v42 }
 0x8a1   :  { %v9155_v43 = vpop.eup %9154  ;;  %9174 = vpow2.f32 %v6982_v38  ;;  %v11282_v31 = vmul.f32 %v9153_v34, %v9135_v62  ;;  %v3576_v62 = vadd.f32 %v11217_v22, %v10334_v3 }
 0x8a2   :  { %v9157_v37 = vpop.eup %9156  ;;  %9176 = vpow2.f32 %v6983_v46  ;;  %v11284_v17 = vmul.f32 %v9155_v43, %v9149_v5  ;;  %v3516_v5 = vrot.slane %v11217_v22, 1 }
 0x8a3   :  { %v9159_v57 = vpop.eup %9158  ;;  %v3653_v50 = vadd.f32 1.0, %v9157_v37  ;;  %9178 = vpow2.f32 %v6984_v48  ;;  %v6986_v48 = vmul.f32 -1.442695, %v3572_v53  ;;  %v6987_v43 = vmul.f32 -1.442695, %v3576_v62 }
 0x8a4   :  { %v9161_v36 = vpop.eup %9160  ;;  %v3654_v60 = vadd.f32 1.0, %v9159_v57  ;;  %9180 = vpow2.f32 %v6985_v18 }
 0x8a5   :  { %v9163_v12 = vpop.eup %9162  ;;  %v3655_v28 = vadd.f32 1.0, %v9161_v36  ;;  %9182 = vrcp.f32 %v3653_v50  ;;  %v3580_v50 = vadd.f32 %v3516_v5, %v10343_v9 }
 0x8a6   :  { %v9165_v30 = vpop.eup %9164  ;;  %v3656_v54 = vadd.f32 1.0, %v9163_v12  ;;  %9184 = vrcp.f32 %v3654_v60 }
 0x8a7   :  { %v9167_v51 = vpop.eup %9166  ;;  %v3657_v32 = vadd.f32 1.0, %v9165_v30  ;;  %9186 = vrcp.f32 %v3655_v28  ;;  %v3741_v28 = vrot.slane %v11140_v58, 7  ;;  %v3745_v58 = vrot.slane %v11156_v13, 7 }
 0x8a8   :  { %v9169_v42 = vpop.eup %9168  ;;  %v3658_v38 = vadd.f32 1.0, %v9167_v51  ;;  %9188 = vrcp.f32 %v3656_v54  ;;  %v3742_v54 = vrot.slane %v11144_v41, 7 }
 0x8a9   :  { %v9171_v46 = vpop.eup %9170  ;;  %v3659_v26 = vadd.f32 1.0, %v9169_v42  ;;  %9190 = vrcp.f32 %v3657_v32  ;;  %v3743_v32 = vrot.slane %v11148_v10, 7  ;;  %v6988_v42 = vmul.f32 -1.442695, %v3580_v50 }
 0x8aa   :  { %v9173_v34 = vpop.eup %9172  ;;  %v3660_v18 = vadd.f32 1.0, %v9171_v46  ;;  %9192 = vrcp.f32 %v3658_v38  ;;  %v3744_v46 = vrot.slane %v11152_v59, 7  ;;  %v3747_v59 = vrot.slane %v11164_v40, 7 }
 0x8ab   :  { %v9175_v35 = vpop.eup %9174  ;;  %9194 = vrcp.f32 %v3659_v26  ;;  %v3709_v37 = vadd.f32 1.0, %v9173_v34 }
 0x8ac   :  { %v9177_v57 = vpop.eup %9176  ;;  %9196 = vrcp.f32 %v3660_v18  ;;  %v3710_v36 = vadd.f32 1.0, %v9175_v35 }
 0x8ad   :  { %v9179_v60 = vpop.eup %9178  ;;  %9198 = vpow2.f32 %v6986_v48  ;;  %v3711_v12 = vadd.f32 1.0, %v9177_v57 }
 0x8ae   :  { %v9181_v22 = vpop.eup %9180  ;;  %9200 = vpow2.f32 %v6987_v43  ;;  %v3712_v53 = vadd.f32 1.0, %v9179_v60  ;;  %v3746_v43 = vrot.slane %v11160_v2, 7 }
 0x8af   :  { %v9183_v30 = vpop.eup %9182  ;;  %v3713_v62 = vadd.f32 1.0, %v9181_v22  ;;  %9202 = vrcp.f32 %v3709_v37 }
 0x8b0   :  { %v9185_v51 = vpop.eup %9184  ;;  %9204 = vrcp.f32 %v3710_v36  ;;  %v3757_v38 = vmul.f32 %v9183_v30, %v3741_v28 }
 0x8b1   :  { %v9187_v5 = vpop.eup %9186  ;;  %9206 = vrcp.f32 %v3711_v12  ;;  %v3758_v26 = vmul.f32 %v9185_v51, %v3742_v54 }
 0x8b2   :  { %v9189_v48 = vpop.eup %9188  ;;  %9208 = vrcp.f32 %v3712_v53  ;;  %v3759_v34 = vmul.f32 %v9187_v5, %v3743_v32  ;;  %v11297_v41 = vadd.f32 %v11265_v14, %v3757_v38  ;;  %v3748_v14 = vrot.slane %v11168_v44, 7 }
 0x8b3   :  { %v9191_v18 = vpop.eup %9190  ;;  %9210 = vrcp.f32 %v3713_v62  ;;  %v3760_v10 = vmul.f32 %v9189_v48, %v3744_v46  ;;  %v11301_v35 = vadd.f32 %v11268_v1, %v3758_v26 }
 0x8b4   :  { %v9193_v37 = vpop.eup %9192  ;;  %9212 = vpow2.f32 %v6988_v42  ;;  %v3761_v57 = vmul.f32 %v9191_v18, %v3745_v58  ;;  %v11305_v13 = vadd.f32 %v11271_v29, %v3759_v34 }
 0x8b5   :  { %v9195_v50 = vpop.eup %9194  ;;  %v3762_v36 = vmul.f32 %v9193_v37, %v3746_v43  ;;  %v11309_v60 = vadd.f32 %v11275_v55, %v3760_v10  ;;  %9214 = vtanh.f32 %v11297_v41 }
 0x8b6   :  { %v9197_v2 = vpop.eup %9196  ;;  %v3763_v1 = vmul.f32 %v9195_v50, %v3747_v59  ;;  %v11313_v12 = vadd.f32 %v11277_v0, %v3761_v57  ;;  %9216 = vtanh.f32 %v11301_v35 }
 0x8b7   :  { %v9199_v40 = vpop.eup %9198  ;;  %v3764_v22 = vmul.f32 %v9197_v2, %v3748_v14  ;;  %v11317_v29 = vadd.f32 %v11279_v23, %v3762_v36  ;;  %9218 = vtanh.f32 %v11305_v13 }
 0x8b8   :  { %v9201_v44 = vpop.eup %9200  ;;  %v3714_v28 = vadd.f32 1.0, %v9199_v40  ;;  %v11321_v55 = vadd.f32 %v11282_v31, %v3763_v1  ;;  %9220 = vtanh.f32 %v11309_v60 }
 0x8b9   :  { %v9203_v53 = vpop.eup %9202  ;;  %v3715_v30 = vadd.f32 1.0, %v9201_v44  ;;  %v11325_v0 = vadd.f32 %v11284_v17, %v3764_v22  ;;  %9222 = vtanh.f32 %v11313_v12 }
 0x8ba   :  { %v9205_v54 = vpop.eup %9204  ;;  %9224 = vrcp.f32 %v3714_v28 }
 0x8bb   :  { %v9207_v23 = vpop.eup %9206  ;;  %9226 = vrcp.f32 %v3715_v30 }
 0x8bc   :  { %v9209_v62 = vpop.eup %9208  ;;  %9228 = vtanh.f32 %v11317_v29 }
 0x8bd   :  { %v9211_v51 = vpop.eup %9210  ;;  %9230 = vtanh.f32 %v11321_v55 }
 0x8be   :  { %v9213_v31 = vpop.eup %9212  ;;  %9232 = vtanh.f32 %v11325_v0 }
 0x8bf   :  { %v9215_v32 = vpop.eup %9214  ;;  %v3716_v42 = vadd.f32 1.0, %v9213_v31 }
 0x8c0   :  { %v9217_v38 = vpop.eup %9216  ;;  %v3789_v17 = vmul.f32 %v9215_v32, %v9203_v53 }
 0x8c1   :  { %v9219_v5 = vpop.eup %9218  ;;  %9234 = vrcp.f32 %v3716_v42  ;;  %v3790_v46 = vmul.f32 %v9217_v38, %v9205_v54  ;;  %v4275_v38 = vld [vmem:[#allocation10 + $0x8] sm:$0xff] }
 0x8c2   :  { %v9221_v26 = vpop.eup %9220  ;;  %v3791_v48 = vmul.f32 %v9219_v5, %v9207_v23  ;;  %v3805_v58 = vrot.slane %v3789_v17, 6  ;;  %v4279_v17 = vld [vmem:[#allocation10 + $0x28] sm:$0xff]  ;;  %v4277_v5 = vld [vmem:[#allocation10 + $0x18] sm:$0xff] }
 0x8c3   :  { %v9223_v34 = vpop.eup %9222  ;;  %v3792_v18 = vmul.f32 %v9221_v26, %v9209_v62  ;;  %v3806_v43 = vrot.slane %v3790_v46, 5  ;;  %v7697_v46 = vpack.c.bf16 %v4279_v17, %v4275_v38  ;;  %v4281_v26 = vld [vmem:[#allocation10 + $0x38] sm:$0xff]  ;;  %v4292_v38 = vld [vmem:[#allocation10 + $0x90] sm:$0xff] }
 0x8c4   :  { %v9225_v10 = vpop.eup %9224  ;;  %v3793_v37 = vmul.f32 %v9223_v34, %v9211_v51  ;;  %v3808_v59 = vrot.slane %v3791_v48, 4  ;;  %v4274_v48 = vld [vmem:[#allocation10] sm:$0xff]  ;;  %v7729_v34 = vpack.c.bf16 %v4281_v26, %v4277_v5  ;;  %v4296_v17 = vld [vmem:[#allocation10 + $0xb0] sm:$0xff]  ;;  %v4303_v26 = vld [vmem:[#allocation10 + $0xe8] sm:$0xff] }
 0x8c5   :  { %v9227_v57 = vpop.eup %9226  ;;  %v3807_v50 = vsel %vm937_vm1, %v3806_v43, %v3805_v58  ;;  %v3810_v14 = vrot.slane %v3792_v18, 3  ;;  %v4278_v58 = vld [vmem:[#allocation10 + $0x20] sm:$0xff]  ;;  %v4276_v43 = vld [vmem:[#allocation10 + $0x10] sm:$0xff]  ;;  %7698 = vmatprep.subr.bf16.mxu0 %v7697_v46  ;;  %v4299_v46 = vld [vmem:[#allocation10 + $0xc8] sm:$0xff] }
 0x8c6   :  { %v9229_v36 = vpop.eup %9228  ;;  %v3809_v2 = vsel %vm940_vm2, %v3808_v59, %v3807_v50  ;;  %v3812_v1 = vrot.slane %v3793_v37, 2  ;;  %v7699_v18 = vpack.c.bf16 %v4278_v58, %v4274_v48  ;;  %v4283_v37 = vld [vmem:[#allocation10 + $0x48] sm:$0xff]  ;;  %v4285_v50 = vld [vmem:[#allocation10 + $0x58] sm:$0xff]  ;;  %7730 = vmatprep.subr.bf16.mxu1 %v7729_v34  ;;  %v7739_v58 = vpack.c.bf16 %v4296_v17, %v4292_v38  ;;  %v4314_v17 = vld [vmem:[#allocation10 + $0x140] sm:$0xff] }
 0x8c7   :  { %v9231_v40 = vpop.eup %9230  ;;  %v3794_v22 = vmul.f32 %v9229_v36, %v9225_v10  ;;  %v3811_v44 = vsel %vm943_vm3, %v3810_v14, %v3809_v2  ;;  %v4280_v10 = vld [vmem:[#allocation10 + $0x30] sm:$0xff]  ;;  %v4289_v14 = vld [vmem:[#allocation10 + $0x78] sm:$0xff]  ;;  %v7709_v34 = vpack.c.bf16 %v4303_v26, %v4299_v46 }
 0x8c8   :  { %v3795_v28 = vmul.f32 %v9231_v40, %v9227_v57  ;;  %v3813_v53 = vsel %vm946_vm4, %v3812_v1, %v3811_v44  ;;  %v9233_v30 = vpop.eup %9232  ;;  %v7731_v59 = vpack.c.bf16 %v4280_v10, %v4276_v43  ;;  %v4287_v57 = vld [vmem:[#allocation10 + $0x68] sm:$0xff]  ;;  %v7733_v2 = vpack.c.bf16 %v4289_v14, %v4285_v50  ;;  %v4282_v1 = vld [vmem:[#allocation10 + $0x40] sm:$0xff]  ;;  %v4301_v48 = vld [vmem:[#allocation10 + $0xd8] sm:$0xff] }
 0x8c9   :  { %v3814_v54 = vrot.slane %v3794_v22, 1  ;;  %v7701_v36 = vpack.c.bf16 %v4287_v57, %v4283_v37  ;;  %v4286_v40 = vld [vmem:[#allocation10 + $0x60] sm:$0xff]  ;;  %v4284_v22 = vld [vmem:[#allocation10 + $0x50] sm:$0xff]  ;;  %v4307_v50 = vld [vmem:[#allocation10 + $0x108] sm:$0xff] }
 0x8ca   :  { %v7703_v44 = vpack.c.bf16 %v4286_v40, %v4282_v1  ;;  %v4298_v43 = vld [vmem:[#allocation10 + $0xc0] sm:$0xff]  ;;  %v4304_v57 = vld [vmem:[#allocation10 + $0xf0] sm:$0xff]  ;;  %v4311_v14 = vld [vmem:[#allocation10 + $0x128] sm:$0xff] }
 0x8cb   :  { %v9235_v23 = vpop.eup %9234  ;;  %v3815_v62 = vsel %vm949_vm5, %v3814_v54, %v3813_v53  ;;  %v4291_v53 = vld [vmem:[#allocation10 + $0x88] sm:$0xff]  ;;  %v4302_v10 = vld [vmem:[#allocation10 + $0xe0] sm:$0xff]  ;;  %v4316_v46 = vld [vmem:[#allocation10 + $0x150] sm:$0xff] }
 0x8cc   :  { %v3796_v51 = vmul.f32 %v9235_v23, %v9233_v30  ;;  %v3816_v31 = vsel %vm952_vm6, %v3795_v28, %v3815_v62  ;;  %v4288_v28 = vld [vmem:[#allocation10 + $0x70] sm:$0xff]  ;;  %v4295_v30 = vld [vmem:[#allocation10 + $0xa8] sm:$0xff]  ;;  %v4293_v62 = vld [vmem:[#allocation10 + $0x98] sm:$0xff]  ;;  %v7711_v1 = vpack.c.bf16 %v4302_v10, %v4298_v43 }
 0x8cd   :  { %v7735_v54 = vpack.c.bf16 %v4288_v28, %v4284_v22  ;;  %v7705_v23 = vpack.c.bf16 %v4295_v30, %v4291_v53  ;;  %v7713_v22 = vpack.c.bf16 %v4311_v14, %v4307_v50  ;;  %v4310_v28 = vld [vmem:[#allocation10 + $0x120] sm:$0xff]  ;;  %v4308_v53 = vld [vmem:[#allocation10 + $0x110] sm:$0xff]  ;;  %v4329_v43 = vld [vmem:[#allocation10 + $0x1b8] sm:$0xff] }
 0x8ce   :  { %v3817_v32 = vrot.slane %v3796_v51, 7  ;;  %v4297_v51 = vld [vmem:[#allocation10 + $0xb8] sm:$0xff]  ;;  %v4326_v50 = vld [vmem:[#allocation10 + $0x1a0] sm:$0xff]  ;;  %v4324_v14 = vld [vmem:[#allocation10 + $0x190] sm:$0xff] }
 0x8d0   :  { %v3818_v42 = vsel %vm955_vm7, %v3817_v32, %v3816_v31  ;;  %v4290_v31 = vld [vmem:[#allocation10 + $0x80] sm:$0xff]  ;;  %v7737_v32 = vpack.c.bf16 %v4297_v51, %v4293_v62  ;;  %v4319_v62 = vld [vmem:[#allocation10 + $0x168] sm:$0xff]  ;;  %v4317_v51 = vld [vmem:[#allocation10 + $0x158] sm:$0xff] }
 0x8d1   :  { %3885 = vmatmul.mubr.f32.vlgmr.msra.gmra.mrb[30].mxu0 %v3818_v42  ;;  %3956 = vmatmul.mubr.f32.vlgmr.msra.gmra.mrb[30].mxu1 %v3818_v42  ;;  %v4294_v42 = vld [vmem:[#allocation10 + $0xa0] sm:$0xff] }
 0x8d2   :  { %4447 = vmatprep.mubr.f32.mxu0 %v12155_v52  ;;  %4518 = vmatprep.mubr.f32.mxu1 %v12155_v52  ;;  %v7707_v5 = vpack.c.bf16 %v4294_v42, %v4290_v31  ;;  %v4321_v31 = vld [vmem:[#allocation10 + $0x178] sm:$0xff] }
 0x8d3   :  { %7700 = vmatpush1.bf16.msra.mxu0 %v7699_v18  ;;  %7732 = vmatpush1.bf16.msra.mxu1 %v7731_v59  ;;  %v4305_v18 = vld [vmem:[#allocation10 + $0xf8] sm:$0xff]  ;;  %v4300_v59 = vld [vmem:[#allocation10 + $0xd0] sm:$0xff]  ;;  %v7749_v26 = vpack.c.bf16 %v4321_v31, %v4317_v51 }
 0x8d4   :  { %7702 = vmatprep.subr.bf16.mxu0 %v7701_v36  ;;  %7734 = vmatprep.subr.bf16.mxu1 %v7733_v2  ;;  %v7741_v37 = vpack.c.bf16 %v4305_v18, %v4301_v48  ;;  %v4309_v36 = vld [vmem:[#allocation10 + $0x118] sm:$0xff]  ;;  %v7743_v40 = vpack.c.bf16 %v4304_v57, %v4300_v59  ;;  %v4320_v48 = vld [vmem:[#allocation10 + $0x170] sm:$0xff]  ;;  %v4322_v57 = vld [vmem:[#allocation10 + $0x180] sm:$0xff] }
 0x8d5   :  { %v4313_v2 = vld [vmem:[#allocation10 + $0x138] sm:$0xff]  ;;  %v4336_v31 = vld [vmem:[#allocation10 + $0x1f0] sm:$0xff] }
 0x8d6   :  { %v7745_v30 = vpack.c.bf16 %v4313_v2, %v4309_v36  ;;  %v4325_v18 = vld [vmem:[#allocation10 + $0x198] sm:$0xff]  ;;  %v4328_v2 = vld [vmem:[#allocation10 + $0x1b0] sm:$0xff] }
 0x8d7   :  { %7704 = vmatpush1.bf16.msra.mxu0 %v7703_v44  ;;  %7736 = vmatpush1.bf16.msra.mxu1 %v7735_v54  ;;  %v4306_v44 = vld [vmem:[#allocation10 + $0x100] sm:$0xff]  ;;  %v4312_v54 = vld [vmem:[#allocation10 + $0x130] sm:$0xff]  ;;  %v7753_v36 = vpack.c.bf16 %v4329_v43, %v4325_v18 }
 0x8d8   :  { %7706 = vmatprep.subr.bf16.mxu0 %v7705_v23  ;;  %7738 = vmatprep.subr.bf16.mxu1 %v7737_v32  ;;  %v4315_v23 = vld [vmem:[#allocation10 + $0x148] sm:$0xff]  ;;  %v7715_v32 = vpack.c.bf16 %v4310_v28, %v4306_v44  ;;  %v7747_v42 = vpack.c.bf16 %v4312_v54, %v4308_v53  ;;  %v4337_v44 = vld [vmem:[#allocation10 + $0x1f8] sm:$0xff]  ;;  %v7723_v28 = vpack.c.bf16 %v4326_v50, %v4322_v57  ;;  %v4330_v54 = vld [vmem:[#allocation10 + $0x1c0] sm:$0xff] }
 0x8d9   :  { %v7717_v38 = vpack.c.bf16 %v4319_v62, %v4315_v23  ;;  %v7755_v53 = vpack.c.bf16 %v4328_v2, %v4324_v14  ;;  %v4334_v23 = vld [vmem:[#allocation10 + $0x1e0] sm:$0xff]  ;;  %v4332_v62 = vld [vmem:[#allocation10 + $0x1d0] sm:$0xff] }
 0x8db   :  { %7708 = vmatpush1.bf16.msra.mxu0 %v7707_v5  ;;  %7740 = vmatpush1.bf16.msra.mxu1 %v7739_v58  ;;  %v4318_v5 = vld [vmem:[#allocation10 + $0x160] sm:$0xff]  ;;  %v4323_v58 = vld [vmem:[#allocation10 + $0x188] sm:$0xff] }
 0x8dc   :  { %7710 = vmatprep.subr.bf16.mxu0 %v7709_v34  ;;  %7742 = vmatprep.subr.bf16.mxu1 %v7741_v37  ;;  %v4327_v34 = vld [vmem:[#allocation10 + $0x1a8] sm:$0xff]  ;;  %v7719_v10 = vpack.c.bf16 %v4318_v5, %v4314_v17  ;;  %v7751_v37 = vpack.c.bf16 %v4320_v48, %v4316_v46  ;;  %v4532_v17 = vld [vmem:[#allocation12 + $0x38] sm:$0xff]  ;;  %v7727_v5 = vpack.c.bf16 %v4334_v23, %v4330_v54 }
 0x8dd   :  { %v7721_v59 = vpack.c.bf16 %v4327_v34, %v4323_v58  ;;  %v7759_v46 = vpack.c.bf16 %v4336_v31, %v4332_v62 }
 0x8df   :  { %7712 = vmatpush1.bf16.msra.mxu0 %v7711_v1  ;;  %7744 = vmatpush1.bf16.msra.mxu1 %v7743_v40  ;;  %v4331_v1 = vld [vmem:[#allocation10 + $0x1c8] sm:$0xff] }
 0x8e0   :  { %7714 = vmatprep.subr.bf16.mxu0 %v7713_v22  ;;  %7746 = vmatprep.subr.bf16.mxu1 %v7745_v30  ;;  %v4335_v40 = vld [vmem:[#allocation10 + $0x1e8] sm:$0xff]  ;;  %v4333_v22 = vld [vmem:[#allocation10 + $0x1d8] sm:$0xff] }
 0x8e1   :  { %v7725_v30 = vpack.c.bf16 %v4335_v40, %v4331_v1  ;;  %v7757_v51 = vpack.c.bf16 %v4337_v44, %v4333_v22 }
 0x8e3   :  { %7716 = vmatpush1.bf16.msra.mxu0 %v7715_v32  ;;  %7748 = vmatpush1.bf16.msra.mxu1 %v7747_v42  ;;  %v4526_v32 = vld [vmem:[#allocation12 + $0x8] sm:$0xff] }
 0x8e4   :  { %7718 = vmatprep.subr.bf16.mxu0 %v7717_v38  ;;  %7750 = vmatprep.subr.bf16.mxu1 %v7749_v26  ;;  %v4530_v42 = vld [vmem:[#allocation12 + $0x28] sm:$0xff]  ;;  %v4528_v38 = vld [vmem:[#allocation12 + $0x18] sm:$0xff] }
 0x8e5   :  { %v11340_v26 = vpack.c.bf16 %v4530_v42, %v4526_v32  ;;  %v11342_v48 = vpack.c.bf16 %v4532_v17, %v4528_v38 }
 0x8e7   :  { %7720 = vmatpush1.bf16.msra.mxu0 %v7719_v10  ;;  %7752 = vmatpush1.bf16.msra.mxu1 %v7751_v37 }
 0x8e8   :  { %7722 = vmatprep.subr.bf16.mxu0 %v7721_v59  ;;  %7754 = vmatprep.subr.bf16.mxu1 %v7753_v36 }
 0x8eb   :  { %7724 = vmatpush1.bf16.msra.mxu0 %v7723_v28  ;;  %7756 = vmatpush1.bf16.msra.mxu1 %v7755_v53 }
 0x8ec   :  { %7726 = vmatprep.subr.bf16.mxu0 %v7725_v30  ;;  %7758 = vmatprep.subr.bf16.mxu1 %v7757_v51 }
 0x8ef   :  { %7728 = vmatpush1.bf16.msra.mxu0 %v7727_v5  ;;  %7760 = vmatpush1.bf16.msra.mxu1 %v7759_v46 }
 0x8f0   :  { %7762 = vmatprep.subr.bf16.mxu0 %v11340_v26  ;;  %7794 = vmatprep.subr.bf16.mxu1 %v11342_v48 }
 0x9a4   :  { %v3886_v58 = vpop.f32.mrb[30].mxu0  ;;  %v11346_v34 = vpop.f32.mrb[30].mxu1 }
 0x9a5   :  { %v3966_v18 = vrot.slane %v3886_v58, 1  ;;  %v3970_v43 = vrot.slane %v3886_v58, 2  ;;  %v3974_v10 = vrot.slane %v3886_v58, 3  ;;  %v3978_v37 = vrot.slane %v3886_v58, 4  ;;  %v11348_v59 = vpop.f32.mrb[31].mxu0  ;;  %v11350_v57 = vpop.f32.mrb[31].mxu1 }
 0x9a6   :  { %v3982_v50 = vrot.slane %v3886_v58, 5  ;;  %v3986_v14 = vrot.slane %v3886_v58, 6  ;;  %v3990_v36 = vrot.slane %v3886_v58, 7  ;;  %v4054_v2 = vadd.f32 %v3886_v58, %v12368_v15 }
 0x9a7   :  { %v4026_v1 = vadd.f32 %v3966_v18, %v12362_v6  ;;  %v4030_v40 = vadd.f32 %v3970_v43, %v12363_v63  ;;  %v4034_v22 = vadd.f32 %v3974_v10, %v12364_v4  ;;  %v4038_v44 = vadd.f32 %v3978_v37, %v12365_v39 }
 0x9a8   :  { %v4042_v28 = vadd.f32 %v3982_v50, %v12366_v7  ;;  %v4046_v53 = vadd.f32 %v3986_v14, %v12367_v61  ;;  %v6996_v30 = vmul.f32 -1.442695, %v4054_v2  ;;  %v4050_v54 = vadd.f32 %v3990_v36, %v12329_v24 }
 0x9a9   :  { %v6989_v23 = vmul.f32 -1.442695, %v4026_v1  ;;  %v6990_v62 = vmul.f32 -1.442695, %v4030_v40  ;;  %v6991_v51 = vmul.f32 -1.442695, %v4034_v22 }
 0x9aa   :  { %v6992_v31 = vmul.f32 -1.442695, %v4038_v44  ;;  %9236 = vpow2.f32 %v6996_v30  ;;  %v6993_v6 = vmul.f32 -1.442695, %v4042_v28  ;;  %v3968_v63 = vrot.slane %v11346_v34, 1 }
 0x9ab   :  { %9238 = vpow2.f32 %v6989_v23  ;;  %v3972_v4 = vrot.slane %v11346_v34, 2  ;;  %v6994_v39 = vmul.f32 -1.442695, %v4046_v53  ;;  %v3976_v7 = vrot.slane %v11346_v34, 3 }
 0x9ac   :  { %9240 = vpow2.f32 %v6990_v62  ;;  %v6995_v61 = vmul.f32 -1.442695, %v4050_v54  ;;  %v3980_v15 = vrot.slane %v11346_v34, 4  ;;  %v3984_v24 = vrot.slane %v11346_v34, 5  ;;  %v12385_v54 = vld [vmem:[#allocation61_spill] sm:$0xff] }
 0x9ad   :  { %9242 = vpow2.f32 %v6991_v51  ;;  %v4028_v32 = vadd.f32 %v3968_v63, %v12369_v47  ;;  %v4032_v42 = vadd.f32 %v3972_v4, %v12370_v49  ;;  %v4036_v38 = vadd.f32 %v3976_v7, %v12371_v25 }
 0x9ae   :  { %9244 = vpow2.f32 %v6992_v31  ;;  %v4040_v17 = vadd.f32 %v3980_v15, %v12372_v21  ;;  %v4044_v5 = vadd.f32 %v3984_v24, %v12373_v56  ;;  %v3988_v58 = vrot.slane %v11346_v34, 6  ;;  %v12386_v31 = vld [vmem:[#allocation68_spill] sm:$0xff] }
 0x9af   :  { %9246 = vpow2.f32 %v6993_v6  ;;  %v3992_v47 = vrot.slane %v11346_v34, 7  ;;  %v3967_v25 = vrot.slane %v11348_v59, 1  ;;  %v3971_v56 = vrot.slane %v11348_v59, 2  ;;  %v12388_v15 = vld [vmem:[#allocation76_spill] sm:$0xff] }
 0x9b0   :  { %9248 = vpow2.f32 %v6994_v39  ;;  %v4048_v36 = vadd.f32 %v3988_v58, %v12374_v27  ;;  %v3975_v2 = vrot.slane %v11348_v59, 3  ;;  %v3979_v44 = vrot.slane %v11348_v59, 4  ;;  %v12387_v39 = vld [vmem:[#allocation69_spill] sm:$0xff] }
 0x9b1   :  { %9250 = vpow2.f32 %v6995_v61  ;;  %v4052_v22 = vadd.f32 %v3992_v47, %v12377_v8  ;;  %v3983_v30 = vrot.slane %v11348_v59, 5  ;;  %v4027_v23 = vadd.f32 %v3967_v25, %v12385_v54 }
 0x9b2   :  { %9252 = vtanh.f32 %v4028_v32  ;;  %v3987_v27 = vrot.slane %v11348_v59, 6  ;;  %v4031_v6 = vadd.f32 %v3971_v56, %v12386_v31  ;;  %v3991_v8 = vrot.slane %v11348_v59, 7  ;;  %v12389_v32 = vld [vmem:[#allocation70_spill] sm:$0xff] }
 0x9b3   :  { %9254 = vtanh.f32 %v4032_v42  ;;  %v4035_v7 = vadd.f32 %v3975_v2, %v12387_v39  ;;  %v4056_v24 = vadd.f32 %v11346_v34, %v12388_v15  ;;  %v4039_v42 = vadd.f32 %v3979_v44, %v12389_v32 }
 0x9b4   :  { %v9237_v46 = vpop.eup %9236  ;;  %9256 = vtanh.f32 %v4036_v38  ;;  %v3969_v58 = vrot.slane %v11350_v57, 1  ;;  %v3977_v56 = vrot.slane %v11350_v57, 3 }
 0x9b5   :  { %v9239_v18 = vpop.eup %9238  ;;  %v4089_v43 = vadd.f32 1.0, %v9237_v46  ;;  %9258 = vtanh.f32 %v4040_v17  ;;  %v12390_v17 = vld [vmem:[#allocation71_spill] sm:$0xff]  ;;  %v6997_v46 = vmul.f32 -1.442695, %v4027_v23 }
 0x9b6   :  { %v9241_v49 = vpop.eup %9240  ;;  %v4082_v10 = vadd.f32 1.0, %v9239_v18  ;;  %9260 = vtanh.f32 %v4044_v5  ;;  %v4043_v5 = vadd.f32 %v3983_v30, %v12390_v17 }
 0x9b7   :  { %v9243_v37 = vpop.eup %9242  ;;  %v4083_v21 = vadd.f32 1.0, %v9241_v49  ;;  %9262 = vrcp.f32 %v4089_v43  ;;  %v12391_v43 = vld [vmem:[#allocation74_spill] sm:$0xff]  ;;  %v6998_v49 = vmul.f32 -1.442695, %v4031_v6 }
 0x9b8   :  { %v9245_v50 = vpop.eup %9244  ;;  %v4084_v14 = vadd.f32 1.0, %v9243_v37  ;;  %9264 = vrcp.f32 %v4082_v10  ;;  %v4047_v47 = vadd.f32 %v3987_v27, %v12391_v43  ;;  %v3973_v10 = vrot.slane %v11350_v57, 2  ;;  %v12392_v37 = vld [vmem:[#allocation75_spill] sm:$0xff] }
 0x9b9   :  { %v9247_v1 = vpop.eup %9246  ;;  %v4085_v40 = vadd.f32 1.0, %v9245_v50  ;;  %9266 = vrcp.f32 %v4083_v21  ;;  %v4051_v34 = vadd.f32 %v3991_v8, %v12392_v37  ;;  %v6999_v21 = vmul.f32 -1.442695, %v4035_v7 }
 0x9ba   :  { %v9249_v28 = vpop.eup %9248  ;;  %v4086_v53 = vadd.f32 1.0, %v9247_v1  ;;  %9268 = vrcp.f32 %v4084_v14  ;;  %v12393_v14 = vld [vmem:[#allocation77_spill] sm:$0xff]  ;;  %v7000_v1 = vmul.f32 -1.442695, %v4039_v42  ;;  %v7001_v44 = vmul.f32 -1.442695, %v4043_v5 }
 0x9bb   :  { %v9251_v62 = vpop.eup %9250  ;;  %v4087_v51 = vadd.f32 1.0, %v9249_v28  ;;  %9270 = vrcp.f32 %v4085_v40  ;;  %v4055_v2 = vadd.f32 %v11348_v59, %v12393_v14  ;;  %v3985_v28 = vrot.slane %v11350_v57, 5 }
 0x9bc   :  { %v9253_v63 = vpop.eup %9252  ;;  %v4088_v4 = vadd.f32 1.0, %v9251_v62  ;;  %9272 = vrcp.f32 %v4086_v53  ;;  %v7002_v54 = vmul.f32 -1.442695, %v4047_v47  ;;  %v4033_v23 = vadd.f32 %v3973_v10, %v10228_v45 }
 0x9bd   :  { %v9255_v61 = vpop.eup %9254  ;;  %9274 = vrcp.f32 %v4087_v51  ;;  %v7003_v59 = vmul.f32 -1.442695, %v4051_v34  ;;  %v4037_v27 = vadd.f32 %v3977_v56, %v10237_v33  ;;  %v7004_v6 = vmul.f32 -1.442695, %v4055_v2 }
 0x9be   :  { %v9257_v38 = vpop.eup %9256  ;;  %9276 = vrcp.f32 %v4088_v4  ;;  %v4045_v8 = vadd.f32 %v3985_v28, %v10260_v20  ;;  %v3989_v5 = vrot.slane %v11350_v57, 6 }
 0x9bf   :  { %v9259_v18 = vpop.eup %9258  ;;  %9278 = vtanh.f32 %v4048_v36  ;;  %v3981_v36 = vrot.slane %v11350_v57, 4 }
 0x9c0   :  { %v9261_v25 = vpop.eup %9260  ;;  %9280 = vtanh.f32 %v4052_v22  ;;  %v4029_v22 = vadd.f32 %v3969_v58, %v12226_v11 }
 0x9c1   :  { %v9263_v50 = vpop.eup %9262  ;;  %9282 = vtanh.f32 %v4056_v24  ;;  %v4041_v4 = vadd.f32 %v3981_v36, %v10246_v19  ;;  %v7007_v24 = vmul.f32 -1.442695, %v4037_v27 }
 0x9c2   :  { %v9265_v40 = vpop.eup %9264  ;;  %9284 = vpow2.f32 %v6997_v46  ;;  %v7005_v39 = vmul.f32 -1.442695, %v4029_v22 }
 0x9c3   :  { %v9267_v53 = vpop.eup %9266  ;;  %v11398_v30 = vmul.f32 %v9265_v40, %v9253_v63  ;;  %9286 = vpow2.f32 %v6998_v49  ;;  %v7008_v19 = vmul.f32 -1.442695, %v4041_v4 }
 0x9c4   :  { %v9269_v62 = vpop.eup %9268  ;;  %v11401_v51 = vmul.f32 %v9267_v53, %v9255_v61  ;;  %9288 = vpow2.f32 %v6999_v21  ;;  %v7006_v61 = vmul.f32 -1.442695, %v4033_v23  ;;  %v4049_v21 = vadd.f32 %v3989_v5, %v10327_v16 }
 0x9c5   :  { %v9271_v31 = vpop.eup %9270  ;;  %9290 = vpow2.f32 %v7000_v1  ;;  %v11405_v11 = vmul.f32 %v9269_v62, %v9257_v38  ;;  %v7009_v38 = vmul.f32 -1.442695, %v4045_v8  ;;  %v4219_v8 = vrot.slane %v11301_v35, 7 }
 0x9c6   :  { %v9273_v63 = vpop.eup %9272  ;;  %9292 = vpow2.f32 %v7001_v44  ;;  %v11408_v45 = vmul.f32 %v9271_v31, %v9259_v18  ;;  %v3993_v18 = vrot.slane %v11350_v57, 7  ;;  %v7010_v53 = vmul.f32 -1.442695, %v4049_v21 }
 0x9c7   :  { %v9275_v7 = vpop.eup %9274  ;;  %9294 = vpow2.f32 %v7002_v54  ;;  %v11410_v15 = vmul.f32 %v9273_v63, %v9261_v25 }
 0x9c8   :  { %v9277_v33 = vpop.eup %9276  ;;  %9296 = vpow2.f32 %v7003_v59  ;;  %v4053_v2 = vadd.f32 %v3993_v18, %v10334_v3 }
 0x9c9   :  { %v9279_v32 = vpop.eup %9278  ;;  %9298 = vpow2.f32 %v7004_v6  ;;  %v4218_v6 = vrot.slane %v11297_v41, 7  ;;  %v4222_v41 = vrot.slane %v11313_v12, 7  ;;  %v4225_v12 = vrot.slane %v11325_v0, 7 }
 0x9ca   :  { %v9281_v42 = vpop.eup %9280  ;;  %9300 = vpow2.f32 %v7005_v39  ;;  %v11412_v17 = vmul.f32 %v9279_v32, %v9275_v7  ;;  %v7011_v23 = vmul.f32 -1.442695, %v4053_v2 }
 0x9cb   :  { %v9283_v20 = vpop.eup %9282  ;;  %9302 = vpow2.f32 %v7006_v61  ;;  %v11415_v46 = vmul.f32 %v9281_v42, %v9277_v33  ;;  %v4220_v61 = vrot.slane %v11305_v13, 7 }
 0x9cc   :  { %v9285_v58 = vpop.eup %9284  ;;  %9304 = vpow2.f32 %v7007_v24  ;;  %v11418_v43 = vmul.f32 %v9283_v20, %v9263_v50  ;;  %v4057_v50 = vadd.f32 %v11350_v57, %v10343_v9 }
 0x9cd   :  { %v9287_v47 = vpop.eup %9286  ;;  %v4130_v49 = vadd.f32 1.0, %v9285_v58  ;;  %9306 = vpow2.f32 %v7008_v19  ;;  %v4221_v19 = vrot.slane %v11309_v60, 7  ;;  %v4223_v58 = vrot.slane %v11317_v29, 7 }
 0x9ce   :  { %v9289_v10 = vpop.eup %9288  ;;  %v4131_v25 = vadd.f32 1.0, %v9287_v47  ;;  %9308 = vpow2.f32 %v7009_v38  ;;  %v7012_v3 = vmul.f32 -1.442695, %v4057_v50 }
 0x9cf   :  { %v9291_v37 = vpop.eup %9290  ;;  %v4132_v34 = vadd.f32 1.0, %v9289_v10  ;;  %9310 = vrcp.f32 %v4130_v49  ;;  %v4224_v49 = vrot.slane %v11321_v55, 7 }
 0x9d0   :  { %v9293_v56 = vpop.eup %9292  ;;  %v4133_v14 = vadd.f32 1.0, %v9291_v37  ;;  %9312 = vrcp.f32 %v4131_v25 }
 0x9d1   :  { %v9295_v1 = vpop.eup %9294  ;;  %v4134_v36 = vadd.f32 1.0, %v9293_v56  ;;  %9314 = vrcp.f32 %v4132_v34 }
 0x9d2   :  { %v9297_v40 = vpop.eup %9296  ;;  %v4135_v44 = vadd.f32 1.0, %v9295_v1  ;;  %9316 = vrcp.f32 %v4133_v14 }
 0x9d3   :  { %v9299_v28 = vpop.eup %9298  ;;  %v4136_v22 = vadd.f32 1.0, %v9297_v40  ;;  %9318 = vrcp.f32 %v4134_v36 }
 0x9d4   :  { %v9301_v54 = vpop.eup %9300  ;;  %v4137_v16 = vadd.f32 1.0, %v9299_v28  ;;  %9320 = vrcp.f32 %v4135_v44 }
 0x9d5   :  { %v9303_v62 = vpop.eup %9302  ;;  %9322 = vrcp.f32 %v4136_v22  ;;  %v4186_v27 = vadd.f32 1.0, %v9301_v54 }
 0x9d6   :  { %v9305_v59 = vpop.eup %9304  ;;  %9324 = vrcp.f32 %v4137_v16  ;;  %v4187_v9 = vadd.f32 1.0, %v9303_v62 }
 0x9d7   :  { %v9307_v31 = vpop.eup %9306  ;;  %9326 = vpow2.f32 %v7010_v53  ;;  %v4188_v4 = vadd.f32 1.0, %v9305_v59 }
 0x9d8   :  { %v9309_v57 = vpop.eup %9308  ;;  %9328 = vpow2.f32 %v7011_v23  ;;  %v4189_v39 = vadd.f32 1.0, %v9307_v31 }
 0x9d9   :  { %v9311_v63 = vpop.eup %9310  ;;  %9330 = vpow2.f32 %v7012_v3  ;;  %v4190_v33 = vadd.f32 1.0, %v9309_v57 }
 0x9da   :  { %v9313_v7 = vpop.eup %9312  ;;  %9332 = vrcp.f32 %v4186_v27  ;;  %v4234_v24 = vmul.f32 %v9311_v63, %v4218_v6 }
 0x9db   :  { %v9315_v32 = vpop.eup %9314  ;;  %9334 = vrcp.f32 %v4187_v9  ;;  %v4235_v42 = vmul.f32 %v9313_v7, %v4219_v8 }
 0x9dc   :  { %v9317_v38 = vpop.eup %9316  ;;  %9336 = vrcp.f32 %v4188_v4  ;;  %v4236_v20 = vmul.f32 %v9315_v32, %v4220_v61  ;;  %v4250_v35 = vadd.f32 %v11398_v30, %v4234_v24 }
 0x9dd   :  { %v9319_v5 = vpop.eup %9318  ;;  %9338 = vrcp.f32 %v4189_v39  ;;  %v4237_v13 = vmul.f32 %v9317_v38, %v4221_v19  ;;  %v4251_v18 = vadd.f32 %v11401_v51, %v4235_v42  ;;  %v4525_v19 = vld [vmem:[#allocation12] sm:$0xff] }
 0x9de   :  { %v9321_v47 = vpop.eup %9320  ;;  %9340 = vrcp.f32 %v4190_v33  ;;  %v4238_v60 = vmul.f32 %v9319_v5, %v4222_v41  ;;  %v4252_v10 = vadd.f32 %v11405_v11, %v4236_v20  ;;  %v4529_v42 = vld [vmem:[#allocation12 + $0x20] sm:$0xff]  ;;  %v4527_v20 = vld [vmem:[#allocation12 + $0x10] sm:$0xff]  ;;  %v4534_v5 = vld [vmem:[#allocation12 + $0x48] sm:$0xff] }
 0x9df   :  { %v9323_v25 = vpop.eup %9322  ;;  %v4239_v37 = vmul.f32 %v9321_v47, %v4223_v58  ;;  %v4253_v30 = vadd.f32 %v11408_v45, %v4237_v13  ;;  %9342 = vtanh.f32 %v4250_v35  ;;  %v4531_v35 = vld [vmem:[#allocation12 + $0x30] sm:$0xff]  ;;  %v4536_v47 = vld [vmem:[#allocation12 + $0x58] sm:$0xff] }
 0x9e0   :  { %v9325_v34 = vpop.eup %9324  ;;  %v4240_v29 = vmul.f32 %v9323_v25, %v4224_v49  ;;  %v4254_v21 = vadd.f32 %v11410_v15, %v4238_v60  ;;  %9344 = vtanh.f32 %v4251_v18  ;;  %v4538_v18 = vld [vmem:[#allocation12 + $0x68] sm:$0xff]  ;;  %v4540_v49 = vld [vmem:[#allocation12 + $0x78] sm:$0xff]  ;;  %v11445_v25 = vpack.c.bf16 %v4529_v42, %v4525_v19 }
 0x9e1   :  { %v9327_v51 = vpop.eup %9326  ;;  %v4241_v56 = vmul.f32 %v9325_v34, %v4225_v12  ;;  %v4255_v55 = vadd.f32 %v11412_v17, %v4239_v37  ;;  %9346 = vtanh.f32 %v4252_v10  ;;  %v11447_v12 = vpack.c.bf16 %v4531_v35, %v4527_v20  ;;  %v4533_v37 = vld [vmem:[#allocation12 + $0x40] sm:$0xff]  ;;  %v4570_v19 = vld [vmem:[#allocation12 + $0x168] sm:$0xff]  ;;  %v4568_v42 = vld [vmem:[#allocation12 + $0x158] sm:$0xff] }
 0x9e2   :  { %v9329_v14 = vpop.eup %9328  ;;  %v4191_v2 = vadd.f32 1.0, %v9327_v51  ;;  %v4256_v11 = vadd.f32 %v11415_v46, %v4240_v29  ;;  %9348 = vtanh.f32 %v4253_v30  ;;  %v4537_v30 = vld [vmem:[#allocation12 + $0x60] sm:$0xff]  ;;  %v11450_v29 = vpack.c.bf16 %v4538_v18, %v4534_v5  ;;  %v4535_v51 = vld [vmem:[#allocation12 + $0x50] sm:$0xff] }
 0x9e3   :  { %v9331_v0 = vpop.eup %9330  ;;  %v4192_v1 = vadd.f32 1.0, %v9329_v14  ;;  %v4257_v45 = vadd.f32 %v11418_v43, %v4241_v56  ;;  %9350 = vtanh.f32 %v4254_v21  ;;  %v11452_v21 = vpack.c.bf16 %v4540_v49, %v4536_v47  ;;  %v4539_v56 = vld [vmem:[#allocation12 + $0x70] sm:$0xff]  ;;  %v4565_v35 = vld [vmem:[#allocation12 + $0x140] sm:$0xff]  ;;  %v4574_v49 = vld [vmem:[#allocation12 + $0x188] sm:$0xff] }
 0x9e4   :  { %v9333_v36 = vpop.eup %9332  ;;  %v4193_v50 = vadd.f32 1.0, %v9331_v0  ;;  %9352 = vrcp.f32 %v4191_v2  ;;  %v4546_v2 = vld [vmem:[#allocation12 + $0xa8] sm:$0xff]  ;;  %v4548_v0 = vld [vmem:[#allocation12 + $0xb8] sm:$0xff]  ;;  %v4569_v5 = vld [vmem:[#allocation12 + $0x160] sm:$0xff] }
 0x9e5   :  { %v9335_v15 = vpop.eup %9334  ;;  %9354 = vrcp.f32 %v4192_v1  ;;  %v11457_v1 = vpack.c.bf16 %v4537_v30, %v4533_v37  ;;  %v4567_v18 = vld [vmem:[#allocation12 + $0x150] sm:$0xff]  ;;  %v4580_v37 = vld [vmem:[#allocation12 + $0x1b8] sm:$0xff]  ;;  %v11507_v30 = vpack.c.bf16 %v4569_v5, %v4565_v35 }
 0x9e6   :  { %v9337_v40 = vpop.eup %9336  ;;  %9356 = vrcp.f32 %v4193_v50  ;;  %v4545_v50 = vld [vmem:[#allocation12 + $0xa0] sm:$0xff]  ;;  %v4571_v47 = vld [vmem:[#allocation12 + $0x170] sm:$0xff] }
 0x9e7   :  { %v9339_v44 = vpop.eup %9338  ;;  %9358 = vtanh.f32 %v4255_v55  ;;  %v4542_v55 = vld [vmem:[#allocation12 + $0x88] sm:$0xff] }
 0x9e8   :  { %v9341_v17 = vpop.eup %9340  ;;  %9360 = vtanh.f32 %v4256_v11  ;;  %v4544_v11 = vld [vmem:[#allocation12 + $0x98] sm:$0xff] }
 0x9e9   :  { %v9343_v28 = vpop.eup %9342  ;;  %9362 = vtanh.f32 %v4257_v45  ;;  %v11459_v45 = vpack.c.bf16 %v4539_v56, %v4535_v51  ;;  %v4573_v51 = vld [vmem:[#allocation12 + $0x180] sm:$0xff] }
 0x9ea   :  { %v9345_v46 = vpop.eup %9344  ;;  %v4266_v22 = vmul.f32 %v9343_v28, %v9333_v36  ;;  %v4541_v36 = vld [vmem:[#allocation12 + $0x80] sm:$0xff]  ;;  %v4550_v28 = vld [vmem:[#allocation12 + $0xc8] sm:$0xff] }
 0x9eb   :  { %v9347_v53 = vpop.eup %9346  ;;  %v4267_v54 = vmul.f32 %v9345_v46, %v9335_v15  ;;  %v11463_v15 = vpack.c.bf16 %v4546_v2, %v4542_v55  ;;  %v4554_v46 = vld [vmem:[#allocation12 + $0xe8] sm:$0xff]  ;;  %v4577_v56 = vld [vmem:[#allocation12 + $0x1a0] sm:$0xff]  ;;  %v4575_v2 = vld [vmem:[#allocation12 + $0x190] sm:$0xff] }
 0x9ec   :  { %v9349_v16 = vpop.eup %9348  ;;  %v4268_v43 = vmul.f32 %v9347_v53, %v9337_v40  ;;  %v4368_v23 = vrot.slane %v4266_v22, 7  ;;  %v11465_v40 = vpack.c.bf16 %v4548_v0, %v4544_v11  ;;  %v4552_v22 = vld [vmem:[#allocation12 + $0xd8] sm:$0xff]  ;;  %v4579_v11 = vld [vmem:[#allocation12 + $0x1b0] sm:$0xff]  ;;  %v4582_v0 = vld [vmem:[#allocation12 + $0x1c8] sm:$0xff] }
 0x9ed   :  { %v9351_v62 = vpop.eup %9350  ;;  %v4269_v3 = vmul.f32 %v9349_v16, %v9339_v44  ;;  %v4369_v59 = vrot.slane %v4267_v54, 6  ;;  %v4543_v44 = vld [vmem:[#allocation12 + $0x90] sm:$0xff]  ;;  %v4556_v53 = vld [vmem:[#allocation12 + $0xf8] sm:$0xff]  ;;  %v11471_v54 = vpack.c.bf16 %v4545_v50, %v4541_v36  ;;  %v4586_v36 = vld [vmem:[#allocation12 + $0x1e8] sm:$0xff] }
 0x9ee   :  { %v9353_v27 = vpop.eup %9352  ;;  %v4270_v31 = vmul.f32 %v9351_v62, %v9341_v17  ;;  %v4371_v9 = vrot.slane %v4268_v43, 5  ;;  %v4547_v17 = vld [vmem:[#allocation12 + $0xb0] sm:$0xff]  ;;  %v4549_v43 = vld [vmem:[#allocation12 + $0xc0] sm:$0xff]  ;;  %v11477_v62 = vpack.c.bf16 %v4554_v46, %v4550_v28  ;;  %v4584_v50 = vld [vmem:[#allocation12 + $0x1d8] sm:$0xff]  ;;  %v11521_v28 = vpack.c.bf16 %v4579_v11, %v4575_v2 }
 0x9ef   :  { %v9355_v57 = vpop.eup %9354  ;;  %v4370_v6 = vsel %vm937_vm1, %v4369_v59, %v4368_v23  ;;  %v4373_v4 = vrot.slane %v4269_v3, 4  ;;  %v11473_v16 = vpack.c.bf16 %v4547_v17, %v4543_v44  ;;  %v4553_v23 = vld [vmem:[#allocation12 + $0xe0] sm:$0xff]  ;;  %v11479_v3 = vpack.c.bf16 %v4556_v53, %v4552_v22  ;;  %v4551_v59 = vld [vmem:[#allocation12 + $0xd0] sm:$0xff]  ;;  %v4588_v44 = vld [vmem:[#allocation12 + $0x1f8] sm:$0xff] }
 0x9f0   :  { %v9357_v63 = vpop.eup %9356  ;;  %v4372_v8 = vsel %vm940_vm2, %v4371_v9, %v4370_v6  ;;  %v4375_v39 = vrot.slane %v4270_v31, 3  ;;  %v4558_v31 = vld [vmem:[#allocation12 + $0x108] sm:$0xff]  ;;  %v4564_v6 = vld [vmem:[#allocation12 + $0x138] sm:$0xff]  ;;  %v11519_v17 = vpack.c.bf16 %v4577_v56, %v4573_v51  ;;  %v4581_v46 = vld [vmem:[#allocation12 + $0x1c0] sm:$0xff]  ;;  %v11525_v22 = vpack.c.bf16 %v4586_v36, %v4582_v0 }
 0x9f1   :  { %v9359_v7 = vpop.eup %9358  ;;  %v4374_v61 = vsel %vm943_vm3, %v4373_v4, %v4372_v8  ;;  %v4562_v9 = vld [vmem:[#allocation12 + $0x128] sm:$0xff]  ;;  %v11483_v4 = vpack.c.bf16 %v4553_v23, %v4549_v43  ;;  %v4557_v8 = vld [vmem:[#allocation12 + $0x100] sm:$0xff]  ;;  %v11527_v53 = vpack.c.bf16 %v4588_v44, %v4584_v50  ;;  %v4583_v23 = vld [vmem:[#allocation12 + $0x1d0] sm:$0xff] }
 0x9f2   :  { %v9361_v33 = vpop.eup %9360  ;;  %v4271_v24 = vmul.f32 %v9359_v7, %v9353_v27  ;;  %v4376_v32 = vsel %vm946_vm4, %v4375_v39, %v4374_v61  ;;  %v4555_v27 = vld [vmem:[#allocation12 + $0xf0] sm:$0xff]  ;;  %v4561_v39 = vld [vmem:[#allocation12 + $0x120] sm:$0xff]  ;;  %v11489_v7 = vpack.c.bf16 %v4562_v9, %v4558_v31 }
 0x9f3   :  { %v9363_v38 = vpop.eup %9362  ;;  %v4272_v41 = vmul.f32 %v9361_v33, %v9355_v57  ;;  %v4560_v57 = vld [vmem:[#allocation12 + $0x118] sm:$0xff]  ;;  %v4559_v33 = vld [vmem:[#allocation12 + $0x110] sm:$0xff]  ;;  %v4585_v43 = vld [vmem:[#allocation12 + $0x1e0] sm:$0xff] }
 0x9f4   :  { %v4273_v58 = vmul.f32 %v9363_v38, %v9357_v63  ;;  %v4377_v13 = vrot.slane %v4271_v24, 2  ;;  %v11485_v63 = vpack.c.bf16 %v4555_v27, %v4551_v59  ;;  %v11491_v61 = vpack.c.bf16 %v4564_v6, %v4560_v57  ;;  %v4563_v24 = vld [vmem:[#allocation12 + $0x130] sm:$0xff]  ;;  %v4572_v38 = vld [vmem:[#allocation12 + $0x178] sm:$0xff] }
 0x9f5   :  { %v4379_v60 = vrot.slane %v4272_v41, 1  ;;  %v11495_v41 = vpack.c.bf16 %v4561_v39, %v4557_v8  ;;  %v11497_v20 = vpack.c.bf16 %v4563_v24, %v4559_v33  ;;  %v4587_v59 = vld [vmem:[#allocation12 + $0x1f0] sm:$0xff]  ;;  %v11531_v27 = vpack.c.bf16 %v4585_v43, %v4581_v46  ;;  %v4338_v39 = vld [vmem:[%s11975_s6] sm:$0xf]  ;;  %v12394_v33 = vld [vmem:[#allocation52_spill] sm:$0xff] }
 0x9f6   :  { %v4378_v10 = vsel %vm949_vm5, %v4377_v13, %v4376_v32  ;;  %v4566_v32 = vld [vmem:[#allocation12 + $0x148] sm:$0xff]  ;;  %v11503_v13 = vpack.c.bf16 %v4572_v38, %v4568_v42  ;;  %v11533_v31 = vpack.c.bf16 %v4587_v59, %v4583_v23  ;;  %v12395_v24 = vsub.s32 0, %v12394_v33 }
 0x9f7   :  { %v4380_v34 = vsel %vm952_vm6, %v4379_v60, %v4378_v10  ;;  %v4578_v60 = vld [vmem:[#allocation12 + $0x1a8] sm:$0xff]  ;;  %v4576_v10 = vld [vmem:[#allocation12 + $0x198] sm:$0xff]  ;;  %v12398_v0 = vsub.s32 2, %v12394_v33 }
 0x9f8   :  { %v4381_v14 = vsel %vm955_vm7, %v4273_v58, %v4380_v34  ;;  %v11501_v58 = vpack.c.bf16 %v4570_v19, %v4566_v32  ;;  %v11509_v34 = vpack.c.bf16 %v4571_v47, %v4567_v18  ;;  %v11513_v55 = vpack.c.bf16 %v4578_v60, %v4574_v49 }
 0x9f9   :  { %4448 = vmatmul.mubr.f32.vlgmr.msra.gmra.mrb[32].mxu0 %v4381_v14  ;;  %4519 = vmatmul.mubr.f32.vlgmr.msra.gmra.mrb[32].mxu1 %v4381_v14  ;;  %v11515_v14 = vpack.c.bf16 %v4580_v37, %v4576_v10  ;;  %v4343_v32 = vrot.slane %v4338_v39, %v12395_v24  ;;  %v12396_v19 = vsub.s32 1, %v12394_v33  ;;  %v12397_v10 = vsub.s32 3, %v12394_v33 }
 0x9fa   :  { %7764 = vmatpush1.bf16.msra.mxu0 %v11445_v25  ;;  %7796 = vmatpush1.bf16.msra.mxu1 %v11447_v12  ;;  %v4351_v36 = vrot.slane %v4338_v39, %v12398_v0 }
 0x9fb   :  { %7766 = vmatprep.subr.bf16.mxu0 %v11450_v29  ;;  %7798 = vmatprep.subr.bf16.mxu1 %v11452_v21  ;;  %v4347_v42 = vrot.slane %v4338_v39, %v12396_v19  ;;  %v4355_v37 = vrot.slane %v4338_v39, %v12397_v10 }
 0x9fc   :  { %4653 = vmatprep.mubr.f32.mxu0 %v12155_v52  ;;  %4724 = vmatprep.mubr.f32.mxu1 %v12155_v52 }
 0x9fe   :  { %7768 = vmatpush1.bf16.msra.mxu0 %v11457_v1  ;;  %7800 = vmatpush1.bf16.msra.mxu1 %v11459_v45 }
 0x9ff   :  { %7770 = vmatprep.subr.bf16.mxu0 %v11463_v15  ;;  %7802 = vmatprep.subr.bf16.mxu1 %v11465_v40 }
 0xa02   :  { %7772 = vmatpush1.bf16.msra.mxu0 %v11471_v54  ;;  %7804 = vmatpush1.bf16.msra.mxu1 %v11473_v16 }
 0xa03   :  { %7774 = vmatprep.subr.bf16.mxu0 %v11477_v62  ;;  %7806 = vmatprep.subr.bf16.mxu1 %v11479_v3 }
 0xa06   :  { %7776 = vmatpush1.bf16.msra.mxu0 %v11483_v4  ;;  %7808 = vmatpush1.bf16.msra.mxu1 %v11485_v63 }
 0xa07   :  { %7778 = vmatprep.subr.bf16.mxu0 %v11489_v7  ;;  %7810 = vmatprep.subr.bf16.mxu1 %v11491_v61 }
 0xa0a   :  { %7780 = vmatpush1.bf16.msra.mxu0 %v11495_v41  ;;  %7812 = vmatpush1.bf16.msra.mxu1 %v11497_v20 }
 0xa0b   :  { %7782 = vmatprep.subr.bf16.mxu0 %v11501_v58  ;;  %7814 = vmatprep.subr.bf16.mxu1 %v11503_v13 }
 0xa0e   :  { %7784 = vmatpush1.bf16.msra.mxu0 %v11507_v30  ;;  %7816 = vmatpush1.bf16.msra.mxu1 %v11509_v34 }
 0xa0f   :  { %7786 = vmatprep.subr.bf16.mxu0 %v11513_v55  ;;  %7818 = vmatprep.subr.bf16.mxu1 %v11515_v14 }
 0xa12   :  { %7788 = vmatpush1.bf16.msra.mxu0 %v11519_v17  ;;  %7820 = vmatpush1.bf16.msra.mxu1 %v11521_v28 }
 0xa13   :  { %7790 = vmatprep.subr.bf16.mxu0 %v11525_v22  ;;  %7822 = vmatprep.subr.bf16.mxu1 %v11527_v53 }
 0xa16   :  { %7792 = vmatpush1.bf16.msra.mxu0 %v11531_v27  ;;  %7824 = vmatpush1.bf16.msra.mxu1 %v11533_v31 }
 0xa17   :  { %7826 = vmatprep.subr.bf16.mxu0 %v11340_v26  ;;  %7858 = vmatprep.subr.bf16.mxu1 %v11342_v48 }
 0xa19   :  { %4654 = vmatmul.mubr.f32.vlgmr.msra.gmra.mrb[34].mxu0 %v12155_v52  ;;  %4725 = vmatmul.mubr.f32.vlgmr.msra.gmra.mrb[34].mxu1 %v12155_v52 }
 0xa1a   :  { %7828 = vmatpush1.bf16.msra.mxu0 %v11445_v25  ;;  %7860 = vmatpush1.bf16.msra.mxu1 %v11447_v12 }
 0xa1b   :  { %7830 = vmatprep.subr.bf16.mxu0 %v11450_v29  ;;  %7862 = vmatprep.subr.bf16.mxu1 %v11452_v21 }
 0xa1c   :  { %4889 = vmatprep.mubr.f32.mxu0 %v12155_v52  ;;  %4960 = vmatprep.mubr.f32.mxu1 %v12155_v52 }
 0xa1e   :  { %7832 = vmatpush1.bf16.msra.mxu0 %v11457_v1  ;;  %7864 = vmatpush1.bf16.msra.mxu1 %v11459_v45 }
 0xa1f   :  { %7834 = vmatprep.subr.bf16.mxu0 %v11463_v15  ;;  %7866 = vmatprep.subr.bf16.mxu1 %v11465_v40 }
 0xa22   :  { %7836 = vmatpush1.bf16.msra.mxu0 %v11471_v54  ;;  %7868 = vmatpush1.bf16.msra.mxu1 %v11473_v16 }
 0xa23   :  { %7838 = vmatprep.subr.bf16.mxu0 %v11477_v62  ;;  %7870 = vmatprep.subr.bf16.mxu1 %v11479_v3 }
 0xa26   :  { %7840 = vmatpush1.bf16.msra.mxu0 %v11483_v4  ;;  %7872 = vmatpush1.bf16.msra.mxu1 %v11485_v63 }
 0xa27   :  { %7842 = vmatprep.subr.bf16.mxu0 %v11489_v7  ;;  %7874 = vmatprep.subr.bf16.mxu1 %v11491_v61 }
 0xa2a   :  { %7844 = vmatpush1.bf16.msra.mxu0 %v11495_v41  ;;  %7876 = vmatpush1.bf16.msra.mxu1 %v11497_v20 }
 0xa2b   :  { %7846 = vmatprep.subr.bf16.mxu0 %v11501_v58  ;;  %7878 = vmatprep.subr.bf16.mxu1 %v11503_v13 }
 0xa2e   :  { %7848 = vmatpush1.bf16.msra.mxu0 %v11507_v30  ;;  %7880 = vmatpush1.bf16.msra.mxu1 %v11509_v34 }
 0xa2f   :  { %7850 = vmatprep.subr.bf16.mxu0 %v11513_v55  ;;  %7882 = vmatprep.subr.bf16.mxu1 %v11515_v14 }
 0xa32   :  { %7852 = vmatpush1.bf16.msra.mxu0 %v11519_v17  ;;  %7884 = vmatpush1.bf16.msra.mxu1 %v11521_v28 }
 0xa33   :  { %7854 = vmatprep.subr.bf16.mxu0 %v11525_v22  ;;  %7886 = vmatprep.subr.bf16.mxu1 %v11527_v53 }
 0xa36   :  { %7856 = vmatpush1.bf16.msra.mxu0 %v11531_v27  ;;  %7888 = vmatpush1.bf16.msra.mxu1 %v11533_v31 }
 0xa37   :  { %7890 = vmatprep.subr.bf16.mxu0 %v11340_v26  ;;  %7922 = vmatprep.subr.bf16.mxu1 %v11342_v48 }
 0xacc   :  { %v4449_v9 = vpop.f32.mrb[32].mxu0  ;;  %v4520_v57 = vpop.f32.mrb[32].mxu1 }
 0xacd   :  { %v4451_v6 = vpop.f32.mrb[33].mxu0  ;;  %v4522_v8 = vpop.f32.mrb[33].mxu1  ;;  %v11584_v38 = vadd.f32 %v4449_v9, %v4343_v32  ;;  %v11597_v44 = vadd.f32 %v4520_v57, %v4351_v36 }
 0xace   :  { %v11586_v35 = vadd.f32 %v4451_v6, %v4347_v42  ;;  %v11592_v11 = vadd.f32 %v4522_v8, %v4355_v37 }
 0xaec   :  { %v4655_v5 = vpop.f32.mrb[34].mxu0  ;;  %v4726_v18 = vpop.f32.mrb[34].mxu1 }
 0xaed   :  { %v4731_v47 = vadd.f32 %v4655_v5, %v11584_v38  ;;  %v4657_v49 = vpop.f32.mrb[35].mxu0  ;;  %v4728_v60 = vpop.f32.mrb[35].mxu1  ;;  %v4733_v43 = vadd.f32 %v4726_v18, %v11597_v44  ;;  %v9714_v18 = vmov 1966171168  }
 0xaee   :  { %v4732_v51 = vadd.f32 %v4657_v49, %v11586_v35  ;;  %v4734_v50 = vadd.f32 %v4728_v60, %v11592_v11 }
 0xaef   :  { %v7013_v56 = vmul.f32 -1.442695, %v4731_v47  ;;  %v4762_v47 = vunpack.c.l.s4 %v9714_v18 }
 0xaf0   :  { %v7014_v2 = vmul.f32 -1.442695, %v4732_v51  ;;  %v7015_v46 = vmul.f32 -1.442695, %v4734_v50 }
 0xaf1   :  { %9364 = vpow2.f32 %v7013_v56  ;;  %v4763_v49 = vunpack.c.0.s8 %v4762_v47 }
 0xaf2   :  { %9366 = vpow2.f32 %v7014_v2 }
 0xaf3   :  { %9368 = vpow2.f32 %v7015_v46  ;;  %v11604_v10 = vsub.s32 %v4763_v49, %v12394_v33 }
 0xaf4   :  { %9370 = vtanh.f32 %v4733_v43 }
 0xafb   :  { %v9365_v23 = vpop.eup %9364 }
 0xafc   :  { %v9367_v59 = vpop.eup %9366  ;;  %v4738_v9 = vadd.f32 1.0, %v9365_v23 }
 0xafd   :  { %v4744_v6 = vadd.f32 1.0, %v9367_v59  ;;  %v9369_v8 = vpop.eup %9368 }
 0xafe   :  { %9372 = vrcp.f32 %v4738_v9  ;;  %v9371_v24 = vpop.eup %9370  ;;  %v4751_v42 = vadd.f32 1.0, %v9369_v8 }
 0xaff   :  { %9374 = vrcp.f32 %v4744_v6 }
 0xb00   :  { %9376 = vrcp.f32 %v4751_v42 }
 0xb08   :  { %v9373_v32 = vpop.eup %9372 }
 0xb09   :  { %v9375_v19 = vpop.eup %9374  ;;  %v4755_v39 = vmul.f32 %v9373_v32, %v9371_v24 }
 0xb0a   :  { %v4754_v5 = vmul.f32 0.0, %v9375_v19  ;;  %v9377_v60 = vpop.eup %9376 }
 0xb0c   :  { %v11600_v57 = vadd.f32 %v4755_v39, %v4754_v5 }
 0xb0e   :  { %9378 = vtanh.f32 %v11600_v57 }
 0xb18   :  { %v9379_v37 = vpop.eup %9378 }
 0xb19   :  { %v4758_v51 = vmul.f32 %v9379_v37, %v9377_v60 }
 0xb1b   :  { %v4760_v56 = vcombine.high %v4758_v51, %v4758_v51  ;;  %v4767_v2 = vrot.slane %v4758_v51, %v11604_v10  ;;  %4890 = vmatmul.mubr.f32.vlgmr.msra.gmra.mrb[36].mxu0 %v4758_v51  ;;  %4961 = vmatmul.mubr.f32.vlgmr.msra.gmra.mrb[36].mxu1 %v4758_v51 }
 0xb1c   :  { %7892 = vmatpush1.bf16.msra.mxu0 %v11445_v25  ;;  %7924 = vmatpush1.bf16.msra.mxu1 %v11447_v12 }
 0xb1d   :  { %v4774_v0 = vrot.slane %v4760_v56, %v11604_v10  ;;  %v4775_v36 = vcombine.high %v4767_v2, %v4767_v2  ;;  %v4783_v50 = vrot.slane %v4767_v2, %v11604_v10  ;;  %7016 = vst.sshfl [vmem:[#allocation2] sm:$0x1 pattern:$0x73625140] %v4767_v2  ;;  %7894 = vmatprep.subr.bf16.mxu0 %v11450_v29 }
 0xb1e   :  { %7926 = vmatprep.subr.bf16.mxu1 %v11452_v21  ;;  %5125 = vmatprep.mubr.f32.mxu0 %v12155_v52 }
 0xb1f   :  { %5196 = vmatprep.mubr.f32.mxu1 %v12155_v52  ;;  %v4776_v46 = vcombine.high %v4774_v0, %v4774_v0  ;;  %v4790_v43 = vrot.slane %v4774_v0, %v11604_v10  ;;  %v4797_v23 = vrot.slane %v4775_v36, %v11604_v10  ;;  %v4805_v59 = vcombine.high %v4783_v50, %v4783_v50 }
 0xb20   :  { %7017 = vst.sshfl [vmem:[#allocation2 + $0x8] sm:$0x1 pattern:$0x73625140] %v4775_v36  ;;  %7896 = vmatpush1.bf16.msra.mxu0 %v11457_v1  ;;  %7928 = vmatpush1.bf16.msra.mxu1 %v11459_v45 }
 0xb21   :  { %7018 = vst.sshfl [vmem:[#allocation2 + $0x20] sm:$0x1 pattern:$0x73625140] %v4774_v0  ;;  %v4804_v9 = vrot.slane %v4776_v46, %v11604_v10  ;;  %v4806_v6 = vcombine.high %v4790_v43, %v4790_v43  ;;  %v4807_v8 = vcombine.high %v4797_v23, %v4797_v23  ;;  %4819 = vst [vmem:[#allocation2 + $0x10] sm:$0x1] %v4805_v59  ;;  %7898 = vmatprep.subr.bf16.mxu0 %v11463_v15 }
 0xb22   :  { %7019 = vst.sshfl [vmem:[#allocation2 + $0x28] sm:$0x1 pattern:$0x73625140] %v4776_v46  ;;  %7930 = vmatprep.subr.bf16.mxu1 %v11465_v40 }
 0xb23   :  { %v4808_v24 = vcombine.high %v4804_v9, %v4804_v9  ;;  %4820 = vst [vmem:[#allocation2 + $0x18] sm:$0x1] %v4807_v8  ;;  %4823 = vst [vmem:[#allocation2 + $0x30] sm:$0x1] %v4806_v6 }
 0xb24   :  { %7900 = vmatpush1.bf16.msra.mxu0 %v11471_v54  ;;  %7932 = vmatpush1.bf16.msra.mxu1 %v11473_v16 }
 0xb25   :  { %4824 = vst [vmem:[#allocation2 + $0x38] sm:$0x1] %v4808_v24  ;;  %7902 = vmatprep.subr.bf16.mxu0 %v11477_v62  ;;  %7934 = vmatprep.subr.bf16.mxu1 %v11479_v3 }
 0xb28   :  { %7904 = vmatpush1.bf16.msra.mxu0 %v11483_v4  ;;  %7936 = vmatpush1.bf16.msra.mxu1 %v11485_v63 }
 0xb29   :  { %7906 = vmatprep.subr.bf16.mxu0 %v11489_v7  ;;  %7938 = vmatprep.subr.bf16.mxu1 %v11491_v61 }
 0xb2c   :  { %7908 = vmatpush1.bf16.msra.mxu0 %v11495_v41  ;;  %7940 = vmatpush1.bf16.msra.mxu1 %v11497_v20 }
 0xb2d   :  { %7910 = vmatprep.subr.bf16.mxu0 %v11501_v58  ;;  %7942 = vmatprep.subr.bf16.mxu1 %v11503_v13 }
 0xb30   :  { %7912 = vmatpush1.bf16.msra.mxu0 %v11507_v30  ;;  %7944 = vmatpush1.bf16.msra.mxu1 %v11509_v34 }
 0xb31   :  { %7914 = vmatprep.subr.bf16.mxu0 %v11513_v55  ;;  %7946 = vmatprep.subr.bf16.mxu1 %v11515_v14 }
 0xb34   :  { %7916 = vmatpush1.bf16.msra.mxu0 %v11519_v17  ;;  %7948 = vmatpush1.bf16.msra.mxu1 %v11521_v28 }
 0xb35   :  { %7918 = vmatprep.subr.bf16.mxu0 %v11525_v22  ;;  %7950 = vmatprep.subr.bf16.mxu1 %v11527_v53 }
 0xb38   :  { %7920 = vmatpush1.bf16.msra.mxu0 %v11531_v27  ;;  %7952 = vmatpush1.bf16.msra.mxu1 %v11533_v31 }
 0xb39   :  { %7954 = vmatprep.subr.bf16.mxu0 %v11340_v26  ;;  %7986 = vmatprep.subr.bf16.mxu1 %v11342_v48 }
 0xbee   :  { %v4891_v32 = vpop.f32.mrb[36].mxu0  ;;  %v4962_v19 = vpop.f32.mrb[36].mxu1 }
 0xbef   :  { %v4967_v39 = vadd.f32 %v4891_v32, %v11584_v38  ;;  %v4893_v42 = vpop.f32.mrb[37].mxu0  ;;  %v4964_v5 = vpop.f32.mrb[37].mxu1  ;;  %v4969_v51 = vadd.f32 %v4962_v19, %v11597_v44 }
 0xbf0   :  { %v4968_v18 = vadd.f32 %v4893_v42, %v11586_v35  ;;  %v4970_v60 = vadd.f32 %v4964_v5, %v11592_v11 }
 0xbf1   :  { %v7020_v47 = vmul.f32 -1.442695, %v4967_v39 }
 0xbf2   :  { %v7021_v49 = vmul.f32 -1.442695, %v4968_v18  ;;  %v7022_v37 = vmul.f32 -1.442695, %v4970_v60 }
 0xbf3   :  { %9380 = vpow2.f32 %v7020_v47 }
 0xbf4   :  { %9382 = vpow2.f32 %v7021_v49 }
 0xbf5   :  { %9384 = vpow2.f32 %v7022_v37 }
 0xbf6   :  { %9386 = vtanh.f32 %v4969_v51 }
 0xbfd   :  { %v9381_v56 = vpop.eup %9380 }
 0xbfe   :  { %v9383_v2 = vpop.eup %9382  ;;  %v4974_v0 = vadd.f32 1.0, %v9381_v56 }
 0xbff   :  { %v4980_v36 = vadd.f32 1.0, %v9383_v2  ;;  %v9385_v50 = vpop.eup %9384 }
 0xc00   :  { %9388 = vrcp.f32 %v4974_v0  ;;  %v9387_v46 = vpop.eup %9386  ;;  %v4987_v9 = vadd.f32 1.0, %v9385_v50 }
 0xc01   :  { %9390 = vrcp.f32 %v4980_v36 }
 0xc02   :  { %9392 = vrcp.f32 %v4987_v9 }
 0xc0a   :  { %v9389_v43 = vpop.eup %9388 }
 0xc0b   :  { %v9391_v23 = vpop.eup %9390  ;;  %v4991_v59 = vmul.f32 %v9389_v43, %v9387_v46 }
 0xc0c   :  { %v4990_v6 = vmul.f32 %v9391_v23, %v11600_v57  ;;  %v9393_v24 = vpop.eup %9392 }
 0xc0e   :  { %v11651_v8 = vadd.f32 %v4991_v59, %v4990_v6 }
 0xc10   :  { %9394 = vtanh.f32 %v11651_v8 }
 0xc1a   :  { %v9395_v32 = vpop.eup %9394 }
 0xc1b   :  { %v4994_v19 = vmul.f32 %v9395_v32, %v9393_v24 }
 0xc1d   :  { %v4996_v39 = vcombine.high %v4994_v19, %v4994_v19  ;;  %v5003_v42 = vrot.slane %v4994_v19, %v11604_v10  ;;  %5126 = vmatmul.mubr.f32.vlgmr.msra.gmra.mrb[38].mxu0 %v4994_v19  ;;  %5197 = vmatmul.mubr.f32.vlgmr.msra.gmra.mrb[38].mxu1 %v4994_v19 }
 0xc1e   :  { %7956 = vmatpush1.bf16.msra.mxu0 %v11445_v25  ;;  %7988 = vmatpush1.bf16.msra.mxu1 %v11447_v12 }
 0xc1f   :  { %v5010_v5 = vrot.slane %v4996_v39, %v11604_v10  ;;  %v5011_v57 = vcombine.high %v5003_v42, %v5003_v42  ;;  %v5019_v18 = vrot.slane %v5003_v42, %v11604_v10  ;;  %7023 = vst.sshfl [vmem:[#allocation2 + $0x1] sm:$0x1 pattern:$0x73625140] %v5003_v42  ;;  %7958 = vmatprep.subr.bf16.mxu0 %v11450_v29 }
 0xc20   :  { %7990 = vmatprep.subr.bf16.mxu1 %v11452_v21  ;;  %5361 = vmatprep.mubr.f32.mxu0 %v12155_v52 }
 0xc21   :  { %5432 = vmatprep.mubr.f32.mxu1 %v12155_v52  ;;  %v5012_v47 = vcombine.high %v5010_v5, %v5010_v5  ;;  %v5026_v49 = vrot.slane %v5010_v5, %v11604_v10  ;;  %v5033_v60 = vrot.slane %v5011_v57, %v11604_v10  ;;  %v5041_v37 = vcombine.high %v5019_v18, %v5019_v18 }
 0xc22   :  { %7024 = vst.sshfl [vmem:[#allocation2 + $0x9] sm:$0x1 pattern:$0x73625140] %v5011_v57  ;;  %7960 = vmatpush1.bf16.msra.mxu0 %v11457_v1  ;;  %7992 = vmatpush1.bf16.msra.mxu1 %v11459_v45 }
 0xc23   :  { %7025 = vst.sshfl [vmem:[#allocation2 + $0x21] sm:$0x1 pattern:$0x73625140] %v5010_v5  ;;  %v5040_v51 = vrot.slane %v5012_v47, %v11604_v10  ;;  %v5042_v56 = vcombine.high %v5026_v49, %v5026_v49  ;;  %v5043_v2 = vcombine.high %v5033_v60, %v5033_v60  ;;  %5055 = vst [vmem:[#allocation2 + $0x11] sm:$0x1] %v5041_v37  ;;  %7962 = vmatprep.subr.bf16.mxu0 %v11463_v15 }
 0xc24   :  { %7026 = vst.sshfl [vmem:[#allocation2 + $0x29] sm:$0x1 pattern:$0x73625140] %v5012_v47  ;;  %7994 = vmatprep.subr.bf16.mxu1 %v11465_v40 }
 0xc25   :  { %v5044_v0 = vcombine.high %v5040_v51, %v5040_v51  ;;  %5056 = vst [vmem:[#allocation2 + $0x19] sm:$0x1] %v5043_v2  ;;  %5059 = vst [vmem:[#allocation2 + $0x31] sm:$0x1] %v5042_v56 }
 0xc26   :  { %7964 = vmatpush1.bf16.msra.mxu0 %v11471_v54  ;;  %7996 = vmatpush1.bf16.msra.mxu1 %v11473_v16 }
 0xc27   :  { %5060 = vst [vmem:[#allocation2 + $0x39] sm:$0x1] %v5044_v0  ;;  %7966 = vmatprep.subr.bf16.mxu0 %v11477_v62  ;;  %7998 = vmatprep.subr.bf16.mxu1 %v11479_v3 }
 0xc2a   :  { %7968 = vmatpush1.bf16.msra.mxu0 %v11483_v4  ;;  %8000 = vmatpush1.bf16.msra.mxu1 %v11485_v63 }
 0xc2b   :  { %7970 = vmatprep.subr.bf16.mxu0 %v11489_v7  ;;  %8002 = vmatprep.subr.bf16.mxu1 %v11491_v61 }
 0xc2e   :  { %7972 = vmatpush1.bf16.msra.mxu0 %v11495_v41  ;;  %8004 = vmatpush1.bf16.msra.mxu1 %v11497_v20 }
 0xc2f   :  { %7974 = vmatprep.subr.bf16.mxu0 %v11501_v58  ;;  %8006 = vmatprep.subr.bf16.mxu1 %v11503_v13 }
 0xc32   :  { %7976 = vmatpush1.bf16.msra.mxu0 %v11507_v30  ;;  %8008 = vmatpush1.bf16.msra.mxu1 %v11509_v34 }
 0xc33   :  { %7978 = vmatprep.subr.bf16.mxu0 %v11513_v55  ;;  %8010 = vmatprep.subr.bf16.mxu1 %v11515_v14 }
 0xc36   :  { %7980 = vmatpush1.bf16.msra.mxu0 %v11519_v17  ;;  %8012 = vmatpush1.bf16.msra.mxu1 %v11521_v28 }
 0xc37   :  { %7982 = vmatprep.subr.bf16.mxu0 %v11525_v22  ;;  %8014 = vmatprep.subr.bf16.mxu1 %v11527_v53 }
 0xc3a   :  { %7984 = vmatpush1.bf16.msra.mxu0 %v11531_v27  ;;  %8016 = vmatpush1.bf16.msra.mxu1 %v11533_v31 }
 0xc3b   :  { %8018 = vmatprep.subr.bf16.mxu0 %v11340_v26  ;;  %8050 = vmatprep.subr.bf16.mxu1 %v11342_v48 }
 0xcf0   :  { %v5127_v36 = vpop.f32.mrb[38].mxu0  ;;  %v5198_v50 = vpop.f32.mrb[38].mxu1 }
 0xcf1   :  { %v5203_v46 = vadd.f32 %v5127_v36, %v11584_v38  ;;  %v5129_v43 = vpop.f32.mrb[39].mxu0  ;;  %v5200_v23 = vpop.f32.mrb[39].mxu1  ;;  %v5205_v19 = vadd.f32 %v5198_v50, %v11597_v44 }
 0xcf2   :  { %v5204_v59 = vadd.f32 %v5129_v43, %v11586_v35  ;;  %v5206_v24 = vadd.f32 %v5200_v23, %v11592_v11 }
 0xcf3   :  { %v7027_v9 = vmul.f32 -1.442695, %v5203_v46 }
 0xcf4   :  { %v7028_v6 = vmul.f32 -1.442695, %v5204_v59  ;;  %v7029_v32 = vmul.f32 -1.442695, %v5206_v24 }
 0xcf5   :  { %9396 = vpow2.f32 %v7027_v9 }
 0xcf6   :  { %9398 = vpow2.f32 %v7028_v6 }
 0xcf7   :  { %9400 = vpow2.f32 %v7029_v32 }
 0xcf8   :  { %9402 = vtanh.f32 %v5205_v19 }
 0xcff   :  { %v9397_v39 = vpop.eup %9396 }
 0xd00   :  { %v9399_v42 = vpop.eup %9398  ;;  %v5210_v5 = vadd.f32 1.0, %v9397_v39 }
 0xd01   :  { %v5216_v57 = vadd.f32 1.0, %v9399_v42  ;;  %v9401_v18 = vpop.eup %9400 }
 0xd02   :  { %9404 = vrcp.f32 %v5210_v5  ;;  %v9403_v47 = vpop.eup %9402  ;;  %v5223_v51 = vadd.f32 1.0, %v9401_v18 }
 0xd03   :  { %9406 = vrcp.f32 %v5216_v57 }
 0xd04   :  { %9408 = vrcp.f32 %v5223_v51 }
 0xd0c   :  { %v9405_v49 = vpop.eup %9404 }
 0xd0d   :  { %v9407_v60 = vpop.eup %9406  ;;  %v5227_v37 = vmul.f32 %v9405_v49, %v9403_v47 }
 0xd0e   :  { %v5226_v56 = vmul.f32 %v9407_v60, %v11651_v8  ;;  %v9409_v0 = vpop.eup %9408 }
 0xd10   :  { %v11699_v2 = vadd.f32 %v5227_v37, %v5226_v56 }
 0xd12   :  { %9410 = vtanh.f32 %v11699_v2 }
 0xd1c   :  { %v9411_v36 = vpop.eup %9410 }
 0xd1d   :  { %v5230_v50 = vmul.f32 %v9411_v36, %v9409_v0 }
 0xd1f   :  { %v5232_v46 = vcombine.high %v5230_v50, %v5230_v50  ;;  %v5239_v43 = vrot.slane %v5230_v50, %v11604_v10  ;;  %5362 = vmatmul.mubr.f32.vlgmr.msra.gmra.mrb[40].mxu0 %v5230_v50  ;;  %5433 = vmatmul.mubr.f32.vlgmr.msra.gmra.mrb[40].mxu1 %v5230_v50 }
 0xd20   :  { %8020 = vmatpush1.bf16.msra.mxu0 %v11445_v25  ;;  %8052 = vmatpush1.bf16.msra.mxu1 %v11447_v12 }
 0xd21   :  { %v5246_v23 = vrot.slane %v5232_v46, %v11604_v10  ;;  %v5247_v8 = vcombine.high %v5239_v43, %v5239_v43  ;;  %v5255_v59 = vrot.slane %v5239_v43, %v11604_v10  ;;  %7030 = vst.sshfl [vmem:[#allocation2 + $0x2] sm:$0x1 pattern:$0x73625140] %v5239_v43  ;;  %8022 = vmatprep.subr.bf16.mxu0 %v11450_v29 }
 0xd22   :  { %8054 = vmatprep.subr.bf16.mxu1 %v11452_v21  ;;  %5597 = vmatprep.mubr.f32.mxu0 %v12155_v52 }
 0xd23   :  { %5668 = vmatprep.mubr.f32.mxu1 %v12155_v52  ;;  %v5248_v9 = vcombine.high %v5246_v23, %v5246_v23  ;;  %v5262_v6 = vrot.slane %v5246_v23, %v11604_v10  ;;  %v5269_v24 = vrot.slane %v5247_v8, %v11604_v10  ;;  %v5277_v32 = vcombine.high %v5255_v59, %v5255_v59 }
 0xd24   :  { %7031 = vst.sshfl [vmem:[#allocation2 + $0xa] sm:$0x1 pattern:$0x73625140] %v5247_v8  ;;  %8024 = vmatpush1.bf16.msra.mxu0 %v11457_v1  ;;  %8056 = vmatpush1.bf16.msra.mxu1 %v11459_v45 }
 0xd25   :  { %7032 = vst.sshfl [vmem:[#allocation2 + $0x22] sm:$0x1 pattern:$0x73625140] %v5246_v23  ;;  %v5276_v19 = vrot.slane %v5248_v9, %v11604_v10  ;;  %v5278_v39 = vcombine.high %v5262_v6, %v5262_v6  ;;  %v5279_v42 = vcombine.high %v5269_v24, %v5269_v24  ;;  %5291 = vst [vmem:[#allocation2 + $0x12] sm:$0x1] %v5277_v32  ;;  %8026 = vmatprep.subr.bf16.mxu0 %v11463_v15 }
 0xd26   :  { %7033 = vst.sshfl [vmem:[#allocation2 + $0x2a] sm:$0x1 pattern:$0x73625140] %v5248_v9  ;;  %8058 = vmatprep.subr.bf16.mxu1 %v11465_v40 }
 0xd27   :  { %v5280_v5 = vcombine.high %v5276_v19, %v5276_v19  ;;  %5292 = vst [vmem:[#allocation2 + $0x1a] sm:$0x1] %v5279_v42  ;;  %5295 = vst [vmem:[#allocation2 + $0x32] sm:$0x1] %v5278_v39 }
 0xd28   :  { %8028 = vmatpush1.bf16.msra.mxu0 %v11471_v54  ;;  %8060 = vmatpush1.bf16.msra.mxu1 %v11473_v16 }
 0xd29   :  { %5296 = vst [vmem:[#allocation2 + $0x3a] sm:$0x1] %v5280_v5  ;;  %8030 = vmatprep.subr.bf16.mxu0 %v11477_v62  ;;  %8062 = vmatprep.subr.bf16.mxu1 %v11479_v3 }
 0xd2c   :  { %8032 = vmatpush1.bf16.msra.mxu0 %v11483_v4  ;;  %8064 = vmatpush1.bf16.msra.mxu1 %v11485_v63 }
 0xd2d   :  { %8034 = vmatprep.subr.bf16.mxu0 %v11489_v7  ;;  %8066 = vmatprep.subr.bf16.mxu1 %v11491_v61 }
 0xd30   :  { %8036 = vmatpush1.bf16.msra.mxu0 %v11495_v41  ;;  %8068 = vmatpush1.bf16.msra.mxu1 %v11497_v20 }
 0xd31   :  { %8038 = vmatprep.subr.bf16.mxu0 %v11501_v58  ;;  %8070 = vmatprep.subr.bf16.mxu1 %v11503_v13 }
 0xd34   :  { %8040 = vmatpush1.bf16.msra.mxu0 %v11507_v30  ;;  %8072 = vmatpush1.bf16.msra.mxu1 %v11509_v34 }
 0xd35   :  { %8042 = vmatprep.subr.bf16.mxu0 %v11513_v55  ;;  %8074 = vmatprep.subr.bf16.mxu1 %v11515_v14 }
 0xd38   :  { %8044 = vmatpush1.bf16.msra.mxu0 %v11519_v17  ;;  %8076 = vmatpush1.bf16.msra.mxu1 %v11521_v28 }
 0xd39   :  { %8046 = vmatprep.subr.bf16.mxu0 %v11525_v22  ;;  %8078 = vmatprep.subr.bf16.mxu1 %v11527_v53 }
 0xd3c   :  { %8048 = vmatpush1.bf16.msra.mxu0 %v11531_v27  ;;  %8080 = vmatpush1.bf16.msra.mxu1 %v11533_v31 }
 0xd3d   :  { %8082 = vmatprep.subr.bf16.mxu0 %v11340_v26  ;;  %8114 = vmatprep.subr.bf16.mxu1 %v11342_v48 }
 0xdf2   :  { %v5363_v57 = vpop.f32.mrb[40].mxu0  ;;  %v5434_v18 = vpop.f32.mrb[40].mxu1 }
 0xdf3   :  { %v5439_v47 = vadd.f32 %v5363_v57, %v11584_v38  ;;  %v5365_v49 = vpop.f32.mrb[41].mxu0  ;;  %v5436_v60 = vpop.f32.mrb[41].mxu1  ;;  %v5441_v50 = vadd.f32 %v5434_v18, %v11597_v44 }
 0xdf4   :  { %v5440_v37 = vadd.f32 %v5365_v49, %v11586_v35  ;;  %v5442_v0 = vadd.f32 %v5436_v60, %v11592_v11 }
 0xdf5   :  { %v7034_v51 = vmul.f32 -1.442695, %v5439_v47 }
 0xdf6   :  { %v7035_v56 = vmul.f32 -1.442695, %v5440_v37  ;;  %v7036_v36 = vmul.f32 -1.442695, %v5442_v0 }
 0xdf7   :  { %9412 = vpow2.f32 %v7034_v51 }
 0xdf8   :  { %9414 = vpow2.f32 %v7035_v56 }
 0xdf9   :  { %9416 = vpow2.f32 %v7036_v36 }
 0xdfa   :  { %9418 = vtanh.f32 %v5441_v50 }
 0xe01   :  { %v9413_v46 = vpop.eup %9412 }
 0xe02   :  { %v9415_v43 = vpop.eup %9414  ;;  %v5446_v23 = vadd.f32 1.0, %v9413_v46 }
 0xe03   :  { %v5452_v8 = vadd.f32 1.0, %v9415_v43  ;;  %v9417_v59 = vpop.eup %9416 }
 0xe04   :  { %9420 = vrcp.f32 %v5446_v23  ;;  %v9419_v9 = vpop.eup %9418  ;;  %v5459_v19 = vadd.f32 1.0, %v9417_v59 }
 0xe05   :  { %9422 = vrcp.f32 %v5452_v8 }
 0xe06   :  { %9424 = vrcp.f32 %v5459_v19 }
 0xe0e   :  { %v9421_v6 = vpop.eup %9420 }
 0xe0f   :  { %v9423_v24 = vpop.eup %9422  ;;  %v5463_v32 = vmul.f32 %v9421_v6, %v9419_v9 }
 0xe10   :  { %v5462_v39 = vmul.f32 %v9423_v24, %v11699_v2  ;;  %v9425_v5 = vpop.eup %9424 }
 0xe12   :  { %v11747_v42 = vadd.f32 %v5463_v32, %v5462_v39 }
 0xe14   :  { %9426 = vtanh.f32 %v11747_v42 }
 0xe1e   :  { %v9427_v57 = vpop.eup %9426 }
 0xe1f   :  { %v5466_v18 = vmul.f32 %v9427_v57, %v9425_v5 }
 0xe21   :  { %v5468_v47 = vcombine.high %v5466_v18, %v5466_v18  ;;  %v5475_v49 = vrot.slane %v5466_v18, %v11604_v10  ;;  %5598 = vmatmul.mubr.f32.vlgmr.msra.gmra.mrb[42].mxu0 %v5466_v18  ;;  %5669 = vmatmul.mubr.f32.vlgmr.msra.gmra.mrb[42].mxu1 %v5466_v18 }
 0xe22   :  { %8084 = vmatpush1.bf16.msra.mxu0 %v11445_v25  ;;  %8116 = vmatpush1.bf16.msra.mxu1 %v11447_v12 }
 0xe23   :  { %v5482_v60 = vrot.slane %v5468_v47, %v11604_v10  ;;  %v5483_v2 = vcombine.high %v5475_v49, %v5475_v49  ;;  %v5491_v37 = vrot.slane %v5475_v49, %v11604_v10  ;;  %7037 = vst.sshfl [vmem:[#allocation2 + $0x3] sm:$0x1 pattern:$0x73625140] %v5475_v49  ;;  %8086 = vmatprep.subr.bf16.mxu0 %v11450_v29 }
 0xe24   :  { %8118 = vmatprep.subr.bf16.mxu1 %v11452_v21  ;;  %5833 = vmatprep.mubr.f32.mxu0 %v12155_v52 }
 0xe25   :  { %5904 = vmatprep.mubr.f32.mxu1 %v12155_v52  ;;  %v5484_v51 = vcombine.high %v5482_v60, %v5482_v60  ;;  %v5498_v56 = vrot.slane %v5482_v60, %v11604_v10  ;;  %v5505_v0 = vrot.slane %v5483_v2, %v11604_v10  ;;  %v5513_v36 = vcombine.high %v5491_v37, %v5491_v37 }
 0xe26   :  { %7038 = vst.sshfl [vmem:[#allocation2 + $0xb] sm:$0x1 pattern:$0x73625140] %v5483_v2  ;;  %8088 = vmatpush1.bf16.msra.mxu0 %v11457_v1  ;;  %8120 = vmatpush1.bf16.msra.mxu1 %v11459_v45 }
 0xe27   :  { %7039 = vst.sshfl [vmem:[#allocation2 + $0x23] sm:$0x1 pattern:$0x73625140] %v5482_v60  ;;  %v5512_v50 = vrot.slane %v5484_v51, %v11604_v10  ;;  %v5514_v46 = vcombine.high %v5498_v56, %v5498_v56  ;;  %v5515_v43 = vcombine.high %v5505_v0, %v5505_v0  ;;  %5527 = vst [vmem:[#allocation2 + $0x13] sm:$0x1] %v5513_v36  ;;  %8090 = vmatprep.subr.bf16.mxu0 %v11463_v15 }
 0xe28   :  { %7040 = vst.sshfl [vmem:[#allocation2 + $0x2b] sm:$0x1 pattern:$0x73625140] %v5484_v51  ;;  %8122 = vmatprep.subr.bf16.mxu1 %v11465_v40 }
 0xe29   :  { %v5516_v23 = vcombine.high %v5512_v50, %v5512_v50  ;;  %5528 = vst [vmem:[#allocation2 + $0x1b] sm:$0x1] %v5515_v43  ;;  %5531 = vst [vmem:[#allocation2 + $0x33] sm:$0x1] %v5514_v46 }
 0xe2a   :  { %8092 = vmatpush1.bf16.msra.mxu0 %v11471_v54  ;;  %8124 = vmatpush1.bf16.msra.mxu1 %v11473_v16 }
 0xe2b   :  { %5532 = vst [vmem:[#allocation2 + $0x3b] sm:$0x1] %v5516_v23  ;;  %8094 = vmatprep.subr.bf16.mxu0 %v11477_v62  ;;  %8126 = vmatprep.subr.bf16.mxu1 %v11479_v3 }
 0xe2e   :  { %8096 = vmatpush1.bf16.msra.mxu0 %v11483_v4  ;;  %8128 = vmatpush1.bf16.msra.mxu1 %v11485_v63 }
 0xe2f   :  { %8098 = vmatprep.subr.bf16.mxu0 %v11489_v7  ;;  %8130 = vmatprep.subr.bf16.mxu1 %v11491_v61 }
 0xe32   :  { %8100 = vmatpush1.bf16.msra.mxu0 %v11495_v41  ;;  %8132 = vmatpush1.bf16.msra.mxu1 %v11497_v20 }
 0xe33   :  { %8102 = vmatprep.subr.bf16.mxu0 %v11501_v58  ;;  %8134 = vmatprep.subr.bf16.mxu1 %v11503_v13 }
 0xe36   :  { %8104 = vmatpush1.bf16.msra.mxu0 %v11507_v30  ;;  %8136 = vmatpush1.bf16.msra.mxu1 %v11509_v34 }
 0xe37   :  { %8106 = vmatprep.subr.bf16.mxu0 %v11513_v55  ;;  %8138 = vmatprep.subr.bf16.mxu1 %v11515_v14 }
 0xe3a   :  { %8108 = vmatpush1.bf16.msra.mxu0 %v11519_v17  ;;  %8140 = vmatpush1.bf16.msra.mxu1 %v11521_v28 }
 0xe3b   :  { %8110 = vmatprep.subr.bf16.mxu0 %v11525_v22  ;;  %8142 = vmatprep.subr.bf16.mxu1 %v11527_v53 }
 0xe3e   :  { %8112 = vmatpush1.bf16.msra.mxu0 %v11531_v27  ;;  %8144 = vmatpush1.bf16.msra.mxu1 %v11533_v31 }
 0xe3f   :  { %8146 = vmatprep.subr.bf16.mxu0 %v11340_v26  ;;  %8178 = vmatprep.subr.bf16.mxu1 %v11342_v48 }
 0xef4   :  { %v5599_v8 = vpop.f32.mrb[42].mxu0  ;;  %v5670_v59 = vpop.f32.mrb[42].mxu1 }
 0xef5   :  { %v5675_v9 = vadd.f32 %v5599_v8, %v11584_v38  ;;  %v5601_v6 = vpop.f32.mrb[43].mxu0  ;;  %v5672_v24 = vpop.f32.mrb[43].mxu1  ;;  %v5677_v18 = vadd.f32 %v5670_v59, %v11597_v44 }
 0xef6   :  { %v5676_v32 = vadd.f32 %v5601_v6, %v11586_v35  ;;  %v5678_v5 = vadd.f32 %v5672_v24, %v11592_v11 }
 0xef7   :  { %v7041_v19 = vmul.f32 -1.442695, %v5675_v9 }
 0xef8   :  { %v7042_v39 = vmul.f32 -1.442695, %v5676_v32  ;;  %v7043_v57 = vmul.f32 -1.442695, %v5678_v5 }
 0xef9   :  { %9428 = vpow2.f32 %v7041_v19 }
 0xefa   :  { %9430 = vpow2.f32 %v7042_v39 }
 0xefb   :  { %9432 = vpow2.f32 %v7043_v57 }
 0xefc   :  { %9434 = vtanh.f32 %v5677_v18 }
 0xf03   :  { %v9429_v47 = vpop.eup %9428 }
 0xf04   :  { %v9431_v49 = vpop.eup %9430  ;;  %v5682_v60 = vadd.f32 1.0, %v9429_v47 }
 0xf05   :  { %v5688_v2 = vadd.f32 1.0, %v9431_v49  ;;  %v9433_v37 = vpop.eup %9432 }
 0xf06   :  { %9436 = vrcp.f32 %v5682_v60  ;;  %v9435_v51 = vpop.eup %9434  ;;  %v5695_v50 = vadd.f32 1.0, %v9433_v37 }
 0xf07   :  { %9438 = vrcp.f32 %v5688_v2 }
 0xf08   :  { %9440 = vrcp.f32 %v5695_v50 }
 0xf10   :  { %v9437_v56 = vpop.eup %9436 }
 0xf11   :  { %v9439_v0 = vpop.eup %9438  ;;  %v5699_v36 = vmul.f32 %v9437_v56, %v9435_v51 }
 0xf12   :  { %v5698_v46 = vmul.f32 %v9439_v0, %v11747_v42  ;;  %v9441_v23 = vpop.eup %9440 }
 0xf14   :  { %v11795_v43 = vadd.f32 %v5699_v36, %v5698_v46 }
 0xf16   :  { %9442 = vtanh.f32 %v11795_v43 }
 0xf20   :  { %v9443_v8 = vpop.eup %9442 }
 0xf21   :  { %v5702_v59 = vmul.f32 %v9443_v8, %v9441_v23 }
 0xf23   :  { %v5704_v9 = vcombine.high %v5702_v59, %v5702_v59  ;;  %v5711_v6 = vrot.slane %v5702_v59, %v11604_v10  ;;  %5834 = vmatmul.mubr.f32.vlgmr.msra.gmra.mrb[44].mxu0 %v5702_v59  ;;  %5905 = vmatmul.mubr.f32.vlgmr.msra.gmra.mrb[44].mxu1 %v5702_v59 }
 0xf24   :  { %8148 = vmatpush1.bf16.msra.mxu0 %v11445_v25  ;;  %8180 = vmatpush1.bf16.msra.mxu1 %v11447_v12 }
 0xf25   :  { %v5718_v24 = vrot.slane %v5704_v9, %v11604_v10  ;;  %v5719_v42 = vcombine.high %v5711_v6, %v5711_v6  ;;  %v5727_v32 = vrot.slane %v5711_v6, %v11604_v10  ;;  %7044 = vst.sshfl [vmem:[#allocation2 + $0x4] sm:$0x1 pattern:$0x73625140] %v5711_v6  ;;  %8150 = vmatprep.subr.bf16.mxu0 %v11450_v29 }
 0xf26   :  { %8182 = vmatprep.subr.bf16.mxu1 %v11452_v21  ;;  %6069 = vmatprep.mubr.f32.mxu0 %v12155_v52 }
 0xf27   :  { %6140 = vmatprep.mubr.f32.mxu1 %v12155_v52  ;;  %v5720_v19 = vcombine.high %v5718_v24, %v5718_v24  ;;  %v5734_v39 = vrot.slane %v5718_v24, %v11604_v10  ;;  %v5741_v5 = vrot.slane %v5719_v42, %v11604_v10  ;;  %v5749_v57 = vcombine.high %v5727_v32, %v5727_v32 }
 0xf28   :  { %7045 = vst.sshfl [vmem:[#allocation2 + $0xc] sm:$0x1 pattern:$0x73625140] %v5719_v42  ;;  %8152 = vmatpush1.bf16.msra.mxu0 %v11457_v1  ;;  %8184 = vmatpush1.bf16.msra.mxu1 %v11459_v45 }
 0xf29   :  { %7046 = vst.sshfl [vmem:[#allocation2 + $0x24] sm:$0x1 pattern:$0x73625140] %v5718_v24  ;;  %v5748_v18 = vrot.slane %v5720_v19, %v11604_v10  ;;  %v5750_v47 = vcombine.high %v5734_v39, %v5734_v39  ;;  %v5751_v49 = vcombine.high %v5741_v5, %v5741_v5  ;;  %5763 = vst [vmem:[#allocation2 + $0x14] sm:$0x1] %v5749_v57  ;;  %8154 = vmatprep.subr.bf16.mxu0 %v11463_v15 }
 0xf2a   :  { %7047 = vst.sshfl [vmem:[#allocation2 + $0x2c] sm:$0x1 pattern:$0x73625140] %v5720_v19  ;;  %8186 = vmatprep.subr.bf16.mxu1 %v11465_v40 }
 0xf2b   :  { %v5752_v60 = vcombine.high %v5748_v18, %v5748_v18  ;;  %5764 = vst [vmem:[#allocation2 + $0x1c] sm:$0x1] %v5751_v49  ;;  %5767 = vst [vmem:[#allocation2 + $0x34] sm:$0x1] %v5750_v47 }
 0xf2c   :  { %8156 = vmatpush1.bf16.msra.mxu0 %v11471_v54  ;;  %8188 = vmatpush1.bf16.msra.mxu1 %v11473_v16 }
 0xf2d   :  { %5768 = vst [vmem:[#allocation2 + $0x3c] sm:$0x1] %v5752_v60  ;;  %8158 = vmatprep.subr.bf16.mxu0 %v11477_v62  ;;  %8190 = vmatprep.subr.bf16.mxu1 %v11479_v3 }
 0xf30   :  { %8160 = vmatpush1.bf16.msra.mxu0 %v11483_v4  ;;  %8192 = vmatpush1.bf16.msra.mxu1 %v11485_v63 }
 0xf31   :  { %8162 = vmatprep.subr.bf16.mxu0 %v11489_v7  ;;  %8194 = vmatprep.subr.bf16.mxu1 %v11491_v61 }
 0xf34   :  { %8164 = vmatpush1.bf16.msra.mxu0 %v11495_v41  ;;  %8196 = vmatpush1.bf16.msra.mxu1 %v11497_v20 }
 0xf35   :  { %8166 = vmatprep.subr.bf16.mxu0 %v11501_v58  ;;  %8198 = vmatprep.subr.bf16.mxu1 %v11503_v13 }
 0xf38   :  { %8168 = vmatpush1.bf16.msra.mxu0 %v11507_v30  ;;  %8200 = vmatpush1.bf16.msra.mxu1 %v11509_v34 }
 0xf39   :  { %8170 = vmatprep.subr.bf16.mxu0 %v11513_v55  ;;  %8202 = vmatprep.subr.bf16.mxu1 %v11515_v14 }
 0xf3c   :  { %8172 = vmatpush1.bf16.msra.mxu0 %v11519_v17  ;;  %8204 = vmatpush1.bf16.msra.mxu1 %v11521_v28 }
 0xf3d   :  { %8174 = vmatprep.subr.bf16.mxu0 %v11525_v22  ;;  %8206 = vmatprep.subr.bf16.mxu1 %v11527_v53 }
 0xf40   :  { %8176 = vmatpush1.bf16.msra.mxu0 %v11531_v27  ;;  %8208 = vmatpush1.bf16.msra.mxu1 %v11533_v31 }
 0xf41   :  { %8210 = vmatprep.subr.bf16.mxu0 %v11340_v26  ;;  %8242 = vmatprep.subr.bf16.mxu1 %v11342_v48 }
 0xff6   :  { %v5835_v2 = vpop.f32.mrb[44].mxu0  ;;  %v5906_v37 = vpop.f32.mrb[44].mxu1 }
 0xff7   :  { %v5911_v51 = vadd.f32 %v5835_v2, %v11584_v38  ;;  %v5837_v56 = vpop.f32.mrb[45].mxu0  ;;  %v5908_v0 = vpop.f32.mrb[45].mxu1  ;;  %v5913_v59 = vadd.f32 %v5906_v37, %v11597_v44 }
 0xff8   :  { %v5912_v36 = vadd.f32 %v5837_v56, %v11586_v35  ;;  %v5914_v23 = vadd.f32 %v5908_v0, %v11592_v11 }
 0xff9   :  { %v7048_v50 = vmul.f32 -1.442695, %v5911_v51 }
 0xffa   :  { %v7049_v46 = vmul.f32 -1.442695, %v5912_v36  ;;  %v7050_v8 = vmul.f32 -1.442695, %v5914_v23 }
 0xffb   :  { %9444 = vpow2.f32 %v7048_v50 }
 0xffc   :  { %9446 = vpow2.f32 %v7049_v46 }
 0xffd   :  { %9448 = vpow2.f32 %v7050_v8 }
 0xffe   :  { %9450 = vtanh.f32 %v5913_v59 }
0x1005   :  { %v9445_v26 = vpop.eup %9444 }
0x1006   :  { %v9447_v9 = vpop.eup %9446  ;;  %v5918_v48 = vadd.f32 1.0, %v9445_v26 }
0x1007   :  { %v5924_v6 = vadd.f32 1.0, %v9447_v9  ;;  %v9449_v24 = vpop.eup %9448 }
0x1008   :  { %9452 = vrcp.f32 %v5918_v48  ;;  %v9451_v42 = vpop.eup %9450  ;;  %v5931_v5 = vadd.f32 1.0, %v9449_v24 }
0x1009   :  { %9454 = vrcp.f32 %v5924_v6 }
0x100a   :  { %9456 = vrcp.f32 %v5931_v5 }
0x1012   :  { %v9453_v32 = vpop.eup %9452 }
0x1013   :  { %v9455_v19 = vpop.eup %9454  ;;  %v5935_v39 = vmul.f32 %v9453_v32, %v9451_v42 }
0x1014   :  { %v5934_v57 = vmul.f32 %v9455_v19, %v11795_v43  ;;  %v9457_v47 = vpop.eup %9456 }
0x1016   :  { %v11843_v18 = vadd.f32 %v5935_v39, %v5934_v57  ;;  %v6586_v57 = vld [vmem:[#allocation13] sm:$0xff] }
0x1018   :  { %9458 = vtanh.f32 %v11843_v18 }
0x1022   :  { %v9459_v49 = vpop.eup %9458 }
0x1023   :  { %v5938_v60 = vmul.f32 %v9459_v49, %v9457_v47  ;;  %v9715_v49 = vmov 0.0|0.0  }
0x1025   :  { %v5940_v2 = vcombine.high %v5938_v60, %v5938_v60  ;;  %v5947_v37 = vrot.slane %v5938_v60, %v11604_v10  ;;  %6070 = vmatmul.mubr.f32.vlgmr.msra.gmra.mrb[46].mxu0 %v5938_v60  ;;  %6141 = vmatmul.mubr.f32.vlgmr.msra.gmra.mrb[46].mxu1 %v5938_v60  ;;  %v6588_v60 = vld [vmem:[#allocation13 + $0x10] sm:$0xff] }
0x1026   :  { %8212 = vmatpush1.bf16.msra.mxu0 %v11445_v25  ;;  %8244 = vmatpush1.bf16.msra.mxu1 %v11447_v12 }
0x1027   :  { %v5954_v51 = vrot.slane %v5940_v2, %v11604_v10  ;;  %v5955_v43 = vcombine.high %v5947_v37, %v5947_v37  ;;  %v5963_v56 = vrot.slane %v5947_v37, %v11604_v10  ;;  %7051 = vst.sshfl [vmem:[#allocation2 + $0x5] sm:$0x1 pattern:$0x73625140] %v5947_v37  ;;  %8214 = vmatprep.subr.bf16.mxu0 %v11450_v29  ;;  %v6589_v2 = vld [vmem:[#allocation13 + $0x18] sm:$0xff] }
0x1028   :  { %8246 = vmatprep.subr.bf16.mxu1 %v11452_v21  ;;  %6305 = vmatprep.mubr.f32.mxu0 %v12155_v52  ;;  %v8277_v37 = vpack.c.bf16 %v6589_v2, %v6588_v60 }
0x1029   :  { %6376 = vmatprep.mubr.f32.mxu1 %v12155_v52  ;;  %v5956_v0 = vcombine.high %v5954_v51, %v5954_v51  ;;  %v5970_v36 = vrot.slane %v5954_v51, %v11604_v10  ;;  %v5977_v25 = vrot.slane %v5955_v43, %v11604_v10  ;;  %v5985_v12 = vcombine.high %v5963_v56, %v5963_v56 }
0x102a   :  { %7052 = vst.sshfl [vmem:[#allocation2 + $0xd] sm:$0x1 pattern:$0x73625140] %v5955_v43  ;;  %8216 = vmatpush1.bf16.msra.mxu0 %v11457_v1  ;;  %8248 = vmatpush1.bf16.msra.mxu1 %v11459_v45  ;;  %v6591_v43 = vld [vmem:[#allocation13 + $0x28] sm:$0xff] }
0x102b   :  { %7053 = vst.sshfl [vmem:[#allocation2 + $0x25] sm:$0x1 pattern:$0x73625140] %v5954_v51  ;;  %v5984_v29 = vrot.slane %v5956_v0, %v11604_v10  ;;  %v5986_v50 = vcombine.high %v5970_v36, %v5970_v36  ;;  %v5987_v21 = vcombine.high %v5977_v25, %v5977_v25  ;;  %5999 = vst [vmem:[#allocation2 + $0x15] sm:$0x1] %v5985_v12  ;;  %8218 = vmatprep.subr.bf16.mxu0 %v11463_v15 }
0x102c   :  { %7054 = vst.sshfl [vmem:[#allocation2 + $0x2d] sm:$0x1 pattern:$0x73625140] %v5956_v0  ;;  %8250 = vmatprep.subr.bf16.mxu1 %v11465_v40  ;;  %v6590_v51 = vld [vmem:[#allocation13 + $0x20] sm:$0xff]  ;;  %v6592_v0 = vld [vmem:[#allocation13 + $0x30] sm:$0xff] }
0x102d   :  { %v5988_v46 = vcombine.high %v5984_v29, %v5984_v29  ;;  %6000 = vst [vmem:[#allocation2 + $0x1d] sm:$0x1] %v5987_v21  ;;  %6003 = vst [vmem:[#allocation2 + $0x35] sm:$0x1] %v5986_v50  ;;  %v8280_v56 = vpack.c.bf16 %v6591_v43, %v6590_v51  ;;  %v6593_v36 = vld [vmem:[#allocation13 + $0x38] sm:$0xff]  ;;  %v6594_v12 = vld [vmem:[#allocation13 + $0x40] sm:$0xff] }
0x102e   :  { %8220 = vmatpush1.bf16.msra.mxu0 %v11471_v54  ;;  %8252 = vmatpush1.bf16.msra.mxu1 %v11473_v16  ;;  %v8283_v25 = vpack.c.bf16 %v6593_v36, %v6592_v0  ;;  %v6595_v29 = vld [vmem:[#allocation13 + $0x48] sm:$0xff]  ;;  %v6596_v21 = vld [vmem:[#allocation13 + $0x50] sm:$0xff] }
0x102f   :  { %6004 = vst [vmem:[#allocation2 + $0x3d] sm:$0x1] %v5988_v46  ;;  %8222 = vmatprep.subr.bf16.mxu0 %v11477_v62  ;;  %8254 = vmatprep.subr.bf16.mxu1 %v11479_v3  ;;  %v8286_v50 = vpack.c.bf16 %v6595_v29, %v6594_v12  ;;  %v6597_v46 = vld [vmem:[#allocation13 + $0x58] sm:$0xff] }
0x1032   :  { %8224 = vmatpush1.bf16.msra.mxu0 %v11483_v4  ;;  %8256 = vmatpush1.bf16.msra.mxu1 %v11485_v63 }
0x1033   :  { %8226 = vmatprep.subr.bf16.mxu0 %v11489_v7  ;;  %8258 = vmatprep.subr.bf16.mxu1 %v11491_v61 }
0x1036   :  { %8228 = vmatpush1.bf16.msra.mxu0 %v11495_v41  ;;  %8260 = vmatpush1.bf16.msra.mxu1 %v11497_v20 }
0x1037   :  { %8230 = vmatprep.subr.bf16.mxu0 %v11501_v58  ;;  %8262 = vmatprep.subr.bf16.mxu1 %v11503_v13 }
0x103a   :  { %8232 = vmatpush1.bf16.msra.mxu0 %v11507_v30  ;;  %8264 = vmatpush1.bf16.msra.mxu1 %v11509_v34 }
0x103b   :  { %8234 = vmatprep.subr.bf16.mxu0 %v11513_v55  ;;  %8266 = vmatprep.subr.bf16.mxu1 %v11515_v14 }
0x103e   :  { %8236 = vmatpush1.bf16.msra.mxu0 %v11519_v17  ;;  %8268 = vmatpush1.bf16.msra.mxu1 %v11521_v28 }
0x103f   :  { %8238 = vmatprep.subr.bf16.mxu0 %v11525_v22  ;;  %8270 = vmatprep.subr.bf16.mxu1 %v11527_v53 }
0x1042   :  { %8240 = vmatpush1.bf16.msra.mxu0 %v11531_v27  ;;  %8272 = vmatpush1.bf16.msra.mxu1 %v11533_v31 }
0x1043   :  { %8273 = vmatprep.subr.bf16.mxu0 %v9715_v49  ;;  %8297 = vmatprep.subr.bf16.mxu1 %v9715_v49 }
0x10f8   :  { %v6071_v1 = vpop.f32.mrb[46].mxu0  ;;  %v6142_v45 = vpop.f32.mrb[46].mxu1 }
0x10f9   :  { %v6147_v15 = vadd.f32 %v6071_v1, %v11584_v38  ;;  %v6073_v40 = vpop.f32.mrb[47].mxu0  ;;  %v6144_v54 = vpop.f32.mrb[47].mxu1  ;;  %v6149_v7 = vadd.f32 %v6142_v45, %v11597_v44  ;;  %v6598_v1 = vld [vmem:[#allocation13 + $0x60] sm:$0xff]  ;;  %v6599_v45 = vld [vmem:[#allocation13 + $0x68] sm:$0xff] }
0x10fa   :  { %v6148_v16 = vadd.f32 %v6073_v40, %v11586_v35  ;;  %v6150_v4 = vadd.f32 %v6144_v54, %v11592_v11  ;;  %v6600_v40 = vld [vmem:[#allocation13 + $0x70] sm:$0xff]  ;;  %v6601_v54 = vld [vmem:[#allocation13 + $0x78] sm:$0xff] }
0x10fb   :  { %v7055_v62 = vmul.f32 -1.442695, %v6147_v15  ;;  %v8292_v15 = vpack.c.bf16 %v6599_v45, %v6598_v1  ;;  %v7070_v45 = vld [vmem:[#allocation3] ss:$0 sm:$0xff] }
0x10fc   :  { %v7056_v3 = vmul.f32 -1.442695, %v6148_v16  ;;  %v7057_v63 = vmul.f32 -1.442695, %v6150_v4  ;;  %v8295_v16 = vpack.c.bf16 %v6601_v54, %v6600_v40  ;;  %v6680_v40 = vld [vmem:[#allocation15 + $0x8] sm:$0xff]  ;;  %v6681_v54 = vld [vmem:[#allocation15 + $0x10] sm:$0xff] }
0x10fd   :  { %9460 = vpow2.f32 %v7055_v62  ;;  %v9717_v62 = vmov 0  }
0x10fe   :  { %9462 = vpow2.f32 %v7056_v3  ;;  %8339 = vset.pattern.permute.xlu0 %v9717_v62  ;;  %v6682_v62 = vld [vmem:[#allocation15 + $0x18] sm:$0xff] }
0x10ff   :  { %9464 = vpow2.f32 %v7057_v63 }
0x1100   :  { %9466 = vtanh.f32 %v6149_v7 }
0x1107   :  { %v9461_v61 = vpop.eup %9460 }
0x1108   :  { %v9463_v41 = vpop.eup %9462  ;;  %v6154_v20 = vadd.f32 1.0, %v9461_v61 }
0x1109   :  { %v6160_v58 = vadd.f32 1.0, %v9463_v41  ;;  %v9465_v13 = vpop.eup %9464 }
0x110a   :  { %9468 = vrcp.f32 %v6154_v20  ;;  %v9467_v30 = vpop.eup %9466  ;;  %v6167_v17 = vadd.f32 1.0, %v9465_v13 }
0x110b   :  { %9470 = vrcp.f32 %v6160_v58 }
0x110c   :  { %9472 = vrcp.f32 %v6167_v17 }
0x1114   :  { %v9469_v34 = vpop.eup %9468 }
0x1115   :  { %v9471_v55 = vpop.eup %9470  ;;  %v6171_v14 = vmul.f32 %v9469_v34, %v9467_v30 }
0x1116   :  { %v6170_v28 = vmul.f32 %v9471_v55, %v11843_v18  ;;  %v9473_v53 = vpop.eup %9472  ;;  %v6587_v18 = vld [vmem:[#allocation13 + $0x8] sm:$0xff] }
0x1117   :  { %v8274_v47 = vpack.c.bf16 %v6587_v18, %v6586_v57 }
0x1118   :  { %v11889_v22 = vadd.f32 %v6171_v14, %v6170_v28 }
0x111a   :  { %9474 = vtanh.f32 %v11889_v22 }
0x1124   :  { %v9475_v27 = vpop.eup %9474 }
0x1125   :  { %v6174_v31 = vmul.f32 %v9475_v27, %v9473_v53 }
0x1127   :  { %v6176_v23 = vcombine.high %v6174_v31, %v6174_v31  ;;  %v6183_v8 = vrot.slane %v6174_v31, %v11604_v10  ;;  %6306 = vmatmul.mubr.f32.vlgmr.msra.gmra.mrb[48].mxu0 %v6174_v31  ;;  %6377 = vmatmul.mubr.f32.vlgmr.msra.gmra.mrb[48].mxu1 %v6174_v31 }
0x1128   :  { %8275 = vmatpush3.bf16.msra.mxu0 %v8274_v47  ;;  %7139 = vmatprep.mubr.msk.f32.mxu0 %vm9716_vm8, %v12155_v52  ;;  %v7069_v47 = vld [vmem:[%s11976_s7] ss:$0 sm:$0xff] }
0x1129   :  { %v6190_v59 = vrot.slane %v6176_v23, %v11604_v10  ;;  %v6191_v26 = vcombine.high %v6183_v8, %v6183_v8  ;;  %v6199_v9 = vrot.slane %v6183_v8, %v11604_v10  ;;  %7058 = vst.sshfl [vmem:[#allocation2 + $0x6] sm:$0x1 pattern:$0x73625140] %v6183_v8  ;;  %8276 = vmatprep.subr.bf16.mxu0 %v9715_v49 }
0x112a   :  { %7174 = vmatprep.mubr.msk.f32.mxu1 %vm9716_vm8, %v12155_v52  ;;  %v8289_v52 = vpack.c.bf16 %v6597_v46, %v6596_v21 }
0x112b   :  { %v6192_v48 = vcombine.high %v6190_v59, %v6190_v59  ;;  %v6206_v6 = vrot.slane %v6190_v59, %v11604_v10  ;;  %v6213_v24 = vrot.slane %v6191_v26, %v11604_v10  ;;  %v6221_v42 = vcombine.high %v6199_v9, %v6199_v9  ;;  %7059 = vst.sshfl [vmem:[#allocation2 + $0xe] sm:$0x1 pattern:$0x73625140] %v6191_v26 }
0x112c   :  { %7060 = vst.sshfl [vmem:[#allocation2 + $0x26] sm:$0x1 pattern:$0x73625140] %v6190_v59  ;;  %8278 = vmatpush3.bf16.msra.mxu0 %v8277_v37 }
0x112d   :  { %v6220_v32 = vrot.slane %v6192_v48, %v11604_v10  ;;  %v6222_v19 = vcombine.high %v6206_v6, %v6206_v6  ;;  %v6223_v39 = vcombine.high %v6213_v24, %v6213_v24  ;;  %6235 = vst [vmem:[#allocation2 + $0x16] sm:$0x1] %v6221_v42  ;;  %7061 = vst.sshfl [vmem:[#allocation2 + $0x2e] sm:$0x1 pattern:$0x73625140] %v6192_v48  ;;  %8279 = vmatprep.subr.bf16.mxu0 %v9715_v49 }
0x112f   :  { %v6224_v5 = vcombine.high %v6220_v32, %v6220_v32  ;;  %6236 = vst [vmem:[#allocation2 + $0x1e] sm:$0x1] %v6223_v39  ;;  %6239 = vst [vmem:[#allocation2 + $0x36] sm:$0x1] %v6222_v19 }
0x1130   :  { %8281 = vmatpush3.bf16.msra.mxu0 %v8280_v56 }
0x1131   :  { %6240 = vst [vmem:[#allocation2 + $0x3e] sm:$0x1] %v6224_v5  ;;  %8282 = vmatprep.subr.bf16.mxu0 %v9715_v49 }
0x1134   :  { %8284 = vmatpush3.bf16.msra.mxu0 %v8283_v25 }
0x1135   :  { %8285 = vmatprep.subr.bf16.mxu0 %v9715_v49 }
0x1138   :  { %8287 = vmatpush3.bf16.msra.mxu0 %v8286_v50 }
0x1139   :  { %8288 = vmatprep.subr.bf16.mxu0 %v9715_v49 }
0x113c   :  { %8290 = vmatpush3.bf16.msra.mxu0 %v8289_v52 }
0x113d   :  { %8291 = vmatprep.subr.bf16.mxu0 %v9715_v49 }
0x1140   :  { %8293 = vmatpush3.bf16.msra.mxu0 %v8292_v15  ;;  %v6679_v15 = vld [vmem:[#allocation15] sm:$0xff] }
0x1141   :  { %8294 = vmatprep.subr.bf16.mxu0 %v9715_v49 }
0x1144   :  { %8296 = vmatpush3.bf16.msra.mxu0 %v8295_v16  ;;  %v8298_v16 = vpack.c.bf16 %v6680_v40, %v6679_v15 }
0x1146   :  { %8299 = vmatpush3.bf16.msra.mxu1 %v8298_v16 }
0x1147   :  { %8300 = vmatprep.subr.bf16.mxu1 %v9715_v49 }
0x11fa   :  { %v6307_v3 = vpop.f32.mrb[48].mxu0  ;;  %v6378_v4 = vpop.f32.mrb[48].mxu1 }
0x11fb   :  { %v6383_v63 = vadd.f32 %v6307_v3, %v11584_v38  ;;  %v6309_v7 = vpop.f32.mrb[49].mxu0  ;;  %v6380_v61 = vpop.f32.mrb[49].mxu1  ;;  %v6385_v34 = vadd.f32 %v6378_v4, %v11597_v44  ;;  %v8301_v3 = vpack.c.bf16 %v6682_v62, %v6681_v54  ;;  %v6683_v4 = vld [vmem:[#allocation15 + $0x20] sm:$0xff] }
0x11fc   :  { %v6384_v41 = vadd.f32 %v6309_v7, %v11586_v35  ;;  %v6386_v13 = vadd.f32 %v6380_v61, %v11592_v11  ;;  %v6685_v61 = vld [vmem:[#allocation15 + $0x30] sm:$0xff] }
0x11fd   :  { %v7062_v20 = vmul.f32 -1.442695, %v6383_v63  ;;  %v6684_v63 = vld [vmem:[#allocation15 + $0x28] sm:$0xff]  ;;  %8302 = vmatpush3.bf16.msra.mxu1 %v8301_v3 }
0x11fe   :  { %v7063_v58 = vmul.f32 -1.442695, %v6384_v41  ;;  %v7064_v30 = vmul.f32 -1.442695, %v6386_v13  ;;  %v8304_v7 = vpack.c.bf16 %v6684_v63, %v6683_v4  ;;  %8303 = vmatprep.subr.bf16.mxu1 %v9715_v49  ;;  %v6686_v41 = vld [vmem:[#allocation15 + $0x38] sm:$0xff]  ;;  %v6688_v13 = vld [vmem:[#allocation15 + $0x48] sm:$0xff] }
0x11ff   :  { %9476 = vpow2.f32 %v7062_v20  ;;  %v8307_v20 = vpack.c.bf16 %v6686_v41, %v6685_v61 }
0x1200   :  { %9478 = vpow2.f32 %v7063_v58  ;;  %v6687_v58 = vld [vmem:[#allocation15 + $0x40] sm:$0xff] }
0x1201   :  { %9480 = vpow2.f32 %v7064_v30  ;;  %8305 = vmatpush3.bf16.msra.mxu1 %v8304_v7  ;;  %v8310_v30 = vpack.c.bf16 %v6688_v13, %v6687_v58 }
0x1202   :  { %9482 = vtanh.f32 %v6385_v34  ;;  %8306 = vmatprep.subr.bf16.mxu1 %v9715_v49  ;;  %v6689_v34 = vld [vmem:[#allocation15 + $0x50] sm:$0xff] }
0x1205   :  { %8308 = vmatpush3.bf16.msra.mxu1 %v8307_v20 }
0x1206   :  { %8309 = vmatprep.subr.bf16.mxu1 %v9715_v49 }
0x1209   :  { %v9477_v55 = vpop.eup %9476  ;;  %8311 = vmatpush3.bf16.msra.mxu1 %v8310_v30 }
0x120a   :  { %v9479_v14 = vpop.eup %9478  ;;  %v6390_v17 = vadd.f32 1.0, %v9477_v55  ;;  %v6690_v55 = vld [vmem:[#allocation15 + $0x58] sm:$0xff]  ;;  %8312 = vmatprep.subr.bf16.mxu1 %v9715_v49 }
0x120b   :  { %v6396_v28 = vadd.f32 1.0, %v9479_v14  ;;  %v9481_v38 = vpop.eup %9480  ;;  %v8313_v14 = vpack.c.bf16 %v6690_v55, %v6689_v34 }
0x120c   :  { %9484 = vrcp.f32 %v6390_v17  ;;  %v9483_v53 = vpop.eup %9482  ;;  %v6403_v23 = vadd.f32 1.0, %v9481_v38  ;;  %v6691_v17 = vld [vmem:[#allocation15 + $0x60] sm:$0xff] }
0x120d   :  { %9486 = vrcp.f32 %v6396_v28  ;;  %v6692_v28 = vld [vmem:[#allocation15 + $0x68] sm:$0xff]  ;;  %8314 = vmatpush3.bf16.msra.mxu1 %v8313_v14 }
0x120e   :  { %9488 = vrcp.f32 %v6403_v23  ;;  %v8316_v38 = vpack.c.bf16 %v6692_v28, %v6691_v17  ;;  %8315 = vmatprep.subr.bf16.mxu1 %v9715_v49 }
0x1211   :  { %8317 = vmatpush3.bf16.msra.mxu1 %v8316_v38 }
0x1212   :  { %8318 = vmatprep.subr.bf16.mxu1 %v9715_v49 }
0x1216   :  { %v9485_v35 = vpop.eup %9484 }
0x1217   :  { %v9487_v27 = vpop.eup %9486  ;;  %v6407_v31 = vmul.f32 %v9485_v35, %v9483_v53  ;;  %v6693_v53 = vld [vmem:[#allocation15 + $0x70] sm:$0xff]  ;;  %v6694_v35 = vld [vmem:[#allocation15 + $0x78] sm:$0xff] }
0x1218   :  { %v6406_v8 = vmul.f32 %v9487_v27, %v11889_v22  ;;  %v9489_v44 = vpop.eup %9488  ;;  %v8319_v27 = vpack.c.bf16 %v6694_v35, %v6693_v53 }
0x121a   :  { %v6408_v11 = vadd.f32 %v6407_v31, %v6406_v8  ;;  %8320 = vmatpush3.bf16.msra.mxu1 %v8319_v27 }
0x121c   :  { %9490 = vtanh.f32 %v6408_v11 }
0x1226   :  { %v9491_v59 = vpop.eup %9490 }
0x1227   :  { %v6410_v26 = vmul.f32 %v9491_v59, %v9489_v44  ;;  %v12399_v59 = vlaneseq }
0x1229   :  { %v6412_v9 = vcombine.high %v6410_v26, %v6410_v26  ;;  %v6419_v48 = vrot.slane %v6410_v26, %v11604_v10  ;;  %7140 = vmatmul.mubr.f32.vlgmr.msra.gmra.mrb[50].mxu0 %v6410_v26  ;;  %v6543_v26 = vand.u32 127, %v12399_v59 }
0x122b   :  { %v6426_v6 = vrot.slane %v6412_v9, %v11604_v10  ;;  %v6427_v24 = vcombine.high %v6419_v48, %v6419_v48  ;;  %v6435_v42 = vrot.slane %v6419_v48, %v11604_v10  ;;  %7065 = vst.sshfl [vmem:[#allocation2 + $0x7] sm:$0x1 pattern:$0x73625140] %v6419_v48 }
0x122d   :  { %v6428_v32 = vcombine.high %v6426_v6, %v6426_v6  ;;  %v6442_v19 = vrot.slane %v6426_v6, %v11604_v10  ;;  %v6449_v22 = vrot.slane %v6427_v24, %v11604_v10  ;;  %v6457_v39 = vcombine.high %v6435_v42, %v6435_v42  ;;  %7066 = vst.sshfl [vmem:[#allocation2 + $0xf] sm:$0x1 pattern:$0x73625140] %v6427_v24 }
0x122e   :  { %7067 = vst.sshfl [vmem:[#allocation2 + $0x27] sm:$0x1 pattern:$0x73625140] %v6426_v6  ;;  %v6546_v6 = vsub.s32 %v6543_v26, %v12394_v33 }
0x122f   :  { %v6456_v5 = vrot.slane %v6428_v32, %v11604_v10  ;;  %v6458_v57 = vcombine.high %v6442_v19, %v6442_v19  ;;  %v6459_v18 = vcombine.high %v6449_v22, %v6449_v22  ;;  %6471 = vst [vmem:[#allocation2 + $0x17] sm:$0x1] %v6457_v39  ;;  %7068 = vst.sshfl [vmem:[#allocation2 + $0x2f] sm:$0x1 pattern:$0x73625140] %v6428_v32 }
0x1231   :  { %v6460_v60 = vcombine.high %v6456_v5, %v6456_v5  ;;  %6472 = vst [vmem:[#allocation2 + $0x1f] sm:$0x1] %v6459_v18  ;;  %6475 = vst [vmem:[#allocation2 + $0x37] sm:$0x1] %v6458_v57 }
0x1232   :  { %v6477_v2 = vld [vmem:[#allocation2] sm:$0xff] }
0x1233   :  { %6476 = vst [vmem:[#allocation2 + $0x3f] sm:$0x1] %v6460_v60  ;;  %v6492_v37 = vmul.f32 %v7069_v47, %v6477_v2 }
0x1234   :  { %v6478_v51 = vld [vmem:[#allocation2 + $0x8] sm:$0xff] }
0x1235   :  { %6500 = vadd.xlane.f32.xlu0 %v6492_v37  ;;  %v6493_v0 = vmul.f32 %v7069_v47, %v6478_v51  ;;  %v6481_v10 = vld [vmem:[#allocation2 + $0x20] sm:$0xff] }
0x1236   :  { %v6479_v43 = vld [vmem:[#allocation2 + $0x10] sm:$0xff]  ;;  %v6482_v36 = vld [vmem:[#allocation2 + $0x28] sm:$0xff]  ;;  %v6496_v25 = vmul.f32 %v7069_v47, %v6481_v10 }
0x1237   :  { %v6494_v56 = vmul.f32 %v7069_v47, %v6479_v43  ;;  %v6497_v12 = vmul.f32 %v7069_v47, %v6482_v36 }
0x1238   :  { %v6483_v29 = vld [vmem:[#allocation2 + $0x30] sm:$0xff]  ;;  %v6480_v50 = vld [vmem:[#allocation2 + $0x18] sm:$0xff] }
0x1239   :  { %6504 = vadd.xlane.f32.xlu1 %v6494_v56  ;;  %6502 = vadd.xlane.f32.xlu0 %v6493_v0  ;;  %v6498_v21 = vmul.f32 %v7069_v47, %v6483_v29  ;;  %v6495_v46 = vmul.f32 %v7069_v47, %v6480_v50 }
0x123a   :  { %v6484_v52 = vld [vmem:[#allocation2 + $0x38] sm:$0xff] }
0x123b   :  { %v6499_v1 = vmul.f32 %v7069_v47, %v6484_v52 }
0x123d   :  { %6508 = vadd.xlane.f32.xlu0 %v6496_v25  ;;  %6510 = vadd.xlane.f32.xlu1 %v6497_v12 }
0x1241   :  { %6512 = vadd.xlane.f32.xlu0 %v6498_v21  ;;  %6506 = vadd.xlane.f32.xlu1 %v6495_v46  ;;  %v7071_v21 = vld [vmem:[%s11979_s10] ss:$0 sm:$0xff] }
0x1245   :  { %6514 = vadd.xlane.f32.xlu1 %v6499_v1 }
0x1257   :  { %6523 = vperm.xlu0 %8339, %v7070_v45  }
0x12c2   :  { %v6501_v31 = vpop.xlane.xlu0 %6500 }
0x12c6   :  { %v6503_v23 = vpop.xlane.xlu0 %6502  ;;  %v6505_v8 = vpop.xlane.xlu1 %6504 }
0x12ca   :  { %v6509_v11 = vpop.xlane.xlu0 %6508  ;;  %v6511_v44 = vpop.xlane.xlu1 %6510 }
0x12ce   :  { %v6513_v9 = vpop.xlane.xlu0 %6512  ;;  %v6507_v48 = vpop.xlane.xlu1 %6506 }
0x12d2   :  { %v6515_v47 = vpop.xlane.xlu1 %6514 }
0x12d6   :  { %v6524_v24 = vpop.permute.xlu0 %6523 }
0x12d7   :  { %v6526_v42 = vadd.f32 %v6524_v24, %v6501_v31  ;;  %v6527_v32 = vadd.f32 %v6524_v24, %v6503_v23  ;;  %v6528_v19 = vadd.f32 %v6524_v24, %v6505_v8  ;;  %v6529_v49 = vadd.f32 %v6524_v24, %v6507_v48 }
0x12d8   :  { %v6530_v22 = vadd.f32 %v6524_v24, %v6509_v11  ;;  %v6531_v18 = vadd.f32 %v6524_v24, %v6511_v44  ;;  %v6532_v60 = vadd.f32 %v6524_v24, %v6513_v9  ;;  %v6533_v2 = vadd.f32 %v6524_v24, %v6515_v47 }
0x12d9   :  { %v6547_v39 = vrot.slane %v6526_v42, %v6546_v6  ;;  %v6551_v5 = vrot.slane %v6527_v32, %v6546_v6  ;;  %v6555_v57 = vrot.slane %v6528_v19, %v6546_v6  ;;  %v6559_v37 = vrot.slane %v6529_v49, %v6546_v6 }
0x12da   :  { %v6563_v43 = vrot.slane %v6530_v22, %v6546_v6  ;;  %v6567_v33 = vrot.slane %v6531_v18, %v6546_v6  ;;  %v6571_v10 = vrot.slane %v6532_v60, %v6546_v6  ;;  %v6575_v25 = vrot.slane %v6533_v2, %v6546_v6 }
0x12db   :  { %v6576_v51 = vsel %vm937_vm1, %v6551_v5, %v6547_v39 }
0x12dc   :  { %v6577_v56 = vsel %vm940_vm2, %v6555_v57, %v6576_v51 }
0x12dd   :  { %v6578_v0 = vsel %vm943_vm3, %v6559_v37, %v6577_v56 }
0x12de   :  { %v6579_v36 = vsel %vm946_vm4, %v6563_v43, %v6578_v0 }
0x12df   :  { %v6580_v12 = vsel %vm949_vm5, %v6567_v33, %v6579_v36 }
0x12e0   :  { %v6581_v29 = vsel %vm952_vm6, %v6571_v10, %v6580_v12 }
0x12e1   :  { %v6582_v50 = vsel %vm955_vm7, %v6575_v25, %v6581_v29 }
0x12e2   :  { %6585 = vst.msk [vmem:[#allocation16] sm:$0xff] %vm6584_vm9, %v6582_v50 }
0x12fc   :  { %v6675_v46 = vpop.f32.mrb[50].mxu0 }
0x12fd   :  { %v6676_v52 = vadd.f32 %v7071_v21, %v6675_v46  ;;  %v7141_v1 = vpop.f32.mrb[51].mxu0 }
0x12ff   :  { %7175 = vmatmul.mubr.f32.vlgmr.msra.gmra.mrb[50].mxu1 %v6676_v52 }
0x1300   :  { %9657 = shalt.err (!%p9654_p4)
}
0x1301   :  { %s9658_s2 = scalar_lea.hbm %s11982_s13, 128 }
0x1302   :  { %p9659_p5 = scmp.ne.s32.totalorder %s11982_s13, %s9658_s2  ;;  %p9662_p6 = scmp.lt.u32.totalorder %s9658_s2, %s11982_s13 }
0x1304   :  { %p9664_p7 = pnand %p9662_p6, %p9659_p5 }
0x1306   :  { %9667 = shalt.err (!%p9664_p7)
}
0x1307   :  { %6782 = dma.vmem_to_hbm [thread:$0]  %s6780_s4, 128, %s11982_s13, [#allocation6]   ;;  %v7072_v45 = vld [vmem:[%s11981_s12] ss:$0 sm:$0xff] }
0x1308   :  { %s9719_s17 = smov [#allocation17]  }
0x1309   :  { %s6789_s18 = sshll.u32 %s9719_s17, 4  ;;  %s6790_s18 = int_to_ptr.vmem [resolvable:$true] %s6789_s18 }
0x130a   :  { %s9668_s9 = scalar_lea.vmem %s6790_s18, 128  ;;  %p9673_p9 = scmp.lt.s32.totalorder %s6790_s18, %s6790_s18 }
0x130b   :  { %p9669_p8 = scmp.ne.s32.totalorder %s6790_s18, %s9668_s9  ;;  %p9674_p10 = scmp.lt.s32.totalorder %s9668_s9, %s9668_s9 }
0x130d   :  { %p9675_p11 = por %p9674_p10, %p9673_p9 }
0x130f   :  { %p9676_p12 = pnand %p9675_p11, %p9669_p8 }
0x13d2   :  { %v6768_v15 = vpop.f32.mrb[50].mxu1 }
0x13d3   :  { %v6769_v40 = vadd.f32 %v7072_v45, %v6768_v15  ;;  %v7176_v54 = vpop.f32.mrb[51].mxu1 }
0x13d5   :  { %6772 = vst [vmem:[#allocation17] sm:$0xff] %v6769_v40 }
0x13d6   :  { %9679 = shalt.err (!%p9676_p12)
}
0x13d7   :  { %s9680_s5 = scalar_lea.hbm %s11983_s14, 128 }
0x13d8   :  { %p9681_p13 = scmp.ne.s32.totalorder %s11983_s14, %s9680_s5  ;;  %p9684_p0 = scmp.lt.u32.totalorder %s9680_s5, %s11983_s14 }
0x13da   :  { %p9686_p1 = pnand %p9684_p0, %p9681_p13 }
0x13dc   :  { %9689 = shalt.err (!%p9686_p1)
}
0x13dd   :  { %6792 = dma.vmem_to_hbm [thread:$0]  %s6790_s18, 128, %s11983_s14, [#allocation18]  }
0x13de   :  { %9698 = dma.done.wait [#allocation6], 128  }
0x13df   :  { %9699 = vsyncadd [#allocation6], 4294967168 }
0x13e0   :  { %9700 = dma.done.wait [#allocation18], 128  }
0x13e1   :  { %9701 = vsyncadd [#allocation18], 4294967168 }
0x13e2   :  { %6799 = vsyncpa [#allocation5], 1 }
0x13e3   :  { %6800 = vsyncpa [#allocation8], 1 }
0x13e4   :  { %6801 = vsyncpa [#allocation11], 1 }
0x13e5   :  { %6802 = vsyncpa [#allocation14], 1 }
0x13e6   :  { %6803 = vsyncpa [#allocation6], 1 }
0x13e7   :  { %6804 = vsyncpa [#allocation18], 1 }

</bundles_post_ra>
